<compile_context>
chip_gen: v5e
topology: v5e:2x2
jax: 0.10.0
libtpu: 0.0.40
codegen_flags: <defaults>
</compile_context>

<pallas_src>
import functools

import jax
import jax.numpy as jnp
from jax import lax
from jax.experimental import pallas as pl
from jax.experimental.pallas import tpu as pltpu

DIM = 256          # hidden dim (hard-coded in the PyTorch module)
LSTM_HIDDEN = 256  # lstm hidden (hard-coded in the PyTorch module)
LAYER_NUM = 4      # number of GeniePath layers


# ----------------------------------------------------------------------------
# Pallas kernels
# ----------------------------------------------------------------------------
def _linear_kernel(x_ref, w_ref, b_ref, o_ref):
    # o = x @ W + b   (W pre-transposed to [in, out] bf16, b as [1, out] f32)
    o_ref[...] = (
        jnp.dot(x_ref[...].astype(jnp.bfloat16), w_ref[...],
                preferred_element_type=jnp.float32)
        + b_ref[...]
    )


def _pallas_linear(x, w_t_bf16, b_row):
    """x: [N, in] f32, w_t_bf16: [in, out] bf16, b_row: [1, out] f32 -> [N, out] f32."""
    n = x.shape[0]
    out = w_t_bf16.shape[1]
    vmem = pl.BlockSpec(memory_space=pltpu.MemorySpace.VMEM)
    return pl.pallas_call(
        _linear_kernel,
        out_shape=jax.ShapeDtypeStruct((n, out), jnp.float32),
        in_specs=[vmem, vmem, vmem],
        out_specs=vmem,
    )(x, w_t_bf16, b_row)


def _geniepath_stack_kernel(
    x0_ref, adj_ref, wgat_ref, att_src_ref, att_dst_ref, gat_b_ref, wgates_ref,
    x_out_ref, x_scr, h_scr, c_scr,
):
    """Grid axis = layer index.  One step = GATConv(heads=1) -> tanh -> LSTM step.

    x0       [N, D]      lin1 output (read once at l == 0)
    adj      [N, N]      adj[i, j] = 1 if edge j -> i (self loops included), resident
    wgat     [D, D]      layer-l GAT weight, [in, out] layout, bf16
    att_src  [1, D]      layer-l attention vector (source side), f32
    att_dst  [1, D]      layer-l attention vector (target side), f32
    gat_b    [1, D]      layer-l GAT output bias, f32
    wgates   [2D, 4H]    layer-l fused LSTM weight [w_ih.T ; w_hh.T], bf16
    x_scr/h_scr/c_scr    VMEM-resident running state (f32)
    """
    H = LSTM_HIDDEN
    l = pl.program_id(0)

    @pl.when(l == 0)
    def _():
        x_scr[...] = x0_ref[...]
        h_scr[...] = jnp.zeros_like(h_scr)
        c_scr[...] = jnp.zeros_like(c_scr)

    x = x_scr[...]

    # ---- GATConv (dense-adjacency formulation), bf16 MXU / f32 accumulate ----
    xw = jnp.dot(x.astype(jnp.bfloat16), wgat_ref[...],
                 preferred_element_type=jnp.float32)                       # [N, D]
    a_dst = jnp.sum(xw * att_dst_ref[...], axis=-1, keepdims=True)         # [N, 1]
    # Lane-major [1, N] row produced directly on the MXU (no XLU transpose).
    a_src_row = lax.dot_general(att_src_ref[...], xw,
                                (((1,), (1,)), ((), ())),
                                preferred_element_type=jnp.float32)        # [1, N]

    score = a_dst + a_src_row                                              # [N, N]
    score = jnp.where(score > 0, score, 0.2 * score)                       # LeakyReLU
    score = jnp.where(adj_ref[...] > 0, score, jnp.float32(-1e30))         # edge mask
    score = score - jnp.max(score, axis=-1, keepdims=True)                 # stable
    p = jnp.exp(score)                                                     # 0 off-edges
    inv_denom = pl.reciprocal(jnp.sum(p, axis=-1, keepdims=True), approx=True)
    attn = p * inv_denom                                                   # softmax
    agg = jnp.dot(attn.astype(jnp.bfloat16), xw.astype(jnp.bfloat16),
                  preferred_element_type=jnp.float32)                      # [N, D]
    gat_out = jnp.tanh(agg + gat_b_ref[...])

    # ---- single-step bias-free LSTM, fused gate matmul (K = 2D) ----
    zin = jnp.concatenate(
        [gat_out.astype(jnp.bfloat16), h_scr[...].astype(jnp.bfloat16)], axis=-1)
    gates = jnp.dot(zin, wgates_ref[...], preferred_element_type=jnp.float32)  # [N, 4H]
    i_g = jax.nn.sigmoid(gates[:, 0:H])
    f_g = jax.nn.sigmoid(gates[:, H:2 * H])
    g_g = jnp.tanh(gates[:, 2 * H:3 * H])
    o_g = jax.nn.sigmoid(gates[:, 3 * H:4 * H])

    c_new = f_g * c_scr[...] + i_g * g_g
    h_new = o_g * jnp.tanh(c_new)

    x_scr[...] = h_new          # LSTM output == next layer's GAT input (seq_len == 1)
    h_scr[...] = h_new
    c_scr[...] = c_new

    @pl.when(l == pl.num_programs(0) - 1)
    def _():
        x_out_ref[...] = h_new


def _pallas_geniepath_stack(x0, adj, wgat_s, att_src_s, att_dst_s, gat_b_s, wgates_s):
    n = x0.shape[0]
    num_layers = wgat_s.shape[0]
    return pl.pallas_call(
        _geniepath_stack_kernel,
        out_shape=jax.ShapeDtypeStruct((n, DIM), jnp.float32),
        grid_spec=pltpu.PrefetchScalarGridSpec(
            num_scalar_prefetch=0,
            grid=(num_layers,),
            in_specs=[
                pl.BlockSpec((n, DIM), lambda l: (0, 0)),                  # x0 (resident)
                pl.BlockSpec((n, n), lambda l: (0, 0)),                    # adj (resident)
                pl.BlockSpec((None, DIM, DIM), lambda l: (l, 0, 0)),       # w_gat[l]
                pl.BlockSpec((None, 1, DIM), lambda l: (l, 0, 0)),         # att_src[l]
                pl.BlockSpec((None, 1, DIM), lambda l: (l, 0, 0)),         # att_dst[l]
                pl.BlockSpec((None, 1, DIM), lambda l: (l, 0, 0)),         # gat_bias[l]
                pl.BlockSpec((None, 2 * DIM, 4 * LSTM_HIDDEN),
                             lambda l: (l, 0, 0)),                         # fused LSTM W[l]
            ],
            out_specs=pl.BlockSpec((n, DIM), lambda l: (0, 0)),
            scratch_shapes=[
                pltpu.VMEM((n, DIM), jnp.float32),          # x (running GAT input)
                pltpu.VMEM((n, LSTM_HIDDEN), jnp.float32),  # h
                pltpu.VMEM((n, LSTM_HIDDEN), jnp.float32),  # c
            ],
        ),
        compiler_params=pltpu.CompilerParams(
            dimension_semantics=("arbitrary",)),
    )(x0, adj, wgat_s, att_src_s, att_dst_s, gat_b_s, wgates_s)


# ----------------------------------------------------------------------------
# One-time parameter preparation (layouts / stacking / bf16 / padding) — OUTSIDE jit
# ----------------------------------------------------------------------------
def prepare_params(params):
    layers = params["layers"]
    out_dim = params["lin2_w"].shape[0]
    out_pad = ((out_dim + 127) // 128) * 128  # lane-dense lin2 output

    lin2_wt = jnp.zeros((DIM, out_pad), jnp.float32).at[:, :out_dim].set(
        params["lin2_w"].T)
    lin2_b = jnp.zeros((1, out_pad), jnp.float32).at[:, :out_dim].set(
        params["lin2_b"])

    return {
        "lin1_wt": params["lin1_w"].T.astype(jnp.bfloat16),                   # [in, D]
        "lin1_b": params["lin1_b"].reshape(1, DIM).astype(jnp.float32),
        "lin2_wt": lin2_wt.astype(jnp.bfloat16),                              # [D, 128]
        "lin2_b": lin2_b,
        "wgat_s": jnp.stack(
            [lp["w_gat"].T for lp in layers]).astype(jnp.bfloat16),           # [L, D, D]
        "att_src_s": jnp.stack(
            [lp["att_src"].reshape(1, DIM) for lp in layers]).astype(jnp.float32),
        "att_dst_s": jnp.stack(
            [lp["att_dst"].reshape(1, DIM) for lp in layers]).astype(jnp.float32),
        "gat_b_s": jnp.stack(
            [lp["gat_bias"].reshape(1, DIM) for lp in layers]).astype(jnp.float32),
        "wgates_s": jnp.stack(
            [jnp.concatenate([lp["w_ih"].T, lp["w_hh"].T], axis=0)
             for lp in layers]).astype(jnp.bfloat16),                         # [L, 2D, 4H]
    }


# ----------------------------------------------------------------------------
# Full GeniePath forward
# ----------------------------------------------------------------------------
@functools.partial(jax.jit, static_argnames=("out_dim",))
def geniepath_forward(x, adj, prep, out_dim):
    x = _pallas_linear(x, prep["lin1_wt"], prep["lin1_b"])
    x = _pallas_geniepath_stack(
        x, adj,
        prep["wgat_s"], prep["att_src_s"], prep["att_dst_s"],
        prep["gat_b_s"], prep["wgates_s"])
    y = _pallas_linear(x, prep["lin2_wt"], prep["lin2_b"])
    return y[:, :out_dim]


# ----------------------------------------------------------------------------
# Pure-JAX reference (same math; weights bf16-rounded to match MXU operand
# precision, all arithmetic in f32) for the correctness check.
# ----------------------------------------------------------------------------
def geniepath_reference(x, adj, params):
    def q(w):  # match kernel's bf16 weight rounding
        return w.astype(jnp.bfloat16).astype(jnp.float32)

    H = LSTM_HIDDEN
    x = x @ q(params["lin1_w"]).T + params["lin1_b"]
    n = x.shape[0]
    h = jnp.zeros((n, H), jnp.float32)
    c = jnp.zeros((n, H), jnp.float32)
    for lp in params["layers"]:
        xw = x @ q(lp["w_gat"]).T
        a_src = jnp.sum(xw * lp["att_src"], axis=-1)
        a_dst = jnp.sum(xw * lp["att_dst"], axis=-1)
        score = a_dst[:, None] + a_src[None, :]
        score = jnp.where(score > 0, score, 0.2 * score)
        score = jnp.where(adj > 0, score, -1e30)
        score = score - jnp.max(score, axis=-1, keepdims=True)
        p = jnp.exp(score) * adj
        attn = p / jnp.sum(p, axis=-1, keepdims=True)
        gat_out = jnp.tanh(attn @ xw + lp["gat_bias"])
        gates = gat_out @ q(lp["w_ih"]).T + h @ q(lp["w_hh"]).T
        i_g = jax.nn.sigmoid(gates[:, 0:H])
        f_g = jax.nn.sigmoid(gates[:, H:2 * H])
        g_g = jnp.tanh(gates[:, 2 * H:3 * H])
        o_g = jax.nn.sigmoid(gates[:, 3 * H:4 * H])
        c = f_g * c + i_g * g_g
        h = o_g * jnp.tanh(c)
        x = h
    return x @ q(params["lin2_w"]).T + params["lin2_b"]


# ----------------------------------------------------------------------------
# Deterministic parameter / input construction (PyTorch layouts)
# ----------------------------------------------------------------------------
def make_params(key, in_dim, out_dim):
    ks = jax.random.split(key, 4 + 6 * LAYER_NUM)
    s = 0.1
    params = {
        "lin1_w": jax.random.normal(ks[0], (DIM, in_dim), jnp.float32) * s,
        "lin1_b": jax.random.normal(ks[1], (DIM,), jnp.float32) * s,
        "lin2_w": jax.random.normal(ks[2], (out_dim, DIM), jnp.float32) * s,
        "lin2_b": jax.random.normal(ks[3], (out_dim,), jnp.float32) * s,
        "layers": [],
    }
    for l in range(LAYER_NUM):
        o = 4 + 6 * l
        params["layers"].append({
            "w_gat": jax.random.normal(ks[o + 0], (DIM, DIM), jnp.float32) * s,
            "att_src": jax.random.normal(ks[o + 1], (DIM,), jnp.float32) * s,
            "att_dst": jax.random.normal(ks[o + 2], (DIM,), jnp.float32) * s,
            "gat_bias": jax.random.normal(ks[o + 3], (DIM,), jnp.float32) * s,
            "w_ih": jax.random.normal(ks[o + 4], (4 * LSTM_HIDDEN, DIM), jnp.float32) * s,
            "w_hh": jax.random.normal(ks[o + 5], (4 * LSTM_HIDDEN, LSTM_HIDDEN), jnp.float32) * s,
        })
    return params


def make_adjacency(edge_index, num_nodes):
    """Dense adjacency mask adj[dst, src] with self-loops (GATConv default)."""
    src, dst = edge_index
    adj = jnp.zeros((num_nodes, num_nodes), jnp.float32).at[dst, src].set(1.0)
    return jnp.maximum(adj, jnp.eye(num_nodes, dtype=jnp.float32))


if __name__ == "__main__":
    N = 128          # nodes
    IN_DIM = 32      # raw node feature dim
    OUT_DIM = 16     # number of output classes

    key = jax.random.PRNGKey(0)
    k_x, k_p = jax.random.split(key)

    x = jax.random.normal(k_x, (N, IN_DIM), jnp.float32)

    # Deterministic bidirectional ring graph as edge_index [2, E].
    idx = jnp.arange(N)
    src = jnp.concatenate([idx, (idx + 1) % N])
    dst = jnp.concatenate([(idx + 1) % N, idx])
    edge_index = jnp.stack([src, dst])
    adj = make_adjacency(edge_index, N)

    params = make_params(k_p, IN_DIM, OUT_DIM)
    prep = prepare_params(params)   # one-time layout / bf16 / stacking, outside jit

    out = geniepath_forward(x, adj, prep, out_dim=OUT_DIM)
    out = jax.block_until_ready(out)

    ref = geniepath_reference(x, adj, params)
    assert out.shape == (N, OUT_DIM)
    assert jnp.allclose(out, ref, atol=2e-2, rtol=2e-2), "mismatch vs reference"

    print("KERNEL_OK")
</pallas_src>

<mosaic_0001>
module attributes {stable_mosaic.version = 11 : i64} {
  func.func @_linear_kernel(%arg0: memref<128x256xf32, #tpu.memory_space<vmem>>, %arg1: memref<256x128xbf16, #tpu.memory_space<vmem>>, %arg2: memref<1x128xf32, #tpu.memory_space<vmem>>, %arg3: memref<128x128xf32, #tpu.memory_space<vmem>>) attributes {dimension_semantics = [], scalar_prefetch = 0 : i64, scratch_operands = 0 : i64, tpu.core_type = #tpu.core_type<tc>} {
    %c0 = arith.constant 0 : index
    %c0_0 = arith.constant 0 : index
    %0 = vector.load %arg0[%c0, %c0_0] : memref<128x256xf32, #tpu.memory_space<vmem>>, vector<128x256xf32>
    %1 = arith.truncf %0 : vector<128x256xf32> to vector<128x256xbf16>
    %c0_1 = arith.constant 0 : index
    %c0_2 = arith.constant 0 : index
    %2 = vector.load %arg1[%c0_1, %c0_2] : memref<256x128xbf16, #tpu.memory_space<vmem>>, vector<256x128xbf16>
    %cst = arith.constant dense<0.000000e+00> : vector<128x128xf32>
    %3 = tpu.matmul %1, %2, %cst {dimension_numbers = #tpu.dot_dimension_numbers<[1], [0], [0], [1], [0, 0, 1, 1], [], []>} : vector<128x256xbf16>, vector<256x128xbf16>, vector<128x128xf32> -> vector<128x128xf32>
    %c0_3 = arith.constant 0 : index
    %c0_4 = arith.constant 0 : index
    %4 = vector.load %arg2[%c0_3, %c0_4] : memref<1x128xf32, #tpu.memory_space<vmem>>, vector<1x128xf32>
    %5 = vector.broadcast %4 : vector<1x128xf32> to vector<128x128xf32>
    %6 = arith.addf %3, %5 : vector<128x128xf32>
    %c0_5 = arith.constant 0 : index
    %c0_6 = arith.constant 0 : index
    %7 = vector.load %arg3[%c0_5, %c0_6] : memref<128x128xf32, #tpu.memory_space<vmem>>, vector<128x128xf32>
    tpu.vector_store %arg3[%c0_5, %c0_6], %6 {strides = array<i32>} : memref<128x128xf32, #tpu.memory_space<vmem>>, vector<128x128xf32>,
    return
  }
}

module attributes {stable_mosaic.version = 11 : i64} {
  func.func @_linear_kernel(%arg0: memref<128x32xf32, #tpu.memory_space<vmem>>, %arg1: memref<32x256xbf16, #tpu.memory_space<vmem>>, %arg2: memref<1x256xf32, #tpu.memory_space<vmem>>, %arg3: memref<128x256xf32, #tpu.memory_space<vmem>>) attributes {dimension_semantics = [], scalar_prefetch = 0 : i64, scratch_operands = 0 : i64, tpu.core_type = #tpu.core_type<tc>} {
    %c0 = arith.constant 0 : index
    %c0_0 = arith.constant 0 : index
    %0 = vector.load %arg0[%c0, %c0_0] : memref<128x32xf32, #tpu.memory_space<vmem>>, vector<128x32xf32>
    %1 = arith.truncf %0 : vector<128x32xf32> to vector<128x32xbf16>
    %c0_1 = arith.constant 0 : index
    %c0_2 = arith.constant 0 : index
    %2 = vector.load %arg1[%c0_1, %c0_2] : memref<32x256xbf16, #tpu.memory_space<vmem>>, vector<32x256xbf16>
    %cst = arith.constant dense<0.000000e+00> : vector<128x256xf32>
    %3 = tpu.matmul %1, %2, %cst {dimension_numbers = #tpu.dot_dimension_numbers<[1], [0], [0], [1], [0, 0, 1, 1], [], []>} : vector<128x32xbf16>, vector<32x256xbf16>, vector<128x256xf32> -> vector<128x256xf32>
    %c0_3 = arith.constant 0 : index
    %c0_4 = arith.constant 0 : index
    %4 = vector.load %arg2[%c0_3, %c0_4] : memref<1x256xf32, #tpu.memory_space<vmem>>, vector<1x256xf32>
    %5 = vector.broadcast %4 : vector<1x256xf32> to vector<128x256xf32>
    %6 = arith.addf %3, %5 : vector<128x256xf32>
    %c0_5 = arith.constant 0 : index
    %c0_6 = arith.constant 0 : index
    %7 = vector.load %arg3[%c0_5, %c0_6] : memref<128x256xf32, #tpu.memory_space<vmem>>, vector<128x256xf32>
    tpu.vector_store %arg3[%c0_5, %c0_6], %6 {strides = array<i32>} : memref<128x256xf32, #tpu.memory_space<vmem>>, vector<128x256xf32>,
    return
  }
}

module attributes {stable_mosaic.version = 11 : i64} {
  func.func @_geniepath_stack_kernel(%arg0: i32, %arg1: memref<128x256xf32, #tpu.memory_space<vmem>>, %arg2: memref<128x128xf32, #tpu.memory_space<vmem>>, %arg3: memref<1x256x256xbf16, #tpu.memory_space<vmem>>, %arg4: memref<1x1x256xf32, #tpu.memory_space<vmem>>, %arg5: memref<1x1x256xf32, #tpu.memory_space<vmem>>, %arg6: memref<1x1x256xf32, #tpu.memory_space<vmem>>, %arg7: memref<1x512x1024xbf16, #tpu.memory_space<vmem>>, %arg8: memref<128x256xf32, #tpu.memory_space<vmem>>, %arg9: memref<128x256xf32, #tpu.memory_space<vmem>>, %arg10: memref<128x256xf32, #tpu.memory_space<vmem>>, %arg11: memref<128x256xf32, #tpu.memory_space<vmem>>) attributes {dimension_semantics = [#tpu.dimension_semantics<arbitrary>], iteration_bounds = array<i64: 4>, scalar_prefetch = 0 : i64, scratch_operands = 3 : i64, tpu.core_type = #tpu.core_type<tc>, window_params = [{pipeline_mode = #tpu.pipeline_mode<synchronous>, transform_indices = @transform_0, window_bounds = array<i64: 128, 256>}, {pipeline_mode = #tpu.pipeline_mode<synchronous>, transform_indices = @transform_1, window_bounds = array<i64: 128, 128>}, {transform_indices = @transform_2, window_bounds = array<i64: 1, 256, 256>}, {transform_indices = @transform_3, window_bounds = array<i64: 1, 1, 256>}, {transform_indices = @transform_4, window_bounds = array<i64: 1, 1, 256>}, {transform_indices = @transform_5, window_bounds = array<i64: 1, 1, 256>}, {transform_indices = @transform_6, window_bounds = array<i64: 1, 512, 1024>}, {pipeline_mode = #tpu.pipeline_mode<synchronous>, transform_indices = @transform_7, window_bounds = array<i64: 128, 256>}]} {
    %c0_i32 = arith.constant 0 : i32
    %0 = arith.cmpi eq, %arg0, %c0_i32 : i32
    %1 = arith.extui %0 : i1 to i32
    %c0_i32_0 = arith.constant 0 : i32
    %2 = arith.cmpi ne, %1, %c0_i32_0 : i32
    scf.if %2 {
      %c0_43 = arith.constant 0 : index
      %c0_44 = arith.constant 0 : index
      %87 = vector.load %arg1[%c0_43, %c0_44] : memref<128x256xf32, #tpu.memory_space<vmem>>, vector<128x256xf32>
      %c0_45 = arith.constant 0 : index
      %c0_46 = arith.constant 0 : index
      %88 = vector.load %arg9[%c0_45, %c0_46] : memref<128x256xf32, #tpu.memory_space<vmem>>, vector<128x256xf32>
      tpu.vector_store %arg9[%c0_45, %c0_46], %87 {strides = array<i32>} : memref<128x256xf32, #tpu.memory_space<vmem>>, vector<128x256xf32>,
      %cst_47 = arith.constant 0.000000e+00 : f32
      %89 = vector.broadcast %cst_47 : f32 to vector<128x256xf32>
      %c0_48 = arith.constant 0 : index
      %c0_49 = arith.constant 0 : index
      %90 = vector.load %arg10[%c0_48, %c0_49] : memref<128x256xf32, #tpu.memory_space<vmem>>, vector<128x256xf32>
      tpu.vector_store %arg10[%c0_48, %c0_49], %89 {strides = array<i32>} : memref<128x256xf32, #tpu.memory_space<vmem>>, vector<128x256xf32>,
      %cst_50 = arith.constant 0.000000e+00 : f32
      %91 = vector.broadcast %cst_50 : f32 to vector<128x256xf32>
      %c0_51 = arith.constant 0 : index
      %c0_52 = arith.constant 0 : index
      %92 = vector.load %arg11[%c0_51, %c0_52] : memref<128x256xf32, #tpu.memory_space<vmem>>, vector<128x256xf32>
      tpu.vector_store %arg11[%c0_51, %c0_52], %91 {strides = array<i32>} : memref<128x256xf32, #tpu.memory_space<vmem>>, vector<128x256xf32>,
    } else {
    }
    %c0 = arith.constant 0 : index
    %c0_1 = arith.constant 0 : index
    %3 = vector.load %arg9[%c0, %c0_1] : memref<128x256xf32, #tpu.memory_space<vmem>>, vector<128x256xf32>
    %4 = arith.truncf %3 : vector<128x256xf32> to vector<128x256xbf16>
    %c0_2 = arith.constant 0 : index
    %c0_3 = arith.constant 0 : index
    %c0_4 = arith.constant 0 : index
    %5 = vector.load %arg3[%c0_2, %c0_3, %c0_4] : memref<1x256x256xbf16, #tpu.memory_space<vmem>>, vector<1x256x256xbf16>
    %6 = vector.shape_cast %5 : vector<1x256x256xbf16> to vector<256x256xbf16>
    %cst = arith.constant dense<0.000000e+00> : vector<128x256xf32>
    %7 = tpu.matmul %4, %6, %cst {dimension_numbers = #tpu.dot_dimension_numbers<[1], [0], [0], [1], [0, 0, 1, 1], [], []>} : vector<128x256xbf16>, vector<256x256xbf16>, vector<128x256xf32> -> vector<128x256xf32>
    %c0_5 = arith.constant 0 : index
    %c0_6 = arith.constant 0 : index
    %c0_7 = arith.constant 0 : index
    %8 = vector.load %arg5[%c0_5, %c0_6, %c0_7] : memref<1x1x256xf32, #tpu.memory_space<vmem>>, vector<1x1x256xf32>
    %9 = vector.shape_cast %8 : vector<1x1x256xf32> to vector<1x256xf32>
    %10 = vector.broadcast %9 : vector<1x256xf32> to vector<128x256xf32>
    %11 = arith.mulf %7, %10 : vector<128x256xf32>
    %cst_8 = arith.constant dense<0.000000e+00> : vector<128xf32>
    %12 = vector.multi_reduction <add>, %11, %cst_8 [1] : vector<128x256xf32> to vector<128xf32>
    %13 = vector.shape_cast %12 : vector<128xf32> to vector<128x1xf32>
    %c0_9 = arith.constant 0 : index
    %c0_10 = arith.constant 0 : index
    %c0_11 = arith.constant 0 : index
    %14 = vector.load %arg4[%c0_9, %c0_10, %c0_11] : memref<1x1x256xf32, #tpu.memory_space<vmem>>, vector<1x1x256xf32>
    %15 = vector.shape_cast %14 : vector<1x1x256xf32> to vector<1x256xf32>
    %cst_12 = arith.constant dense<0.000000e+00> : vector<1x128xf32>
    %16 = tpu.matmul %15, %7, %cst_12 {dimension_numbers = #tpu.dot_dimension_numbers<[1], [1], [0], [0], [0, 0, 1, 0], [], []>} : vector<1x256xf32>, vector<128x256xf32>, vector<1x128xf32> -> vector<1x128xf32>
    %17 = vector.broadcast %13 : vector<128x1xf32> to vector<128x128xf32>
    %18 = vector.broadcast %16 : vector<1x128xf32> to vector<128x128xf32>
    %19 = arith.addf %17, %18 : vector<128x128xf32>
    %cst_13 = arith.constant 0.000000e+00 : f32
    %20 = vector.broadcast %cst_13 : f32 to vector<128x128xf32>
    %21 = arith.cmpf ogt, %19, %20 : vector<128x128xf32>
    %cst_14 = arith.constant 2.000000e-01 : f32
    %22 = vector.broadcast %cst_14 : f32 to vector<128x128xf32>
    %23 = arith.mulf %22, %19 : vector<128x128xf32>
    %24 = arith.select %21, %19, %23 : vector<128x128xi1>, vector<128x128xf32>
    %c0_15 = arith.constant 0 : index
    %c0_16 = arith.constant 0 : index
    %25 = vector.load %arg2[%c0_15, %c0_16] : memref<128x128xf32, #tpu.memory_space<vmem>>, vector<128x128xf32>
    %cst_17 = arith.constant 0.000000e+00 : f32
    %26 = vector.broadcast %cst_17 : f32 to vector<128x128xf32>
    %27 = arith.cmpf ogt, %25, %26 : vector<128x128xf32>
    %cst_18 = arith.constant -1.000000e+30 : f32
    %28 = vector.broadcast %cst_18 : f32 to vector<128x128xf32>
    %29 = arith.select %27, %24, %28 : vector<128x128xi1>, vector<128x128xf32>
    %cst_19 = arith.constant dense<0xFF800000> : vector<128xf32>
    %30 = vector.multi_reduction <maximumf>, %29, %cst_19 [1] : vector<128x128xf32> to vector<128xf32>
    %31 = vector.shape_cast %30 : vector<128xf32> to vector<128x1xf32>
    %32 = vector.broadcast %31 : vector<128x1xf32> to vector<128x128xf32>
    %33 = arith.subf %29, %32 : vector<128x128xf32>
    %34 = math.exp %33 : vector<128x128xf32>
    %cst_20 = arith.constant dense<0.000000e+00> : vector<128xf32>
    %35 = vector.multi_reduction <add>, %34, %cst_20 [1] : vector<128x128xf32> to vector<128xf32>
    %36 = vector.shape_cast %35 : vector<128xf32> to vector<128x1xf32>
    %37 = tpu.reciprocal %36 {approx = true} : vector<128x1xf32> -> vector<128x1xf32>
    %38 = vector.broadcast %37 : vector<128x1xf32> to vector<128x128xf32>
    %39 = arith.mulf %34, %38 : vector<128x128xf32>
    %40 = arith.truncf %39 : vector<128x128xf32> to vector<128x128xbf16>
    %41 = arith.truncf %7 : vector<128x256xf32> to vector<128x256xbf16>
    %cst_21 = arith.constant dense<0.000000e+00> : vector<128x256xf32>
    %42 = tpu.matmul %40, %41, %cst_21 {dimension_numbers = #tpu.dot_dimension_numbers<[1], [0], [0], [1], [0, 0, 1, 1], [], []>} : vector<128x128xbf16>, vector<128x256xbf16>, vector<128x256xf32> -> vector<128x256xf32>
    %c0_22 = arith.constant 0 : index
    %c0_23 = arith.constant 0 : index
    %c0_24 = arith.constant 0 : index
    %43 = vector.load %arg6[%c0_22, %c0_23, %c0_24] : memref<1x1x256xf32, #tpu.memory_space<vmem>>, vector<1x1x256xf32>
    %44 = vector.shape_cast %43 : vector<1x1x256xf32> to vector<1x256xf32>
    %45 = vector.broadcast %44 : vector<1x256xf32> to vector<128x256xf32>
    %46 = arith.addf %42, %45 : vector<128x256xf32>
    %47 = math.tanh %46 : vector<128x256xf32>
    %48 = arith.truncf %47 : vector<128x256xf32> to vector<128x256xbf16>
    %c0_25 = arith.constant 0 : index
    %c0_26 = arith.constant 0 : index
    %49 = vector.load %arg10[%c0_25, %c0_26] : memref<128x256xf32, #tpu.memory_space<vmem>>, vector<128x256xf32>
    %50 = arith.truncf %49 : vector<128x256xf32> to vector<128x256xbf16>
    %51 = tpu.concatenate %48, %50 in 1 : vector<128x256xbf16>, vector<128x256xbf16> -> vector<128x512xbf16>
    %c0_27 = arith.constant 0 : index
    %c0_28 = arith.constant 0 : index
    %c0_29 = arith.constant 0 : index
    %52 = vector.load %arg7[%c0_27, %c0_28, %c0_29] : memref<1x512x1024xbf16, #tpu.memory_space<vmem>>, vector<1x512x1024xbf16>
    %53 = vector.shape_cast %52 : vector<1x512x1024xbf16> to vector<512x1024xbf16>
    %cst_30 = arith.constant dense<0.000000e+00> : vector<128x1024xf32>
    %54 = tpu.matmul %51, %53, %cst_30 {dimension_numbers = #tpu.dot_dimension_numbers<[1], [0], [0], [1], [0, 0, 1, 1], [], []>} : vector<128x512xbf16>, vector<512x1024xbf16>, vector<128x1024xf32> -> vector<128x1024xf32>
    %55 = vector.extract_strided_slice %54 {offsets = [0, 0], sizes = [128, 256], strides = [1, 1]} : vector<128x1024xf32> to vector<128x256xf32>
    %56 = arith.negf %55 : vector<128x256xf32>
    %57 = math.exp %56 : vector<128x256xf32>
    %cst_31 = arith.constant 1.000000e+00 : f32
    %58 = vector.broadcast %cst_31 : f32 to vector<128x256xf32>
    %59 = arith.addf %58, %57 : vector<128x256xf32>
    %60 = arith.divf %58, %59 : vector<128x256xf32>
    %61 = vector.extract_strided_slice %54 {offsets = [0, 256], sizes = [128, 256], strides = [1, 1]} : vector<128x1024xf32> to vector<128x256xf32>
    %62 = arith.negf %61 : vector<128x256xf32>
    %63 = math.exp %62 : vector<128x256xf32>
    %cst_32 = arith.constant 1.000000e+00 : f32
    %64 = vector.broadcast %cst_32 : f32 to vector<128x256xf32>
    %65 = arith.addf %64, %63 : vector<128x256xf32>
    %66 = arith.divf %64, %65 : vector<128x256xf32>
    %67 = vector.extract_strided_slice %54 {offsets = [0, 512], sizes = [128, 256], strides = [1, 1]} : vector<128x1024xf32> to vector<128x256xf32>
    %68 = math.tanh %67 : vector<128x256xf32>
    %69 = vector.extract_strided_slice %54 {offsets = [0, 768], sizes = [128, 256], strides = [1, 1]} : vector<128x1024xf32> to vector<128x256xf32>
    %70 = arith.negf %69 : vector<128x256xf32>
    %71 = math.exp %70 : vector<128x256xf32>
    %cst_33 = arith.constant 1.000000e+00 : f32
    %72 = vector.broadcast %cst_33 : f32 to vector<128x256xf32>
    %73 = arith.addf %72, %71 : vector<128x256xf32>
    %74 = arith.divf %72, %73 : vector<128x256xf32>
    %c0_34 = arith.constant 0 : index
    %c0_35 = arith.constant 0 : index
    %75 = vector.load %arg11[%c0_34, %c0_35] : memref<128x256xf32, #tpu.memory_space<vmem>>, vector<128x256xf32>
    %76 = arith.mulf %66, %75 : vector<128x256xf32>
    %77 = arith.mulf %60, %68 : vector<128x256xf32>
    %78 = arith.addf %76, %77 : vector<128x256xf32>
    %79 = math.tanh %78 : vector<128x256xf32>
    %80 = arith.mulf %74, %79 : vector<128x256xf32>
    %c0_36 = arith.constant 0 : index
    %c0_37 = arith.constant 0 : index
    %81 = vector.load %arg9[%c0_36, %c0_37] : memref<128x256xf32, #tpu.memory_space<vmem>>, vector<128x256xf32>
    tpu.vector_store %arg9[%c0_36, %c0_37], %80 {strides = array<i32>} : memref<128x256xf32, #tpu.memory_space<vmem>>, vector<128x256xf32>,
    %c0_38 = arith.constant 0 : index
    %c0_39 = arith.constant 0 : index
    %82 = vector.load %arg10[%c0_38, %c0_39] : memref<128x256xf32, #tpu.memory_space<vmem>>, vector<128x256xf32>
    tpu.vector_store %arg10[%c0_38, %c0_39], %80 {strides = array<i32>} : memref<128x256xf32, #tpu.memory_space<vmem>>, vector<128x256xf32>,
    %c0_40 = arith.constant 0 : index
    %c0_41 = arith.constant 0 : index
    %83 = vector.load %arg11[%c0_40, %c0_41] : memref<128x256xf32, #tpu.memory_space<vmem>>, vector<128x256xf32>
    tpu.vector_store %arg11[%c0_40, %c0_41], %78 {strides = array<i32>} : memref<128x256xf32, #tpu.memory_space<vmem>>, vector<128x256xf32>,
    %c3_i32 = arith.constant 3 : i32
    %84 = arith.cmpi eq, %arg0, %c3_i32 : i32
    %85 = arith.extui %84 : i1 to i32
    %c0_i32_42 = arith.constant 0 : i32
    %86 = arith.cmpi ne, %85, %c0_i32_42 : i32
    scf.if %86 {
      %c0_43 = arith.constant 0 : index
      %c0_44 = arith.constant 0 : index
      %87 = vector.load %arg8[%c0_43, %c0_44] : memref<128x256xf32, #tpu.memory_space<vmem>>, vector<128x256xf32>
      tpu.vector_store %arg8[%c0_43, %c0_44], %80 {strides = array<i32>} : memref<128x256xf32, #tpu.memory_space<vmem>>, vector<128x256xf32>,
    } else {
    }
    return
  }
  func.func @transform_0(%arg0: i32) -> (i32, i32) {
    %c0_i32 = arith.constant 0 : i32
    %c0_i32_0 = arith.constant 0 : i32
    %c0_i32_1 = arith.constant 0 : i32
    return %c0_i32, %c0_i32_0 : i32, i32
  }
  func.func @transform_1(%arg0: i32) -> (i32, i32) {
    %c0_i32 = arith.constant 0 : i32
    %c0_i32_0 = arith.constant 0 : i32
    %c0_i32_1 = arith.constant 0 : i32
    return %c0_i32, %c0_i32_0 : i32, i32
  }
  func.func @transform_2(%arg0: i32) -> (i32, i32, i32) {
    %c0_i32 = arith.constant 0 : i32
    %c0_i32_0 = arith.constant 0 : i32
    %c0_i32_1 = arith.constant 0 : i32
    return %arg0, %c0_i32, %c0_i32_0 : i32, i32, i32
  }
  func.func @transform_3(%arg0: i32) -> (i32, i32, i32) {
    %c0_i32 = arith.constant 0 : i32
    %c0_i32_0 = arith.constant 0 : i32
    %c0_i32_1 = arith.constant 0 : i32
    return %arg0, %c0_i32, %c0_i32_0 : i32, i32, i32
  }
  func.func @transform_4(%arg0: i32) -> (i32, i32, i32) {
    %c0_i32 = arith.constant 0 : i32
    %c0_i32_0 = arith.constant 0 : i32
    %c0_i32_1 = arith.constant 0 : i32
    return %arg0, %c0_i32, %c0_i32_0 : i32, i32, i32
  }
  func.func @transform_5(%arg0: i32) -> (i32, i32, i32) {
    %c0_i32 = arith.constant 0 : i32
    %c0_i32_0 = arith.constant 0 : i32
    %c0_i32_1 = arith.constant 0 : i32
    return %arg0, %c0_i32, %c0_i32_0 : i32, i32, i32
  }
  func.func @transform_6(%arg0: i32) -> (i32, i32, i32) {
    %c0_i32 = arith.constant 0 : i32
    %c0_i32_0 = arith.constant 0 : i32
    %c0_i32_1 = arith.constant 0 : i32
    return %arg0, %c0_i32, %c0_i32_0 : i32, i32, i32
  }
  func.func @transform_7(%arg0: i32) -> (i32, i32) {
    %c0_i32 = arith.constant 0 : i32
    %c0_i32_0 = arith.constant 0 : i32
    %c0_i32_1 = arith.constant 0 : i32
    return %c0_i32, %c0_i32_0 : i32, i32
  }
}

</mosaic_0001>

<bundles_post_ra>
// kernel: geniepath_forward.3
= control target key start
LH: loop header
LB: loop body
LE: loop exit
PB: predicated region body
PF: predicated region fallthrough
CT: control target
= control target key end

     0   :  { %8 = vsyncpa [#allocation3], 0  ;;  %s582_s0 = inlined_call_operand.vmem [shape: f32[128,32], index: 0, kind: input, shape index: {}]   ;;  %s583_s1 = inlined_call_operand.hbm [shape: bf16[32,256], index: 1, kind: input, shape index: {}]   ;;  %s584_s2 = inlined_call_operand.hbm [shape: f32[1,256], index: 2, kind: input, shape index: {}]   ;;  %s585_s3 = inlined_call_operand.vmem [shape: f32[128,256], index: 3, kind: output, shape index: {}]  }
   0x1   :  { %s16_s14 = sshll.u32 %s583_s1, 4  ;;  %s17_s14 = int_to_ptr.hbm [resolvable:$true] %s16_s14 }
   0x2   :  { %9 = vsyncpa [#allocation5], 0  ;;  %s356_s15 = smov [#allocation2]   ;;  %s30_s19 = sshll.u32 %s584_s2, 4  ;;  %s31_s19 = int_to_ptr.hbm [resolvable:$true] %s30_s19 }
   0x3   :  { %s18_s16 = sshll.u32 %s356_s15, 4  ;;  %s357_s20 = smov 128   ;;  %s19_s16 = int_to_ptr.vmem [resolvable:$true] %s18_s16 }
   0x4   :  { %s358_s21 = smov 8   ;;  %s359_s22 = smov [#allocation4]  }
   0x5   :  { %24 = dma.hbm_to_vmem [thread:$0]  %s17_s14, 512, %s19_s16, [#allocation3], %s357_s20, %s357_s20, %s358_s21  }
   0x6   :  { %s32_s23 = sshll.u32 %s359_s22, 4  ;;  %s33_s23 = int_to_ptr.vmem [resolvable:$true] %s32_s23 }
   0x7   :  { %35 = dma.hbm_to_vmem [thread:$0]  %s31_s19, 32, %s33_s23, [#allocation5]  }
   0x8   :  { %352 = dma.done.wait [#allocation3], 512  }
   0x9   :  { %353 = vsyncadd [#allocation3], 4294966784 }
   0xa   :  { %354 = dma.done.wait [#allocation5], 32  }
   0xb   :  { %355 = vsyncadd [#allocation5], 4294967264  ;;  %v270_v0 = vld [vmem:[#allocation2 + $0x10] sm:$0xf]  ;;  %v295_v1 = vld [vmem:[#allocation2 + $0x14] sm:$0xf0] }
   0xc   :  { %v294_v2 = vld [vmem:[#allocation2 + $0x14] sm:$0xf]  ;;  %v271_v3 = vor.u32 %v295_v1, %v270_v0  ;;  %v272_v4 = vld [vmem:[#allocation2 + $0x18] sm:$0xf0]  ;;  %v262_v5 = vld [vmem:[#allocation2] sm:$0xf] }
   0xd   :  { %v293_v6 = vld [vmem:[#allocation2 + $0x4] sm:$0xf0]  ;;  %v275_v7 = vor.u32 %v294_v2, %v272_v4  ;;  %v292_v8 = vld [vmem:[#allocation2 + $0x4] sm:$0xf]  ;;  %v264_v9 = vld [vmem:[#allocation2 + $0x8] sm:$0xf0] }
   0xe   :  { %v45_v10 = vld [vmem:[%s582_s0] sm:$0xff]  ;;  %130 = vmatpush.bf16.msra.mxu0 %v271_v3  ;;  %296 = vmatpush.bf16.msra.mxu2 %v271_v3  ;;  %v263_v11 = vor.u32 %v293_v6, %v262_v5  ;;  %v46_v12 = vld [vmem:[%s582_s0 + $0x8] sm:$0xff]  ;;  %v267_v15 = vor.u32 %v292_v8, %v264_v9  ;;  %vm99_vm0 = vcmask 261120   ;;  %v47_v18 = vld [vmem:[%s582_s0 + $0x10] sm:$0xff] }
   0xf   :  { %v53_v13 = vld [vmem:[%s582_s0 + $0x40] sm:$0xff]  ;;  %v54_v14 = vld [vmem:[%s582_s0 + $0x48] sm:$0xff]  ;;  %179 = vmatpush.bf16.msra.mxu1 %v275_v7  ;;  %298 = vmatpush.bf16.msra.mxu3 %v275_v7  ;;  %v61_v16 = vpack.c.bf16 %v46_v12, %v45_v10  ;;  %v48_v19 = vld [vmem:[%s582_s0 + $0x18] sm:$0xff] }
  0x10   :  { %v65_v17 = vpack.c.bf16 %v54_v14, %v53_v13  ;;  %v55_v20 = vld [vmem:[%s582_s0 + $0x50] sm:$0xff]  ;;  %v56_v21 = vld [vmem:[%s582_s0 + $0x58] sm:$0xff]  ;;  %v62_v22 = vpack.c.bf16 %v48_v19, %v47_v18  ;;  %v49_v24 = vld [vmem:[%s582_s0 + $0x20] sm:$0xff] }
  0x11   :  { %v66_v23 = vpack.c.bf16 %v56_v21, %v55_v20  ;;  %v50_v25 = vld [vmem:[%s582_s0 + $0x28] sm:$0xff]  ;;  %v57_v26 = vld [vmem:[%s582_s0 + $0x60] sm:$0xff]  ;;  %v51_v30 = vld [vmem:[%s582_s0 + $0x30] sm:$0xff] }
  0x12   :  { %131 = vmatpush.bf16.msra.mxu0 %v263_v11  ;;  %297 = vmatpush.bf16.msra.mxu2 %v263_v11  ;;  %v58_v27 = vld [vmem:[%s582_s0 + $0x68] sm:$0xff]  ;;  %v63_v28 = vpack.c.bf16 %v50_v25, %v49_v24  ;;  %v52_v31 = vld [vmem:[%s582_s0 + $0x38] sm:$0xff]  ;;  %v59_v32 = vld [vmem:[%s582_s0 + $0x70] sm:$0xff] }
  0x13   :  { %180 = vmatpush.bf16.msra.mxu1 %v267_v15  ;;  %299 = vmatpush.bf16.msra.mxu3 %v267_v15  ;;  %v67_v29 = vpack.c.bf16 %v58_v27, %v57_v26  ;;  %v60_v33 = vld [vmem:[%s582_s0 + $0x78] sm:$0xff]  ;;  %v64_v34 = vpack.c.bf16 %v52_v31, %v51_v30  ;;  %v73_v36 = vld [vmem:[#allocation4] sm:$0x3] }
  0x14   :  { %v68_v35 = vpack.c.bf16 %v60_v33, %v59_v32  ;;  %v450_v37 = vperm.slane %v73_v36, 0  ;;  %v452_v38 = vperm.slane %v73_v36, 1 }
  0x15   :  { %276 = vmatmul.msk.bf16.vlgmr.msra.gmra.mxu0 %vm99_vm0, %v61_v16  ;;  %280 = vmatmul.msk.bf16.vlgmr.msra.gmra.mxu2 %vm99_vm0, %v65_v17 }
  0x16   :  { %284 = vmatmul.msk.bf16.vlgmr.msra.gmra.mxu1 %vm99_vm0, %v61_v16  ;;  %288 = vmatmul.msk.bf16.vlgmr.msra.gmra.mxu3 %vm99_vm0, %v65_v17 }
  0x25   :  { %277 = vmatmul.msk.bf16.gmra.mxu0 %vm99_vm0, %v62_v22  ;;  %281 = vmatmul.msk.bf16.gmra.mxu2 %vm99_vm0, %v66_v23 }
  0x26   :  { %285 = vmatmul.msk.bf16.gmra.mxu1 %vm99_vm0, %v62_v22  ;;  %289 = vmatmul.msk.bf16.gmra.mxu3 %vm99_vm0, %v66_v23 }
  0x35   :  { %278 = vmatmul.msk.bf16.gmra.mxu0 %vm99_vm0, %v63_v28  ;;  %282 = vmatmul.msk.bf16.gmra.mxu2 %vm99_vm0, %v67_v29 }
  0x36   :  { %286 = vmatmul.msk.bf16.gmra.mxu1 %vm99_vm0, %v63_v28  ;;  %290 = vmatmul.msk.bf16.gmra.mxu3 %vm99_vm0, %v67_v29 }
  0x45   :  { %279 = vmatmul.msk.bf16.gmra.mxu0 %vm99_vm0, %v64_v34  ;;  %283 = vmatmul.msk.bf16.gmra.mxu2 %vm99_vm0, %v68_v35 }
  0x46   :  { %287 = vmatmul.msk.bf16.gmra.mxu1 %vm99_vm0, %v64_v34  ;;  %291 = vmatmul.msk.bf16.gmra.mxu3 %vm99_vm0, %v68_v35 }
  0x92   :  { %v133_v39 = vpop.f32.mrf.mxu0 }
  0x93   :  { %v134_v40 = vadd.f32 %v133_v39, %v450_v37  ;;  %v182_v41 = vpop.f32.mrf.mxu1 }
  0x94   :  { %v183_v42 = vadd.f32 %v182_v41, %v452_v38 }
  0x95   :  { %222 = vst [vmem:[%s585_s3] sm:$0xff] %v134_v40 }
  0x96   :  { %223 = vst [vmem:[%s585_s3 + $0x8] sm:$0xff] %v183_v42 }
  0x98   :  { %v153_v43 = vpop.f32.mrf.mxu2 }
  0x99   :  { %v154_v44 = vadd.f32 %v153_v43, %v450_v37  ;;  %v202_v45 = vpop.f32.mrf.mxu3 }
  0x9a   :  { %v203_v46 = vadd.f32 %v202_v45, %v452_v38  ;;  %v135_v47 = vpop.f32.mrf.mxu0 }
  0x9b   :  { %238 = vst [vmem:[%s585_s3 + $0x80] sm:$0xff] %v154_v44  ;;  %v136_v48 = vadd.f32 %v135_v47, %v450_v37  ;;  %v184_v49 = vpop.f32.mrf.mxu1 }
  0x9c   :  { %239 = vst [vmem:[%s585_s3 + $0x88] sm:$0xff] %v203_v46  ;;  %v185_v50 = vadd.f32 %v184_v49, %v452_v38 }
  0x9d   :  { %224 = vst [vmem:[%s585_s3 + $0x10] sm:$0xff] %v136_v48 }
  0x9e   :  { %225 = vst [vmem:[%s585_s3 + $0x18] sm:$0xff] %v185_v50 }
  0xa0   :  { %v155_v51 = vpop.f32.mrf.mxu2 }
  0xa1   :  { %v156_v52 = vadd.f32 %v155_v51, %v450_v37  ;;  %v204_v53 = vpop.f32.mrf.mxu3 }
  0xa2   :  { %v205_v54 = vadd.f32 %v204_v53, %v452_v38  ;;  %v138_v55 = vpop.f32.mrf.mxu0 }
  0xa3   :  { %240 = vst [vmem:[%s585_s3 + $0x90] sm:$0xff] %v156_v52  ;;  %v139_v56 = vadd.f32 %v138_v55, %v450_v37  ;;  %v187_v57 = vpop.f32.mrf.mxu1 }
  0xa4   :  { %241 = vst [vmem:[%s585_s3 + $0x98] sm:$0xff] %v205_v54  ;;  %v188_v58 = vadd.f32 %v187_v57, %v452_v38 }
  0xa5   :  { %226 = vst [vmem:[%s585_s3 + $0x20] sm:$0xff] %v139_v56 }
  0xa6   :  { %227 = vst [vmem:[%s585_s3 + $0x28] sm:$0xff] %v188_v58 }
  0xa8   :  { %v158_v59 = vpop.f32.mrf.mxu2 }
  0xa9   :  { %v159_v60 = vadd.f32 %v158_v59, %v450_v37  ;;  %v207_v61 = vpop.f32.mrf.mxu3 }
  0xaa   :  { %v208_v62 = vadd.f32 %v207_v61, %v452_v38  ;;  %v140_v63 = vpop.f32.mrf.mxu0 }
  0xab   :  { %242 = vst [vmem:[%s585_s3 + $0xa0] sm:$0xff] %v159_v60  ;;  %v141_v0 = vadd.f32 %v140_v63, %v450_v37  ;;  %v189_v1 = vpop.f32.mrf.mxu1 }
  0xac   :  { %243 = vst [vmem:[%s585_s3 + $0xa8] sm:$0xff] %v208_v62  ;;  %v190_v2 = vadd.f32 %v189_v1, %v452_v38 }
  0xad   :  { %228 = vst [vmem:[%s585_s3 + $0x30] sm:$0xff] %v141_v0 }
  0xae   :  { %229 = vst [vmem:[%s585_s3 + $0x38] sm:$0xff] %v190_v2 }
  0xb0   :  { %v160_v3 = vpop.f32.mrf.mxu2 }
  0xb1   :  { %v161_v4 = vadd.f32 %v160_v3, %v450_v37  ;;  %v209_v5 = vpop.f32.mrf.mxu3 }
  0xb2   :  { %v210_v6 = vadd.f32 %v209_v5, %v452_v38  ;;  %v143_v7 = vpop.f32.mrf.mxu0 }
  0xb3   :  { %244 = vst [vmem:[%s585_s3 + $0xb0] sm:$0xff] %v161_v4  ;;  %v144_v8 = vadd.f32 %v143_v7, %v450_v37  ;;  %v192_v9 = vpop.f32.mrf.mxu1 }
  0xb4   :  { %245 = vst [vmem:[%s585_s3 + $0xb8] sm:$0xff] %v210_v6  ;;  %v193_v10 = vadd.f32 %v192_v9, %v452_v38 }
  0xb5   :  { %230 = vst [vmem:[%s585_s3 + $0x40] sm:$0xff] %v144_v8 }
  0xb6   :  { %231 = vst [vmem:[%s585_s3 + $0x48] sm:$0xff] %v193_v10 }
  0xb8   :  { %v163_v11 = vpop.f32.mrf.mxu2 }
  0xb9   :  { %v164_v12 = vadd.f32 %v163_v11, %v450_v37  ;;  %v212_v13 = vpop.f32.mrf.mxu3 }
  0xba   :  { %v213_v14 = vadd.f32 %v212_v13, %v452_v38  ;;  %v145_v15 = vpop.f32.mrf.mxu0 }
  0xbb   :  { %246 = vst [vmem:[%s585_s3 + $0xc0] sm:$0xff] %v164_v12  ;;  %v146_v16 = vadd.f32 %v145_v15, %v450_v37  ;;  %v194_v17 = vpop.f32.mrf.mxu1 }
  0xbc   :  { %247 = vst [vmem:[%s585_s3 + $0xc8] sm:$0xff] %v213_v14  ;;  %v195_v18 = vadd.f32 %v194_v17, %v452_v38 }
  0xbd   :  { %232 = vst [vmem:[%s585_s3 + $0x50] sm:$0xff] %v146_v16 }
  0xbe   :  { %233 = vst [vmem:[%s585_s3 + $0x58] sm:$0xff] %v195_v18 }
  0xc0   :  { %v165_v19 = vpop.f32.mrf.mxu2 }
  0xc1   :  { %v166_v20 = vadd.f32 %v165_v19, %v450_v37  ;;  %v214_v21 = vpop.f32.mrf.mxu3 }
  0xc2   :  { %v215_v22 = vadd.f32 %v214_v21, %v452_v38  ;;  %v148_v23 = vpop.f32.mrf.mxu0 }
  0xc3   :  { %248 = vst [vmem:[%s585_s3 + $0xd0] sm:$0xff] %v166_v20  ;;  %v149_v24 = vadd.f32 %v148_v23, %v450_v37  ;;  %v197_v25 = vpop.f32.mrf.mxu1 }
  0xc4   :  { %249 = vst [vmem:[%s585_s3 + $0xd8] sm:$0xff] %v215_v22  ;;  %v198_v26 = vadd.f32 %v197_v25, %v452_v38 }
  0xc5   :  { %234 = vst [vmem:[%s585_s3 + $0x60] sm:$0xff] %v149_v24 }
  0xc6   :  { %235 = vst [vmem:[%s585_s3 + $0x68] sm:$0xff] %v198_v26 }
  0xc8   :  { %v168_v27 = vpop.f32.mrf.mxu2 }
  0xc9   :  { %v169_v28 = vadd.f32 %v168_v27, %v450_v37  ;;  %v217_v29 = vpop.f32.mrf.mxu3 }
  0xca   :  { %v218_v30 = vadd.f32 %v217_v29, %v452_v38  ;;  %v150_v31 = vpop.f32.mrf.mxu0 }
  0xcb   :  { %250 = vst [vmem:[%s585_s3 + $0xe0] sm:$0xff] %v169_v28  ;;  %v151_v32 = vadd.f32 %v150_v31, %v450_v37  ;;  %v199_v33 = vpop.f32.mrf.mxu1 }
  0xcc   :  { %251 = vst [vmem:[%s585_s3 + $0xe8] sm:$0xff] %v218_v30  ;;  %v200_v34 = vadd.f32 %v199_v33, %v452_v38 }
  0xcd   :  { %236 = vst [vmem:[%s585_s3 + $0x70] sm:$0xff] %v151_v32 }
  0xce   :  { %237 = vst [vmem:[%s585_s3 + $0x78] sm:$0xff] %v200_v34 }
  0xd0   :  { %v170_v35 = vpop.f32.mrf.mxu2 }
  0xd1   :  { %v171_v36 = vadd.f32 %v170_v35, %v450_v37  ;;  %v219_v39 = vpop.f32.mrf.mxu3 }
  0xd2   :  { %v220_v40 = vadd.f32 %v219_v39, %v452_v38 }
  0xd3   :  { %252 = vst [vmem:[%s585_s3 + $0xf0] sm:$0xff] %v171_v36 }
  0xd4   :  { %253 = vst [vmem:[%s585_s3 + $0xf8] sm:$0xff] %v220_v40 }
  0xd5   :  { %258 = vsyncpa [#allocation3], 1 }
  0xd6   :  { %259 = vsyncpa [#allocation5], 1 }

// kernel: geniepath_forward.5
= control target key start
LH: loop header
LB: loop body
LE: loop exit
PB: predicated region body
PF: predicated region fallthrough
CT: control target
= control target key end

     0   :  { %8 = vsyncpa [#allocation3], 0  ;;  %s689_s0 = inlined_call_operand.vmem [shape: f32[128,256], index: 0, kind: input, shape index: {}]   ;;  %s690_s1 = inlined_call_operand.hbm [shape: bf16[256,128], index: 1, kind: input, shape index: {}]   ;;  %s691_s2 = inlined_call_operand.hbm [shape: f32[1,128], index: 2, kind: input, shape index: {}]   ;;  %s692_s3 = inlined_call_operand.vmem [shape: f32[128,128], index: 3, kind: output, shape index: {}]  }
   0x1   :  { %s16_s14 = sshll.u32 %s690_s1, 4  ;;  %s17_s14 = int_to_ptr.hbm [resolvable:$true] %s16_s14 }
   0x2   :  { %9 = vsyncpa [#allocation5], 0  ;;  %s497_s15 = smov [#allocation2]   ;;  %s30_s19 = sshll.u32 %s691_s2, 4  ;;  %s31_s19 = int_to_ptr.hbm [resolvable:$true] %s30_s19 }
   0x3   :  { %s18_s16 = sshll.u32 %s497_s15, 4  ;;  %s498_s20 = smov 64   ;;  %s19_s16 = int_to_ptr.vmem [resolvable:$true] %s18_s16 }
   0x4   :  { %s499_s21 = smov 4   ;;  %s500_s22 = smov [#allocation4]  }
   0x5   :  { %24 = dma.hbm_to_vmem [thread:$0]  %s17_s14, 2048, %s19_s16, [#allocation3], %s498_s20, %s498_s20, %s499_s21  }
   0x6   :  { %s32_s23 = sshll.u32 %s500_s22, 4  ;;  %s33_s23 = int_to_ptr.vmem [resolvable:$true] %s32_s23 }
   0x7   :  { %35 = dma.hbm_to_vmem [thread:$0]  %s31_s19, 16, %s33_s23, [#allocation5]  }
   0x8   :  { %493 = dma.done.wait [#allocation3], 2048  }
   0x9   :  { %494 = vsyncadd [#allocation3], 4294965248 }
   0xa   :  { %495 = dma.done.wait [#allocation5], 16  }
   0xb   :  { %496 = vsyncadd [#allocation5], 4294967280  ;;  %v415_v0 = vld [vmem:[#allocation2 + $0x38] sm:$0xff]  ;;  %v414_v2 = vld [vmem:[#allocation2 + $0x30] sm:$0xff] }
   0xc   :  { %v423_v1 = vld [vmem:[#allocation2 + $0x78] sm:$0xff]  ;;  %224 = vmatpush.bf16.msra.mxu0 %v415_v0  ;;  %424 = vmatpush.bf16.msra.mxu2 %v415_v0  ;;  %v422_v3 = vld [vmem:[#allocation2 + $0x70] sm:$0xff]  ;;  %v413_v4 = vld [vmem:[#allocation2 + $0x28] sm:$0xff] }
   0xd   :  { %273 = vmatpush.bf16.msra.mxu1 %v423_v1  ;;  %432 = vmatpush.bf16.msra.mxu3 %v423_v1  ;;  %v421_v5 = vld [vmem:[#allocation2 + $0x68] sm:$0xff]  ;;  %v412_v6 = vld [vmem:[#allocation2 + $0x20] sm:$0xff]  ;;  %v411_v8 = vld [vmem:[#allocation2 + $0x18] sm:$0xff] }
   0xe   :  { %v420_v7 = vld [vmem:[#allocation2 + $0x60] sm:$0xff]  ;;  %v419_v9 = vld [vmem:[#allocation2 + $0x58] sm:$0xff]  ;;  %v410_v10 = vld [vmem:[#allocation2 + $0x10] sm:$0xff] }
   0xf   :  { %v418_v11 = vld [vmem:[#allocation2 + $0x50] sm:$0xff]  ;;  %v409_v12 = vld [vmem:[#allocation2 + $0x8] sm:$0xff]  ;;  %v408_v14 = vld [vmem:[#allocation2] sm:$0xff] }
  0x10   :  { %225 = vmatpush.bf16.msra.mxu0 %v414_v2  ;;  %425 = vmatpush.bf16.msra.mxu2 %v414_v2  ;;  %v417_v13 = vld [vmem:[#allocation2 + $0x48] sm:$0xff]  ;;  %v416_v15 = vld [vmem:[#allocation2 + $0x40] sm:$0xff]  ;;  %v46_v17 = vld [vmem:[%s689_s0 + $0x10] sm:$0xff] }
  0x11   :  { %274 = vmatpush.bf16.msra.mxu1 %v422_v3  ;;  %433 = vmatpush.bf16.msra.mxu3 %v422_v3  ;;  %v44_v16 = vld [vmem:[%s689_s0] sm:$0xff]  ;;  %v62_v19 = vld [vmem:[%s689_s0 + $0x90] sm:$0xff]  ;;  %v45_v20 = vld [vmem:[%s689_s0 + $0x8] sm:$0xff] }
  0x12   :  { %v60_v18 = vld [vmem:[%s689_s0 + $0x80] sm:$0xff]  ;;  %v47_v21 = vld [vmem:[%s689_s0 + $0x18] sm:$0xff]  ;;  %v61_v22 = vld [vmem:[%s689_s0 + $0x88] sm:$0xff]  ;;  %v76_v24 = vpack.c.bf16 %v46_v17, %v44_v16 }
  0x13   :  { %v63_v23 = vld [vmem:[%s689_s0 + $0x98] sm:$0xff]  ;;  %v84_v25 = vpack.c.bf16 %v62_v19, %v60_v18  ;;  %v77_v26 = vpack.c.bf16 %v47_v21, %v45_v20  ;;  %v48_v28 = vld [vmem:[%s689_s0 + $0x20] sm:$0xff]  ;;  %v50_v29 = vld [vmem:[%s689_s0 + $0x30] sm:$0xff] }
  0x14   :  { %226 = vmatpush.bf16.msra.mxu0 %v413_v4  ;;  %426 = vmatpush.bf16.msra.mxu2 %v413_v4  ;;  %v85_v27 = vpack.c.bf16 %v63_v23, %v61_v22  ;;  %v64_v30 = vld [vmem:[%s689_s0 + $0xa0] sm:$0xff]  ;;  %v66_v31 = vld [vmem:[%s689_s0 + $0xb0] sm:$0xff]  ;;  %v49_v32 = vld [vmem:[%s689_s0 + $0x28] sm:$0xff]  ;;  %v78_v36 = vpack.c.bf16 %v50_v29, %v48_v28 }
  0x15   :  { %275 = vmatpush.bf16.msra.mxu1 %v421_v5  ;;  %434 = vmatpush.bf16.msra.mxu3 %v421_v5  ;;  %v51_v33 = vld [vmem:[%s689_s0 + $0x38] sm:$0xff]  ;;  %v65_v34 = vld [vmem:[%s689_s0 + $0xa8] sm:$0xff]  ;;  %v86_v37 = vpack.c.bf16 %v66_v31, %v64_v30  ;;  %v52_v40 = vld [vmem:[%s689_s0 + $0x40] sm:$0xff] }
  0x16   :  { %v67_v35 = vld [vmem:[%s689_s0 + $0xb8] sm:$0xff]  ;;  %v79_v38 = vpack.c.bf16 %v51_v33, %v49_v32  ;;  %v54_v41 = vld [vmem:[%s689_s0 + $0x50] sm:$0xff]  ;;  %v68_v42 = vld [vmem:[%s689_s0 + $0xc0] sm:$0xff] }
  0x17   :  { %v87_v39 = vpack.c.bf16 %v67_v35, %v65_v34  ;;  %v70_v43 = vld [vmem:[%s689_s0 + $0xd0] sm:$0xff]  ;;  %v53_v44 = vld [vmem:[%s689_s0 + $0x48] sm:$0xff]  ;;  %v55_v45 = vld [vmem:[%s689_s0 + $0x58] sm:$0xff]  ;;  %v80_v48 = vpack.c.bf16 %v54_v41, %v52_v40 }
  0x18   :  { %227 = vmatpush.bf16.msra.mxu0 %v412_v6  ;;  %427 = vmatpush.bf16.msra.mxu2 %v412_v6  ;;  %v69_v46 = vld [vmem:[%s689_s0 + $0xc8] sm:$0xff]  ;;  %v71_v47 = vld [vmem:[%s689_s0 + $0xd8] sm:$0xff]  ;;  %v88_v49 = vpack.c.bf16 %v70_v43, %v68_v42  ;;  %v81_v50 = vpack.c.bf16 %v55_v45, %v53_v44  ;;  %v56_v52 = vld [vmem:[%s689_s0 + $0x60] sm:$0xff] }
  0x19   :  { %276 = vmatpush.bf16.msra.mxu1 %v420_v7  ;;  %435 = vmatpush.bf16.msra.mxu3 %v420_v7  ;;  %v89_v51 = vpack.c.bf16 %v71_v47, %v69_v46  ;;  %v58_v53 = vld [vmem:[%s689_s0 + $0x70] sm:$0xff]  ;;  %v72_v54 = vld [vmem:[%s689_s0 + $0xe0] sm:$0xff]  ;;  %v57_v56 = vld [vmem:[%s689_s0 + $0x68] sm:$0xff] }
  0x1a   :  { %v74_v55 = vld [vmem:[%s689_s0 + $0xf0] sm:$0xff]  ;;  %v59_v57 = vld [vmem:[%s689_s0 + $0x78] sm:$0xff]  ;;  %v73_v58 = vld [vmem:[%s689_s0 + $0xe8] sm:$0xff]  ;;  %v82_v60 = vpack.c.bf16 %v58_v53, %v56_v52 }
  0x1b   :  { %v75_v59 = vld [vmem:[%s689_s0 + $0xf8] sm:$0xff]  ;;  %v90_v61 = vpack.c.bf16 %v74_v55, %v72_v54  ;;  %v83_v62 = vpack.c.bf16 %v59_v57, %v57_v56  ;;  %v623_v0 = vld [vmem:[#allocation4] ss:$0 sm:$0xff] }
  0x1c   :  { %228 = vmatpush.bf16.msra.mxu0 %v411_v8  ;;  %428 = vmatpush.bf16.msra.mxu2 %v411_v8  ;;  %v91_v63 = vpack.c.bf16 %v75_v59, %v73_v58 }
  0x1d   :  { %277 = vmatpush.bf16.msra.mxu1 %v419_v9  ;;  %436 = vmatpush.bf16.msra.mxu3 %v419_v9 }
  0x20   :  { %229 = vmatpush.bf16.msra.mxu0 %v410_v10  ;;  %429 = vmatpush.bf16.msra.mxu2 %v410_v10 }
  0x21   :  { %278 = vmatpush.bf16.msra.mxu1 %v418_v11  ;;  %437 = vmatpush.bf16.msra.mxu3 %v418_v11 }
  0x24   :  { %230 = vmatpush.bf16.msra.mxu0 %v409_v12  ;;  %430 = vmatpush.bf16.msra.mxu2 %v409_v12 }
  0x25   :  { %279 = vmatpush.bf16.msra.mxu1 %v417_v13  ;;  %438 = vmatpush.bf16.msra.mxu3 %v417_v13 }
  0x28   :  { %231 = vmatpush.bf16.msra.mxu0 %v408_v14  ;;  %431 = vmatpush.bf16.msra.mxu2 %v408_v14 }
  0x29   :  { %280 = vmatpush.bf16.msra.mxu1 %v416_v15  ;;  %439 = vmatpush.bf16.msra.mxu3 %v416_v15 }
  0x2b   :  { %232 = vmatmul.bf16.vlgmr.msra.gmra.mxu0 %v76_v24  ;;  %252 = vmatmul.bf16.vlgmr.msra.gmra.mxu2 %v84_v25 }
  0x2c   :  { %281 = vmatmul.bf16.vlgmr.msra.gmra.mxu1 %v77_v26  ;;  %301 = vmatmul.bf16.vlgmr.msra.gmra.mxu3 %v85_v27 }
  0x3b   :  { %237 = vmatmul.bf16.gmra.mxu0 %v78_v36  ;;  %257 = vmatmul.bf16.gmra.mxu2 %v86_v37 }
  0x3c   :  { %286 = vmatmul.bf16.gmra.mxu1 %v79_v38  ;;  %306 = vmatmul.bf16.gmra.mxu3 %v87_v39 }
  0x4b   :  { %242 = vmatmul.bf16.gmra.mxu0 %v80_v48  ;;  %262 = vmatmul.bf16.gmra.mxu2 %v88_v49 }
  0x4c   :  { %291 = vmatmul.bf16.gmra.mxu1 %v81_v50  ;;  %311 = vmatmul.bf16.gmra.mxu3 %v89_v51 }
  0x5b   :  { %247 = vmatmul.bf16.gmra.mxu0 %v82_v60  ;;  %267 = vmatmul.bf16.gmra.mxu2 %v90_v61 }
  0x5c   :  { %296 = vmatmul.bf16.gmra.mxu1 %v83_v62  ;;  %316 = vmatmul.bf16.gmra.mxu3 %v91_v63 }
  0xa8   :  { %v233_v1 = vpop.f32.mrf.mxu0 }
  0xa9   :  { %v234_v2 = vadd.f32 %v623_v0, %v233_v1  ;;  %v282_v3 = vpop.f32.mrf.mxu1 }
  0xab   :  { %v283_v4 = vadd.f32 %v282_v3, %v234_v2 }
  0xad   :  { %322 = vst [vmem:[%s692_s3] sm:$0xff] %v283_v4 }
  0xae   :  { %v253_v5 = vpop.f32.mrf.mxu2 }
  0xaf   :  { %v254_v6 = vadd.f32 %v623_v0, %v253_v5  ;;  %v302_v7 = vpop.f32.mrf.mxu3 }
  0xb0   :  { %v235_v8 = vpop.f32.mrf.mxu0 }
  0xb1   :  { %v303_v9 = vadd.f32 %v302_v7, %v254_v6  ;;  %v236_v10 = vadd.f32 %v623_v0, %v235_v8  ;;  %v284_v11 = vpop.f32.mrf.mxu1 }
  0xb3   :  { %330 = vst [vmem:[%s692_s3 + $0x40] sm:$0xff] %v303_v9  ;;  %v285_v12 = vadd.f32 %v284_v11, %v236_v10 }
  0xb5   :  { %323 = vst [vmem:[%s692_s3 + $0x8] sm:$0xff] %v285_v12 }
  0xb6   :  { %v255_v13 = vpop.f32.mrf.mxu2 }
  0xb7   :  { %v256_v14 = vadd.f32 %v623_v0, %v255_v13  ;;  %v304_v15 = vpop.f32.mrf.mxu3 }
  0xb8   :  { %v238_v16 = vpop.f32.mrf.mxu0 }
  0xb9   :  { %v305_v17 = vadd.f32 %v304_v15, %v256_v14  ;;  %v239_v18 = vadd.f32 %v623_v0, %v238_v16  ;;  %v287_v19 = vpop.f32.mrf.mxu1 }
  0xbb   :  { %331 = vst [vmem:[%s692_s3 + $0x48] sm:$0xff] %v305_v17  ;;  %v288_v20 = vadd.f32 %v287_v19, %v239_v18 }
  0xbd   :  { %324 = vst [vmem:[%s692_s3 + $0x10] sm:$0xff] %v288_v20 }
  0xbe   :  { %v258_v21 = vpop.f32.mrf.mxu2 }
  0xbf   :  { %v259_v22 = vadd.f32 %v623_v0, %v258_v21  ;;  %v307_v23 = vpop.f32.mrf.mxu3 }
  0xc0   :  { %v240_v24 = vpop.f32.mrf.mxu0 }
  0xc1   :  { %v308_v25 = vadd.f32 %v307_v23, %v259_v22  ;;  %v241_v26 = vadd.f32 %v623_v0, %v240_v24  ;;  %v289_v27 = vpop.f32.mrf.mxu1 }
  0xc3   :  { %332 = vst [vmem:[%s692_s3 + $0x50] sm:$0xff] %v308_v25  ;;  %v290_v28 = vadd.f32 %v289_v27, %v241_v26 }
  0xc5   :  { %325 = vst [vmem:[%s692_s3 + $0x18] sm:$0xff] %v290_v28 }
  0xc6   :  { %v260_v29 = vpop.f32.mrf.mxu2 }
  0xc7   :  { %v261_v30 = vadd.f32 %v623_v0, %v260_v29  ;;  %v309_v31 = vpop.f32.mrf.mxu3 }
  0xc8   :  { %v243_v32 = vpop.f32.mrf.mxu0 }
  0xc9   :  { %v310_v33 = vadd.f32 %v309_v31, %v261_v30  ;;  %v244_v34 = vadd.f32 %v623_v0, %v243_v32  ;;  %v292_v35 = vpop.f32.mrf.mxu1 }
  0xcb   :  { %333 = vst [vmem:[%s692_s3 + $0x58] sm:$0xff] %v310_v33  ;;  %v293_v36 = vadd.f32 %v292_v35, %v244_v34 }
  0xcd   :  { %326 = vst [vmem:[%s692_s3 + $0x20] sm:$0xff] %v293_v36 }
  0xce   :  { %v263_v37 = vpop.f32.mrf.mxu2 }
  0xcf   :  { %v264_v38 = vadd.f32 %v623_v0, %v263_v37  ;;  %v312_v39 = vpop.f32.mrf.mxu3 }
  0xd0   :  { %v245_v40 = vpop.f32.mrf.mxu0 }
  0xd1   :  { %v313_v41 = vadd.f32 %v312_v39, %v264_v38  ;;  %v246_v42 = vadd.f32 %v623_v0, %v245_v40  ;;  %v294_v43 = vpop.f32.mrf.mxu1 }
  0xd3   :  { %334 = vst [vmem:[%s692_s3 + $0x60] sm:$0xff] %v313_v41  ;;  %v295_v44 = vadd.f32 %v294_v43, %v246_v42 }
  0xd5   :  { %327 = vst [vmem:[%s692_s3 + $0x28] sm:$0xff] %v295_v44 }
  0xd6   :  { %v265_v45 = vpop.f32.mrf.mxu2 }
  0xd7   :  { %v266_v46 = vadd.f32 %v623_v0, %v265_v45  ;;  %v314_v47 = vpop.f32.mrf.mxu3 }
  0xd8   :  { %v248_v48 = vpop.f32.mrf.mxu0 }
  0xd9   :  { %v315_v49 = vadd.f32 %v314_v47, %v266_v46  ;;  %v249_v50 = vadd.f32 %v623_v0, %v248_v48  ;;  %v297_v51 = vpop.f32.mrf.mxu1 }
  0xdb   :  { %335 = vst [vmem:[%s692_s3 + $0x68] sm:$0xff] %v315_v49  ;;  %v298_v52 = vadd.f32 %v297_v51, %v249_v50 }
  0xdd   :  { %328 = vst [vmem:[%s692_s3 + $0x30] sm:$0xff] %v298_v52 }
  0xde   :  { %v268_v53 = vpop.f32.mrf.mxu2 }
  0xdf   :  { %v269_v54 = vadd.f32 %v623_v0, %v268_v53  ;;  %v317_v55 = vpop.f32.mrf.mxu3 }
  0xe0   :  { %v250_v56 = vpop.f32.mrf.mxu0 }
  0xe1   :  { %v318_v57 = vadd.f32 %v317_v55, %v269_v54  ;;  %v251_v58 = vadd.f32 %v623_v0, %v250_v56  ;;  %v299_v59 = vpop.f32.mrf.mxu1 }
  0xe3   :  { %336 = vst [vmem:[%s692_s3 + $0x70] sm:$0xff] %v318_v57  ;;  %v300_v60 = vadd.f32 %v299_v59, %v251_v58 }
  0xe5   :  { %329 = vst [vmem:[%s692_s3 + $0x38] sm:$0xff] %v300_v60 }
  0xe6   :  { %v270_v61 = vpop.f32.mrf.mxu2 }
  0xe7   :  { %v271_v62 = vadd.f32 %v623_v0, %v270_v61  ;;  %v319_v63 = vpop.f32.mrf.mxu3 }
  0xe9   :  { %v320_v1 = vadd.f32 %v319_v63, %v271_v62 }
  0xeb   :  { %337 = vst [vmem:[%s692_s3 + $0x78] sm:$0xff] %v320_v1 }
  0xec   :  { %342 = vsyncpa [#allocation3], 1 }
  0xed   :  { %343 = vsyncpa [#allocation5], 1 }

// kernel: geniepath_forward.4
= control target key start
LH: loop header
LB: loop body
LE: loop exit
PB: predicated region body
PF: predicated region fallthrough
CT: control target
= control target key end

     0   :  { %s14611_s0 = inlined_call_operand.vmem [shape: f32[128,256], index: 0, kind: input, shape index: {}]   ;;  %s14612_s1 = inlined_call_operand.hbm [shape: f32[128,128], index: 1, kind: input, shape index: {}]   ;;  %s14613_s2 = inlined_call_operand.hbm [shape: bf16[4,256,256], index: 2, kind: input, shape index: {}]   ;;  %s14614_s3 = inlined_call_operand.hbm [shape: f32[4,1,256], index: 3, kind: input, shape index: {}]   ;;  %s14615_s4 = inlined_call_operand.hbm [shape: f32[4,1,256], index: 4, kind: input, shape index: {}]   ;;  %s14616_s5 = inlined_call_operand.hbm [shape: f32[4,1,256], index: 5, kind: input, shape index: {}]   ;;  %s14617_s6 = inlined_call_operand.hbm [shape: bf16[4,512,1024], index: 6, kind: input, shape index: {}]   ;;  %s14618_s7 = inlined_call_operand.vmem [shape: f32[128,256], index: 7, kind: output, shape index: {}]  }
   0x1   :  { %14691 = sst [smem:[#allocation102_spill]] %s14612_s1 }
   0x2   :  { %14692 = sst [smem:[#allocation103_spill]] %s14613_s2 }
   0x3   :  { %14693 = sst [smem:[#allocation104_spill]] %s14615_s4 }
   0x4   :  { %12 = vsyncpa [#allocation6], 0 }
   0x5   :  { %13 = vsyncpa [#allocation8], 0 }
   0x6   :  { %15 = vsyncpa [#allocation8 + $0x1], 0 }
   0x7   :  { %16 = vsyncpa [#allocation11], 0 }
   0x8   :  { %18 = vsyncpa [#allocation11 + $0x1], 0 }
   0x9   :  { %19 = vsyncpa [#allocation14], 0 }
   0xa   :  { %21 = vsyncpa [#allocation14 + $0x1], 0  ;;  %s9820_s24 = smov 0   ;;  %s9822_s25 = smov 0  }
   0xb   :  { %s9824_s26 = smov 0   ;;  %s9826_s27 = smov 0  }
   0xc LB: > { %14694 = sst [smem:[#allocation19_spill]] %s9768_s26  ;;  %s9841_s28 = sadd.s32 1, %s9772_s27   ;;  %s9772_s27 = sphi %s9826_s27, %s15159_s27   ;;  %s9768_s26 = sphi %s9824_s26, %s15161_s26   ;;  %s9764_s25 = sphi %s9822_s25, %s15163_s25   ;;  %s9760_s24 = sphi %s9820_s24, %s15162_s24  }
   0xd   : > { %14695 = sst [smem:[#allocation20_spill]] %s9841_s28  ;;  %s76_s29 = sadd.s32 1, %s9768_s26 }
   0xe   : > { %s73_s30 = ssub.s32 %s9772_s27, %s9841_s28  ;;  %p83_p0 = scmp.ne.s32.totalorder %s9768_s26, %s9764_s25 }
   0xf   : > { %p74_p1 = scmp.eq.s32.totalorder %s73_s30, 0  ;;  %p84_p2 = scmp.eq.s32.totalorder %s9772_s27, 0 }
  0x10   : > { %p8834_p4 = scmp.lt.s32.totalorder %s9772_s27, 4  ;;  %s14619_s9 = sand.u32 1, %s9772_s27  }
  0x11   : > { %s9850_s8 = scalar_select %p74_p1, %s9768_s26, %s76_s29  }
  0x12   : > { %p85_p3 = por %p84_p2, %p83_p0  ;;  %s9855_s10 = sand.u32 1, %s9768_s26  }
  0x13   : > { %14696 = sst [smem:[#allocation21_spill]] %s9850_s8  ;;  %s7222_s11 = sshll.u32 %s9855_s10, 8 }
  0x14   : > { %s8493_s12 = sshll.u32 %s9772_s27, 8  ;;  %s14697_s2 = sld [smem:[#allocation103_spill]] }
  0x15   : > { %s259_s17 = scalar_lea.vmem [#allocation7], %s7222_s11  ;;  %p9862_p5 = pnand %p8834_p4, %p85_p3 }
  0x16   : > { %s267_s18 = sshll.u32 %s259_s17, 4  ;;  %s9867_s20 = sshll.u32 %s9855_s10, 1  ;;  %s268_s18 = int_to_ptr.vmem [resolvable:$true] %s267_s18 }
  0x17   : > { %s9870_s21 = sshll.u32 %s9772_s27, 1  ;;  %s9874_s22 = scalar_lea.sflag [#allocation8], %s14619_s9 }
  0x18   : > { %p9878_p7 = pneg %p9862_p5 }
  0x1a   : > { %s264_s15 = scalar_lea.hbm %s14697_s2, %s8493_s12  ;;  %s9553_s13 = scalar_lea.hbm %s14697_s2, 1024 }
  0x1b   : > { %s265_s16 = sshll.u32 %s264_s15, 4  ;;  %s266_s16 = int_to_ptr.hbm [resolvable:$true] %s265_s16 }
  0x1c   : > { %s9546_s23 = sshra.s32 %s266_s16, 4  ;;  %s9547_s23 = int_to_ptr.hbm [resolvable:$true] %s9546_s23 }
  0x1d   : > { %s9548_s29 = scalar_lea.hbm %s9547_s23, 256  ;;  %p9554_p10 = scmp.lt.s32.totalorder %s9547_s23, %s14697_s2 }
  0x1e   : > { %p9549_p6 = scmp.ne.s32.totalorder %s9547_s23, %s9548_s29  ;;  %p9555_p11 = scmp.lt.s32.totalorder %s9553_s13, %s9548_s29 }
  0x20   : > { %p9551_p8 = pnand %p9878_p7, %p9549_p6  ;;  %p9556_p12 = por %p9555_p11, %p9554_p10 }
  0x22   : > { %p9552_p9 = pneg %p9551_p8 }
  0x24   : > { %p9557_p13 = pnand %p9556_p12, %p9552_p9 }
  0x26   : > { %9560 = shalt.err (!%p9557_p13)
}
  0x27   : > { %s14621_s17 = smov 128   ;;  %s14622_s9 = smov 8  }
  0x28   : > { %8820 = dma.hbm_to_vmem [thread:$0]  (!%p9862_p5), %s266_s16, 4096, %s268_s18, %s9874_s22, %s14621_s17, %s14621_s17, %s14622_s9  }
  0x29   : > { %s14700_s4 = sld [smem:[#allocation104_spill]]  ;;  %s300_s29 = scalar_lea.vmem [#allocation10], %s9867_s20 }
  0x2a   : > { %s308_s13 = sshll.u32 %s300_s29, 4  ;;  %s14701_s15 = sand.u32 1, %s9772_s27   ;;  %s309_s13 = int_to_ptr.vmem [resolvable:$true] %s308_s13 }
  0x2b   : > { %s9903_s2 = scalar_lea.sflag [#allocation11], %s14701_s15 }
  0x2f   : > { %s304_s23 = scalar_lea.hbm %s14700_s4, %s9870_s21  ;;  %s9583_s11 = scalar_lea.hbm %s14700_s4, 8 }
  0x30   : > { %s306_s14 = sshll.u32 %s304_s23, 4  ;;  %s307_s14 = int_to_ptr.hbm [resolvable:$true] %s306_s14 }
  0x31   : > { %s9576_s8 = sshra.s32 %s307_s14, 4  ;;  %s9577_s8 = int_to_ptr.hbm [resolvable:$true] %s9576_s8 }
  0x32   : > { %s9578_s26 = scalar_lea.hbm %s9577_s8, 2  ;;  %p9584_p3 = scmp.lt.s32.totalorder %s9577_s8, %s14700_s4 }
  0x33   : > { %p9579_p0 = scmp.ne.s32.totalorder %s9577_s8, %s9578_s26  ;;  %p9585_p4 = scmp.lt.s32.totalorder %s9583_s11, %s9578_s26 }
  0x35   : > { %p9581_p1 = pnand %p9579_p0, %p9878_p7  ;;  %p9586_p6 = por %p9585_p4, %p9584_p3 }
  0x37   : > { %p9582_p2 = pneg %p9581_p1 }
  0x39   : > { %p9587_p8 = pnand %p9586_p6, %p9582_p2 }
  0x3b   : > { %9590 = shalt.err (!%p9587_p8)
}
  0x3c   : > { %8826 = dma.hbm_to_vmem [thread:$0]  (!%p9862_p5), %s307_s14, 32, %s309_s13, %s9903_s2  }
  0x3d   : > { %s9917_s23 = sadd.s32 4294967295, %s9772_s27   ;;  %p89_p9 = scmp.ne.s32.totalorder %s9764_s25, %s9760_s24 }
  0x3e   : > { %p90_p10 = scmp.eq.s32.totalorder %s9917_s23, 0  ;;  %p7219_p11 = scmp.ge.s32.totalorder %s9772_s27, 1 }
  0x3f   : > { %p225_p12 = scmp.lt.s32.totalorder %s9772_s27, 5  ;;  %p7220_p0 = scmp.ne.s32.totalorder %s9917_s23, 0 }
  0x40   : > { %p9926_p13 = por %p90_p10, %p89_p9  ;;  %s14704_s1 = sld [smem:[#allocation102_spill]] }
  0x41   : > { %p9931_p1 = pnand %p7219_p11, %p225_p12  ;;  %s9776_s24 = smov [#allocation5]  }
  0x42   : > { %s241_s14 = sshll.u32 %s9776_s24, 4  ;;  %s285_s18 = scalar_lea.hbm %s14614_s3, %s9870_s21  ;;  %s242_s14 = int_to_ptr.vmem [resolvable:$true] %s241_s14 }
  0x43   : > { %p8813_p2 = pneg %p9931_p1  ;;  %s287_s11 = sshll.u32 %s285_s18, 4  ;;  %s288_s11 = int_to_ptr.hbm [resolvable:$true] %s287_s11 }
  0x44   : > { %s281_s12 = scalar_lea.vmem [#allocation9], %s9867_s20  ;;  %s14705_s17 = smov 8  }
  0x45   : > { %p8814_p3 = pnand %p8813_p2, %p90_p10  ;;  %s289_s9 = sshll.u32 %s281_s12, 4  ;;  %s290_s9 = int_to_ptr.vmem [resolvable:$true] %s289_s9 }
  0x46   : > { %s239_s13 = sshll.u32 %s14704_s1, 4  ;;  %s14706_s29 = smov 128   ;;  %s240_s13 = int_to_ptr.hbm [resolvable:$true] %s239_s13 }
  0x47   : > { %8816 = dma.hbm_to_vmem [thread:$0]  (!%p8814_p3), %s240_s13, 2048, %s242_s14, [#allocation6], %s14706_s29, %s14706_s29, %s14705_s17  }
  0x48   : > { %s9636_s1 = sshra.s32 %s288_s11, 4  ;;  %s9643_s15 = scalar_lea.hbm %s14614_s3, 8  ;;  %s9637_s1 = int_to_ptr.hbm [resolvable:$true] %s9636_s1 }
  0x49   : > { %s9638_s4 = scalar_lea.hbm %s9637_s1, 2  ;;  %p9644_p9 = scmp.lt.s32.totalorder %s9637_s1, %s14614_s3 }
  0x4a   : > { %p9639_p4 = scmp.ne.s32.totalorder %s9637_s1, %s9638_s4  ;;  %p9645_p11 = scmp.lt.s32.totalorder %s9643_s15, %s9638_s4 }
  0x4c   : > { %p9641_p6 = pnand %p9639_p4, %p9878_p7  ;;  %p9646_p12 = por %p9645_p11, %p9644_p9 }
  0x4e   : > { %p9642_p8 = pneg %p9641_p6 }
  0x50   : > { %p9647_p2 = pnand %p9646_p12, %p9642_p8 }
  0x52   : > { %9650 = shalt.err (!%p9647_p2)
}
  0x53   : > { %8823 = dma.hbm_to_vmem [thread:$0]  (!%p9862_p5), %s288_s11, 32, %s290_s9, %s9874_s22  }
  0x54   : > { %s323_s28 = scalar_lea.hbm %s14616_s5, %s9870_s21  ;;  %s319_s12 = scalar_lea.vmem [#allocation12], %s9867_s20 }
  0x55   : > { %s327_s17 = sshll.u32 %s319_s12, 4  ;;  %s325_s29 = sshll.u32 %s323_s28, 4  ;;  %s328_s17 = int_to_ptr.vmem [resolvable:$true] %s327_s17  ;;  %s326_s29 = int_to_ptr.hbm [resolvable:$true] %s325_s29 }
  0x56   : > { %s9666_s1 = sshra.s32 %s326_s29, 4  ;;  %s9673_s9 = scalar_lea.hbm %s14616_s5, 8  ;;  %s9667_s1 = int_to_ptr.hbm [resolvable:$true] %s9666_s1 }
  0x57   : > { %s9668_s4 = scalar_lea.hbm %s9667_s1, 2  ;;  %p9674_p8 = scmp.lt.s32.totalorder %s9667_s1, %s14616_s5 }
  0x58   : > { %p9669_p3 = scmp.ne.s32.totalorder %s9667_s1, %s9668_s4  ;;  %p9675_p9 = scmp.lt.s32.totalorder %s9673_s9, %s9668_s4 }
  0x5a   : > { %p9671_p4 = pnand %p9669_p3, %p9878_p7  ;;  %p9676_p11 = por %p9675_p9, %p9674_p8 }
  0x5c   : > { %p9672_p6 = pneg %p9671_p4 }
  0x5e   : > { %p9677_p12 = pnand %p9676_p11, %p9672_p6 }
  0x60   : > { %9680 = shalt.err (!%p9677_p12)
}
  0x61   : > { %8829 = dma.hbm_to_vmem [thread:$0]  (!%p9862_p5), %s326_s29, 32, %s328_s17, %s9903_s2  }
  0x62   : > { %s7231_s20 = sshll.u32 %s9855_s10, 11  ;;  %s8494_s21 = sshll.u32 %s9772_s27, 11 }
  0x63   : > { %s343_s13 = scalar_lea.hbm %s14617_s6, %s8494_s21  ;;  %s338_s28 = scalar_lea.vmem [#allocation13], %s7231_s20 }
  0x64   : > { %s344_s14 = sshll.u32 %s343_s13, 4  ;;  %s346_s12 = sshll.u32 %s338_s28, 4  ;;  %s345_s14 = int_to_ptr.hbm [resolvable:$true] %s344_s14  ;;  %s347_s12 = int_to_ptr.vmem [resolvable:$true] %s346_s12 }
  0x65   : > { %s335_s1 = scalar_lea.sflag [#allocation14], %s9855_s10  ;;  %s9696_s4 = sshra.s32 %s345_s14, 4  ;;  %s9697_s4 = int_to_ptr.hbm [resolvable:$true] %s9696_s4 }
  0x66   : > { %s9698_s24 = scalar_lea.hbm %s9697_s4, 2048  ;;  %s9703_s27 = scalar_lea.hbm %s14617_s6, 8192 }
  0x67   : > { %p9699_p2 = scmp.ne.s32.totalorder %s9697_s4, %s9698_s24  ;;  %p9704_p6 = scmp.lt.s32.totalorder %s9697_s4, %s14617_s6 }
  0x68   : > { %p9705_p8 = scmp.lt.s32.totalorder %s9703_s27, %s9698_s24 }
  0x69   : > { %p9701_p3 = pnand %p9699_p2, %p9878_p7 }
  0x6a   : > { %p9706_p9 = por %p9705_p8, %p9704_p6 }
  0x6b   : > { %p9702_p4 = pneg %p9701_p3 }
  0x6d   : > { %p9707_p11 = pnand %p9706_p9, %p9702_p4 }
  0x6f   : > { %9710 = shalt.err (!%p9707_p11)
}
  0x70   : > { %s9777_s10 = smov 512   ;;  %s9778_s9 = smov 32  }
  0x71   : > { %8832 = dma.hbm_to_vmem [thread:$0]  (!%p9862_p5), %s345_s14, 32768, %s347_s12, %s335_s1, %s9777_s10, %s9777_s10, %s9778_s9  }
  0x72   : > { %358 = sbr.rel (%p9931_p1) target bundleno = 2516 (0x9d4), region = 48 }
  0x77   : > { %9743 = dma.done.wait (%p90_p10), [#allocation6], 2048  }
  0x78   : > { %9745 = vsyncadd (%p90_p10), [#allocation6], 4294965248  ;;  %s365_s30 = sand.u32 1, %s9917_s23   ;;  %s367_s22 = sand.u32 1, %s9764_s25  }
  0x79   : > { %s7236_s11 = sshll.u32 %s367_s22, 8  ;;  %s366_s20 = scalar_lea.sflag [#allocation8], %s365_s30 }
  0x7a   : > { %s10001_s21 = scalar_lea.vmem [#allocation7], %s7236_s11 }
  0x7b   : > { %9747 = dma.done.wait (%p9926_p13), %s366_s20, 4128  }
  0x7c   : > { %9749 = vsyncadd (%p9926_p13), %s366_s20, 4294963168  ;;  %s10007_s19 = sshll.u32 %s367_s22, 1  ;;  %s386_s16 = scalar_lea.sflag [#allocation11], %s365_s30 }
  0x7d   : > { %s379_s8 = scalar_lea.vmem [#allocation9], %s10007_s19  ;;  %s389_s18 = scalar_lea.vmem [#allocation10], %s10007_s19 }
  0x7e   : > { %9751 = dma.done.wait (%p9926_p13), %s386_s16, 64  }
  0x7f   : > { %9753 = vsyncadd (%p9926_p13), %s386_s16, 4294967232  ;;  %s7240_s13 = sshll.u32 %s367_s22, 11  ;;  %s399_s14 = scalar_lea.vmem [#allocation12], %s10007_s19 }
  0x80   : > { %s406_s28 = scalar_lea.sflag [#allocation14], %s367_s22  ;;  %s10016_s12 = scalar_lea.vmem [#allocation13], %s7240_s13 }
  0x81   : > { %9755 = dma.done.wait (%p9926_p13), %s406_s28, 32768  }
  0x82   : > { %9757 = vsyncadd (%p9926_p13), %s406_s28, 4294934528  ;;  %459 = sbr.rel (%p7220_p0) target bundleno = 232 (0xe8), region = 76 }
  0x87   : > { %v460_v0 = vld [vmem:[%s14611_s0] sm:$0xff]  ;;  %v461_v1 = vld [vmem:[%s14611_s0 + $0x8] sm:$0xff]  ;;  %v462_v2 = vld [vmem:[%s14611_s0 + $0x10] sm:$0xff]  ;;  %v9779_v32 = vmov 0.0  }
  0x88   : > { %492 = vst [vmem:[#allocation2 + $0xb0] sm:$0xff] %v460_v0  ;;  %v463_v3 = vld [vmem:[%s14611_s0 + $0x18] sm:$0xff]  ;;  %v464_v4 = vld [vmem:[%s14611_s0 + $0x20] sm:$0xff]  ;;  %v465_v5 = vld [vmem:[%s14611_s0 + $0x28] sm:$0xff] }
  0x89   : > { %493 = vst [vmem:[#allocation2] sm:$0xff] %v461_v1  ;;  %v466_v6 = vld [vmem:[%s14611_s0 + $0x30] sm:$0xff]  ;;  %v467_v7 = vld [vmem:[%s14611_s0 + $0x38] sm:$0xff]  ;;  %v468_v8 = vld [vmem:[%s14611_s0 + $0x40] sm:$0xff] }
  0x8a   : > { %494 = vst [vmem:[#allocation2 + $0xd8] sm:$0xff] %v462_v2  ;;  %v469_v9 = vld [vmem:[%s14611_s0 + $0x48] sm:$0xff]  ;;  %v470_v10 = vld [vmem:[%s14611_s0 + $0x50] sm:$0xff]  ;;  %v471_v11 = vld [vmem:[%s14611_s0 + $0x58] sm:$0xff] }
  0x8b   : > { %495 = vst [vmem:[#allocation2 + $0x18] sm:$0xff] %v463_v3  ;;  %v472_v12 = vld [vmem:[%s14611_s0 + $0x60] sm:$0xff]  ;;  %v473_v13 = vld [vmem:[%s14611_s0 + $0x68] sm:$0xff]  ;;  %v474_v14 = vld [vmem:[%s14611_s0 + $0x70] sm:$0xff] }
  0x8c   : > { %496 = vst [vmem:[#allocation2 + $0x50] sm:$0xff] %v464_v4  ;;  %v475_v15 = vld [vmem:[%s14611_s0 + $0x78] sm:$0xff]  ;;  %v476_v16 = vld [vmem:[%s14611_s0 + $0x80] sm:$0xff]  ;;  %v477_v17 = vld [vmem:[%s14611_s0 + $0x88] sm:$0xff] }
  0x8d   : > { %497 = vst [vmem:[#allocation2 + $0x68] sm:$0xff] %v465_v5  ;;  %v478_v18 = vld [vmem:[%s14611_s0 + $0x90] sm:$0xff]  ;;  %v479_v19 = vld [vmem:[%s14611_s0 + $0x98] sm:$0xff]  ;;  %v480_v20 = vld [vmem:[%s14611_s0 + $0xa0] sm:$0xff] }
  0x8e   : > { %498 = vst [vmem:[#allocation2 + $0x30] sm:$0xff] %v466_v6  ;;  %v481_v21 = vld [vmem:[%s14611_s0 + $0xa8] sm:$0xff]  ;;  %v482_v22 = vld [vmem:[%s14611_s0 + $0xb0] sm:$0xff]  ;;  %v483_v23 = vld [vmem:[%s14611_s0 + $0xb8] sm:$0xff] }
  0x8f   : > { %499 = vst [vmem:[#allocation2 + $0x48] sm:$0xff] %v467_v7  ;;  %v484_v24 = vld [vmem:[%s14611_s0 + $0xc0] sm:$0xff]  ;;  %v485_v25 = vld [vmem:[%s14611_s0 + $0xc8] sm:$0xff]  ;;  %v486_v26 = vld [vmem:[%s14611_s0 + $0xd0] sm:$0xff] }
  0x90   : > { %500 = vst [vmem:[#allocation2 + $0x80] sm:$0xff] %v468_v8  ;;  %v487_v27 = vld [vmem:[%s14611_s0 + $0xd8] sm:$0xff]  ;;  %v488_v28 = vld [vmem:[%s14611_s0 + $0xe0] sm:$0xff]  ;;  %v489_v29 = vld [vmem:[%s14611_s0 + $0xe8] sm:$0xff] }
  0x91   : > { %501 = vst [vmem:[#allocation2 + $0x88] sm:$0xff] %v469_v9  ;;  %v490_v30 = vld [vmem:[%s14611_s0 + $0xf0] sm:$0xff]  ;;  %v491_v31 = vld [vmem:[%s14611_s0 + $0xf8] sm:$0xff] }
  0x92   : > { %502 = vst [vmem:[#allocation2 + $0xe8] sm:$0xff] %v470_v10 }
  0x93   : > { %503 = vst [vmem:[#allocation2 + $0xb8] sm:$0xff] %v471_v11 }
  0x94   : > { %504 = vst [vmem:[#allocation2 + $0x60] sm:$0xff] %v472_v12 }
  0x95   : > { %505 = vst [vmem:[#allocation2 + $0xf0] sm:$0xff] %v473_v13 }
  0x96   : > { %506 = vst [vmem:[#allocation2 + $0x8] sm:$0xff] %v474_v14 }
  0x97   : > { %507 = vst [vmem:[#allocation2 + $0x78] sm:$0xff] %v475_v15 }
  0x98   : > { %508 = vst [vmem:[#allocation2 + $0x38] sm:$0xff] %v476_v16 }
  0x99   : > { %509 = vst [vmem:[#allocation2 + $0x58] sm:$0xff] %v477_v17 }
  0x9a   : > { %510 = vst [vmem:[#allocation2 + $0x40] sm:$0xff] %v478_v18 }
  0x9b   : > { %511 = vst [vmem:[#allocation2 + $0xc8] sm:$0xff] %v479_v19 }
  0x9c   : > { %512 = vst [vmem:[#allocation2 + $0xe0] sm:$0xff] %v480_v20 }
  0x9d   : > { %513 = vst [vmem:[#allocation2 + $0x90] sm:$0xff] %v481_v21 }
  0x9e   : > { %514 = vst [vmem:[#allocation2 + $0x70] sm:$0xff] %v482_v22 }
  0x9f   : > { %515 = vst [vmem:[#allocation2 + $0xc0] sm:$0xff] %v483_v23 }
  0xa0   : > { %516 = vst [vmem:[#allocation2 + $0xa8] sm:$0xff] %v484_v24 }
  0xa1   : > { %517 = vst [vmem:[#allocation2 + $0xd0] sm:$0xff] %v485_v25 }
  0xa2   : > { %518 = vst [vmem:[#allocation2 + $0x10] sm:$0xff] %v486_v26 }
  0xa3   : > { %519 = vst [vmem:[#allocation2 + $0x28] sm:$0xff] %v487_v27 }
  0xa4   : > { %520 = vst [vmem:[#allocation2 + $0xa0] sm:$0xff] %v488_v28 }
  0xa5   : > { %521 = vst [vmem:[#allocation2 + $0xf8] sm:$0xff] %v489_v29 }
  0xa6   : > { %522 = vst [vmem:[#allocation2 + $0x20] sm:$0xff] %v490_v30 }
  0xa7   : > { %523 = vst [vmem:[#allocation2 + $0x98] sm:$0xff] %v491_v31 }
  0xa8   : > { %524 = vst [vmem:[#allocation3 + $0x80] sm:$0xff] %v9779_v32 }
  0xa9   : > { %525 = vst [vmem:[#allocation3 + $0xc8] sm:$0xff] %v9779_v32 }
  0xaa   : > { %526 = vst [vmem:[#allocation3 + $0xe8] sm:$0xff] %v9779_v32 }
  0xab   : > { %527 = vst [vmem:[#allocation3 + $0x78] sm:$0xff] %v9779_v32 }
  0xac   : > { %528 = vst [vmem:[#allocation3 + $0x8] sm:$0xff] %v9779_v32 }
  0xad   : > { %529 = vst [vmem:[#allocation3 + $0x90] sm:$0xff] %v9779_v32 }
  0xae   : > { %530 = vst [vmem:[#allocation3 + $0x58] sm:$0xff] %v9779_v32 }
  0xaf   : > { %531 = vst [vmem:[#allocation3 + $0xa8] sm:$0xff] %v9779_v32 }
  0xb0   : > { %532 = vst [vmem:[#allocation3 + $0xd0] sm:$0xff] %v9779_v32 }
  0xb1   : > { %533 = vst [vmem:[#allocation3 + $0xb0] sm:$0xff] %v9779_v32 }
  0xb2   : > { %534 = vst [vmem:[#allocation3 + $0x38] sm:$0xff] %v9779_v32 }
  0xb3   : > { %535 = vst [vmem:[#allocation3 + $0x40] sm:$0xff] %v9779_v32 }
  0xb4   : > { %536 = vst [vmem:[#allocation3 + $0xe0] sm:$0xff] %v9779_v32 }
  0xb5   : > { %537 = vst [vmem:[#allocation3 + $0x60] sm:$0xff] %v9779_v32 }
  0xb6   : > { %538 = vst [vmem:[#allocation3 + $0x18] sm:$0xff] %v9779_v32 }
  0xb7   : > { %539 = vst [vmem:[#allocation3 + $0x68] sm:$0xff] %v9779_v32 }
  0xb8   : > { %540 = vst [vmem:[#allocation3 + $0x10] sm:$0xff] %v9779_v32 }
  0xb9   : > { %541 = vst [vmem:[#allocation3 + $0x70] sm:$0xff] %v9779_v32 }
  0xba   : > { %542 = vst [vmem:[#allocation3 + $0x50] sm:$0xff] %v9779_v32 }
  0xbb   : > { %543 = vst [vmem:[#allocation3 + $0xa0] sm:$0xff] %v9779_v32 }
  0xbc   : > { %544 = vst [vmem:[#allocation3 + $0xd8] sm:$0xff] %v9779_v32 }
  0xbd   : > { %545 = vst [vmem:[#allocation3 + $0x30] sm:$0xff] %v9779_v32 }
  0xbe   : > { %546 = vst [vmem:[#allocation3 + $0x20] sm:$0xff] %v9779_v32 }
  0xbf   : > { %547 = vst [vmem:[#allocation3 + $0xf0] sm:$0xff] %v9779_v32 }
  0xc0   : > { %548 = vst [vmem:[#allocation3 + $0x88] sm:$0xff] %v9779_v32 }
  0xc1   : > { %549 = vst [vmem:[#allocation3 + $0x48] sm:$0xff] %v9779_v32 }
  0xc2   : > { %550 = vst [vmem:[#allocation3 + $0xf8] sm:$0xff] %v9779_v32 }
  0xc3   : > { %551 = vst [vmem:[#allocation3 + $0xc0] sm:$0xff] %v9779_v32 }
  0xc4   : > { %552 = vst [vmem:[#allocation3 + $0xb8] sm:$0xff] %v9779_v32 }
  0xc5   : > { %553 = vst [vmem:[#allocation3] sm:$0xff] %v9779_v32 }
  0xc6   : > { %554 = vst [vmem:[#allocation3 + $0x28] sm:$0xff] %v9779_v32 }
  0xc7   : > { %555 = vst [vmem:[#allocation3 + $0x98] sm:$0xff] %v9779_v32 }
  0xc8   : > { %556 = vst [vmem:[#allocation4 + $0xb0] sm:$0xff] %v9779_v32 }
  0xc9   : > { %557 = vst [vmem:[#allocation4 + $0xb8] sm:$0xff] %v9779_v32 }
  0xca   : > { %558 = vst [vmem:[#allocation4 + $0xc0] sm:$0xff] %v9779_v32 }
  0xcb   : > { %559 = vst [vmem:[#allocation4 + $0x10] sm:$0xff] %v9779_v32 }
  0xcc   : > { %560 = vst [vmem:[#allocation4 + $0x28] sm:$0xff] %v9779_v32 }
  0xcd   : > { %561 = vst [vmem:[#allocation4 + $0x30] sm:$0xff] %v9779_v32 }
  0xce   : > { %562 = vst [vmem:[#allocation4 + $0xd0] sm:$0xff] %v9779_v32 }
  0xcf   : > { %563 = vst [vmem:[#allocation4 + $0x68] sm:$0xff] %v9779_v32 }
  0xd0   : > { %564 = vst [vmem:[#allocation4 + $0x58] sm:$0xff] %v9779_v32 }
  0xd1   : > { %565 = vst [vmem:[#allocation4] sm:$0xff] %v9779_v32 }
  0xd2   : > { %566 = vst [vmem:[#allocation4 + $0x48] sm:$0xff] %v9779_v32 }
  0xd3   : > { %567 = vst [vmem:[#allocation4 + $0x40] sm:$0xff] %v9779_v32 }
  0xd4   : > { %568 = vst [vmem:[#allocation4 + $0x78] sm:$0xff] %v9779_v32 }
  0xd5   : > { %569 = vst [vmem:[#allocation4 + $0xd8] sm:$0xff] %v9779_v32 }
  0xd6   : > { %570 = vst [vmem:[#allocation4 + $0xe0] sm:$0xff] %v9779_v32 }
  0xd7   : > { %571 = vst [vmem:[#allocation4 + $0x80] sm:$0xff] %v9779_v32 }
  0xd8   : > { %572 = vst [vmem:[#allocation4 + $0xa0] sm:$0xff] %v9779_v32 }
  0xd9   : > { %573 = vst [vmem:[#allocation4 + $0x18] sm:$0xff] %v9779_v32 }
  0xda   : > { %574 = vst [vmem:[#allocation4 + $0xf8] sm:$0xff] %v9779_v32 }
  0xdb   : > { %575 = vst [vmem:[#allocation4 + $0xe8] sm:$0xff] %v9779_v32 }
  0xdc   : > { %576 = vst [vmem:[#allocation4 + $0x90] sm:$0xff] %v9779_v32 }
  0xdd   : > { %577 = vst [vmem:[#allocation4 + $0x20] sm:$0xff] %v9779_v32 }
  0xde   : > { %578 = vst [vmem:[#allocation4 + $0x38] sm:$0xff] %v9779_v32 }
  0xdf   : > { %579 = vst [vmem:[#allocation4 + $0x70] sm:$0xff] %v9779_v32 }
  0xe0   : > { %580 = vst [vmem:[#allocation4 + $0xa8] sm:$0xff] %v9779_v32 }
  0xe1   : > { %581 = vst [vmem:[#allocation4 + $0xf0] sm:$0xff] %v9779_v32 }
  0xe2   : > { %582 = vst [vmem:[#allocation4 + $0x50] sm:$0xff] %v9779_v32 }
  0xe3   : > { %583 = vst [vmem:[#allocation4 + $0x88] sm:$0xff] %v9779_v32 }
  0xe4   : > { %584 = vst [vmem:[#allocation4 + $0xc8] sm:$0xff] %v9779_v32 }
  0xe5   : > { %585 = vst [vmem:[#allocation4 + $0x98] sm:$0xff] %v9779_v32 }
  0xe6   : > { %586 = vst [vmem:[#allocation4 + $0x60] sm:$0xff] %v9779_v32 }
  0xe7   : > { %587 = vst [vmem:[#allocation4 + $0x8] sm:$0xff] %v9779_v32 }
  0xe8 PF: > { %v7300_v33 = vld [vmem:[%s10001_s21 + $0x70] sm:$0xf]  ;;  %v8510_v34 = vld [vmem:[%s10001_s21 + $0x74] sm:$0xf0]  ;;  %v8509_v38 = vld [vmem:[%s10001_s21 + $0x74] sm:$0xf] }
  0xe9   : > { %v7364_v35 = vld [vmem:[%s10001_s21 + $0xf0] sm:$0xf]  ;;  %v7301_v36 = vor.u32 %v8510_v34, %v7300_v33  ;;  %v8526_v37 = vld [vmem:[%s10001_s21 + $0xf4] sm:$0xf0]  ;;  %v7302_v39 = vld [vmem:[%s10001_s21 + $0x78] sm:$0xf0] }
  0xea   : > { %v7365_v40 = vor.u32 %v8526_v37, %v7364_v35  ;;  %v7305_v41 = vor.u32 %v8509_v38, %v7302_v39  ;;  %v8525_v42 = vld [vmem:[%s10001_s21 + $0xf4] sm:$0xf]  ;;  %v7366_v43 = vld [vmem:[%s10001_s21 + $0xf8] sm:$0xf0]  ;;  %v7292_v44 = vld [vmem:[%s10001_s21 + $0x60] sm:$0xf] }
  0xeb   : > { %828 = vmatpush.bf16.msra.mxu0 %v7301_v36  ;;  %v7369_v45 = vor.u32 %v8525_v42, %v7366_v43  ;;  %v8508_v46 = vld [vmem:[%s10001_s21 + $0x64] sm:$0xf0]  ;;  %v7356_v47 = vld [vmem:[%s10001_s21 + $0xe0] sm:$0xf]  ;;  %v8507_v51 = vld [vmem:[%s10001_s21 + $0x64] sm:$0xf] }
  0xec   : > { %v8524_v48 = vld [vmem:[%s10001_s21 + $0xe4] sm:$0xf0]  ;;  %877 = vmatpush.bf16.msra.mxu1 %v7365_v40  ;;  %926 = vmatpush.bf16.msra.mxu2 %v7305_v41  ;;  %v7293_v49 = vor.u32 %v8508_v46, %v7292_v44  ;;  %v7294_v52 = vld [vmem:[%s10001_s21 + $0x68] sm:$0xf0]  ;;  %v8523_v53 = vld [vmem:[%s10001_s21 + $0xe4] sm:$0xf] }
  0xed   : > { %v7357_v50 = vor.u32 %v8524_v48, %v7356_v47  ;;  %975 = vmatpush.bf16.msra.mxu3 %v7369_v45  ;;  %v7297_v54 = vor.u32 %v8507_v51, %v7294_v52  ;;  %v7358_v55 = vld [vmem:[%s10001_s21 + $0xe8] sm:$0xf0]  ;;  %v7284_v56 = vld [vmem:[%s10001_s21 + $0x50] sm:$0xf]  ;;  %v8506_v57 = vld [vmem:[%s10001_s21 + $0x54] sm:$0xf0] }
  0xee   : > { %v7361_v58 = vor.u32 %v8523_v53, %v7358_v55  ;;  %v7348_v59 = vld [vmem:[%s10001_s21 + $0xd0] sm:$0xf]  ;;  %v8522_v60 = vld [vmem:[%s10001_s21 + $0xd4] sm:$0xf0]  ;;  %v8505_v61 = vld [vmem:[%s10001_s21 + $0x54] sm:$0xf]  ;;  %v7285_v62 = vor.u32 %v8506_v57, %v7284_v56 }
  0xef   : > { %829 = vmatpush.bf16.msra.mxu0 %v7293_v49  ;;  %v7286_v63 = vld [vmem:[%s10001_s21 + $0x58] sm:$0xf0]  ;;  %v8521_v0 = vld [vmem:[%s10001_s21 + $0xd4] sm:$0xf]  ;;  %v7349_v2 = vor.u32 %v8522_v60, %v7348_v59  ;;  %v7276_v4 = vld [vmem:[%s10001_s21 + $0x40] sm:$0xf] }
  0xf0   : > { %v7350_v1 = vld [vmem:[%s10001_s21 + $0xd8] sm:$0xf0]  ;;  %878 = vmatpush.bf16.msra.mxu1 %v7357_v50  ;;  %927 = vmatpush.bf16.msra.mxu2 %v7297_v54  ;;  %v7289_v3 = vor.u32 %v8505_v61, %v7286_v63  ;;  %v8504_v5 = vld [vmem:[%s10001_s21 + $0x44] sm:$0xf0]  ;;  %v7340_v6 = vld [vmem:[%s10001_s21 + $0xc0] sm:$0xf] }
  0xf1   : > { %976 = vmatpush.bf16.msra.mxu3 %v7361_v58  ;;  %v7353_v7 = vor.u32 %v8521_v0, %v7350_v1  ;;  %v8520_v8 = vld [vmem:[%s10001_s21 + $0xc4] sm:$0xf0]  ;;  %v8503_v9 = vld [vmem:[%s10001_s21 + $0x44] sm:$0xf]  ;;  %v7278_v10 = vld [vmem:[%s10001_s21 + $0x48] sm:$0xf0]  ;;  %v7277_v13 = vor.u32 %v8504_v5, %v7276_v4 }
  0xf2   : > { %v8519_v11 = vld [vmem:[%s10001_s21 + $0xc4] sm:$0xf]  ;;  %v7342_v12 = vld [vmem:[%s10001_s21 + $0xc8] sm:$0xf0]  ;;  %v7341_v14 = vor.u32 %v8520_v8, %v7340_v6  ;;  %v7281_v15 = vor.u32 %v8503_v9, %v7278_v10  ;;  %v7268_v16 = vld [vmem:[%s10001_s21 + $0x30] sm:$0xf] }
  0xf3   : > { %830 = vmatpush.bf16.msra.mxu0 %v7285_v62  ;;  %v8502_v17 = vld [vmem:[%s10001_s21 + $0x34] sm:$0xf0]  ;;  %v7332_v18 = vld [vmem:[%s10001_s21 + $0xb0] sm:$0xf]  ;;  %v7345_v19 = vor.u32 %v8519_v11, %v7342_v12  ;;  %v8501_v21 = vld [vmem:[%s10001_s21 + $0x34] sm:$0xf] }
  0xf4   : > { %879 = vmatpush.bf16.msra.mxu1 %v7349_v2  ;;  %928 = vmatpush.bf16.msra.mxu2 %v7289_v3  ;;  %v8518_v20 = vld [vmem:[%s10001_s21 + $0xb4] sm:$0xf0]  ;;  %v7270_v22 = vld [vmem:[%s10001_s21 + $0x38] sm:$0xf0]  ;;  %v8517_v23 = vld [vmem:[%s10001_s21 + $0xb4] sm:$0xf]  ;;  %v7269_v25 = vor.u32 %v8502_v17, %v7268_v16 }
  0xf5   : > { %977 = vmatpush.bf16.msra.mxu3 %v7353_v7  ;;  %v7334_v24 = vld [vmem:[%s10001_s21 + $0xb8] sm:$0xf0]  ;;  %v7333_v26 = vor.u32 %v8518_v20, %v7332_v18  ;;  %v7273_v27 = vor.u32 %v8501_v21, %v7270_v22  ;;  %v7260_v28 = vld [vmem:[%s10001_s21 + $0x20] sm:$0xf]  ;;  %v8500_v29 = vld [vmem:[%s10001_s21 + $0x24] sm:$0xf0] }
  0xf6   : > { %v7324_v30 = vld [vmem:[%s10001_s21 + $0xa0] sm:$0xf]  ;;  %v7337_v31 = vor.u32 %v8517_v23, %v7334_v24  ;;  %v8516_v32 = vld [vmem:[%s10001_s21 + $0xa4] sm:$0xf0]  ;;  %v8499_v33 = vld [vmem:[%s10001_s21 + $0x24] sm:$0xf]  ;;  %v7261_v37 = vor.u32 %v8500_v29, %v7260_v28 }
  0xf7   : > { %831 = vmatpush.bf16.msra.mxu0 %v7277_v13  ;;  %v7262_v34 = vld [vmem:[%s10001_s21 + $0x28] sm:$0xf0]  ;;  %v8515_v35 = vld [vmem:[%s10001_s21 + $0xa4] sm:$0xf]  ;;  %v7325_v38 = vor.u32 %v8516_v32, %v7324_v30  ;;  %v7252_v40 = vld [vmem:[%s10001_s21 + $0x10] sm:$0xf] }
  0xf8   : > { %880 = vmatpush.bf16.msra.mxu1 %v7341_v14  ;;  %929 = vmatpush.bf16.msra.mxu2 %v7281_v15  ;;  %v7326_v36 = vld [vmem:[%s10001_s21 + $0xa8] sm:$0xf0]  ;;  %v7265_v39 = vor.u32 %v8499_v33, %v7262_v34  ;;  %v8498_v41 = vld [vmem:[%s10001_s21 + $0x14] sm:$0xf0]  ;;  %v7316_v42 = vld [vmem:[%s10001_s21 + $0x90] sm:$0xf] }
  0xf9   : > { %978 = vmatpush.bf16.msra.mxu3 %v7345_v19  ;;  %v7329_v43 = vor.u32 %v8515_v35, %v7326_v36  ;;  %v8514_v44 = vld [vmem:[%s10001_s21 + $0x94] sm:$0xf0]  ;;  %v8497_v45 = vld [vmem:[%s10001_s21 + $0x14] sm:$0xf]  ;;  %v7254_v46 = vld [vmem:[%s10001_s21 + $0x18] sm:$0xf0]  ;;  %v7253_v49 = vor.u32 %v8498_v41, %v7252_v40 }
  0xfa   : > { %v8513_v47 = vld [vmem:[%s10001_s21 + $0x94] sm:$0xf]  ;;  %v7318_v48 = vld [vmem:[%s10001_s21 + $0x98] sm:$0xf0]  ;;  %v7317_v50 = vor.u32 %v8514_v44, %v7316_v42  ;;  %v7257_v51 = vor.u32 %v8497_v45, %v7254_v46  ;;  %v7244_v52 = vld [vmem:[%s10001_s21] sm:$0xf] }
  0xfb   : > { %832 = vmatpush.bf16.msra.mxu0 %v7269_v25  ;;  %v8496_v53 = vld [vmem:[%s10001_s21 + $0x4] sm:$0xf0]  ;;  %v7308_v54 = vld [vmem:[%s10001_s21 + $0x80] sm:$0xf]  ;;  %v7321_v55 = vor.u32 %v8513_v47, %v7318_v48  ;;  %v8495_v57 = vld [vmem:[%s10001_s21 + $0x4] sm:$0xf] }
  0xfc   : > { %881 = vmatpush.bf16.msra.mxu1 %v7333_v26  ;;  %930 = vmatpush.bf16.msra.mxu2 %v7273_v27  ;;  %v8512_v56 = vld [vmem:[%s10001_s21 + $0x84] sm:$0xf0]  ;;  %v7246_v58 = vld [vmem:[%s10001_s21 + $0x8] sm:$0xf0]  ;;  %v8511_v59 = vld [vmem:[%s10001_s21 + $0x84] sm:$0xf]  ;;  %v7245_v61 = vor.u32 %v8496_v53, %v7244_v52 }
  0xfd   : > { %979 = vmatpush.bf16.msra.mxu3 %v7337_v31  ;;  %v7310_v60 = vld [vmem:[%s10001_s21 + $0x88] sm:$0xf0]  ;;  %v588_v62 = vld [vmem:[#allocation2 + $0xb0] sm:$0xff]  ;;  %v590_v63 = vld [vmem:[#allocation2 + $0xd8] sm:$0xff]  ;;  %v7309_v0 = vor.u32 %v8512_v56, %v7308_v54  ;;  %v7249_v1 = vor.u32 %v8495_v57, %v7246_v58  ;;  %p8490_p5 = scmp.ne.s32.totalorder %s9917_s23, 3 }
  0xfe   : > { %v589_v2 = vld [vmem:[#allocation2] sm:$0xff]  ;;  %v591_v3 = vld [vmem:[#allocation2 + $0x18] sm:$0xff]  ;;  %v7313_v4 = vor.u32 %v8511_v59, %v7310_v60  ;;  %v620_v5 = vpack.c.bf16 %v590_v63, %v588_v62  ;;  %v592_v7 = vld [vmem:[#allocation2 + $0x50] sm:$0xff] }
  0xff   : > { %833 = vmatpush.bf16.msra.mxu0 %v7261_v37  ;;  %v621_v6 = vpack.c.bf16 %v591_v3, %v589_v2  ;;  %v594_v8 = vld [vmem:[#allocation2 + $0x30] sm:$0xff]  ;;  %v593_v9 = vld [vmem:[#allocation2 + $0x68] sm:$0xff]  ;;  %v596_v13 = vld [vmem:[#allocation2 + $0x80] sm:$0xff] }
 0x100   : > { %882 = vmatpush.bf16.msra.mxu1 %v7325_v38  ;;  %931 = vmatpush.bf16.msra.mxu2 %v7265_v39  ;;  %v595_v10 = vld [vmem:[#allocation2 + $0x48] sm:$0xff]  ;;  %v622_v11 = vpack.c.bf16 %v594_v8, %v592_v7  ;;  %v599_v16 = vld [vmem:[#allocation2 + $0xb8] sm:$0xff]  ;;  %v600_v19 = vld [vmem:[#allocation2 + $0x60] sm:$0xff] }
 0x101   : > { %980 = vmatpush.bf16.msra.mxu3 %v7329_v43  ;;  %v623_v12 = vpack.c.bf16 %v595_v10, %v593_v9  ;;  %v598_v14 = vld [vmem:[#allocation2 + $0xe8] sm:$0xff]  ;;  %v601_v21 = vld [vmem:[#allocation2 + $0xf0] sm:$0xff]  ;;  %v603_v22 = vld [vmem:[#allocation2 + $0x78] sm:$0xff] }
 0x102   : > { %v597_v15 = vld [vmem:[#allocation2 + $0x88] sm:$0xff]  ;;  %v624_v17 = vpack.c.bf16 %v598_v14, %v596_v13  ;;  %v627_v24 = vpack.c.bf16 %v603_v22, %v601_v21  ;;  %v604_v25 = vld [vmem:[#allocation2 + $0x38] sm:$0xff]  ;;  %v606_v26 = vld [vmem:[#allocation2 + $0x40] sm:$0xff] }
 0x103   : > { %834 = vmatpush.bf16.msra.mxu0 %v7253_v49  ;;  %v625_v18 = vpack.c.bf16 %v599_v16, %v597_v15  ;;  %v602_v20 = vld [vmem:[#allocation2 + $0x8] sm:$0xff]  ;;  %v605_v27 = vld [vmem:[#allocation2 + $0x58] sm:$0xff]  ;;  %v628_v29 = vpack.c.bf16 %v606_v26, %v604_v25  ;;  %v608_v31 = vld [vmem:[#allocation2 + $0xe0] sm:$0xff] }
 0x104   : > { %883 = vmatpush.bf16.msra.mxu1 %v7317_v50  ;;  %932 = vmatpush.bf16.msra.mxu2 %v7257_v51  ;;  %v626_v23 = vpack.c.bf16 %v602_v20, %v600_v19  ;;  %v607_v28 = vld [vmem:[#allocation2 + $0xc8] sm:$0xff]  ;;  %v610_v32 = vld [vmem:[#allocation2 + $0x70] sm:$0xff]  ;;  %v611_v34 = vld [vmem:[#allocation2 + $0xc0] sm:$0xff] }
 0x105   : > { %981 = vmatpush.bf16.msra.mxu3 %v7321_v55  ;;  %v629_v30 = vpack.c.bf16 %v607_v28, %v605_v27  ;;  %v609_v33 = vld [vmem:[#allocation2 + $0x90] sm:$0xff]  ;;  %v630_v35 = vpack.c.bf16 %v610_v32, %v608_v31  ;;  %v612_v37 = vld [vmem:[#allocation2 + $0xa8] sm:$0xff]  ;;  %v616_v43 = vld [vmem:[#allocation2 + $0xa0] sm:$0xff] }
 0x106   : > { %v631_v36 = vpack.c.bf16 %v611_v34, %v609_v33  ;;  %v614_v38 = vld [vmem:[#allocation2 + $0x10] sm:$0xff]  ;;  %v615_v40 = vld [vmem:[#allocation2 + $0x28] sm:$0xff]  ;;  %v618_v44 = vld [vmem:[#allocation2 + $0x20] sm:$0xff] }
 0x107   : > { %835 = vmatpush.bf16.msra.mxu0 %v7245_v61  ;;  %v613_v39 = vld [vmem:[#allocation2 + $0xd0] sm:$0xff]  ;;  %v632_v41 = vpack.c.bf16 %v614_v38, %v612_v37  ;;  %v617_v45 = vld [vmem:[#allocation2 + $0xf8] sm:$0xff]  ;;  %v634_v47 = vpack.c.bf16 %v618_v44, %v616_v43  ;;  %v1024_v51 = vld [vmem:[%s389_s18] sm:$0x3] }
 0x108   : > { %884 = vmatpush.bf16.msra.mxu1 %v7309_v0  ;;  %933 = vmatpush.bf16.msra.mxu2 %v7249_v1  ;;  %v633_v42 = vpack.c.bf16 %v615_v40, %v613_v39  ;;  %v619_v46 = vld [vmem:[#allocation2 + $0x98] sm:$0xff]  ;;  %v10252_v53 = vperm.slane %v1024_v51, 0  ;;  %v10254_v55 = vperm.slane %v1024_v51, 1 }
 0x109   : > { %982 = vmatpush.bf16.msra.mxu3 %v7313_v4  ;;  %v635_v48 = vpack.c.bf16 %v619_v46, %v617_v45 }
 0x10a   : > { %836 = vmatmul.bf16.vlgmr.msra.gmra.mxu0 %v620_v5 }
 0x10b   : > { %885 = vmatmul.bf16.vlgmr.msra.gmra.mxu1 %v621_v6  ;;  %934 = vmatmul.bf16.vlgmr.msra.gmra.mxu2 %v620_v5 }
 0x10c   : > { %983 = vmatmul.bf16.vlgmr.msra.gmra.mxu3 %v621_v6 }
 0x11a   : > { %841 = vmatmul.bf16.gmra.mxu0 %v622_v11 }
 0x11b   : > { %890 = vmatmul.bf16.gmra.mxu1 %v623_v12  ;;  %939 = vmatmul.bf16.gmra.mxu2 %v622_v11 }
 0x11c   : > { %988 = vmatmul.bf16.gmra.mxu3 %v623_v12 }
 0x12a   : > { %846 = vmatmul.bf16.gmra.mxu0 %v624_v17 }
 0x12b   : > { %895 = vmatmul.bf16.gmra.mxu1 %v625_v18  ;;  %944 = vmatmul.bf16.gmra.mxu2 %v624_v17 }
 0x12c   : > { %993 = vmatmul.bf16.gmra.mxu3 %v625_v18 }
 0x13a   : > { %851 = vmatmul.bf16.gmra.mxu0 %v626_v23 }
 0x13b   : > { %900 = vmatmul.bf16.gmra.mxu1 %v627_v24  ;;  %949 = vmatmul.bf16.gmra.mxu2 %v626_v23 }
 0x13c   : > { %998 = vmatmul.bf16.gmra.mxu3 %v627_v24 }
 0x14a   : > { %856 = vmatmul.bf16.gmra.mxu0 %v628_v29 }
 0x14b   : > { %905 = vmatmul.bf16.gmra.mxu1 %v629_v30  ;;  %954 = vmatmul.bf16.gmra.mxu2 %v628_v29 }
 0x14c   : > { %1003 = vmatmul.bf16.gmra.mxu3 %v629_v30 }
 0x15a   : > { %861 = vmatmul.bf16.gmra.mxu0 %v630_v35 }
 0x15b   : > { %910 = vmatmul.bf16.gmra.mxu1 %v631_v36  ;;  %959 = vmatmul.bf16.gmra.mxu2 %v630_v35 }
 0x15c   : > { %1008 = vmatmul.bf16.gmra.mxu3 %v631_v36 }
 0x16a   : > { %866 = vmatmul.bf16.gmra.mxu0 %v632_v41 }
 0x16b   : > { %915 = vmatmul.bf16.gmra.mxu1 %v633_v42  ;;  %964 = vmatmul.bf16.gmra.mxu2 %v632_v41 }
 0x16c   : > { %1013 = vmatmul.bf16.gmra.mxu3 %v633_v42 }
 0x17a   : > { %871 = vmatmul.bf16.gmra.mxu0 %v634_v47 }
 0x17b   : > { %920 = vmatmul.bf16.gmra.mxu1 %v635_v48  ;;  %969 = vmatmul.bf16.gmra.mxu2 %v634_v47 }
 0x17c   : > { %1018 = vmatmul.bf16.gmra.mxu3 %v635_v48 }
 0x187   : > { %v837_v49 = vpop.f32.mrf.mxu0 }
 0x188   : > { %v886_v50 = vpop.f32.mrf.mxu1 }
 0x189   : > { %v10250_v52 = vadd.f32 %v886_v50, %v837_v49 }
 0x18b   : > { %v1030_v60 = vmul.f32 %v10252_v53, %v10250_v52 }
 0x18e   : > { %v935_v54 = vpop.f32.mrf.mxu2 }
 0x18f   : > { %v984_v56 = vpop.f32.mrf.mxu3  ;;  %v839_v57 = vpop.f32.mrf.mxu0 }
 0x190   : > { %v10256_v58 = vadd.f32 %v984_v56, %v935_v54  ;;  %v888_v59 = vpop.f32.mrf.mxu1 }
 0x191   : > { %v10262_v63 = vadd.f32 %v888_v59, %v839_v57 }
 0x192   : > { %v1031_v61 = vmul.f32 %v10254_v55, %v10256_v58 }
 0x193   : > { %v1032_v5 = vmul.f32 %v10252_v53, %v10262_v63 }
 0x194   : > { %v1062_v62 = vadd.f32 %v1031_v61, %v1030_v60 }
 0x196   : > { %1063 = vadd.xlane.f32.xlu0 %v1062_v62  ;;  %v937_v0 = vpop.f32.mrf.mxu2 }
 0x197   : > { %v986_v1 = vpop.f32.mrf.mxu3  ;;  %v842_v2 = vpop.f32.mrf.mxu0 }
 0x198   : > { %v10264_v3 = vadd.f32 %v986_v1, %v937_v0  ;;  %v891_v4 = vpop.f32.mrf.mxu1 }
 0x199   : > { %v10270_v7 = vadd.f32 %v891_v4, %v842_v2 }
 0x19a   : > { %v1033_v6 = vmul.f32 %v10254_v55, %v10264_v3 }
 0x19b   : > { %v1034_v14 = vmul.f32 %v10252_v53, %v10270_v7 }
 0x19c   : > { %v1065_v8 = vadd.f32 %v1033_v6, %v1032_v5 }
 0x19e   : > { %1066 = vadd.xlane.f32.xlu0 %v1065_v8  ;;  %v940_v9 = vpop.f32.mrf.mxu2 }
 0x19f   : > { %v989_v10 = vpop.f32.mrf.mxu3  ;;  %v844_v11 = vpop.f32.mrf.mxu0 }
 0x1a0   : > { %v10272_v12 = vadd.f32 %v989_v10, %v940_v9  ;;  %v893_v13 = vpop.f32.mrf.mxu1 }
 0x1a1   : > { %v10278_v17 = vadd.f32 %v893_v13, %v844_v11 }
 0x1a2   : > { %v1035_v15 = vmul.f32 %v10254_v55, %v10272_v12 }
 0x1a3   : > { %v1036_v23 = vmul.f32 %v10252_v53, %v10278_v17 }
 0x1a4   : > { %v1068_v16 = vadd.f32 %v1035_v15, %v1034_v14 }
 0x1a6   : > { %1069 = vadd.xlane.f32.xlu1 %v1068_v16  ;;  %v942_v18 = vpop.f32.mrf.mxu2 }
 0x1a7   : > { %v991_v19 = vpop.f32.mrf.mxu3  ;;  %v847_v20 = vpop.f32.mrf.mxu0 }
 0x1a8   : > { %v10280_v21 = vadd.f32 %v991_v19, %v942_v18  ;;  %v896_v22 = vpop.f32.mrf.mxu1 }
 0x1a9   : > { %v10286_v25 = vadd.f32 %v896_v22, %v847_v20 }
 0x1aa   : > { %v1037_v24 = vmul.f32 %v10254_v55, %v10280_v21 }
 0x1ab   : > { %v1038_v32 = vmul.f32 %v10252_v53, %v10286_v25 }
 0x1ac   : > { %v1071_v26 = vadd.f32 %v1037_v24, %v1036_v23 }
 0x1ae   : > { %1072 = vadd.xlane.f32.xlu1 %v1071_v26  ;;  %v945_v27 = vpop.f32.mrf.mxu2 }
 0x1af   : > { %v994_v28 = vpop.f32.mrf.mxu3  ;;  %v849_v29 = vpop.f32.mrf.mxu0 }
 0x1b0   : > { %v10288_v30 = vadd.f32 %v994_v28, %v945_v27  ;;  %v898_v31 = vpop.f32.mrf.mxu1 }
 0x1b1   : > { %v10294_v35 = vadd.f32 %v898_v31, %v849_v29 }
 0x1b2   : > { %v1039_v33 = vmul.f32 %v10254_v55, %v10288_v30 }
 0x1b3   : > { %v1040_v41 = vmul.f32 %v10252_v53, %v10294_v35 }
 0x1b4   : > { %v1074_v34 = vadd.f32 %v1039_v33, %v1038_v32 }
 0x1b6   : > { %1075 = vadd.xlane.f32.xlu2 %v1074_v34  ;;  %v947_v36 = vpop.f32.mrf.mxu2 }
 0x1b7   : > { %v996_v37 = vpop.f32.mrf.mxu3  ;;  %v852_v38 = vpop.f32.mrf.mxu0 }
 0x1b8   : > { %v10296_v39 = vadd.f32 %v996_v37, %v947_v36  ;;  %v901_v40 = vpop.f32.mrf.mxu1 }
 0x1b9   : > { %v10302_v43 = vadd.f32 %v901_v40, %v852_v38 }
 0x1ba   : > { %v1041_v42 = vmul.f32 %v10254_v55, %v10296_v39 }
 0x1bb   : > { %v1042_v50 = vmul.f32 %v10252_v53, %v10302_v43 }
 0x1bc   : > { %v1077_v44 = vadd.f32 %v1041_v42, %v1040_v41 }
 0x1be   : > { %1078 = vadd.xlane.f32.xlu2 %v1077_v44  ;;  %v950_v45 = vpop.f32.mrf.mxu2 }
 0x1bf   : > { %v999_v46 = vpop.f32.mrf.mxu3  ;;  %v854_v47 = vpop.f32.mrf.mxu0 }
 0x1c0   : > { %v10304_v48 = vadd.f32 %v999_v46, %v950_v45  ;;  %v903_v49 = vpop.f32.mrf.mxu1 }
 0x1c1   : > { %v10310_v56 = vadd.f32 %v903_v49, %v854_v47 }
 0x1c2   : > { %v1043_v51 = vmul.f32 %v10254_v55, %v10304_v48 }
 0x1c3   : > { %v1044_v0 = vmul.f32 %v10252_v53, %v10310_v56 }
 0x1c4   : > { %v1080_v54 = vadd.f32 %v1043_v51, %v1042_v50 }
 0x1c6   : > { %1081 = vadd.xlane.f32.xlu0 %v1080_v54  ;;  %v952_v57 = vpop.f32.mrf.mxu2 }
 0x1c7   : > { %v1001_v59 = vpop.f32.mrf.mxu3  ;;  %v857_v60 = vpop.f32.mrf.mxu0 }
 0x1c8   : > { %v10312_v61 = vadd.f32 %v1001_v59, %v952_v57  ;;  %v906_v62 = vpop.f32.mrf.mxu1 }
 0x1c9   : > { %v10318_v2 = vadd.f32 %v906_v62, %v857_v60 }
 0x1ca   : > { %v1045_v1 = vmul.f32 %v10254_v55, %v10312_v61 }
 0x1cb   : > { %v1046_v11 = vmul.f32 %v10252_v53, %v10318_v2 }
 0x1cc   : > { %v1083_v4 = vadd.f32 %v1045_v1, %v1044_v0 }
 0x1ce   : > { %1084 = vadd.xlane.f32.xlu1 %v1083_v4  ;;  %v955_v5 = vpop.f32.mrf.mxu2 }
 0x1cf   : > { %v1004_v6 = vpop.f32.mrf.mxu3  ;;  %v10320_v8 = vpop.f32.mrf.mxu0 }
 0x1d0   : > { %v10322_v9 = vadd.f32 %v1004_v6, %v955_v5  ;;  %v10324_v10 = vpop.f32.mrf.mxu1 }
 0x1d2   : > { %v1047_v13 = vmul.f32 %v10254_v55, %v10322_v9 }
 0x1d4   : > { %v1086_v14 = vadd.f32 %v1047_v13, %v1046_v11 }
 0x1d6   : > { %1087 = vadd.xlane.f32.xlu1 %v1086_v14  ;;  %v10330_v15 = vpop.f32.mrf.mxu2 }
 0x1d7   : > { %v10332_v16 = vpop.f32.mrf.mxu3  ;;  %v862_v18 = vpop.f32.mrf.mxu0 }
 0x1d8   : > { %v911_v19 = vpop.f32.mrf.mxu1 }
 0x1d9   : > { %v10334_v20 = vadd.f32 %v911_v19, %v862_v18 }
 0x1db   : > { %v1050_v28 = vmul.f32 %v10252_v53, %v10334_v20 }
 0x1de   : > { %v960_v22 = vpop.f32.mrf.mxu2 }
 0x1df   : > { %v1009_v23 = vpop.f32.mrf.mxu3  ;;  %v864_v24 = vpop.f32.mrf.mxu0 }
 0x1e0   : > { %v10336_v26 = vadd.f32 %v1009_v23, %v960_v22  ;;  %v913_v27 = vpop.f32.mrf.mxu1 }
 0x1e1   : > { %v10344_v32 = vadd.f32 %v913_v27, %v864_v24 }
 0x1e2   : > { %v1051_v29 = vmul.f32 %v10254_v55, %v10336_v26 }
 0x1e3   : > { %v1052_v40 = vmul.f32 %v10252_v53, %v10344_v32 }
 0x1e4   : > { %v10342_v31 = vadd.f32 %v1051_v29, %v1050_v28 }
 0x1e6   : > { %v962_v33 = vpop.f32.mrf.mxu2 }
 0x1e7   : > { %v1011_v34 = vpop.f32.mrf.mxu3  ;;  %v867_v36 = vpop.f32.mrf.mxu0 }
 0x1e8   : > { %v10346_v37 = vadd.f32 %v1011_v34, %v962_v33  ;;  %v916_v38 = vpop.f32.mrf.mxu1 }
 0x1e9   : > { %v917_v42 = vadd.f32 %v916_v38, %v867_v36 }
 0x1ea   : > { %v1053_v41 = vmul.f32 %v10254_v55, %v10346_v37 }
 0x1eb   : > { %v1054_v51 = vmul.f32 %v10252_v53, %v917_v42 }
 0x1ec   : > { %v10352_v44 = vadd.f32 %v1053_v41, %v1052_v40 }
 0x1ee   : > { %v965_v45 = vpop.f32.mrf.mxu2 }
 0x1ef   : > { %v1014_v46 = vpop.f32.mrf.mxu3  ;;  %v869_v47 = vpop.f32.mrf.mxu0 }
 0x1f0   : > { %v1015_v49 = vadd.f32 %v1014_v46, %v965_v45  ;;  %v918_v50 = vpop.f32.mrf.mxu1 }
 0x1f1   : > { %v919_v59 = vadd.f32 %v918_v50, %v869_v47  ;;  %v10378_v47 = vadd.f32 %v10324_v10, %v10320_v8  ;;  %v10382_v50 = vpack.c.bf16 %v10344_v32, %v10334_v20  ;;  %v10392_v8 = vadd.f32 %v10332_v16, %v10330_v15 }
 0x1f2   : > { %v1055_v54 = vmul.f32 %v10254_v55, %v1015_v49  ;;  %v1432_v10 = vpack.c.bf16 %v10346_v37, %v10336_v26  ;;  %v1425_v15 = vpack.c.bf16 %v10294_v35, %v10286_v25  ;;  %v1428_v16 = vpack.c.bf16 %v10312_v61, %v10304_v48 }
 0x1f3   : > { %v1056_v5 = vmul.f32 %v10252_v53, %v919_v59  ;;  %v10369_v38 = vpack.c.bf16 %v919_v59, %v917_v42 }
 0x1f4   : > { %v10356_v57 = vadd.f32 %v1055_v54, %v1054_v51 }
 0x1f6   : > { %v967_v60 = vpop.f32.mrf.mxu2 }
 0x1f7   : > { %v1016_v62 = vpop.f32.mrf.mxu3  ;;  %v872_v0 = vpop.f32.mrf.mxu0 }
 0x1f8   : > { %v1017_v1 = vadd.f32 %v1016_v62, %v967_v60  ;;  %v921_v4 = vpop.f32.mrf.mxu1  ;;  %v1429_v60 = vpack.c.bf16 %v10378_v47, %v10318_v2 }
 0x1f9   : > { %v922_v11 = vadd.f32 %v921_v4, %v872_v0 }
 0x1fa   : > { %v1057_v6 = vmul.f32 %v10254_v55, %v1017_v1  ;;  %v1434_v54 = vpack.c.bf16 %v1017_v1, %v1015_v49 }
 0x1fb   : > { %v1058_v24 = vmul.f32 %v10252_v53, %v922_v11 }
 0x1fc   : > { %v10360_v13 = vadd.f32 %v1057_v6, %v1056_v5 }
 0x1fe   : > { %v970_v14 = vpop.f32.mrf.mxu2 }
 0x1ff   : > { %v1019_v18 = vpop.f32.mrf.mxu3  ;;  %v874_v19 = vpop.f32.mrf.mxu0 }
 0x200   : > { %v1020_v22 = vadd.f32 %v1019_v18, %v970_v14  ;;  %v923_v23 = vpop.f32.mrf.mxu1 }
 0x201   : > { %v924_v27 = vadd.f32 %v923_v23, %v874_v19 }
 0x202   : > { %v1059_v28 = vmul.f32 %v10254_v55, %v1020_v22 }
 0x203   : > { %1116 = vmatpush.xpose.msrb.mxu0 %v924_v27  ;;  %v10364_v29 = vpack.c.bf16 %v924_v27, %v922_v11  ;;  %v1060_v45 = vmul.f32 %v10252_v53, %v924_v27 }
 0x204   : > { %v10366_v33 = vadd.f32 %v1059_v28, %v1058_v24  ;;  %v1223_v28 = vld [vmem:[#allocation5 + $0x10] sm:$0xff] }
 0x205   : > { %8783 = vmatpush.bf16.msrb.mxu2 %v10364_v29  ;;  %vm1239_vm9 = vcmp.gt.f32.partialorder %v1223_v28, 0.0 }
 0x206   : > { %v972_v34 = vpop.f32.mrf.mxu2 }
 0x207   : > { %v1021_v36 = vpop.f32.mrf.mxu3  ;;  %1117 = vmatpush.xpose.msrb.mxu0 %v922_v11 }
 0x208   : > { %v1022_v40 = vadd.f32 %v1021_v36, %v972_v34  ;;  %v1049_v34 = vmul.f32 %v10254_v55, %v10392_v8 }
 0x209   : > { %8784 = vmatpush.bf16.msrb.mxu2 %v10369_v38 }
 0x20a   : > { %1136 = vmatpush.xpose.msrb.mxu1 %v1022_v40  ;;  %v10372_v41 = vpack.c.bf16 %v1022_v40, %v1020_v22  ;;  %v1061_v46 = vmul.f32 %v10254_v55, %v1022_v40  ;;  %v1228_v55 = vld [vmem:[#allocation5 + $0x38] sm:$0xff] }
 0x20b   : > { %1118 = vmatpush.xpose.msrb.mxu0 %v919_v59  ;;  %v1427_v59 = vpack.c.bf16 %v10310_v56, %v10302_v43  ;;  %vm1244_vm11 = vcmp.gt.f32.partialorder %v1228_v55, 0.0 }
 0x20c   : > { %8791 = vmatpush.bf16.msrb.mxu3 %v10372_v41  ;;  %v10385_v51 = vadd.f32 %v1061_v46, %v1060_v45 }
 0x20d   : > { %8785 = vmatpush.bf16.msrb.mxu2 %v10382_v50 }
 0x20e   : > { %1137 = vmatpush.xpose.msrb.mxu1 %v1020_v22  ;;  %v1225_v22 = vld [vmem:[#allocation5 + $0x20] sm:$0xff] }
 0x20f   : > { %1119 = vmatpush.xpose.msrb.mxu0 %v917_v42  ;;  %v1430_v42 = vpack.c.bf16 %v10392_v8, %v10322_v9  ;;  %vm1241_vm8 = vcmp.gt.f32.partialorder %v1225_v22, 0.0 }
 0x210   : > { %8792 = vmatpush.bf16.msrb.mxu3 %v1434_v54 }
 0x211   : > { %8786 = vmatpush.bf16.msrb.mxu2 %v1429_v60 }
 0x212   : > { %1138 = vmatpush.xpose.msrb.mxu1 %v1017_v1 }
 0x213   : > { %1120 = vmatpush.xpose.msrb.mxu0 %v10344_v32  ;;  %v1423_v32 = vpack.c.bf16 %v10278_v17, %v10270_v7 }
 0x214   : > { %8793 = vmatpush.bf16.msrb.mxu3 %v1432_v10 }
 0x215   : > { %8787 = vmatpush.bf16.msrb.mxu2 %v1427_v59 }
 0x216   : > { %1139 = vmatpush.xpose.msrb.mxu1 %v1015_v49  ;;  %v1424_v49 = vpack.c.bf16 %v10280_v21, %v10272_v12 }
 0x217   : > { %1121 = vmatpush.xpose.msrb.mxu0 %v10334_v20  ;;  %v1426_v20 = vpack.c.bf16 %v10296_v39, %v10288_v30 }
 0x218   : > { %8794 = vmatpush.bf16.msrb.mxu3 %v1430_v42 }
 0x219   : > { %8788 = vmatpush.bf16.msrb.mxu2 %v1425_v15 }
 0x21a   : > { %1140 = vmatpush.xpose.msrb.mxu1 %v10346_v37  ;;  %v1421_v37 = vpack.c.bf16 %v10262_v63, %v10250_v52 }
 0x21b   : > { %1122 = vmatpush.xpose.msrb.mxu0 %v10378_v47 }
 0x21c   : > { %8795 = vmatpush.bf16.msrb.mxu3 %v1428_v16 }
 0x21d   : > { %8789 = vmatpush.bf16.msrb.mxu2 %v1423_v32 }
 0x21e   : > { %1141 = vmatpush.xpose.msrb.mxu1 %v10336_v26  ;;  %v1422_v26 = vpack.c.bf16 %v10264_v3, %v10256_v58 }
 0x21f   : > { %1123 = vmatpush.xpose.msrb.mxu0 %v10318_v2 }
 0x220   : > { %8796 = vmatpush.bf16.msrb.mxu3 %v1426_v20 }
 0x221   : > { %8790 = vmatpush.bf16.msrb.mxu2 %v1421_v37 }
 0x222   : > { %1142 = vmatpush.xpose.msrb.mxu1 %v10392_v8 }
 0x223   : > { %1124 = vmatpush.xpose.msrb.mxu0 %v10310_v56 }
 0x224   : > { %8797 = vmatpush.bf16.msrb.mxu3 %v1424_v49 }
 0x226   : > { %1143 = vmatpush.xpose.msrb.mxu1 %v10322_v9  ;;  %v1221_v9 = vld [vmem:[#allocation5] sm:$0xff] }
 0x227   : > { %1125 = vmatpush.xpose.msrb.mxu0 %v10302_v43  ;;  %v1110_v43 = vld [vmem:[%s379_s8] sm:$0x3]  ;;  %vm1237_vm5 = vcmp.gt.f32.partialorder %v1221_v9, 0.0  ;;  %v1230_v9 = vld [vmem:[#allocation5 + $0x48] sm:$0xff] }
 0x228   : > { %8798 = vmatpush.bf16.msrb.mxu3 %v1422_v26 }
 0x22a   : > { %1144 = vmatpush.xpose.msrb.mxu1 %v10312_v61 }
 0x22b   : > { %1126 = vmatpush.xpose.msrb.mxu0 %v10294_v35  ;;  %v1112_v35 = vperm.slane %v1110_v43, 0 }
 0x22e   : > { %1145 = vmatpush.xpose.msrb.mxu1 %v10304_v48  ;;  %v1076_v48 = vpop.xlane.xlu2 %1075 }
 0x22f   : > { %1127 = vmatpush.xpose.msrb.mxu0 %v10286_v25  ;;  %v1222_v25 = vld [vmem:[#allocation5 + $0x8] sm:$0xff] }
 0x230   : > { %vm1238_vm1 = vcmp.gt.f32.partialorder %v1222_v25, 0.0 }
 0x232   : > { %1146 = vmatpush.xpose.msrb.mxu1 %v10296_v39 }
 0x233   : > { %1128 = vmatpush.xpose.msrb.mxu0 %v10278_v17  ;;  %v1113_v17 = vperm.slane %v1110_v43, 1 }
 0x236   : > { %1147 = vmatpush.xpose.msrb.mxu1 %v10288_v30  ;;  %v1079_v8 = vpop.xlane.xlu2 %1078 }
 0x237   : > { %1129 = vmatpush.xpose.msrb.mxu0 %v10270_v7 }
 0x23a   : > { %1148 = vmatpush.xpose.msrb.mxu1 %v10280_v21  ;;  %v1224_v21 = vld [vmem:[#allocation5 + $0x18] sm:$0xff] }
 0x23b   : > { %1130 = vmatpush.xpose.msrb.mxu0 %v10262_v63  ;;  %v1070_v63 = vpop.xlane.xlu1 %1069  ;;  %vm1240_vm0 = vcmp.gt.f32.partialorder %v1224_v21, 0.0 }
 0x23e   : > { %1149 = vmatpush.xpose.msrb.mxu1 %v10272_v12 }
 0x23f   : > { %1131 = vmatpush.xpose.msrb.mxu0 %v10250_v52  ;;  %v1064_v52 = vpop.xlane.xlu0 %1063 }
 0x242   : > { %1150 = vmatpush.xpose.msrb.mxu1 %v10264_v3  ;;  %1132 = vmatmul.f32.vlgmr.msrb.gmra.mxu0 %v1112_v35  ;;  %v1229_v35 = vld [vmem:[#allocation5 + $0x40] sm:$0xff] }
 0x243   : > { %1443 = vmatpush.bf16.msra.mxu0 %v10364_v29  ;;  %v1073_v39 = vpop.xlane.xlu1 %1072 }
 0x246   : > { %1151 = vmatpush.xpose.msrb.mxu1 %v10256_v58 }
 0x247   : > { %1444 = vmatpush.bf16.msra.mxu0 %v10369_v38  ;;  %v1067_v30 = vpop.xlane.xlu0 %1066 }
 0x249   : > { %1152 = vmatmul.f32.vlgmr.msrb.gmra.mxu1 %v1113_v17 }
 0x24a   : > { %1492 = vmatpush.bf16.msra.mxu1 %v10372_v41  ;;  %v1048_v41 = vmul.f32 %v10252_v53, %v10378_v47 }
 0x24b   : > { %1445 = vmatpush.bf16.msra.mxu0 %v10382_v50  ;;  %v1085_v29 = vpop.xlane.xlu1 %1084 }
 0x24c   : > { %v1089_v50 = vadd.f32 %v1049_v34, %v1048_v41 }
 0x24e   : > { %1493 = vmatpush.bf16.msra.mxu1 %v1434_v54 }
 0x24f   : > { %1446 = vmatpush.bf16.msra.mxu0 %v1429_v60  ;;  %v1082_v60 = vpop.xlane.xlu0 %1081 }
 0x252   : > { %1494 = vmatpush.bf16.msra.mxu1 %v1432_v10 }
 0x253   : > { %1447 = vmatpush.bf16.msra.mxu0 %v1427_v59  ;;  %v1088_v43 = vpop.xlane.xlu1 %1087 }
 0x256   : > { %1495 = vmatpush.bf16.msra.mxu1 %v1430_v42 }
 0x257   : > { %1448 = vmatpush.bf16.msra.mxu0 %v1425_v15  ;;  %v1227_v15 = vld [vmem:[#allocation5 + $0x30] sm:$0xff] }
 0x258   : > { %vm1243_vm14 = vcmp.gt.f32.partialorder %v1227_v15, 0.0 }
 0x25a   : > { %1496 = vmatpush.bf16.msra.mxu1 %v1428_v16 }
 0x25b   : > { %1449 = vmatpush.bf16.msra.mxu0 %v1423_v32  ;;  %v1226_v32 = vld [vmem:[#allocation5 + $0x28] sm:$0xff] }
 0x25c   : > { %vm1242_vm15 = vcmp.gt.f32.partialorder %v1226_v32, 0.0 }
 0x25e   : > { %1497 = vmatpush.bf16.msra.mxu1 %v1426_v20 }
 0x25f   : > { %1450 = vmatpush.bf16.msra.mxu0 %v1421_v37 }
 0x262   : > { %1498 = vmatpush.bf16.msra.mxu1 %v1424_v49 }
 0x266   : > { %1499 = vmatpush.bf16.msra.mxu1 %v1422_v26 }
 0x2bf   : > { %v1133_v58 = vpop.f32.mrf.mxu0 }
 0x2c6   : > { %v1153_v3 = vpop.f32.mrf.mxu1 }
 0x2c7   : > { %v1154_v7 = vadd.f32 %v1153_v3, %v1133_v58 }
 0x2c9   : > { %v10444_v12 = vperm.slane %v1154_v7, 0 }
 0x2cb   : > { %v1160_v56 = vadd.f32 %v10444_v12, %v1073_v39  ;;  %v1158_v61 = vadd.f32 %v10444_v12, %v1067_v30  ;;  %v1157_v2 = vadd.f32 %v10444_v12, %v1064_v52  ;;  %v1161_v62 = vadd.f32 %v10444_v12, %v1076_v48 }
 0x2cc   : > { %v1159_v0 = vadd.f32 %v10444_v12, %v1070_v63  ;;  %v1164_v40 = vadd.f32 %v10444_v12, %v1085_v29  ;;  %v1163_v59 = vadd.f32 %v10444_v12, %v1082_v60  ;;  %v1162_v53 = vadd.f32 %v10444_v12, %v1079_v8 }
 0x2cd   : > { %vm1176_vm2 = vcmp.gt.f32.partialorder %v1160_v56, 0.0  ;;  %v1192_v1 = vmul.f32 0.2, %v1160_v56  ;;  %vm1174_vm3 = vcmp.gt.f32.partialorder %v1158_v61, 0.0  ;;  %v1190_v4 = vmul.f32 0.2, %v1158_v61 }
 0x2ce   : > { %vm1173_vm4 = vcmp.gt.f32.partialorder %v1157_v2, 0.0  ;;  %v1189_v5 = vmul.f32 0.2, %v1157_v2  ;;  %v1193_v24 = vmul.f32 0.2, %v1161_v62  ;;  %vm1177_vm6 = vcmp.gt.f32.partialorder %v1161_v62, 0.0 }
 0x2cf   : > { %v1208_v6 = vsel %vm1176_vm2, %v1160_v56, %v1192_v1  ;;  %v1206_v11 = vsel %vm1174_vm3, %v1158_v61, %v1190_v4  ;;  %v1191_v27 = vmul.f32 0.2, %v1159_v0  ;;  %vm1175_vm7 = vcmp.gt.f32.partialorder %v1159_v0, 0.0  ;;  %v1231_v1 = vld [vmem:[#allocation5 + $0x50] sm:$0xff] }
 0x2d0   : > { %v10451_v14 = vsel %vm1240_vm0, %v1208_v6, -1e+30  ;;  %v10453_v18 = vsel %vm1238_vm1, %v1206_v11, -1e+30  ;;  %v1205_v19 = vsel %vm1173_vm4, %v1157_v2, %v1189_v5  ;;  %v1209_v36 = vsel %vm1177_vm6, %v1161_v62, %v1193_v24 }
 0x2d1   : > { %1275 = vmax.xlane.f32.xlu1 %v10451_v14  ;;  %1271 = vmax.xlane.f32.xlu0 %v10453_v18  ;;  %v10457_v23 = vsel %vm1237_vm5, %v1205_v19, -1e+30  ;;  %v1207_v38 = vsel %vm1175_vm7, %v1159_v0, %v1191_v27  ;;  %v10465_v45 = vsel %vm1241_vm8, %v1209_v36, -1e+30  ;;  %v1196_v54 = vmul.f32 0.2, %v1164_v40 }
 0x2d2   : > { %1269 = vmax.xlane.f32.xlu2 %v10457_v23  ;;  %v10467_v46 = vsel %vm1239_vm9, %v1207_v38, -1e+30  ;;  %vm1180_vm10 = vcmp.gt.f32.partialorder %v1164_v40, 0.0  ;;  %v1195_v42 = vmul.f32 0.2, %v1163_v59  ;;  %vm1179_vm12 = vcmp.gt.f32.partialorder %v1163_v59, 0.0 }
 0x2d3   : > { %v1212_v10 = vsel %vm1180_vm10, %v1164_v40, %v1196_v54  ;;  %v1194_v16 = vmul.f32 0.2, %v1162_v53  ;;  %vm1178_vm13 = vcmp.gt.f32.partialorder %v1162_v53, 0.0  ;;  %vm1245_vm1 = vcmp.gt.f32.partialorder %v1229_v35, 0.0 }
 0x2d4   : > { %v10473_v47 = vsel %vm1244_vm11, %v1212_v10, -1e+30  ;;  %v1211_v20 = vsel %vm1179_vm12, %v1163_v59, %v1195_v42  ;;  %vm1246_vm3 = vcmp.gt.f32.partialorder %v1230_v9, 0.0  ;;  %vm1247_vm5 = vcmp.gt.f32.partialorder %v1231_v1, 0.0 }
 0x2d5   : > { %v1210_v37 = vsel %vm1178_vm13, %v1162_v53, %v1194_v16  ;;  %v10478_v49 = vsel %vm1243_vm14, %v1211_v20, -1e+30  ;;  %v1234_v20 = vld [vmem:[#allocation5 + $0x68] sm:$0xff] }
 0x2d6   : > { %v1258_v26 = vsel %vm1242_vm15, %v1210_v37, -1e+30  ;;  %vm1250_vm10 = vcmp.gt.f32.partialorder %v1234_v20, 0.0 }
 0x2d9   : > { %1277 = vmax.xlane.f32.xlu1 %v10465_v45  ;;  %1273 = vmax.xlane.f32.xlu0 %v10467_v46 }
 0x2da   : > { %1090 = vadd.xlane.f32.xlu2 %v1089_v50 }
 0x2e1   : > { %1283 = vmax.xlane.f32.xlu1 %v10473_v47  ;;  %1096 = vadd.xlane.f32.xlu0 %v10352_v44  ;;  %v1165_v44 = vadd.f32 %v10444_v12, %v1088_v43 }
 0x2e2   : > { %1093 = vadd.xlane.f32.xlu2 %v10342_v31 }
 0x2e3   : > { %v1197_v31 = vmul.f32 0.2, %v1165_v44  ;;  %vm1181_vm0 = vcmp.gt.f32.partialorder %v1165_v44, 0.0 }
 0x2e5   : > { %v1213_v17 = vsel %vm1181_vm0, %v1165_v44, %v1197_v31 }
 0x2e6   : > { %v10484_v52 = vsel %vm1245_vm1, %v1213_v17, -1e+30 }
 0x2e9   : > { %1281 = vmax.xlane.f32.xlu0 %v10478_v49 }
 0x2ea   : > { %1279 = vmax.xlane.f32.xlu2 %v1258_v26 }
 0x2f1   : > { %1102 = vadd.xlane.f32.xlu0 %v10360_v13 }
 0x2f2   : > { %1099 = vadd.xlane.f32.xlu2 %v10356_v57 }
 0x2f9   : > { %1285 = vmax.xlane.f32.xlu0 %v10484_v52 }
 0x301   : > { %1108 = vadd.xlane.f32.xlu0 %v10385_v51 }
 0x344   : > { %v1272_v63 = vpop.xlane.xlu0 %1271  ;;  %v1276_v57 = vpop.xlane.xlu1 %1275 }
 0x345   : > { %v1302_v58 = vsub.f32 %v10453_v18, %v1272_v63  ;;  %v1270_v3 = vpop.xlane.xlu2 %1269  ;;  %v1304_v51 = vsub.f32 %v10451_v14, %v1276_v57 }
 0x346   : > { %v1301_v7 = vsub.f32 %v10457_v23, %v1270_v3  ;;  %v1236_v3 = vld [vmem:[#allocation5 + $0x78] sm:$0xff] }
 0x347   : > { %v1319_v13 = vmul.f32 1.442695, %v1302_v58  ;;  %v1323_v4 = vmul.f32 1.442695, %v1304_v51  ;;  %vm1252_vm13 = vcmp.gt.f32.partialorder %v1236_v3, 0.0 }
 0x348   : > { %v1317_v21 = vmul.f32 1.442695, %v1301_v7 }
 0x349   : > { %8874 = vpow2.f32 %v1319_v13 }
 0x34a   : > { %8876 = vpow2.f32 %v1317_v21 }
 0x34b   : > { %8878 = vpow2.f32 %v1323_v4 }
 0x34c   : > { %v1274_v25 = vpop.xlane.xlu0 %1273  ;;  %v1278_v5 = vpop.xlane.xlu1 %1277 }
 0x34d   : > { %v1091_v30 = vpop.xlane.xlu2 %1090  ;;  %v1303_v2 = vsub.f32 %v10467_v46, %v1274_v25  ;;  %v1305_v14 = vsub.f32 %v10465_v45, %v1278_v5  ;;  %v1232_v46 = vld [vmem:[#allocation5 + $0x58] sm:$0xff] }
 0x34e   : > { %v1166_v39 = vadd.f32 %v10444_v12, %v1091_v30  ;;  %vm1248_vm7 = vcmp.gt.f32.partialorder %v1232_v46, 0.0 }
 0x34f   : > { %v10491_v48 = vpop.eup %8874  ;;  %v1321_v18 = vmul.f32 1.442695, %v1303_v2  ;;  %v1325_v28 = vmul.f32 1.442695, %v1305_v14 }
 0x350   : > { %v10493_v56 = vpop.eup %8876  ;;  %1351 = vadd.xlane.f32.xlu2 %v10491_v48  ;;  %v1198_v61 = vmul.f32 0.2, %v1166_v39  ;;  %vm1182_vm2 = vcmp.gt.f32.partialorder %v1166_v39, 0.0 }
 0x351   : > { %1349 = vadd.xlane.f32.xlu1 %v10493_v56  ;;  %8880 = vpow2.f32 %v1321_v18  ;;  %v10509_v38 = vpop.eup %8878 }
 0x352   : > { %v1214_v11 = vsel %vm1182_vm2, %v1166_v39, %v1198_v61  ;;  %8882 = vpow2.f32 %v1325_v28 }
 0x353   : > { %v10502_v22 = vsel %vm1246_vm3, %v1214_v11, -1e+30 }
 0x354   : > { %v1097_v62 = vpop.xlane.xlu0 %1096  ;;  %v1284_v42 = vpop.xlane.xlu1 %1283 }
 0x355   : > { %v1094_v0 = vpop.xlane.xlu2 %1093  ;;  %v1168_v34 = vadd.f32 %v10444_v12, %v1097_v62  ;;  %v1308_v37 = vsub.f32 %v10473_v47, %v1284_v42 }
 0x356   : > { %v1167_v6 = vadd.f32 %v10444_v12, %v1094_v0  ;;  %v1235_v0 = vld [vmem:[#allocation5 + $0x70] sm:$0xff] }
 0x357   : > { %v10511_v40 = vpop.eup %8880  ;;  %v1200_v41 = vmul.f32 0.2, %v1168_v34  ;;  %vm1184_vm6 = vcmp.gt.f32.partialorder %v1168_v34, 0.0  ;;  %v1331_v31 = vmul.f32 1.442695, %v1308_v37  ;;  %vm1251_vm15 = vcmp.gt.f32.partialorder %v1235_v0, 0.0 }
 0x358   : > { %v1199_v19 = vmul.f32 0.2, %v1167_v6  ;;  %vm1183_vm4 = vcmp.gt.f32.partialorder %v1167_v6, 0.0  ;;  %1105 = vadd.xlane.f32.xlu2 %v10366_v33  ;;  %v10518_v59 = vpop.eup %8882 }
 0x359   : > { %1287 = vmax.xlane.f32.xlu1 %v10502_v22  ;;  %v1216_v10 = vsel %vm1184_vm6, %v1168_v34, %v1200_v41  ;;  %v8587_v34 = vld [vmem:[%s10016_s12 + $0x1dc] sm:$0xf0] }
 0x35a   : > { %v1215_v23 = vsel %vm1183_vm4, %v1167_v6, %v1199_v19  ;;  %v10523_v16 = vsel %vm1248_vm7, %v1216_v10, -1e+30 }
 0x35b   : > { %v10505_v24 = vsel %vm1247_vm5, %v1215_v23, -1e+30 }
 0x35c   : > { %1289 = vmax.xlane.f32.xlu0 %v10505_v24  ;;  %v1282_v27 = vpop.xlane.xlu0 %1281 }
 0x35d   : > { %v1280_v29 = vpop.xlane.xlu2 %1279  ;;  %v1307_v45 = vsub.f32 %v10478_v49, %v1282_v27  ;;  %v1233_v49 = vld [vmem:[#allocation5 + $0x60] sm:$0xff] }
 0x35e   : > { %v1306_v36 = vsub.f32 %v1258_v26, %v1280_v29  ;;  %vm1249_vm11 = vcmp.gt.f32.partialorder %v1233_v49, 0.0  ;;  %v7596_v29 = vld [vmem:[%s10016_s12 + $0x1c0] sm:$0xf] }
 0x35f   : > { %v1329_v60 = vmul.f32 1.442695, %v1307_v45  ;;  %v7597_v41 = vor.u32 %v8587_v34, %v7596_v29  ;;  %v8651_v45 = vld [vmem:[%s10016_s12 + $0x3dc] sm:$0xf0] }
 0x360   : > { %v1327_v33 = vmul.f32 1.442695, %v1306_v36  ;;  %1355 = vadd.xlane.f32.xlu2 %v10509_v38  ;;  %v7852_v36 = vld [vmem:[%s10016_s12 + $0x3c0] sm:$0xf] }
 0x361   : > { %1353 = vadd.xlane.f32.xlu1 %v10511_v40  ;;  %3333 = vmatpush.bf16.msrb.mxu0 %v7597_v41  ;;  %v8555_v29 = vld [vmem:[%s10016_s12 + $0xdc] sm:$0xf0] }
 0x362   : > { %8884 = vpow2.f32 %v1327_v33  ;;  %v7724_v34 = vld [vmem:[%s10016_s12 + $0x2c0] sm:$0xf] }
 0x363   : > { %8886 = vpow2.f32 %v1329_v60  ;;  %v7853_v60 = vor.u32 %v8651_v45, %v7852_v36  ;;  %v7436_v45 = vld [vmem:[%s10016_s12 + $0x80] sm:$0xf] }
 0x364   : > { %v1103_v50 = vpop.xlane.xlu0 %1102  ;;  %8888 = vpow2.f32 %v1331_v31 }
 0x365   : > { %v1170_v54 = vadd.f32 %v10444_v12, %v1103_v50  ;;  %v1100_v55 = vpop.xlane.xlu2 %1099  ;;  %3382 = vmatpush.bf16.msrb.mxu1 %v7853_v60 }
 0x366   : > { %v1169_v8 = vadd.f32 %v10444_v12, %v1100_v55 }
 0x367   : > { %v1202_v15 = vmul.f32 0.2, %v1170_v54  ;;  %vm1186_vm8 = vcmp.gt.f32.partialorder %v1170_v54, 0.0 }
 0x368   : > { %v10520_v53 = vpop.eup %8884  ;;  %1357 = vadd.xlane.f32.xlu2 %v10518_v59  ;;  %v1201_v32 = vmul.f32 0.2, %v1169_v8  ;;  %vm1185_vm9 = vcmp.gt.f32.partialorder %v1169_v8, 0.0 }
 0x369   : > { %1359 = vadd.xlane.f32.xlu0 %v10520_v53  ;;  %1291 = vmax.xlane.f32.xlu1 %v10523_v16  ;;  %v1218_v43 = vsel %vm1186_vm8, %v1170_v54, %v1202_v15  ;;  %v10528_v35 = vpop.eup %8886 }
 0x36a   : > { %v1217_v44 = vsel %vm1185_vm9, %v1169_v8, %v1201_v32  ;;  %v10530_v17 = vsel %vm1250_vm10, %v1218_v43, -1e+30  ;;  %v10539_v57 = vpop.eup %8888 }
 0x36b   : > { %v10533_v63 = vsel %vm1249_vm11, %v1217_v44, -1e+30 }
 0x36c   : > { %v1286_v26 = vpop.xlane.xlu0 %1285 }
 0x36d   : > { %v1309_v47 = vsub.f32 %v10484_v52, %v1286_v26 }
 0x36f   : > { %v1333_v13 = vmul.f32 1.442695, %v1309_v47 }
 0x370   : > { %1295 = vmax.xlane.f32.xlu2 %v10530_v17 }
 0x371   : > { %1361 = vadd.xlane.f32.xlu0 %v10528_v35  ;;  %1293 = vmax.xlane.f32.xlu1 %v10533_v63  ;;  %8890 = vpow2.f32 %v1333_v13 }
 0x374   : > { %v1109_v58 = vpop.xlane.xlu0 %1108 }
 0x375   : > { %v1172_v7 = vadd.f32 %v10444_v12, %v1109_v58 }
 0x377   : > { %v1204_v21 = vmul.f32 0.2, %v1172_v7  ;;  %vm1188_vm12 = vcmp.gt.f32.partialorder %v1172_v7, 0.0  ;;  %v10545_v39 = vpop.eup %8890 }
 0x379   : > { %v1220_v25 = vsel %vm1188_vm12, %v1172_v7, %v1204_v21  ;;  %1363 = vadd.xlane.f32.xlu1 %v10539_v57 }
 0x37a   : > { %v10542_v30 = vsel %vm1252_vm13, %v1220_v25, -1e+30 }
 0x37b   : > { %1299 = vmax.xlane.f32.xlu0 %v10542_v30 }
 0x381   : > { %1365 = vadd.xlane.f32.xlu1 %v10545_v39 }
 0x3c3   : > { %v1352_v52 = vpop.xlane.xlu2 %1351 }
 0x3c4   : > { %v1350_v51 = vpop.xlane.xlu1 %1349  ;;  %8892 = vrcp.f32 %v1352_v52 }
 0x3c5   : > { %8894 = vrcp.f32 %v1350_v51 }
 0x3ca   : > { %v8893_v61 = vpop.eup %8892 }
 0x3cb   : > { %v8895_v2 = vpop.eup %8894  ;;  %v1398_v9 = vmul.f32 %v8893_v61, %v10491_v48  ;;  %v1106_v62 = vpop.xlane.xlu2 %1105 }
 0x3cc   : > { %v1397_v1 = vmul.f32 %v8895_v2, %v10493_v56  ;;  %v1288_v4 = vpop.xlane.xlu1 %1287  ;;  %v1171_v5 = vadd.f32 %v10444_v12, %v1106_v62  ;;  %v7564_v2 = vld [vmem:[%s10016_s12 + $0x180] sm:$0xf] }
 0x3cd   : > { %v1310_v6 = vsub.f32 %v10502_v22, %v1288_v4  ;;  %v7820_v62 = vld [vmem:[%s10016_s12 + $0x380] sm:$0xf] }
 0x3ce   : > { %v1203_v11 = vmul.f32 0.2, %v1171_v5  ;;  %v1413_v19 = vpack.c.bf16 %v1398_v9, %v1397_v1  ;;  %vm1187_vm14 = vcmp.gt.f32.partialorder %v1171_v5, 0.0  ;;  %v8579_v9 = vld [vmem:[%s10016_s12 + $0x19c] sm:$0xf0] }
 0x3cf   : > { %v1290_v18 = vpop.xlane.xlu0 %1289  ;;  %v1335_v14 = vmul.f32 1.442695, %v1310_v6  ;;  %v7565_v0 = vor.u32 %v8579_v9, %v7564_v2  ;;  %v8571_v4 = vld [vmem:[%s10016_s12 + $0x15c] sm:$0xf0] }
 0x3d0   : > { %v1311_v23 = vsub.f32 %v10505_v24, %v1290_v18  ;;  %1451 = vmatmul.bf16.vlgmr.msra.gmra.mxu0 %v1413_v19  ;;  %1500 = vmatmul.bf16.vlgmr.msra.gmra.mxu1 %v1413_v19  ;;  %v1219_v48 = vsel %vm1187_vm14, %v1171_v5, %v1203_v11  ;;  %v7788_v5 = vld [vmem:[%s10016_s12 + $0x340] sm:$0xf] }
 0x3d1   : > { %v10553_v27 = vsel %vm1251_vm15, %v1219_v48, -1e+30  ;;  %8896 = vpow2.f32 %v1335_v14  ;;  %3334 = vmatpush.bf16.msrb.mxu0 %v7565_v0  ;;  %v8635_v11 = vld [vmem:[%s10016_s12 + $0x35c] sm:$0xf0] }
 0x3d2   : > { %v1337_v56 = vmul.f32 1.442695, %v1311_v23  ;;  %1297 = vmax.xlane.f32.xlu2 %v10553_v27  ;;  %v7789_v18 = vor.u32 %v8635_v11, %v7788_v5  ;;  %v7500_v19 = vld [vmem:[%s10016_s12 + $0x100] sm:$0xf] }
 0x3d3   : > { %v1356_v12 = vpop.xlane.xlu2 %1355  ;;  %v8563_v14 = vld [vmem:[%s10016_s12 + $0x11c] sm:$0xf0] }
 0x3d4   : > { %8898 = vpow2.f32 %v1337_v56  ;;  %v1354_v22 = vpop.xlane.xlu1 %1353  ;;  %v7756_v23 = vld [vmem:[%s10016_s12 + $0x300] sm:$0xf]  ;;  %v7501_v48 = vor.u32 %v8563_v14, %v7500_v19 }
 0x3d5   : > { %8900 = vrcp.f32 %v1356_v12  ;;  %v8627_v56 = vld [vmem:[%s10016_s12 + $0x31c] sm:$0xf0] }
 0x3d6   : > { %8902 = vrcp.f32 %v1354_v22  ;;  %v7757_v12 = vor.u32 %v8627_v56, %v7756_v23  ;;  %v7468_v22 = vld [vmem:[%s10016_s12 + $0xc0] sm:$0xf] }
 0x3d7   : > { %v10556_v28 = vpop.eup %8896  ;;  %v7469_v36 = vor.u32 %v8555_v29, %v7468_v22 }
 0x3da   : > { %v10558_v24 = vpop.eup %8898  ;;  %1367 = vadd.xlane.f32.xlu2 %v10556_v28 }
 0x3db   : > { %v8901_v33 = vpop.eup %8900  ;;  %1369 = vadd.xlane.f32.xlu0 %v10558_v24  ;;  %v1358_v50 = vpop.xlane.xlu2 %1357 }
 0x3dc   : > { %v8903_v46 = vpop.eup %8902  ;;  %v1360_v54 = vpop.xlane.xlu0 %1359  ;;  %v1400_v55 = vmul.f32 %v8901_v33, %v10509_v38  ;;  %8904 = vrcp.f32 %v1358_v50  ;;  %v8619_v33 = vld [vmem:[%s10016_s12 + $0x2dc] sm:$0xf0] }
 0x3dd   : > { %v1292_v8 = vpop.xlane.xlu1 %1291  ;;  %v1399_v10 = vmul.f32 %v8903_v46, %v10511_v40  ;;  %8906 = vrcp.f32 %v1360_v54  ;;  %v7725_v41 = vor.u32 %v8619_v33, %v7724_v34  ;;  %v8547_v46 = vld [vmem:[%s10016_s12 + $0x9c] sm:$0xf0] }
 0x3de   : > { %v1312_v42 = vsub.f32 %v10523_v16, %v1292_v8  ;;  %v7692_v50 = vld [vmem:[%s10016_s12 + $0x280] sm:$0xf]  ;;  %v7437_v54 = vor.u32 %v8547_v46, %v7436_v45 }
 0x3df   : > { %v1414_v15 = vpack.c.bf16 %v1400_v55, %v1399_v10  ;;  %v8611_v55 = vld [vmem:[%s10016_s12 + $0x29c] sm:$0xf0] }
 0x3e0   : > { %v1339_v32 = vmul.f32 1.442695, %v1312_v42  ;;  %v7693_v60 = vor.u32 %v8611_v55, %v7692_v50  ;;  %v7404_v8 = vld [vmem:[%s10016_s12 + $0x40] sm:$0xf] }
 0x3e1   : > { %1456 = vmatmul.bf16.gmra.mxu0 %v1414_v15  ;;  %1505 = vmatmul.bf16.gmra.mxu1 %v1414_v15  ;;  %v8539_v10 = vld [vmem:[%s10016_s12 + $0x5c] sm:$0xf0] }
 0x3e2   : > { %8908 = vpow2.f32 %v1339_v32  ;;  %v8905_v38 = vpop.eup %8904  ;;  %v7660_v42 = vld [vmem:[%s10016_s12 + $0x240] sm:$0xf]  ;;  %v7405_v15 = vor.u32 %v8539_v10, %v7404_v8 }
 0x3e3   : > { %v1296_v20 = vpop.xlane.xlu2 %1295  ;;  %v8907_v40 = vpop.eup %8906  ;;  %v1401_v47 = vmul.f32 %v8905_v38, %v10518_v59  ;;  %v8603_v32 = vld [vmem:[%s10016_s12 + $0x25c] sm:$0xf0] }
 0x3e4   : > { %v1314_v49 = vsub.f32 %v10530_v17, %v1296_v20  ;;  %v1362_v43 = vpop.xlane.xlu0 %1361  ;;  %v1402_v58 = vmul.f32 %v8907_v40, %v10520_v53  ;;  %v7661_v20 = vor.u32 %v8603_v32, %v7660_v42  ;;  %v7372_v38 = vld [vmem:[%s10016_s12] sm:$0xf] }
 0x3e5   : > { %v1294_v37 = vpop.xlane.xlu1 %1293 }
 0x3e6   : > { %v1313_v26 = vsub.f32 %v10533_v63, %v1294_v37  ;;  %v1343_v44 = vmul.f32 1.442695, %v1314_v49  ;;  %v1415_v13 = vpack.c.bf16 %v1402_v58, %v1401_v47  ;;  %v1437_v58 = vld [vmem:[%s399_s14] sm:$0x3] }
 0x3e8   : > { %v10571_v31 = vpop.eup %8908  ;;  %v1341_v16 = vmul.f32 1.442695, %v1313_v26  ;;  %8910 = vpow2.f32 %v1343_v44  ;;  %v8531_v26 = vld [vmem:[%s10016_s12 + $0x1c] sm:$0xf0] }
 0x3e9   : > { %1371 = vadd.xlane.f32.xlu1 %v10571_v31  ;;  %v7373_v40 = vor.u32 %v8531_v26, %v7372_v38  ;;  %v8595_v44 = vld [vmem:[%s10016_s12 + $0x21c] sm:$0xf0] }
 0x3ea   : > { %8912 = vpow2.f32 %v1341_v16 }
 0x3eb   : > { %8914 = vrcp.f32 %v1362_v43  ;;  %v7628_v43 = vld [vmem:[%s10016_s12 + $0x200] sm:$0xf] }
 0x3ec   : > { %v7629_v47 = vor.u32 %v8595_v44, %v7628_v43 }
 0x3ed   : > { %v1364_v3 = vpop.xlane.xlu1 %1363 }
 0x3ee   : > { %8916 = vrcp.f32 %v1364_v3  ;;  %v1300_v17 = vpop.xlane.xlu0 %1299  ;;  %v10576_v7 = vpop.eup %8910 }
 0x3ef   : > { %v1316_v63 = vsub.f32 %v10542_v30, %v1300_v17  ;;  %1375 = vadd.xlane.f32.xlu0 %v10576_v7  ;;  %v10619_v17 = vperm.slane %v1437_v58, 0 }
 0x3f0   : > { %v10579_v21 = vpop.eup %8912 }
 0x3f1   : > { %v1347_v25 = vmul.f32 1.442695, %v1316_v63  ;;  %1373 = vadd.xlane.f32.xlu2 %v10579_v21  ;;  %1461 = vmatmul.bf16.gmra.mxu0 %v1415_v13  ;;  %v8915_v59 = vpop.eup %8914 }
 0x3f2   : > { %1510 = vmatmul.bf16.gmra.mxu1 %v1415_v13  ;;  %v1403_v30 = vmul.f32 %v8915_v59, %v10528_v35  ;;  %v8643_v35 = vld [vmem:[%s10016_s12 + $0x39c] sm:$0xf0]  ;;  %v10621_v13 = vperm.slane %v1437_v58, 1 }
 0x3f3   : > { %8918 = vpow2.f32 %v1347_v25  ;;  %v7821_v1 = vor.u32 %v8643_v35, %v7820_v62 }
 0x3f4   : > { %v8917_v53 = vpop.eup %8916 }
 0x3f5   : > { %v1404_v52 = vmul.f32 %v8917_v53, %v10539_v57  ;;  %3383 = vmatpush.bf16.msrb.mxu1 %v7821_v1  ;;  %v7532_v57 = vld [vmem:[%s10016_s12 + $0x140] sm:$0xf]  ;;  %v1366_v3 = vpop.xlane.xlu1 %1365 }
 0x3f6   : > { %v7533_v6 = vor.u32 %v8571_v4, %v7532_v57 }
 0x3f7   : > { %v1416_v51 = vpack.c.bf16 %v1404_v52, %v1403_v30 }
 0x3f8   : > { %3335 = vmatpush.bf16.msrb.mxu0 %v7533_v6 }
 0x3f9   : > { %v10585_v61 = vpop.eup %8918  ;;  %1466 = vmatmul.bf16.vlgmr.msrb.gmra.mxu2 %v1416_v51  ;;  %1515 = vmatmul.bf16.vlgmr.msrb.gmra.mxu3 %v1416_v51 }
 0x3fa   : > { %1379 = vadd.xlane.f32.xlu2 %v10585_v61  ;;  %3384 = vmatpush.bf16.msrb.mxu1 %v7789_v18 }
 0x3fc   : > { %3336 = vmatpush.bf16.msrb.mxu0 %v7501_v48 }
 0x3fe   : > { %3385 = vmatpush.bf16.msrb.mxu1 %v7757_v12 }
 0x400   : > { %3337 = vmatpush.bf16.msrb.mxu0 %v7469_v36 }
 0x402   : > { %3386 = vmatpush.bf16.msrb.mxu1 %v7725_v41 }
 0x404   : > { %3338 = vmatpush.bf16.msrb.mxu0 %v7437_v54 }
 0x406   : > { %3387 = vmatpush.bf16.msrb.mxu1 %v7693_v60 }
 0x408   : > { %3339 = vmatpush.bf16.msrb.mxu0 %v7405_v15 }
 0x40a   : > { %3388 = vmatpush.bf16.msrb.mxu1 %v7661_v20 }
 0x40c   : > { %3340 = vmatpush.bf16.msrb.mxu0 %v7373_v40 }
 0x40e   : > { %3389 = vmatpush.bf16.msrb.mxu1 %v7629_v47 }
 0x445   : > { %v1298_v37 = vpop.xlane.xlu2 %1297 }
 0x446   : > { %v1315_v49 = vsub.f32 %v10553_v27, %v1298_v37 }
 0x448   : > { %v1345_v16 = vmul.f32 1.442695, %v1315_v49 }
 0x44a   : > { %8920 = vpow2.f32 %v1345_v16 }
 0x44b   : > { %8922 = vrcp.f32 %v1366_v3 }
 0x44d   : > { %v1452_v63 = vpop.f32.mrf.mxu0  ;;  %v1501_v27 = vpop.f32.mrf.mxu1 }
 0x44e   : > { %v1368_v25 = vpop.xlane.xlu2 %1367  ;;  %v1453_v53 = vadd.f32 %v1452_v63, %v10619_v17  ;;  %v1502_v30 = vadd.f32 %v1501_v27, %v10621_v13  ;;  %v1370_v5 = vpop.xlane.xlu0 %1369 }
 0x44f   : > { %8924 = vrcp.f32 %v1368_v25 }
 0x450   : > { %v10623_v59 = vpop.eup %8920  ;;  %8926 = vtanh.f32 %v1453_v53 }
 0x451   : > { %1377 = vadd.xlane.f32.xlu1 %v10623_v59  ;;  %v8923_v52 = vpop.eup %8922  ;;  %8928 = vtanh.f32 %v1502_v30 }
 0x452   : > { %v1405_v35 = vmul.f32 %v8923_v52, %v10545_v39 }
 0x455   : > { %v8925_v51 = vpop.eup %8924  ;;  %v1454_v2 = vpop.f32.mrf.mxu0 }
 0x456   : > { %v1503_v9 = vpop.f32.mrf.mxu1  ;;  %v1455_v62 = vadd.f32 %v1454_v2, %v10619_v17  ;;  %v1406_v1 = vmul.f32 %v8925_v51, %v10556_v28  ;;  %v8927_v4 = vpop.eup %8926 }
 0x457   : > { %v1504_v0 = vadd.f32 %v1503_v9, %v10621_v13  ;;  %v8929_v6 = vpop.eup %8928  ;;  %v8108_v9 = vld [vmem:[%s10016_s12 + $0x5c0] sm:$0xf] }
 0x458   : > { %8930 = vtanh.f32 %v1455_v62  ;;  %v1417_v57 = vpack.c.bf16 %v1406_v1, %v1405_v35  ;;  %v1573_v23 = vpack.c.bf16 %v8929_v6, %v8927_v4  ;;  %v8715_v62 = vld [vmem:[%s10016_s12 + $0x5dc] sm:$0xf0] }
 0x459   : > { %8932 = vtanh.f32 %v1504_v0  ;;  %v8109_v35 = vor.u32 %v8715_v62, %v8108_v9  ;;  %v8779_v1 = vld [vmem:[%s10016_s12 + $0x7dc] sm:$0xf0] }
 0x45a   : > { %1471 = vmatmul.bf16.gmra.mxu2 %v1417_v57  ;;  %1520 = vmatmul.bf16.gmra.mxu3 %v1417_v57  ;;  %v1653_v22 = vunpack.c.l.b16 %v1573_v23  ;;  %v1654_v29 = vunpack.c.h.b16 %v1573_v23 }
 0x45b   : > { %3431 = vmatpush.bf16.msra.mxu2 %v8109_v35  ;;  %v8236_v35 = vld [vmem:[%s10016_s12 + $0x6c0] sm:$0xf] }
 0x45c   : > { %v1372_v11 = vpop.xlane.xlu1 %1371 }
 0x45d   : > { %8934 = vrcp.f32 %v1372_v11 }
 0x45e   : > { %8936 = vrcp.f32 %v1370_v5  ;;  %v1457_v18 = vpop.f32.mrf.mxu0  ;;  %v1506_v19 = vpop.f32.mrf.mxu1 }
 0x45f   : > { %v8931_v14 = vpop.eup %8930  ;;  %v1458_v39 = vadd.f32 %v1457_v18, %v10619_v17  ;;  %v1507_v28 = vadd.f32 %v1506_v19, %v10621_v13 }
 0x460   : > { %v8933_v48 = vpop.eup %8932 }
 0x461   : > { %v1574_v56 = vpack.c.bf16 %v8933_v48, %v8931_v14  ;;  %8938 = vtanh.f32 %v1458_v39 }
 0x462   : > { %8940 = vtanh.f32 %v1507_v28  ;;  %v1376_v10 = vpop.xlane.xlu0 %1375 }
 0x463   : > { %v8935_v12 = vpop.eup %8934  ;;  %v1655_v34 = vunpack.c.l.b16 %v1574_v56  ;;  %v1656_v36 = vunpack.c.h.b16 %v1574_v56 }
 0x464   : > { %v8937_v33 = vpop.eup %8936  ;;  %v1408_v46 = vmul.f32 %v8935_v12, %v10571_v31  ;;  %v1374_v42 = vpop.xlane.xlu2 %1373 }
 0x465   : > { %v10634_v41 = vpack.c.b16 %v1655_v34, %v1653_v22  ;;  %v10636_v45 = vpack.c.b16 %v1656_v36, %v1654_v29  ;;  %v1407_v8 = vmul.f32 %v8937_v33, %v10558_v24 }
 0x466   : > { %v1459_v50 = vpop.f32.mrf.mxu0  ;;  %v1508_v54 = vpop.f32.mrf.mxu1 }
 0x467   : > { %14707 = vst [vmem:[#allocation22_spill] sm:$0xff] %v10634_v41  ;;  %v1460_v55 = vadd.f32 %v1459_v50, %v10619_v17  ;;  %v1509_v60 = vadd.f32 %v1508_v54, %v10621_v13  ;;  %3341 = vmatmul.bf16.vlgmr.msrb.gmra.mxu0 %v10634_v41  ;;  %3390 = vmatmul.bf16.vlgmr.msrb.gmra.mxu1 %v10636_v45  ;;  %v8939_v32 = vpop.eup %8938 }
 0x468   : > { %14708 = vst [vmem:[#allocation23_spill] sm:$0xff] %v10636_v45  ;;  %v1418_v15 = vpack.c.bf16 %v1408_v46, %v1407_v8  ;;  %v8941_v31 = vpop.eup %8940 }
 0x469   : > { %8942 = vtanh.f32 %v1460_v55  ;;  %v1575_v49 = vpack.c.bf16 %v8941_v31, %v8939_v32 }
 0x46a   : > { %8944 = vtanh.f32 %v1509_v60  ;;  %1476 = vmatmul.bf16.gmra.mxu2 %v1418_v15  ;;  %1525 = vmatmul.bf16.gmra.mxu3 %v1418_v15 }
 0x46b   : > { %8946 = vrcp.f32 %v1376_v10  ;;  %v1657_v47 = vunpack.c.l.b16 %v1575_v49  ;;  %v1658_v58 = vunpack.c.h.b16 %v1575_v49 }
 0x46c   : > { %8948 = vrcp.f32 %v1374_v42 }
 0x46e   : > { %v1462_v20 = vpop.f32.mrf.mxu0 }
 0x46f   : > { %v8943_v37 = vpop.eup %8942  ;;  %v1511_v38 = vpop.f32.mrf.mxu1  ;;  %v1463_v24 = vadd.f32 %v1462_v20, %v10619_v17 }
 0x470   : > { %v8945_v26 = vpop.eup %8944  ;;  %v1512_v16 = vadd.f32 %v1511_v38, %v10621_v13  ;;  %v8076_v38 = vld [vmem:[%s10016_s12 + $0x580] sm:$0xf] }
 0x471   : > { %v8947_v43 = vpop.eup %8946  ;;  %v1576_v40 = vpack.c.bf16 %v8945_v26, %v8943_v37  ;;  %8950 = vtanh.f32 %v1463_v24  ;;  %v8707_v26 = vld [vmem:[%s10016_s12 + $0x59c] sm:$0xf0] }
 0x472   : > { %v8949_v44 = vpop.eup %8948  ;;  %v1410_v27 = vmul.f32 %v8947_v43, %v10576_v7  ;;  %8952 = vtanh.f32 %v1512_v16  ;;  %v8364_v7 = vld [vmem:[%s10016_s12 + $0x7c0] sm:$0xf] }
 0x473   : > { %v1659_v3 = vunpack.c.l.b16 %v1576_v40  ;;  %v1660_v63 = vunpack.c.h.b16 %v1576_v40  ;;  %v1409_v30 = vmul.f32 %v8949_v44, %v10579_v21  ;;  %v8365_v4 = vor.u32 %v8779_v1, %v8364_v7  ;;  %v8332_v43 = vld [vmem:[%s10016_s12 + $0x780] sm:$0xf] }
 0x474   : > { %v8077_v40 = vor.u32 %v8707_v26, %v8076_v38  ;;  %v8771_v24 = vld [vmem:[%s10016_s12 + $0x79c] sm:$0xf0]  ;;  %v1592_v38 = vld [vmem:[#allocation3 + $0x78] sm:$0xff] }
 0x475   : > { %v10647_v25 = vpack.c.b16 %v1659_v3, %v1657_v47  ;;  %v10649_v53 = vpack.c.b16 %v1660_v63, %v1658_v58  ;;  %v1419_v57 = vpack.c.bf16 %v1410_v27, %v1409_v30  ;;  %3480 = vmatpush.bf16.msra.mxu3 %v8365_v4  ;;  %v8044_v44 = vld [vmem:[%s10016_s12 + $0x540] sm:$0xf]  ;;  %v8333_v47 = vor.u32 %v8771_v24, %v8332_v43 }
 0x476   : > { %v1464_v52 = vpop.f32.mrf.mxu0  ;;  %v8699_v16 = vld [vmem:[%s10016_s12 + $0x55c] sm:$0xf0]  ;;  %3432 = vmatpush.bf16.msra.mxu2 %v8077_v40 }
 0x477   : > { %14709 = vst [vmem:[#allocation24_spill] sm:$0xff] %v10647_v25  ;;  %v1465_v51 = vadd.f32 %v1464_v52, %v10619_v17  ;;  %v1513_v2 = vpop.f32.mrf.mxu1  ;;  %3346 = vmatmul.bf16.gmra.mxu0 %v10647_v25  ;;  %3395 = vmatmul.bf16.gmra.mxu1 %v10649_v53  ;;  %v8951_v21 = vpop.eup %8950  ;;  %v8300_v58 = vld [vmem:[%s10016_s12 + $0x740] sm:$0xf]  ;;  %v8045_v63 = vor.u32 %v8699_v16, %v8044_v44 }
 0x478   : > { %14710 = vst [vmem:[#allocation25_spill] sm:$0xff] %v10649_v53  ;;  %v1514_v0 = vadd.f32 %v1513_v2, %v10621_v13  ;;  %v8953_v5 = vpop.eup %8952  ;;  %v8763_v3 = vld [vmem:[%s10016_s12 + $0x75c] sm:$0xf0] }
 0x479   : > { %8954 = vtanh.f32 %v1465_v51  ;;  %v1577_v19 = vpack.c.bf16 %v8953_v5, %v8951_v21  ;;  %3481 = vmatpush.bf16.msra.mxu3 %v8333_v47  ;;  %v8301_v27 = vor.u32 %v8763_v3, %v8300_v58  ;;  %v8012_v30 = vld [vmem:[%s10016_s12 + $0x500] sm:$0xf] }
 0x47a   : > { %8956 = vtanh.f32 %v1514_v0  ;;  %1481 = vmatmul.bf16.gmra.mxu2 %v1419_v57  ;;  %1530 = vmatmul.bf16.gmra.mxu3 %v1419_v57  ;;  %v8691_v52 = vld [vmem:[%s10016_s12 + $0x51c] sm:$0xf0] }
 0x47b   : > { %v1661_v39 = vunpack.c.l.b16 %v1577_v19  ;;  %v1662_v28 = vunpack.c.h.b16 %v1577_v19  ;;  %v8268_v51 = vld [vmem:[%s10016_s12 + $0x700] sm:$0xf]  ;;  %3433 = vmatpush.bf16.msra.mxu2 %v8045_v63  ;;  %v8013_v9 = vor.u32 %v8691_v52, %v8012_v30  ;;  %v1595_v52 = vld [vmem:[#allocation3 + $0x58] sm:$0xff] }
 0x47c   : > { %v1467_v6 = vpop.f32.mrf.mxu2  ;;  %v1516_v11 = vpop.f32.mrf.mxu3  ;;  %v8755_v2 = vld [vmem:[%s10016_s12 + $0x71c] sm:$0xf0] }
 0x47d   : > { %v1468_v23 = vadd.f32 %v1467_v6, %v10619_v17  ;;  %v1517_v56 = vadd.f32 %v1516_v11, %v10621_v13  ;;  %3482 = vmatpush.bf16.msra.mxu3 %v8301_v27  ;;  %v8269_v62 = vor.u32 %v8755_v2, %v8268_v51  ;;  %v7980_v7 = vld [vmem:[%s10016_s12 + $0x4c0] sm:$0xf]  ;;  %v1594_v27 = vld [vmem:[#allocation3 + $0x90] sm:$0xff] }
 0x47e   : > { %v8683_v0 = vld [vmem:[%s10016_s12 + $0x4dc] sm:$0xf0] }
 0x47f   : > { %v8955_v18 = vpop.eup %8954  ;;  %8958 = vtanh.f32 %v1468_v23  ;;  %3434 = vmatpush.bf16.msra.mxu2 %v8013_v9  ;;  %v7981_v1 = vor.u32 %v8683_v0, %v7980_v7  ;;  %v8747_v57 = vld [vmem:[%s10016_s12 + $0x6dc] sm:$0xf0] }
 0x480   : > { %v8957_v14 = vpop.eup %8956  ;;  %8960 = vtanh.f32 %v1517_v56  ;;  %v7948_v4 = vld [vmem:[%s10016_s12 + $0x480] sm:$0xf]  ;;  %v8237_v5 = vor.u32 %v8747_v57, %v8236_v35 }
 0x481   : > { %v1578_v48 = vpack.c.bf16 %v8957_v14, %v8955_v18  ;;  %3483 = vmatpush.bf16.msra.mxu3 %v8269_v62  ;;  %v8675_v21 = vld [vmem:[%s10016_s12 + $0x49c] sm:$0xf0] }
 0x482   : > { %v8204_v6 = vld [vmem:[%s10016_s12 + $0x680] sm:$0xf]  ;;  %v7949_v18 = vor.u32 %v8675_v21, %v7948_v4 }
 0x483   : > { %v1663_v12 = vunpack.c.l.b16 %v1578_v48  ;;  %v1664_v22 = vunpack.c.h.b16 %v1578_v48  ;;  %v8739_v11 = vld [vmem:[%s10016_s12 + $0x69c] sm:$0xf0]  ;;  %3435 = vmatpush.bf16.msra.mxu2 %v7981_v1 }
 0x484   : > { %v1469_v29 = vpop.f32.mrf.mxu2  ;;  %v1518_v34 = vpop.f32.mrf.mxu3  ;;  %v8205_v19 = vor.u32 %v8739_v11, %v8204_v6  ;;  %v7916_v14 = vld [vmem:[%s10016_s12 + $0x440] sm:$0xf] }
 0x485   : > { %v10662_v36 = vpack.c.b16 %v1663_v12, %v1661_v39  ;;  %v10664_v33 = vpack.c.b16 %v1664_v22, %v1662_v28  ;;  %v1470_v46 = vadd.f32 %v1469_v29, %v10619_v17  ;;  %v1519_v50 = vadd.f32 %v1518_v34, %v10621_v13  ;;  %v8959_v54 = vpop.eup %8958  ;;  %3484 = vmatpush.bf16.msra.mxu3 %v8237_v5  ;;  %v8667_v23 = vld [vmem:[%s10016_s12 + $0x45c] sm:$0xf0]  ;;  %v1380_v12 = vpop.xlane.xlu2 %1379 }
 0x486   : > { %v8961_v55 = vpop.eup %8960  ;;  %v8172_v48 = vld [vmem:[%s10016_s12 + $0x640] sm:$0xf]  ;;  %v7917_v39 = vor.u32 %v8667_v23, %v7916_v14 }
 0x487   : > { %14711 = vst [vmem:[#allocation26_spill] sm:$0xff] %v10662_v36  ;;  %8962 = vtanh.f32 %v1470_v46  ;;  %3351 = vmatmul.bf16.gmra.mxu0 %v10662_v36  ;;  %3400 = vmatmul.bf16.gmra.mxu1 %v10664_v33  ;;  %v1579_v10 = vpack.c.bf16 %v8961_v55, %v8959_v54  ;;  %v8731_v56 = vld [vmem:[%s10016_s12 + $0x65c] sm:$0xf0] }
 0x488   : > { %14712 = vst [vmem:[#allocation27_spill] sm:$0xff] %v10664_v33  ;;  %8964 = vtanh.f32 %v1519_v50  ;;  %3436 = vmatpush.bf16.msra.mxu2 %v7949_v18  ;;  %v8173_v28 = vor.u32 %v8731_v56, %v8172_v48  ;;  %v7884_v22 = vld [vmem:[%s10016_s12 + $0x400] sm:$0xf] }
 0x489   : > { %v1665_v31 = vunpack.c.l.b16 %v1579_v10  ;;  %v1666_v20 = vunpack.c.h.b16 %v1579_v10  ;;  %3485 = vmatpush.bf16.msra.mxu3 %v8205_v19  ;;  %v8659_v29 = vld [vmem:[%s10016_s12 + $0x41c] sm:$0xf0]  ;;  %8966 = vrcp.f32 %v1380_v12 }
 0x48a   : > { %v7885_v34 = vor.u32 %v8659_v29, %v7884_v22  ;;  %v8140_v50 = vld [vmem:[%s10016_s12 + $0x600] sm:$0xf] }
 0x48b   : > { %v8723_v54 = vld [vmem:[%s10016_s12 + $0x61c] sm:$0xf0] }
 0x48c   : > { %3437 = vmatpush.bf16.msra.mxu2 %v7917_v39  ;;  %v8141_v55 = vor.u32 %v8723_v54, %v8140_v50  ;;  %v1593_v63 = vld [vmem:[#allocation3 + $0x8] sm:$0xff]  ;;  %v1598_v54 = vld [vmem:[#allocation3 + $0xb0] sm:$0xff] }
 0x48d   : > { %v8963_v60 = vpop.eup %8962  ;;  %3486 = vmatpush.bf16.msra.mxu3 %v8173_v28  ;;  %v1596_v51 = vld [vmem:[#allocation3 + $0xa8] sm:$0xff]  ;;  %v1623_v62 = vpack.c.bf16 %v1594_v27, %v1593_v63 }
 0x48e   : > { %v8965_v8 = vpop.eup %8964  ;;  %v1624_v0 = vpack.c.bf16 %v1596_v51, %v1595_v52 }
 0x48f   : > { %v1580_v42 = vpack.c.bf16 %v8965_v8, %v8963_v60  ;;  %v8967_v60 = vpop.eup %8966  ;;  %v1737_v21 = vunpack.c.l.b16 %v1623_v62  ;;  %v1738_v6 = vunpack.c.h.b16 %v1623_v62 }
 0x490   : > { %3438 = vmatpush.bf16.msra.mxu2 %v7885_v34  ;;  %v1739_v5 = vunpack.c.l.b16 %v1624_v0  ;;  %v1740_v11 = vunpack.c.h.b16 %v1624_v0  ;;  %v1597_v34 = vld [vmem:[#allocation3 + $0xd0] sm:$0xff] }
 0x491   : > { %v1667_v15 = vunpack.c.l.b16 %v1580_v42  ;;  %v1668_v32 = vunpack.c.h.b16 %v1580_v42  ;;  %3487 = vmatpush.bf16.msra.mxu3 %v8141_v55  ;;  %v1412_v42 = vmul.f32 %v8967_v60, %v10585_v61  ;;  %v1599_v55 = vld [vmem:[#allocation3 + $0x38] sm:$0xff]  ;;  %v1600_v60 = vld [vmem:[#allocation3 + $0x40] sm:$0xff] }
 0x492   : > { %v10722_v48 = vpack.c.b16 %v1739_v5, %v1737_v21  ;;  %v10724_v56 = vpack.c.b16 %v1740_v11, %v1738_v6  ;;  %v1601_v6 = vld [vmem:[#allocation3 + $0xe0] sm:$0xff] }
 0x493   : > { %v10670_v37 = vpack.c.b16 %v1667_v15, %v1665_v31  ;;  %v10672_v49 = vpack.c.b16 %v1668_v32, %v1666_v20  ;;  %v1589_v32 = vld [vmem:[#allocation3 + $0x80] sm:$0xff]  ;;  %v1590_v31 = vld [vmem:[#allocation3 + $0xc8] sm:$0xff] }
 0x494   : > { %v1591_v20 = vld [vmem:[#allocation3 + $0xe8] sm:$0xff]  ;;  %v1621_v26 = vpack.c.bf16 %v1590_v31, %v1589_v32  ;;  %14717 = vst [vmem:[#allocation32_spill] sm:$0xff] %v10722_v48 }
 0x495   : > { %14713 = vst [vmem:[#allocation28_spill] sm:$0xff] %v10670_v37  ;;  %v1622_v43 = vpack.c.bf16 %v1592_v38, %v1591_v20  ;;  %v1625_v38 = vpack.c.bf16 %v1598_v54, %v1597_v34 }
 0x496   : > { %14714 = vst [vmem:[#allocation29_spill] sm:$0xff] %v10672_v49  ;;  %v1733_v40 = vunpack.c.l.b16 %v1621_v26  ;;  %v1734_v44 = vunpack.c.h.b16 %v1621_v26  ;;  %v1626_v26 = vpack.c.bf16 %v1600_v60, %v1599_v55 }
 0x497   : > { %3356 = vmatmul.bf16.gmra.mxu0 %v10670_v37  ;;  %3405 = vmatmul.bf16.gmra.mxu1 %v10672_v49  ;;  %v1735_v24 = vunpack.c.l.b16 %v1622_v43  ;;  %v1736_v16 = vunpack.c.h.b16 %v1622_v43  ;;  %14718 = vst [vmem:[#allocation33_spill] sm:$0xff] %v10724_v56  ;;  %v1742_v27 = vunpack.c.h.b16 %v1625_v38 }
 0x498   : > { %v1743_v63 = vunpack.c.l.b16 %v1626_v26 }
 0x499   : > { %v10706_v47 = vpack.c.b16 %v1735_v24, %v1733_v40  ;;  %v10708_v58 = vpack.c.b16 %v1736_v16, %v1734_v44 }
 0x49b   : > { %14715 = vst [vmem:[#allocation30_spill] sm:$0xff] %v10706_v47 }
 0x49c   : > { %14716 = vst [vmem:[#allocation31_spill] sm:$0xff] %v10708_v58 }
 0x4c4   : > { %v1378_v46 = vpop.xlane.xlu1 %1377 }
 0x4c5   : > { %8968 = vrcp.f32 %v1378_v46 }
 0x4cb   : > { %v8969_v8 = vpop.eup %8968 }
 0x4cc   : > { %v1411_v10 = vmul.f32 %v8969_v8, %v10623_v59 }
 0x4ce   : > { %v1420_v15 = vpack.c.bf16 %v1412_v42, %v1411_v10 }
 0x4d0   : > { %1486 = vmatmul.bf16.gmra.mxu2 %v1420_v15  ;;  %1535 = vmatmul.bf16.gmra.mxu3 %v1420_v15 }
 0x4dd   : > { %v1472_v59 = vpop.f32.mrf.mxu2  ;;  %v1521_v3 = vpop.f32.mrf.mxu3 }
 0x4de   : > { %v1473_v61 = vadd.f32 %v1472_v59, %v10619_v17  ;;  %v1522_v30 = vadd.f32 %v1521_v3, %v10621_v13 }
 0x4e0   : > { %3439 = vmatmul.bf16.vlgmr.msra.gmra.mxu2 %v10706_v47  ;;  %3488 = vmatmul.bf16.vlgmr.msra.gmra.mxu3 %v10708_v58  ;;  %8970 = vtanh.f32 %v1473_v61  ;;  %v1741_v61 = vunpack.c.l.b16 %v1625_v38 }
 0x4e1   : > { %8972 = vtanh.f32 %v1522_v30  ;;  %v1744_v30 = vunpack.c.h.b16 %v1626_v26 }
 0x4e2   : > { %v10744_v62 = vpack.c.b16 %v1743_v63, %v1741_v61 }
 0x4e3   : > { %v10746_v0 = vpack.c.b16 %v1744_v30, %v1742_v27 }
 0x4e4   : > { %v3342_v2 = vpop.f32.mrf.mxu0  ;;  %v3391_v9 = vpop.f32.mrf.mxu1  ;;  %14721 = vst [vmem:[#allocation36_spill] sm:$0xff] %v10744_v62 }
 0x4e5   : > { %v10714_v7 = vadd.f32 %v3391_v9, %v3342_v2  ;;  %v1474_v35 = vpop.f32.mrf.mxu2  ;;  %v1523_v1 = vpop.f32.mrf.mxu3  ;;  %14722 = vst [vmem:[#allocation37_spill] sm:$0xff] %v10746_v0 }
 0x4e6   : > { %v1475_v57 = vadd.f32 %v1474_v35, %v10619_v17  ;;  %v1524_v4 = vadd.f32 %v1523_v1, %v10621_v13  ;;  %v8971_v18 = vpop.eup %8970 }
 0x4e7   : > { %v8973_v19 = vpop.eup %8972 }
 0x4e8   : > { %8974 = vtanh.f32 %v1475_v57  ;;  %v1581_v22 = vpack.c.bf16 %v8973_v19, %v8971_v18  ;;  %v1602_v19 = vld [vmem:[#allocation3 + $0x60] sm:$0xff] }
 0x4e9   : > { %8976 = vtanh.f32 %v1524_v4  ;;  %v1627_v54 = vpack.c.bf16 %v1602_v19, %v1601_v6  ;;  %v8110_v6 = vld [vmem:[%s10016_s12 + $0x5e0] sm:$0xf0] }
 0x4ea   : > { %v1669_v10 = vunpack.c.l.b16 %v1581_v22  ;;  %v1670_v42 = vunpack.c.h.b16 %v1581_v22 }
 0x4eb   : > { %v1746_v26 = vunpack.c.h.b16 %v1627_v54 }
 0x4ec   : > { %v10718_v14 = vpop.f32.mrf.mxu0  ;;  %v10720_v23 = vpop.f32.mrf.mxu1 }
 0x4ed   : > { %v1477_v39 = vpop.f32.mrf.mxu2  ;;  %v1526_v28 = vpop.f32.mrf.mxu3 }
 0x4ee   : > { %v8975_v12 = vpop.eup %8974  ;;  %v1478_v50 = vadd.f32 %v1477_v39, %v10619_v17  ;;  %v1527_v8 = vadd.f32 %v1526_v28, %v10621_v13  ;;  %v1603_v39 = vld [vmem:[#allocation3 + $0x18] sm:$0xff]  ;;  %v1604_v28 = vld [vmem:[#allocation3 + $0x68] sm:$0xff] }
 0x4ef   : > { %v8977_v29 = vpop.eup %8976  ;;  %v1628_v55 = vpack.c.bf16 %v1604_v28, %v1603_v39  ;;  %v8366_v39 = vld [vmem:[%s10016_s12 + $0x7e0] sm:$0xf0] }
 0x4f0   : > { %v1582_v46 = vpack.c.bf16 %v8977_v29, %v8975_v12  ;;  %3444 = vmatmul.bf16.gmra.mxu2 %v10722_v48  ;;  %3493 = vmatmul.bf16.gmra.mxu3 %v10724_v56  ;;  %8978 = vtanh.f32 %v1478_v50  ;;  %v8583_v28 = vld [vmem:[%s10016_s12 + $0x1c4] sm:$0xf] }
 0x4f1   : > { %8980 = vtanh.f32 %v1527_v8  ;;  %v1747_v38 = vunpack.c.l.b16 %v1628_v55 }
 0x4f2   : > { %v1671_v15 = vunpack.c.l.b16 %v1582_v46  ;;  %v1672_v32 = vunpack.c.h.b16 %v1582_v46 }
 0x4f4   : > { %v3347_v31 = vpop.f32.mrf.mxu0  ;;  %v3396_v20 = vpop.f32.mrf.mxu1  ;;  %v10730_v43 = vpack.c.b16 %v1671_v15, %v1669_v10  ;;  %v10732_v40 = vpack.c.b16 %v1672_v32, %v1670_v42 }
 0x4f5   : > { %v10734_v24 = vadd.f32 %v3396_v20, %v3347_v31  ;;  %v1479_v44 = vpop.f32.mrf.mxu2  ;;  %v1528_v16 = vpop.f32.mrf.mxu3  ;;  %v1745_v20 = vunpack.c.l.b16 %v1627_v54  ;;  %v7854_v54 = vld [vmem:[%s10016_s12 + $0x3e0] sm:$0xf0] }
 0x4f6   : > { %14719 = vst [vmem:[#allocation34_spill] sm:$0xff] %v10730_v43  ;;  %v1480_v59 = vadd.f32 %v1479_v44, %v10619_v17  ;;  %v1529_v3 = vadd.f32 %v1528_v16, %v10621_v13  ;;  %3361 = vmatmul.bf16.gmra.mxu0 %v10730_v43  ;;  %3410 = vmatmul.bf16.gmra.mxu1 %v10732_v40  ;;  %v8979_v52 = vpop.eup %8978  ;;  %v1748_v44 = vunpack.c.h.b16 %v1628_v55 }
 0x4f7   : > { %14720 = vst [vmem:[#allocation35_spill] sm:$0xff] %v10732_v40  ;;  %v8981_v51 = vpop.eup %8980  ;;  %v10766_v63 = vpack.c.b16 %v1747_v38, %v1745_v20 }
 0x4f8   : > { %8982 = vtanh.f32 %v1480_v59  ;;  %v1583_v4 = vpack.c.bf16 %v8981_v51, %v8979_v52  ;;  %v10768_v27 = vpack.c.b16 %v1748_v44, %v1746_v26  ;;  %v1605_v51 = vld [vmem:[#allocation3 + $0x10] sm:$0xff] }
 0x4f9   : > { %8984 = vtanh.f32 %v1529_v3  ;;  %14725 = vst [vmem:[#allocation40_spill] sm:$0xff] %v10766_v63 }
 0x4fa   : > { %v1673_v12 = vunpack.c.l.b16 %v1583_v4  ;;  %v1674_v22 = vunpack.c.h.b16 %v1583_v4  ;;  %14726 = vst [vmem:[#allocation41_spill] sm:$0xff] %v10768_v27  ;;  %v1608_v4 = vld [vmem:[#allocation3 + $0xa0] sm:$0xff] }
 0x4fc   : > { %v10740_v2 = vpop.f32.mrf.mxu0  ;;  %v10742_v9 = vpop.f32.mrf.mxu1 }
 0x4fd   : > { %v1482_v35 = vpop.f32.mrf.mxu2  ;;  %v1531_v1 = vpop.f32.mrf.mxu3 }
 0x4fe   : > { %v8983_v57 = vpop.eup %8982  ;;  %v1483_v5 = vadd.f32 %v1482_v35, %v10619_v17  ;;  %v1532_v18 = vadd.f32 %v1531_v1, %v10621_v13  ;;  %v1606_v1 = vld [vmem:[#allocation3 + $0x70] sm:$0xff] }
 0x4ff   : > { %v8985_v21 = vpop.eup %8984 }
 0x500   : > { %v1584_v11 = vpack.c.bf16 %v8985_v21, %v8983_v57  ;;  %3449 = vmatmul.bf16.gmra.mxu2 %v10744_v62  ;;  %3498 = vmatmul.bf16.gmra.mxu3 %v10746_v0  ;;  %8986 = vtanh.f32 %v1483_v5  ;;  %v1607_v57 = vld [vmem:[#allocation3 + $0x50] sm:$0xff] }
 0x501   : > { %8988 = vtanh.f32 %v1532_v18  ;;  %v8711_v5 = vld [vmem:[%s10016_s12 + $0x5c4] sm:$0xf]  ;;  %v1630_v44 = vpack.c.bf16 %v1608_v4, %v1607_v57  ;;  %v1611_v4 = vld [vmem:[#allocation3 + $0x20] sm:$0xff] }
 0x502   : > { %v1675_v29 = vunpack.c.l.b16 %v1584_v11  ;;  %v1676_v34 = vunpack.c.h.b16 %v1584_v11  ;;  %v8775_v11 = vld [vmem:[%s10016_s12 + $0x7c4] sm:$0xf]  ;;  %v8113_v19 = vor.u32 %v8711_v5, %v8110_v6 }
 0x503   : > { %v1610_v57 = vld [vmem:[#allocation3 + $0x30] sm:$0xff] }
 0x504   : > { %v3352_v46 = vpop.f32.mrf.mxu0  ;;  %v3401_v50 = vpop.f32.mrf.mxu1  ;;  %v10752_v60 = vpack.c.b16 %v1675_v29, %v1673_v12  ;;  %v10754_v8 = vpack.c.b16 %v1676_v34, %v1674_v22  ;;  %v7598_v12 = vld [vmem:[%s10016_s12 + $0x1e0] sm:$0xf0]  ;;  %3627 = vmatpush.bf16.msrb.mxu2 %v8113_v19 }
 0x505   : > { %v10756_v10 = vadd.f32 %v3401_v50, %v3352_v46  ;;  %v1484_v42 = vpop.f32.mrf.mxu2  ;;  %v1533_v15 = vpop.f32.mrf.mxu3  ;;  %v8369_v46 = vor.u32 %v8775_v11, %v8366_v39  ;;  %v8647_v50 = vld [vmem:[%s10016_s12 + $0x3c4] sm:$0xf] }
 0x506   : > { %14723 = vst [vmem:[#allocation38_spill] sm:$0xff] %v10752_v60  ;;  %v1485_v32 = vadd.f32 %v1484_v42, %v10619_v17  ;;  %v1534_v31 = vadd.f32 %v1533_v15, %v10621_v13  ;;  %3366 = vmatmul.bf16.gmra.mxu0 %v10752_v60  ;;  %3415 = vmatmul.bf16.gmra.mxu1 %v10754_v8  ;;  %v8987_v16 = vpop.eup %8986  ;;  %v8703_v5 = vld [vmem:[%s10016_s12 + $0x584] sm:$0xf] }
 0x507   : > { %14724 = vst [vmem:[#allocation39_spill] sm:$0xff] %v10754_v8  ;;  %v8989_v59 = vpop.eup %8988  ;;  %v1629_v15 = vpack.c.bf16 %v1606_v1, %v1605_v51  ;;  %3676 = vmatpush.bf16.msrb.mxu3 %v8369_v46  ;;  %v1609_v1 = vld [vmem:[#allocation3 + $0xd8] sm:$0xff]  ;;  %v8078_v6 = vld [vmem:[%s10016_s12 + $0x5a0] sm:$0xf0] }
 0x508   : > { %8990 = vtanh.f32 %v1485_v32  ;;  %v1585_v30 = vpack.c.bf16 %v8989_v59, %v8987_v16  ;;  %v7601_v32 = vor.u32 %v8583_v28, %v7598_v12  ;;  %v1751_v59 = vunpack.c.l.b16 %v1630_v44  ;;  %v8767_v11 = vld [vmem:[%s10016_s12 + $0x784] sm:$0xf] }
 0x509   : > { %8992 = vtanh.f32 %v1534_v31  ;;  %v7857_v31 = vor.u32 %v8647_v50, %v7854_v54  ;;  %v1749_v16 = vunpack.c.l.b16 %v1629_v15  ;;  %v8334_v19 = vld [vmem:[%s10016_s12 + $0x7a0] sm:$0xf0]  ;;  %v1631_v50 = vpack.c.bf16 %v1610_v57, %v1609_v1 }
 0x50a   : > { %v1677_v18 = vunpack.c.l.b16 %v1585_v30  ;;  %v1678_v22 = vunpack.c.h.b16 %v1585_v30  ;;  %3529 = vmatpush.bf16.msra.mxu0 %v7601_v32  ;;  %v1750_v30 = vunpack.c.h.b16 %v1629_v15  ;;  %v8575_v39 = vld [vmem:[%s10016_s12 + $0x184] sm:$0xf]  ;;  %v8337_v12 = vor.u32 %v8767_v11, %v8334_v19 }
 0x50b   : > { %3578 = vmatpush.bf16.msra.mxu1 %v7857_v31  ;;  %v10788_v51 = vpack.c.b16 %v1751_v59, %v1749_v16  ;;  %v7566_v28 = vld [vmem:[%s10016_s12 + $0x1a0] sm:$0xf0]  ;;  %v1754_v15 = vunpack.c.h.b16 %v1631_v50  ;;  %v1613_v16 = vld [vmem:[#allocation3 + $0x88] sm:$0xff] }
 0x50c   : > { %v10762_v3 = vpop.f32.mrf.mxu0  ;;  %v10764_v61 = vpop.f32.mrf.mxu1  ;;  %3677 = vmatpush.bf16.msrb.mxu3 %v8337_v12  ;;  %v1614_v59 = vld [vmem:[#allocation3 + $0x48] sm:$0xff]  ;;  %v8695_v19 = vld [vmem:[%s10016_s12 + $0x544] sm:$0xf] }
 0x50d   : > { %14729 = vst [vmem:[#allocation44_spill] sm:$0xff] %v10788_v51  ;;  %v1633_v1 = vpack.c.bf16 %v1614_v59, %v1613_v16  ;;  %v8759_v12 = vld [vmem:[%s10016_s12 + $0x744] sm:$0xf] }
 0x50e   : > { %v8991_v52 = vpop.eup %8990  ;;  %v8270_v16 = vld [vmem:[%s10016_s12 + $0x720] sm:$0xf0] }
 0x50f   : > { %v8993_v35 = vpop.eup %8992 }
 0x510   : > { %v1586_v21 = vpack.c.bf16 %v8993_v35, %v8991_v52  ;;  %3454 = vmatmul.bf16.gmra.mxu2 %v10766_v63  ;;  %3503 = vmatmul.bf16.gmra.mxu3 %v10768_v27  ;;  %v1752_v52 = vunpack.c.h.b16 %v1630_v44 }
 0x512   : > { %v1679_v29 = vunpack.c.l.b16 %v1586_v21  ;;  %v1680_v34 = vunpack.c.h.b16 %v1586_v21  ;;  %v10790_v35 = vpack.c.b16 %v1752_v52, %v1750_v30  ;;  %v1612_v21 = vld [vmem:[#allocation3 + $0xf0] sm:$0xff]  ;;  %v1615_v30 = vld [vmem:[#allocation3 + $0xf8] sm:$0xff]  ;;  %v1616_v52 = vld [vmem:[#allocation3 + $0xc0] sm:$0xff] }
 0x513   : > { %v1632_v54 = vpack.c.bf16 %v1612_v21, %v1611_v4  ;;  %v1634_v57 = vpack.c.bf16 %v1616_v52, %v1615_v30  ;;  %v1757_v4 = vunpack.c.l.b16 %v1633_v1 }
 0x514   : > { %v3357_v55 = vpop.f32.mrf.mxu0  ;;  %v3406_v42 = vpop.f32.mrf.mxu1  ;;  %v10780_v20 = vpack.c.b16 %v1679_v29, %v1677_v18  ;;  %v10782_v38 = vpack.c.b16 %v1680_v34, %v1678_v22  ;;  %14730 = vst [vmem:[#allocation45_spill] sm:$0xff] %v10790_v35  ;;  %v8081_v18 = vor.u32 %v8703_v5, %v8078_v6  ;;  %v7569_v22 = vor.u32 %v8575_v39, %v7566_v28  ;;  %v8639_v29 = vld [vmem:[%s10016_s12 + $0x384] sm:$0xf] }
 0x515   : > { %v10784_v26 = vadd.f32 %v3406_v42, %v3357_v55  ;;  %v7822_v34 = vld [vmem:[%s10016_s12 + $0x3a0] sm:$0xf0]  ;;  %v1753_v55 = vunpack.c.l.b16 %v1631_v50  ;;  %v1755_v42 = vunpack.c.l.b16 %v1632_v54  ;;  %v1756_v32 = vunpack.c.h.b16 %v1632_v54  ;;  %v1619_v50 = vld [vmem:[#allocation3 + $0x28] sm:$0xff] }
 0x516   : > { %14727 = vst [vmem:[#allocation42_spill] sm:$0xff] %v10780_v20  ;;  %3371 = vmatmul.bf16.gmra.mxu0 %v10780_v20  ;;  %3420 = vmatmul.bf16.gmra.mxu1 %v10782_v38  ;;  %v7825_v46 = vor.u32 %v8639_v29, %v7822_v34  ;;  %v1759_v21 = vunpack.c.l.b16 %v1634_v57  ;;  %v1758_v5 = vunpack.c.h.b16 %v1633_v1  ;;  %v1760_v6 = vunpack.c.h.b16 %v1634_v57  ;;  %v8046_v39 = vld [vmem:[%s10016_s12 + $0x560] sm:$0xf0]  ;;  %v1617_v34 = vld [vmem:[#allocation3 + $0xb8] sm:$0xff] }
 0x517   : > { %14728 = vst [vmem:[#allocation43_spill] sm:$0xff] %v10782_v38  ;;  %3628 = vmatpush.bf16.msrb.mxu2 %v8081_v18  ;;  %3530 = vmatpush.bf16.msra.mxu0 %v7569_v22  ;;  %v10802_v31 = vpack.c.b16 %v1755_v42, %v1753_v55  ;;  %v10804_v44 = vpack.c.b16 %v1756_v32, %v1754_v15  ;;  %v8302_v22 = vld [vmem:[%s10016_s12 + $0x760] sm:$0xf0]  ;;  %v1620_v42 = vld [vmem:[#allocation3 + $0x98] sm:$0xff] }
 0x518   : > { %3579 = vmatpush.bf16.msra.mxu1 %v7825_v46  ;;  %v10808_v11 = vpack.c.b16 %v1759_v21, %v1757_v4  ;;  %v10810_v18 = vpack.c.b16 %v1760_v6, %v1758_v5  ;;  %v8049_v28 = vor.u32 %v8695_v19, %v8046_v39  ;;  %v8305_v29 = vor.u32 %v8759_v12, %v8302_v22  ;;  %v1618_v46 = vld [vmem:[#allocation3] sm:$0xff]  ;;  %v8687_v54 = vld [vmem:[%s10016_s12 + $0x504] sm:$0xf] }
 0x519   : > { %14731 = vst [vmem:[#allocation46_spill] sm:$0xff] %v10802_v31  ;;  %v8014_v55 = vld [vmem:[%s10016_s12 + $0x520] sm:$0xf0]  ;;  %v1635_v30 = vpack.c.bf16 %v1618_v46, %v1617_v34  ;;  %v1636_v52 = vpack.c.bf16 %v1620_v42, %v1619_v50 }
 0x51a   : > { %14732 = vst [vmem:[#allocation47_spill] sm:$0xff] %v10804_v44  ;;  %3678 = vmatpush.bf16.msrb.mxu3 %v8305_v29  ;;  %v8017_v15 = vor.u32 %v8687_v54, %v8014_v55  ;;  %v8751_v32 = vld [vmem:[%s10016_s12 + $0x704] sm:$0xf] }
 0x51b   : > { %14733 = vst [vmem:[#allocation48_spill] sm:$0xff] %v10808_v11  ;;  %3629 = vmatpush.bf16.msrb.mxu2 %v8049_v28  ;;  %v8273_v59 = vor.u32 %v8751_v32, %v8270_v16  ;;  %v8679_v1 = vld [vmem:[%s10016_s12 + $0x4c4] sm:$0xf]  ;;  %v1761_v6 = vunpack.c.l.b16 %v1635_v30  ;;  %v1763_v19 = vunpack.c.l.b16 %v1636_v52  ;;  %v1762_v29 = vunpack.c.h.b16 %v1635_v30 }
 0x51c   : > { %14734 = vst [vmem:[#allocation49_spill] sm:$0xff] %v10810_v18  ;;  %v7982_v57 = vld [vmem:[%s10016_s12 + $0x4e0] sm:$0xf0]  ;;  %v1764_v34 = vunpack.c.h.b16 %v1636_v52 }
 0x51d   : > { %v7985_v4 = vor.u32 %v8679_v1, %v7982_v57  ;;  %v8743_v21 = vld [vmem:[%s10016_s12 + $0x6c4] sm:$0xf] }
 0x51e   : > { %3679 = vmatpush.bf16.msrb.mxu3 %v8273_v59  ;;  %v8238_v5 = vld [vmem:[%s10016_s12 + $0x6e0] sm:$0xf0]  ;;  %v10834_v59 = vpack.c.b16 %v1763_v19, %v1761_v6 }
 0x51f   : > { %3630 = vmatpush.bf16.msrb.mxu2 %v8017_v15  ;;  %v8241_v39 = vor.u32 %v8743_v21, %v8238_v5  ;;  %v8567_v28 = vld [vmem:[%s10016_s12 + $0x144] sm:$0xf] }
 0x520   : > { %3459 = vmatmul.bf16.gmra.mxu2 %v10788_v51  ;;  %3508 = vmatmul.bf16.gmra.mxu3 %v10790_v35  ;;  %v7534_v12 = vld [vmem:[%s10016_s12 + $0x160] sm:$0xf0]  ;;  %14735 = vst [vmem:[#allocation50_spill] sm:$0xff] %v10834_v59 }
 0x521   : > { %v8631_v22 = vld [vmem:[%s10016_s12 + $0x344] sm:$0xf]  ;;  %v7537_v46 = vor.u32 %v8567_v28, %v7534_v12 }
 0x522   : > { %v7790_v50 = vld [vmem:[%s10016_s12 + $0x360] sm:$0xf0]  ;;  %3680 = vmatpush.bf16.msrb.mxu3 %v8241_v39 }
 0x523   : > { %3631 = vmatpush.bf16.msrb.mxu2 %v7985_v4  ;;  %v8671_v54 = vld [vmem:[%s10016_s12 + $0x484] sm:$0xf]  ;;  %v7793_v42 = vor.u32 %v8631_v22, %v7790_v50  ;;  %3531 = vmatpush.bf16.msra.mxu0 %v7537_v46  ;;  %v10839_v4 = vpack.c.b16 %v1764_v34, %v1762_v29 }
 0x524   : > { %v7950_v55 = vld [vmem:[%s10016_s12 + $0x4a0] sm:$0xf0] }
 0x525   : > { %v7953_v15 = vor.u32 %v8671_v54, %v7950_v55  ;;  %v8735_v32 = vld [vmem:[%s10016_s12 + $0x684] sm:$0xf]  ;;  %3580 = vmatpush.bf16.msra.mxu1 %v7793_v42  ;;  %14736 = vst [vmem:[#allocation51_spill] sm:$0xff] %v10839_v4 }
 0x526   : > { %v8206_v16 = vld [vmem:[%s10016_s12 + $0x6a0] sm:$0xf0] }
 0x527   : > { %v8209_v30 = vor.u32 %v8735_v32, %v8206_v16  ;;  %v8559_v52 = vld [vmem:[%s10016_s12 + $0x104] sm:$0xf]  ;;  %3632 = vmatpush.bf16.msrb.mxu2 %v7953_v15 }
 0x528   : > { %v7502_v1 = vld [vmem:[%s10016_s12 + $0x120] sm:$0xf0] }
 0x529   : > { %v8623_v57 = vld [vmem:[%s10016_s12 + $0x304] sm:$0xf]  ;;  %v7505_v21 = vor.u32 %v8559_v52, %v7502_v1  ;;  %3681 = vmatpush.bf16.msrb.mxu3 %v8209_v30 }
 0x52a   : > { %v7758_v5 = vld [vmem:[%s10016_s12 + $0x320] sm:$0xf0] }
 0x52b   : > { %v8663_v39 = vld [vmem:[%s10016_s12 + $0x444] sm:$0xf]  ;;  %v7761_v6 = vor.u32 %v8623_v57, %v7758_v5  ;;  %3532 = vmatpush.bf16.msra.mxu0 %v7505_v21 }
 0x52c   : > { %v7918_v28 = vld [vmem:[%s10016_s12 + $0x460] sm:$0xf0] }
 0x52d   : > { %v7921_v19 = vor.u32 %v8663_v39, %v7918_v28  ;;  %v8727_v12 = vld [vmem:[%s10016_s12 + $0x644] sm:$0xf]  ;;  %3581 = vmatpush.bf16.msra.mxu1 %v7761_v6 }
 0x52e   : > { %v8174_v22 = vld [vmem:[%s10016_s12 + $0x660] sm:$0xf0] }
 0x52f   : > { %v8177_v29 = vor.u32 %v8727_v12, %v8174_v22  ;;  %v8551_v34 = vld [vmem:[%s10016_s12 + $0xc4] sm:$0xf]  ;;  %3633 = vmatpush.bf16.msrb.mxu2 %v7921_v19 }
 0x530   : > { %3464 = vmatmul.bf16.gmra.mxu2 %v10802_v31  ;;  %3513 = vmatmul.bf16.gmra.mxu3 %v10804_v44  ;;  %v7470_v46 = vld [vmem:[%s10016_s12 + $0xe0] sm:$0xf0] }
 0x531   : > { %v8615_v50 = vld [vmem:[%s10016_s12 + $0x2c4] sm:$0xf]  ;;  %v7473_v54 = vor.u32 %v8551_v34, %v7470_v46  ;;  %3682 = vmatpush.bf16.msrb.mxu3 %v8177_v29 }
 0x532   : > { %v7726_v55 = vld [vmem:[%s10016_s12 + $0x2e0] sm:$0xf0] }
 0x533   : > { %v8655_v42 = vld [vmem:[%s10016_s12 + $0x404] sm:$0xf]  ;;  %v7729_v30 = vor.u32 %v8615_v50, %v7726_v55  ;;  %3533 = vmatpush.bf16.msra.mxu0 %v7473_v54 }
 0x534   : > { %v7886_v15 = vld [vmem:[%s10016_s12 + $0x420] sm:$0xf0] }
 0x535   : > { %v7889_v52 = vor.u32 %v8655_v42, %v7886_v15  ;;  %v8719_v1 = vld [vmem:[%s10016_s12 + $0x604] sm:$0xf]  ;;  %3582 = vmatpush.bf16.msra.mxu1 %v7729_v30 }
 0x536   : > { %v8142_v57 = vld [vmem:[%s10016_s12 + $0x620] sm:$0xf0] }
 0x537   : > { %v8145_v21 = vor.u32 %v8719_v1, %v8142_v57  ;;  %v8543_v5 = vld [vmem:[%s10016_s12 + $0x84] sm:$0xf]  ;;  %3634 = vmatpush.bf16.msrb.mxu2 %v7889_v52 }
 0x538   : > { %v7438_v39 = vld [vmem:[%s10016_s12 + $0xa0] sm:$0xf0] }
 0x539   : > { %v8607_v28 = vld [vmem:[%s10016_s12 + $0x284] sm:$0xf]  ;;  %v7441_v19 = vor.u32 %v8543_v5, %v7438_v39  ;;  %3683 = vmatpush.bf16.msrb.mxu3 %v8145_v21 }
 0x53a   : > { %v7694_v12 = vld [vmem:[%s10016_s12 + $0x2a0] sm:$0xf0] }
 0x53b   : > { %v7697_v29 = vor.u32 %v8607_v28, %v7694_v12  ;;  %3534 = vmatpush.bf16.msra.mxu0 %v7441_v19  ;;  %v8535_v34 = vld [vmem:[%s10016_s12 + $0x44] sm:$0xf] }
 0x53c   : > { %v7406_v46 = vld [vmem:[%s10016_s12 + $0x60] sm:$0xf0] }
 0x53d   : > { %3583 = vmatpush.bf16.msra.mxu1 %v7697_v29  ;;  %v8599_v50 = vld [vmem:[%s10016_s12 + $0x244] sm:$0xf]  ;;  %v7409_v54 = vor.u32 %v8535_v34, %v7406_v46 }
 0x53e   : > { %v7662_v55 = vld [vmem:[%s10016_s12 + $0x260] sm:$0xf0] }
 0x53f   : > { %3535 = vmatpush.bf16.msra.mxu0 %v7409_v54  ;;  %v8527_v52 = vld [vmem:[%s10016_s12 + $0x4] sm:$0xf] }
 0x540   : > { %3469 = vmatmul.bf16.gmra.mxu2 %v10808_v11  ;;  %3518 = vmatmul.bf16.gmra.mxu3 %v10810_v18  ;;  %v7374_v1 = vld [vmem:[%s10016_s12 + $0x20] sm:$0xf0] }
 0x541   : > { %v8591_v57 = vld [vmem:[%s10016_s12 + $0x204] sm:$0xf]  ;;  %v7377_v21 = vor.u32 %v8527_v52, %v7374_v1 }
 0x542   : > { %v7630_v5 = vld [vmem:[%s10016_s12 + $0x220] sm:$0xf0] }
 0x543   : > { %v7633_v39 = vor.u32 %v8591_v57, %v7630_v5  ;;  %3536 = vmatpush.bf16.msra.mxu0 %v7377_v21 }
 0x550   : > { %3474 = vmatmul.bf16.gmra.mxu2 %v10834_v59  ;;  %3523 = vmatmul.bf16.gmra.mxu3 %v10839_v4 }
 0x553   : > { %v1487_v32 = vpop.f32.mrf.mxu2  ;;  %v1536_v16 = vpop.f32.mrf.mxu3 }
 0x554   : > { %v1488_v6 = vadd.f32 %v1487_v32, %v10619_v17  ;;  %v1537_v22 = vadd.f32 %v1536_v16, %v10621_v13  ;;  %v7665_v32 = vor.u32 %v8599_v50, %v7662_v55 }
 0x556   : > { %8994 = vtanh.f32 %v1488_v6  ;;  %3584 = vmatpush.bf16.msra.mxu1 %v7665_v32  ;;  %v3359_v32 = vpop.f32.mrf.mxu0 }
 0x557   : > { %8996 = vtanh.f32 %v1537_v22 }
 0x55a   : > { %3585 = vmatpush.bf16.msra.mxu1 %v7633_v39 }
 0x55b   : > { %v1489_v42 = vpop.f32.mrf.mxu2  ;;  %v1538_v15 = vpop.f32.mrf.mxu3 }
 0x55c   : > { %v1490_v30 = vadd.f32 %v1489_v42, %v10619_v17  ;;  %v1539_v16 = vadd.f32 %v1538_v15, %v10621_v13  ;;  %v8995_v28 = vpop.eup %8994  ;;  %v3394_v15 = vadd.f32 %v10720_v23, %v10718_v14 }
 0x55d   : > { %v8997_v6 = vpop.eup %8996 }
 0x55e   : > { %8998 = vtanh.f32 %v1490_v30  ;;  %v1587_v12 = vpack.c.bf16 %v8997_v6, %v8995_v28  ;;  %v3408_v30 = vpop.f32.mrf.mxu1 }
 0x55f   : > { %9000 = vtanh.f32 %v1539_v16 }
 0x560   : > { %3635 = vmatmul.bf16.vlgmr.msrb.gmra.mxu2 %v10706_v47  ;;  %3684 = vmatmul.bf16.vlgmr.msrb.gmra.mxu3 %v10708_v58  ;;  %v1681_v50 = vunpack.c.l.b16 %v1587_v12  ;;  %v1682_v54 = vunpack.c.h.b16 %v1587_v12 }
 0x563   : > { %v3440_v17 = vpop.f32.mrf.mxu2  ;;  %v3489_v13 = vpop.f32.mrf.mxu3 }
 0x564   : > { %v8999_v19 = vpop.eup %8998  ;;  %v3441_v22 = vadd.f32 %v3440_v17, %v10714_v7 }
 0x565   : > { %v9001_v29 = vpop.eup %9000 }
 0x566   : > { %v1588_v34 = vpack.c.bf16 %v9001_v29, %v8999_v19  ;;  %v10875_v46 = vadd.f32 %v3489_v13, %v3441_v22  ;;  %v3399_v13 = vadd.f32 %v10742_v9, %v10740_v2 }
 0x568   : > { %v1683_v55 = vunpack.c.l.b16 %v1588_v34  ;;  %v1684_v42 = vunpack.c.h.b16 %v1588_v34 }
 0x56a   : > { %v10879_v16 = vpack.c.b16 %v1683_v55, %v1681_v50  ;;  %v10881_v52 = vpack.c.b16 %v1684_v42, %v1682_v54 }
 0x56b   : > { %v3442_v1 = vpop.f32.mrf.mxu2  ;;  %v3491_v57 = vpop.f32.mrf.mxu3 }
 0x56c   : > { %14737 = vst [vmem:[#allocation52_spill] sm:$0xff] %v10879_v16  ;;  %3376 = vmatmul.bf16.gmra.mxu0 %v10879_v16  ;;  %3425 = vmatmul.bf16.gmra.mxu1 %v10881_v52  ;;  %v3443_v7 = vadd.f32 %v3442_v1, %v3394_v15  ;;  %v3404_v1 = vadd.f32 %v10764_v61, %v10762_v3 }
 0x56d   : > { %14738 = vst [vmem:[#allocation53_spill] sm:$0xff] %v10881_v52 }
 0x56e   : > { %v10885_v21 = vadd.f32 %v3491_v57, %v3443_v7 }
 0x570   : > { %3640 = vmatmul.bf16.gmra.mxu2 %v10722_v48  ;;  %3689 = vmatmul.bf16.gmra.mxu3 %v10724_v56 }
 0x573   : > { %v3362_v14 = vpop.f32.mrf.mxu0  ;;  %v3411_v23 = vpop.f32.mrf.mxu1 }
 0x574   : > { %v3412_v5 = vadd.f32 %v3411_v23, %v3362_v14  ;;  %v3445_v39 = vpop.f32.mrf.mxu2  ;;  %v3494_v28 = vpop.f32.mrf.mxu3 }
 0x575   : > { %v3446_v6 = vadd.f32 %v3445_v39, %v10734_v24 }
 0x577   : > { %v10890_v17 = vadd.f32 %v3494_v28, %v3446_v6 }
 0x57b   : > { %v3364_v19 = vpop.f32.mrf.mxu0  ;;  %v3413_v12 = vpop.f32.mrf.mxu1 }
 0x57c   : > { %v3447_v22 = vpop.f32.mrf.mxu2  ;;  %3537 = vmatmul.bf16.vlgmr.msra.gmra.mxu0 %v10634_v41  ;;  %3586 = vmatmul.bf16.vlgmr.msra.gmra.mxu1 %v10636_v45  ;;  %v3496_v29 = vpop.f32.mrf.mxu3 }
 0x57d   : > { %v3448_v34 = vadd.f32 %v3447_v22, %v3399_v13 }
 0x57f   : > { %v10896_v50 = vadd.f32 %v3496_v29, %v3448_v34  ;;  %v3409_v34 = vadd.f32 %v3408_v30, %v3359_v32 }
 0x580   : > { %3645 = vmatmul.bf16.gmra.mxu2 %v10744_v62  ;;  %3694 = vmatmul.bf16.gmra.mxu3 %v10746_v0 }
 0x583   : > { %v3367_v24 = vpop.f32.mrf.mxu0  ;;  %v3416_v54 = vpop.f32.mrf.mxu1 }
 0x584   : > { %v10900_v55 = vadd.f32 %v3416_v54, %v3367_v24  ;;  %v3450_v2 = vpop.f32.mrf.mxu2  ;;  %v3499_v9 = vpop.f32.mrf.mxu3 }
 0x585   : > { %v3451_v42 = vadd.f32 %v3450_v2, %v10756_v10 }
 0x587   : > { %v10903_v15 = vadd.f32 %v3499_v9, %v3451_v42 }
 0x58b   : > { %v3369_v57 = vpop.f32.mrf.mxu0  ;;  %v3418_v7 = vpop.f32.mrf.mxu1 }
 0x58c   : > { %v3452_v14 = vpop.f32.mrf.mxu2  ;;  %3542 = vmatmul.bf16.gmra.mxu0 %v10647_v25  ;;  %3591 = vmatmul.bf16.gmra.mxu1 %v10649_v53  ;;  %v3501_v23 = vpop.f32.mrf.mxu3 }
 0x58d   : > { %v3453_v39 = vadd.f32 %v3452_v14, %v3404_v1  ;;  %v3414_v1 = vadd.f32 %v3413_v12, %v3364_v19  ;;  %v7860_v19 = vld [vmem:[%s10016_s12 + $0x3c8] sm:$0xf] }
 0x58e   : > { %v8652_v12 = vld [vmem:[%s10016_s12 + $0x3e4] sm:$0xf0] }
 0x58f   : > { %v10909_v28 = vadd.f32 %v3501_v23, %v3453_v39 }
 0x590   : > { %3650 = vmatmul.bf16.gmra.mxu2 %v10766_v63  ;;  %3699 = vmatmul.bf16.gmra.mxu3 %v10768_v27 }
 0x593   : > { %v3372_v10 = vpop.f32.mrf.mxu0  ;;  %v3421_v6 = vpop.f32.mrf.mxu1 }
 0x594   : > { %v10913_v13 = vadd.f32 %v3421_v6, %v3372_v10  ;;  %v3455_v3 = vpop.f32.mrf.mxu2  ;;  %v3504_v61 = vpop.f32.mrf.mxu3  ;;  %v8116_v10 = vld [vmem:[%s10016_s12 + $0x5c8] sm:$0xf] }
 0x595   : > { %v3456_v22 = vadd.f32 %v3455_v3, %v10784_v26  ;;  %v8716_v6 = vld [vmem:[%s10016_s12 + $0x5e4] sm:$0xf0] }
 0x596   : > { %v8117_v3 = vor.u32 %v8716_v6, %v8116_v10  ;;  %v3419_v6 = vadd.f32 %v3418_v7, %v3369_v57  ;;  %v7828_v7 = vld [vmem:[%s10016_s12 + $0x388] sm:$0xf] }
 0x597   : > { %v10916_v29 = vadd.f32 %v3504_v61, %v3456_v22  ;;  %v8372_v61 = vld [vmem:[%s10016_s12 + $0x7c8] sm:$0xf] }
 0x598   : > { %v8780_v22 = vld [vmem:[%s10016_s12 + $0x7e4] sm:$0xf0]  ;;  %3823 = vmatpush.bf16.msra.mxu2 %v8117_v3 }
 0x599   : > { %v8340_v3 = vld [vmem:[%s10016_s12 + $0x788] sm:$0xf] }
 0x59c   : > { %v3457_v24 = vpop.f32.mrf.mxu2  ;;  %3547 = vmatmul.bf16.gmra.mxu0 %v10662_v36  ;;  %3596 = vmatmul.bf16.gmra.mxu1 %v10664_v33  ;;  %v3506_v54 = vpop.f32.mrf.mxu3 }
 0x59d   : > { %v3458_v2 = vadd.f32 %v3457_v24, %v3409_v34  ;;  %v7604_v34 = vld [vmem:[%s10016_s12 + $0x1c8] sm:$0xf]  ;;  %v8373_v24 = vor.u32 %v8780_v22, %v8372_v61 }
 0x59e   : > { %v8772_v61 = vld [vmem:[%s10016_s12 + $0x7a4] sm:$0xf0] }
 0x59f   : > { %v10920_v9 = vadd.f32 %v3506_v54, %v3458_v2  ;;  %v8588_v54 = vld [vmem:[%s10016_s12 + $0x1e4] sm:$0xf0]  ;;  %3872 = vmatpush.bf16.msra.mxu3 %v8373_v24 }
 0x5a0   : > { %3655 = vmatmul.bf16.gmra.mxu2 %v10788_v51  ;;  %3704 = vmatmul.bf16.gmra.mxu3 %v10790_v35  ;;  %v7605_v2 = vor.u32 %v8588_v54, %v7604_v34  ;;  %v8341_v34 = vor.u32 %v8772_v61, %v8340_v3  ;;  %v7572_v54 = vld [vmem:[%s10016_s12 + $0x188] sm:$0xf] }
 0x5a1   : > { %14739 = vst [vmem:[#allocation54_spill] sm:$0xff] %v10920_v9  ;;  %v8692_v3 = vld [vmem:[%s10016_s12 + $0x524] sm:$0xf0]  ;;  %v7702_v9 = vld [vmem:[%s10016_s12 + $0x2a8] sm:$0xf0] }
 0x5a2   : > { %3725 = vmatpush.bf16.msrb.mxu0 %v7605_v2  ;;  %v8052_v2 = vld [vmem:[%s10016_s12 + $0x548] sm:$0xf] }
 0x5a3   : > { %3873 = vmatpush.bf16.msra.mxu3 %v8341_v34 }
 0x5a4   : > { %v3460_v26 = vpop.f32.mrf.mxu2  ;;  %v3509_v32 = vpop.f32.mrf.mxu3 }
 0x5a5   : > { %v3461_v30 = vadd.f32 %v3460_v26, %v3412_v5  ;;  %v7861_v26 = vor.u32 %v8652_v12, %v7860_v19  ;;  %v8580_v19 = vld [vmem:[%s10016_s12 + $0x1a4] sm:$0xf0] }
 0x5a6   : > { %v7573_v57 = vor.u32 %v8580_v19, %v7572_v54  ;;  %v8644_v12 = vld [vmem:[%s10016_s12 + $0x3a4] sm:$0xf0] }
 0x5a7   : > { %v10924_v42 = vadd.f32 %v3509_v32, %v3461_v30  ;;  %3774 = vmatpush.bf16.msrb.mxu1 %v7861_v26 }
 0x5a8   : > { %3726 = vmatpush.bf16.msrb.mxu0 %v7573_v57  ;;  %v7540_v57 = vld [vmem:[%s10016_s12 + $0x148] sm:$0xf] }
 0x5a9   : > { %14740 = vst [vmem:[#allocation55_spill] sm:$0xff] %v10924_v42  ;;  %v7830_v42 = vld [vmem:[%s10016_s12 + $0x3a8] sm:$0xf0] }
 0x5ac   : > { %v3462_v14 = vpop.f32.mrf.mxu2  ;;  %3552 = vmatmul.bf16.gmra.mxu0 %v10670_v37  ;;  %3601 = vmatmul.bf16.gmra.mxu1 %v10672_v49  ;;  %v3511_v23 = vpop.f32.mrf.mxu3 }
 0x5ad   : > { %v3463_v39 = vadd.f32 %v3462_v14, %v3414_v1 }
 0x5af   : > { %v10933_v5 = vadd.f32 %v3511_v23, %v3463_v39  ;;  %v8084_v23 = vld [vmem:[%s10016_s12 + $0x588] sm:$0xf] }
 0x5b0   : > { %3660 = vmatmul.bf16.gmra.mxu2 %v10802_v31  ;;  %3709 = vmatmul.bf16.gmra.mxu3 %v10804_v44  ;;  %v8708_v39 = vld [vmem:[%s10016_s12 + $0x5a4] sm:$0xf0] }
 0x5b1   : > { %14741 = vst [vmem:[#allocation56_spill] sm:$0xff] %v10933_v5  ;;  %v8085_v10 = vor.u32 %v8708_v39, %v8084_v23  ;;  %v8764_v23 = vld [vmem:[%s10016_s12 + $0x764] sm:$0xf0]  ;;  %v8640_v5 = vld [vmem:[%s10016_s12 + $0x38c] sm:$0xf] }
 0x5b3   : > { %3824 = vmatpush.bf16.msra.mxu2 %v8085_v10 }
 0x5b4   : > { %v3465_v32 = vpop.f32.mrf.mxu2  ;;  %v3514_v30 = vpop.f32.mrf.mxu3 }
 0x5b5   : > { %v3466_v1 = vadd.f32 %v3465_v32, %v10900_v55  ;;  %v7829_v32 = vor.u32 %v8644_v12, %v7828_v7  ;;  %v8572_v7 = vld [vmem:[%s10016_s12 + $0x164] sm:$0xf0] }
 0x5b6   : > { %v7541_v12 = vor.u32 %v8572_v7, %v7540_v57  ;;  %v8564_v57 = vld [vmem:[%s10016_s12 + $0x124] sm:$0xf0] }
 0x5b7   : > { %v10941_v14 = vadd.f32 %v3514_v30, %v3466_v1  ;;  %v8700_v30 = vld [vmem:[%s10016_s12 + $0x564] sm:$0xf0]  ;;  %3775 = vmatpush.bf16.msrb.mxu1 %v7829_v32 }
 0x5b8   : > { %v8308_v1 = vld [vmem:[%s10016_s12 + $0x748] sm:$0xf]  ;;  %v8053_v39 = vor.u32 %v8700_v30, %v8052_v2  ;;  %3727 = vmatpush.bf16.msrb.mxu0 %v7541_v12 }
 0x5b9   : > { %14742 = vst [vmem:[#allocation57_spill] sm:$0xff] %v10941_v14  ;;  %v8309_v10 = vor.u32 %v8764_v23, %v8308_v1  ;;  %v7796_v2 = vld [vmem:[%s10016_s12 + $0x348] sm:$0xf] }
 0x5ba   : > { %3825 = vmatpush.bf16.msra.mxu2 %v8053_v39  ;;  %v8636_v32 = vld [vmem:[%s10016_s12 + $0x364] sm:$0xf0] }
 0x5bb   : > { %3874 = vmatpush.bf16.msra.mxu3 %v8309_v10  ;;  %v7988_v30 = vld [vmem:[%s10016_s12 + $0x4c8] sm:$0xf]  ;;  %v7797_v23 = vor.u32 %v8636_v32, %v7796_v2 }
 0x5bc   : > { %v3467_v22 = vpop.f32.mrf.mxu2  ;;  %3557 = vmatmul.bf16.gmra.mxu0 %v10730_v43  ;;  %3606 = vmatmul.bf16.gmra.mxu1 %v10732_v40  ;;  %v3516_v55 = vpop.f32.mrf.mxu3  ;;  %v8684_v39 = vld [vmem:[%s10016_s12 + $0x4e4] sm:$0xf0] }
 0x5bd   : > { %v3468_v24 = vadd.f32 %v3467_v22, %v3419_v6  ;;  %v8020_v6 = vld [vmem:[%s10016_s12 + $0x508] sm:$0xf]  ;;  %3776 = vmatpush.bf16.msrb.mxu1 %v7797_v23 }
 0x5be   : > { %v8021_v61 = vor.u32 %v8692_v3, %v8020_v6  ;;  %v8276_v22 = vld [vmem:[%s10016_s12 + $0x708] sm:$0xf]  ;;  %v3423_v3 = vpop.f32.mrf.mxu1 }
 0x5bf   : > { %v10954_v26 = vadd.f32 %v3516_v55, %v3468_v24  ;;  %v8756_v55 = vld [vmem:[%s10016_s12 + $0x724] sm:$0xf0] }
 0x5c0   : > { %3665 = vmatmul.bf16.gmra.mxu2 %v10808_v11  ;;  %3714 = vmatmul.bf16.gmra.mxu3 %v10810_v18  ;;  %v8277_v54 = vor.u32 %v8756_v55, %v8276_v22  ;;  %v8244_v10 = vld [vmem:[%s10016_s12 + $0x6c8] sm:$0xf]  ;;  %v7989_v22 = vor.u32 %v8684_v39, %v7988_v30 }
 0x5c1   : > { %14743 = vst [vmem:[#allocation58_spill] sm:$0xff] %v10954_v26  ;;  %3826 = vmatpush.bf16.msra.mxu2 %v8021_v61  ;;  %v8748_v6 = vld [vmem:[%s10016_s12 + $0x6e4] sm:$0xf0] }
 0x5c2   : > { %3875 = vmatpush.bf16.msra.mxu3 %v8277_v54  ;;  %v8245_v55 = vor.u32 %v8748_v6, %v8244_v10  ;;  %v7956_v61 = vld [vmem:[%s10016_s12 + $0x488] sm:$0xf] }
 0x5c3   : > { %v7508_v54 = vld [vmem:[%s10016_s12 + $0x108] sm:$0xf] }
 0x5c4   : > { %v3470_v34 = vpop.f32.mrf.mxu2  ;;  %v3519_v24 = vpop.f32.mrf.mxu3  ;;  %v7509_v7 = vor.u32 %v8564_v57, %v7508_v54  ;;  %v7764_v2 = vld [vmem:[%s10016_s12 + $0x308] sm:$0xf] }
 0x5c5   : > { %v3471_v19 = vadd.f32 %v3470_v34, %v10913_v13  ;;  %v3374_v13 = vpop.f32.mrf.mxu0  ;;  %v8676_v34 = vld [vmem:[%s10016_s12 + $0x4a4] sm:$0xf0]  ;;  %3827 = vmatpush.bf16.msra.mxu2 %v7989_v22 }
 0x5c6   : > { %3876 = vmatpush.bf16.msra.mxu3 %v8245_v55  ;;  %v8628_v32 = vld [vmem:[%s10016_s12 + $0x324] sm:$0xf0]  ;;  %3728 = vmatpush.bf16.msrb.mxu0 %v7509_v7 }
 0x5c7   : > { %v10971_v1 = vadd.f32 %v3519_v24, %v3471_v19  ;;  %v7957_v24 = vor.u32 %v8676_v34, %v7956_v61  ;;  %v3424_v19 = vadd.f32 %v3423_v3, %v3374_v13  ;;  %v7765_v30 = vor.u32 %v8628_v32, %v7764_v2  ;;  %v8740_v23 = vld [vmem:[%s10016_s12 + $0x6a4] sm:$0xf0] }
 0x5c8   : > { %v7924_v6 = vld [vmem:[%s10016_s12 + $0x448] sm:$0xf] }
 0x5c9   : > { %14744 = vst [vmem:[#allocation59_spill] sm:$0xff] %v10971_v1  ;;  %v8212_v1 = vld [vmem:[%s10016_s12 + $0x688] sm:$0xf]  ;;  %3777 = vmatpush.bf16.msrb.mxu1 %v7765_v30  ;;  %3828 = vmatpush.bf16.msra.mxu2 %v7957_v24 }
 0x5ca   : > { %v8213_v10 = vor.u32 %v8740_v23, %v8212_v1  ;;  %v8668_v13 = vld [vmem:[%s10016_s12 + $0x464] sm:$0xf0] }
 0x5cb   : > { %v7925_v3 = vor.u32 %v8668_v13, %v7924_v6  ;;  %v8180_v55 = vld [vmem:[%s10016_s12 + $0x648] sm:$0xf] }
 0x5cc   : > { %v3472_v26 = vpop.f32.mrf.mxu2  ;;  %3562 = vmatmul.bf16.gmra.mxu0 %v10752_v60  ;;  %3611 = vmatmul.bf16.gmra.mxu1 %v10754_v8  ;;  %v3521_v12 = vpop.f32.mrf.mxu3  ;;  %v8732_v61 = vld [vmem:[%s10016_s12 + $0x664] sm:$0xf0] }
 0x5cd   : > { %v3473_v39 = vadd.f32 %v3472_v26, %v3424_v19  ;;  %3877 = vmatpush.bf16.msra.mxu3 %v8213_v10  ;;  %v8181_v34 = vor.u32 %v8732_v61, %v8180_v55  ;;  %v7476_v26 = vld [vmem:[%s10016_s12 + $0xc8] sm:$0xf]  ;;  %3829 = vmatpush.bf16.msra.mxu2 %v7925_v3 }
 0x5ce   : > { %v8556_v1 = vld [vmem:[%s10016_s12 + $0xe4] sm:$0xf0] }
 0x5cf   : > { %v10988_v22 = vadd.f32 %v3521_v12, %v3473_v39  ;;  %v7477_v54 = vor.u32 %v8556_v1, %v7476_v26  ;;  %v7732_v57 = vld [vmem:[%s10016_s12 + $0x2c8] sm:$0xf] }
 0x5d0   : > { %3670 = vmatmul.bf16.gmra.mxu2 %v10834_v59  ;;  %v8620_v24 = vld [vmem:[%s10016_s12 + $0x2e4] sm:$0xf0]  ;;  %3719 = vmatmul.bf16.gmra.mxu3 %v10839_v4 }
 0x5d1   : > { %14745 = vst [vmem:[#allocation60_spill] sm:$0xff] %v10988_v22  ;;  %v7733_v19 = vor.u32 %v8620_v24, %v7732_v57  ;;  %v7892_v7 = vld [vmem:[%s10016_s12 + $0x408] sm:$0xf]  ;;  %3729 = vmatpush.bf16.msrb.mxu0 %v7477_v54  ;;  %3878 = vmatpush.bf16.msra.mxu3 %v8181_v34 }
 0x5d2   : > { %v8660_v2 = vld [vmem:[%s10016_s12 + $0x424] sm:$0xf0] }
 0x5d3   : > { %v8148_v32 = vld [vmem:[%s10016_s12 + $0x608] sm:$0xf]  ;;  %v7893_v23 = vor.u32 %v8660_v2, %v7892_v7  ;;  %3778 = vmatpush.bf16.msrb.mxu1 %v7733_v19 }
 0x5d4   : > { %v3475_v12 = vpop.f32.mrf.mxu2  ;;  %v3524_v30 = vpop.f32.mrf.mxu3  ;;  %v8724_v39 = vld [vmem:[%s10016_s12 + $0x624] sm:$0xf0] }
 0x5d5   : > { %v7444_v10 = vld [vmem:[%s10016_s12 + $0x88] sm:$0xf]  ;;  %v8149_v13 = vor.u32 %v8724_v39, %v8148_v32  ;;  %3830 = vmatpush.bf16.msra.mxu2 %v7893_v23 }
 0x5d6   : > { %v8548_v6 = vld [vmem:[%s10016_s12 + $0xa4] sm:$0xf0] }
 0x5d7   : > { %v7445_v3 = vor.u32 %v8548_v6, %v7444_v10  ;;  %v7700_v55 = vld [vmem:[%s10016_s12 + $0x288] sm:$0xf]  ;;  %3879 = vmatpush.bf16.msra.mxu3 %v8149_v13 }
 0x5d8   : > { %v8612_v61 = vld [vmem:[%s10016_s12 + $0x2a4] sm:$0xf0] }
 0x5d9   : > { %v7701_v26 = vor.u32 %v8612_v61, %v7700_v55  ;;  %3730 = vmatpush.bf16.msrb.mxu0 %v7445_v3  ;;  %v7412_v34 = vld [vmem:[%s10016_s12 + $0x48] sm:$0xf] }
 0x5da   : > { %v8540_v1 = vld [vmem:[%s10016_s12 + $0x64] sm:$0xf0] }
 0x5db   : > { %3779 = vmatpush.bf16.msrb.mxu1 %v7701_v26  ;;  %v7668_v54 = vld [vmem:[%s10016_s12 + $0x248] sm:$0xf]  ;;  %v7413_v57 = vor.u32 %v8540_v1, %v7412_v34 }
 0x5dc   : > { %v8604_v24 = vld [vmem:[%s10016_s12 + $0x264] sm:$0xf0]  ;;  %3567 = vmatmul.bf16.gmra.mxu0 %v10780_v20  ;;  %3616 = vmatmul.bf16.gmra.mxu1 %v10782_v38  ;;  %v3477_v7 = vpop.f32.mrf.mxu2  ;;  %v3526_v2 = vpop.f32.mrf.mxu3 }
 0x5dd   : > { %v7669_v19 = vor.u32 %v8604_v24, %v7668_v54  ;;  %3731 = vmatpush.bf16.msrb.mxu0 %v7413_v57  ;;  %v7380_v32 = vld [vmem:[%s10016_s12 + $0x8] sm:$0xf] }
 0x5de   : > { %v8532_v23 = vld [vmem:[%s10016_s12 + $0x24] sm:$0xf0] }
 0x5df   : > { %3780 = vmatpush.bf16.msrb.mxu1 %v7669_v19  ;;  %v7381_v39 = vor.u32 %v8532_v23, %v7380_v32  ;;  %v7636_v10 = vld [vmem:[%s10016_s12 + $0x208] sm:$0xf] }
 0x5e0   : > { %v8596_v6 = vld [vmem:[%s10016_s12 + $0x224] sm:$0xf0]  ;;  %3831 = vmatmul.bf16.vlgmr.msra.gmra.mxu2 %v10706_v47  ;;  %3880 = vmatmul.bf16.vlgmr.msra.gmra.mxu3 %v10708_v58 }
 0x5e1   : > { %v7637_v13 = vor.u32 %v8596_v6, %v7636_v10  ;;  %3732 = vmatpush.bf16.msrb.mxu0 %v7381_v39 }
 0x5e3   : > { %3781 = vmatpush.bf16.msrb.mxu1 %v7637_v13 }
 0x5e4   : > { %v3636_v3 = vpop.f32.mrf.mxu2  ;;  %v3685_v55 = vpop.f32.mrf.mxu3 }
 0x5e9   : > { %v3377_v61 = vpop.f32.mrf.mxu0  ;;  %v3426_v26 = vpop.f32.mrf.mxu1 }
 0x5ea   : > { %v3427_v34 = vadd.f32 %v3426_v26, %v3377_v61 }
 0x5ec   : > { %v3476_v1 = vadd.f32 %v3475_v12, %v3427_v34  ;;  %3572 = vmatmul.bf16.gmra.mxu0 %v10879_v16  ;;  %3621 = vmatmul.bf16.gmra.mxu1 %v10881_v52  ;;  %v3638_v54 = vpop.f32.mrf.mxu2  ;;  %v3687_v57 = vpop.f32.mrf.mxu3 }
 0x5ee   : > { %v11020_v24 = vadd.f32 %v3524_v30, %v3476_v1 }
 0x5f0   : > { %14746 = vst [vmem:[#allocation61_spill] sm:$0xff] %v11020_v24  ;;  %3836 = vmatmul.bf16.gmra.mxu2 %v10722_v48  ;;  %3885 = vmatmul.bf16.gmra.mxu3 %v10724_v56 }
 0x5f1   : > { %v3379_v19 = vpop.f32.mrf.mxu0  ;;  %v3428_v32 = vpop.f32.mrf.mxu1 }
 0x5f2   : > { %v3429_v23 = vadd.f32 %v3428_v32, %v3379_v19 }
 0x5f4   : > { %v3478_v39 = vadd.f32 %v3477_v7, %v3429_v23  ;;  %v3641_v10 = vpop.f32.mrf.mxu2  ;;  %v3690_v6 = vpop.f32.mrf.mxu3 }
 0x5f6   : > { %v11024_v13 = vadd.f32 %v3526_v2, %v3478_v39 }
 0x5f8   : > { %14747 = vst [vmem:[#allocation62_spill] sm:$0xff] %v11024_v13 }
 0x5f9   : > { %v3538_v12 = vpop.f32.mrf.mxu0  ;;  %v3587_v61 = vpop.f32.mrf.mxu1 }
 0x5fa   : > { %v3588_v26 = vadd.f32 %v3587_v61, %v3538_v12 }
 0x5fc   : > { %v3637_v34 = vadd.f32 %v3636_v3, %v3588_v26  ;;  %3733 = vmatmul.bf16.vlgmr.msrb.gmra.mxu0 %v10634_v41  ;;  %3782 = vmatmul.bf16.vlgmr.msrb.gmra.mxu1 %v10636_v45  ;;  %v3643_v30 = vpop.f32.mrf.mxu2  ;;  %v3692_v1 = vpop.f32.mrf.mxu3 }
 0x5fe   : > { %v11028_v24 = vadd.f32 %v3685_v55, %v3637_v34 }
 0x600   : > { %14748 = vst [vmem:[#allocation63_spill] sm:$0xff] %v11028_v24  ;;  %3841 = vmatmul.bf16.gmra.mxu2 %v10744_v62  ;;  %3890 = vmatmul.bf16.gmra.mxu3 %v10746_v0 }
 0x601   : > { %v3540_v19 = vpop.f32.mrf.mxu0  ;;  %v3589_v32 = vpop.f32.mrf.mxu1 }
 0x602   : > { %v3590_v7 = vadd.f32 %v3589_v32, %v3540_v19 }
 0x604   : > { %v3639_v2 = vadd.f32 %v3638_v54, %v3590_v7  ;;  %v3646_v23 = vpop.f32.mrf.mxu2  ;;  %v3695_v39 = vpop.f32.mrf.mxu3 }
 0x606   : > { %v11032_v12 = vadd.f32 %v3687_v57, %v3639_v2 }
 0x608   : > { %14749 = vst [vmem:[#allocation64_spill] sm:$0xff] %v11032_v12 }
 0x609   : > { %v3543_v3 = vpop.f32.mrf.mxu0  ;;  %v3592_v61 = vpop.f32.mrf.mxu1 }
 0x60a   : > { %v3593_v26 = vadd.f32 %v3592_v61, %v3543_v3 }
 0x60c   : > { %v3642_v13 = vadd.f32 %v3641_v10, %v3593_v26  ;;  %3738 = vmatmul.bf16.gmra.mxu0 %v10647_v25  ;;  %3787 = vmatmul.bf16.gmra.mxu1 %v10649_v53  ;;  %v3648_v55 = vpop.f32.mrf.mxu2  ;;  %v3697_v34 = vpop.f32.mrf.mxu3 }
 0x60e   : > { %v11036_v24 = vadd.f32 %v3690_v6, %v3642_v13 }
 0x610   : > { %14750 = vst [vmem:[#allocation65_spill] sm:$0xff] %v11036_v24  ;;  %3846 = vmatmul.bf16.gmra.mxu2 %v10766_v63  ;;  %3895 = vmatmul.bf16.gmra.mxu3 %v10768_v27 }
 0x611   : > { %v3545_v19 = vpop.f32.mrf.mxu0  ;;  %v3594_v32 = vpop.f32.mrf.mxu1 }
 0x612   : > { %v3595_v54 = vadd.f32 %v3594_v32, %v3545_v19 }
 0x614   : > { %v3644_v57 = vadd.f32 %v3643_v30, %v3595_v54  ;;  %v3651_v7 = vpop.f32.mrf.mxu2  ;;  %v3700_v2 = vpop.f32.mrf.mxu3 }
 0x616   : > { %v11040_v3 = vadd.f32 %v3692_v1, %v3644_v57 }
 0x618   : > { %14751 = vst [vmem:[#allocation66_spill] sm:$0xff] %v11040_v3 }
 0x619   : > { %v3548_v10 = vpop.f32.mrf.mxu0  ;;  %v3597_v61 = vpop.f32.mrf.mxu1 }
 0x61a   : > { %v3598_v26 = vadd.f32 %v3597_v61, %v3548_v10 }
 0x61c   : > { %v3647_v12 = vadd.f32 %v3646_v23, %v3598_v26  ;;  %3743 = vmatmul.bf16.gmra.mxu0 %v10662_v36  ;;  %3792 = vmatmul.bf16.gmra.mxu1 %v10664_v33  ;;  %v3653_v6 = vpop.f32.mrf.mxu2  ;;  %v3702_v13 = vpop.f32.mrf.mxu3  ;;  %v8712_v26 = vld [vmem:[%s10016_s12 + $0x5cc] sm:$0xf] }
 0x61e   : > { %v11044_v24 = vadd.f32 %v3695_v39, %v3647_v12 }
 0x620   : > { %14752 = vst [vmem:[#allocation67_spill] sm:$0xff] %v11044_v24  ;;  %3851 = vmatmul.bf16.gmra.mxu2 %v10788_v51  ;;  %3900 = vmatmul.bf16.gmra.mxu3 %v10790_v35  ;;  %v8118_v24 = vld [vmem:[%s10016_s12 + $0x5e8] sm:$0xf0] }
 0x621   : > { %v3550_v19 = vpop.f32.mrf.mxu0  ;;  %v3599_v30 = vpop.f32.mrf.mxu1 }
 0x622   : > { %v3600_v1 = vadd.f32 %v3599_v30, %v3550_v19 }
 0x624   : > { %v3649_v32 = vadd.f32 %v3648_v55, %v3600_v1  ;;  %v3656_v23 = vpop.f32.mrf.mxu2  ;;  %v3705_v54 = vpop.f32.mrf.mxu3  ;;  %v8121_v55 = vor.u32 %v8712_v26, %v8118_v24  ;;  %v8776_v1 = vld [vmem:[%s10016_s12 + $0x7cc] sm:$0xf] }
 0x625   : > { %v8584_v24 = vld [vmem:[%s10016_s12 + $0x1cc] sm:$0xf] }
 0x626   : > { %v11048_v57 = vadd.f32 %v3697_v34, %v3649_v32  ;;  %v8374_v34 = vld [vmem:[%s10016_s12 + $0x7e8] sm:$0xf0]  ;;  %4019 = vmatpush.bf16.msrb.mxu2 %v8121_v55 }
 0x627   : > { %v7606_v26 = vld [vmem:[%s10016_s12 + $0x1e8] sm:$0xf0] }
 0x628   : > { %14753 = vst [vmem:[#allocation68_spill] sm:$0xff] %v11048_v57  ;;  %v7862_v55 = vld [vmem:[%s10016_s12 + $0x3e8] sm:$0xf0] }
 0x629   : > { %v3553_v10 = vpop.f32.mrf.mxu0  ;;  %v3602_v61 = vpop.f32.mrf.mxu1 }
 0x62a   : > { %v3603_v39 = vadd.f32 %v3602_v61, %v3553_v10  ;;  %v8377_v10 = vor.u32 %v8776_v1, %v8374_v34 }
 0x62c   : > { %v3652_v12 = vadd.f32 %v3651_v7, %v3603_v39  ;;  %3748 = vmatmul.bf16.gmra.mxu0 %v10670_v37  ;;  %3797 = vmatmul.bf16.gmra.mxu1 %v10672_v49  ;;  %v3658_v19 = vpop.f32.mrf.mxu2  ;;  %v11054_v30 = vpop.f32.mrf.mxu3 }
 0x62d   : > { %4068 = vmatpush.bf16.msrb.mxu3 %v8377_v10 }
 0x62e   : > { %v11058_v32 = vadd.f32 %v3700_v2, %v3652_v12  ;;  %v7609_v2 = vor.u32 %v8584_v24, %v7606_v26  ;;  %v8648_v12 = vld [vmem:[%s10016_s12 + $0x3cc] sm:$0xf] }
 0x62f   : > { %v7865_v34 = vor.u32 %v8648_v12, %v7862_v55  ;;  %v8768_v24 = vld [vmem:[%s10016_s12 + $0x78c] sm:$0xf] }
 0x630   : > { %14754 = vst [vmem:[#allocation69_spill] sm:$0xff] %v11058_v32  ;;  %3856 = vmatmul.bf16.gmra.mxu2 %v10802_v31  ;;  %3905 = vmatmul.bf16.gmra.mxu3 %v10804_v44  ;;  %v8342_v26 = vld [vmem:[%s10016_s12 + $0x7a8] sm:$0xf0] }
 0x631   : > { %v3555_v7 = vpop.f32.mrf.mxu0  ;;  %v3604_v61 = vpop.f32.mrf.mxu1  ;;  %3921 = vmatpush.bf16.msra.mxu0 %v7609_v2  ;;  %3970 = vmatpush.bf16.msra.mxu1 %v7865_v34  ;;  %v8696_v2 = vld [vmem:[%s10016_s12 + $0x54c] sm:$0xf] }
 0x632   : > { %v3605_v39 = vadd.f32 %v3604_v61, %v3555_v7  ;;  %v8704_v61 = vld [vmem:[%s10016_s12 + $0x58c] sm:$0xf] }
 0x633   : > { %v8054_v12 = vld [vmem:[%s10016_s12 + $0x568] sm:$0xf0] }
 0x634   : > { %v3654_v57 = vadd.f32 %v3653_v6, %v3605_v39  ;;  %v11064_v3 = vpop.f32.mrf.mxu2  ;;  %v11070_v10 = vpop.f32.mrf.mxu3  ;;  %v8086_v39 = vld [vmem:[%s10016_s12 + $0x5a8] sm:$0xf0] }
 0x635   : > { %v8089_v22 = vor.u32 %v8704_v61, %v8086_v39 }
 0x636   : > { %v11068_v1 = vadd.f32 %v3702_v13, %v3654_v57  ;;  %v8345_v13 = vor.u32 %v8768_v24, %v8342_v26  ;;  %v8752_v26 = vld [vmem:[%s10016_s12 + $0x70c] sm:$0xf] }
 0x637   : > { %4020 = vmatpush.bf16.msrb.mxu2 %v8089_v22  ;;  %v8688_v22 = vld [vmem:[%s10016_s12 + $0x50c] sm:$0xf] }
 0x638   : > { %14755 = vst [vmem:[#allocation70_spill] sm:$0xff] %v11068_v1  ;;  %4069 = vmatpush.bf16.msrb.mxu3 %v8345_v13  ;;  %v8278_v13 = vld [vmem:[%s10016_s12 + $0x728] sm:$0xf0] }
 0x639   : > { %v3558_v7 = vpop.f32.mrf.mxu0  ;;  %v3607_v6 = vpop.f32.mrf.mxu1 }
 0x63a   : > { %v3608_v32 = vadd.f32 %v3607_v6, %v3558_v7  ;;  %v8310_v7 = vld [vmem:[%s10016_s12 + $0x768] sm:$0xf0] }
 0x63c   : > { %v3657_v14 = vadd.f32 %v3656_v23, %v3608_v32  ;;  %3753 = vmatmul.bf16.gmra.mxu0 %v10730_v43  ;;  %3802 = vmatmul.bf16.gmra.mxu1 %v10732_v40  ;;  %v11078_v57 = vpop.f32.mrf.mxu2  ;;  %v11084_v34 = vpop.f32.mrf.mxu3  ;;  %v8057_v23 = vor.u32 %v8696_v2, %v8054_v12  ;;  %v8760_v32 = vld [vmem:[%s10016_s12 + $0x74c] sm:$0xf] }
 0x63d   : > { %v8313_v6 = vor.u32 %v8760_v32, %v8310_v7  ;;  %v8576_v12 = vld [vmem:[%s10016_s12 + $0x18c] sm:$0xf] }
 0x63e   : > { %v11082_v55 = vadd.f32 %v3705_v54, %v3657_v14  ;;  %v8022_v14 = vld [vmem:[%s10016_s12 + $0x528] sm:$0xf0]  ;;  %4021 = vmatpush.bf16.msrb.mxu2 %v8057_v23 }
 0x63f   : > { %4070 = vmatpush.bf16.msrb.mxu3 %v8313_v6  ;;  %v8025_v24 = vor.u32 %v8688_v22, %v8022_v14  ;;  %v7574_v32 = vld [vmem:[%s10016_s12 + $0x1a8] sm:$0xf0] }
 0x640   : > { %14756 = vst [vmem:[#allocation71_spill] sm:$0xff] %v11082_v55  ;;  %3861 = vmatmul.bf16.gmra.mxu2 %v10808_v11  ;;  %3910 = vmatmul.bf16.gmra.mxu3 %v10810_v18  ;;  %v8281_v55 = vor.u32 %v8752_v26, %v8278_v13  ;;  %v7577_v1 = vor.u32 %v8576_v12, %v7574_v32  ;;  %v8680_v23 = vld [vmem:[%s10016_s12 + $0x4cc] sm:$0xf] }
 0x641   : > { %v3560_v61 = vpop.f32.mrf.mxu0  ;;  %v3609_v39 = vpop.f32.mrf.mxu1  ;;  %v8744_v14 = vld [vmem:[%s10016_s12 + $0x6cc] sm:$0xf] }
 0x642   : > { %v3610_v54 = vadd.f32 %v3609_v39, %v3560_v61  ;;  %v7833_v61 = vor.u32 %v8640_v5, %v7830_v42  ;;  %4022 = vmatpush.bf16.msrb.mxu2 %v8025_v24  ;;  %3922 = vmatpush.bf16.msra.mxu0 %v7577_v1  ;;  %v8568_v42 = vld [vmem:[%s10016_s12 + $0x14c] sm:$0xf] }
 0x643   : > { %4071 = vmatpush.bf16.msrb.mxu3 %v8281_v55  ;;  %v7542_v5 = vld [vmem:[%s10016_s12 + $0x168] sm:$0xf0] }
 0x644   : > { %v3659_v2 = vadd.f32 %v3658_v19, %v3610_v54  ;;  %v11096_v7 = vpop.f32.mrf.mxu2  ;;  %v11104_v39 = vpop.f32.mrf.mxu3  ;;  %v7990_v19 = vld [vmem:[%s10016_s12 + $0x4e8] sm:$0xf0]  ;;  %3971 = vmatpush.bf16.msra.mxu1 %v7833_v61  ;;  %v7545_v12 = vor.u32 %v8568_v42, %v7542_v5 }
 0x645   : > { %v7993_v22 = vor.u32 %v8680_v23, %v7990_v19  ;;  %v8246_v54 = vld [vmem:[%s10016_s12 + $0x6e8] sm:$0xf0] }
 0x646   : > { %v11102_v6 = vadd.f32 %v11054_v30, %v3659_v2  ;;  %v8249_v26 = vor.u32 %v8744_v14, %v8246_v54  ;;  %v8632_v24 = vld [vmem:[%s10016_s12 + $0x34c] sm:$0xf]  ;;  %3923 = vmatpush.bf16.msra.mxu0 %v7545_v12 }
 0x647   : > { %v7798_v32 = vld [vmem:[%s10016_s12 + $0x368] sm:$0xf0]  ;;  %4023 = vmatpush.bf16.msrb.mxu2 %v7993_v22 }
 0x648   : > { %14757 = vst [vmem:[#allocation72_spill] sm:$0xff] %v11102_v6  ;;  %4072 = vmatpush.bf16.msrb.mxu3 %v8249_v26  ;;  %v8672_v1 = vld [vmem:[%s10016_s12 + $0x48c] sm:$0xf]  ;;  %v7801_v55 = vor.u32 %v8632_v24, %v7798_v32 }
 0x649   : > { %v3563_v30 = vpop.f32.mrf.mxu0  ;;  %v3612_v13 = vpop.f32.mrf.mxu1  ;;  %v7958_v23 = vld [vmem:[%s10016_s12 + $0x4a8] sm:$0xf0] }
 0x64a   : > { %v3613_v2 = vadd.f32 %v3612_v13, %v3563_v30  ;;  %v8736_v19 = vld [vmem:[%s10016_s12 + $0x68c] sm:$0xf]  ;;  %v7961_v22 = vor.u32 %v8672_v1, %v7958_v23  ;;  %3972 = vmatpush.bf16.msra.mxu1 %v7801_v55 }
 0x64b   : > { %v8214_v61 = vld [vmem:[%s10016_s12 + $0x6a8] sm:$0xf0] }
 0x64c   : > { %v3662_v14 = vadd.f32 %v11064_v3, %v3613_v2  ;;  %3758 = vmatmul.bf16.gmra.mxu0 %v10752_v60  ;;  %3807 = vmatmul.bf16.gmra.mxu1 %v10754_v8  ;;  %v11120_v54 = vpop.f32.mrf.mxu2  ;;  %v8217_v30 = vor.u32 %v8736_v19, %v8214_v61  ;;  %v8560_v26 = vld [vmem:[%s10016_s12 + $0x10c] sm:$0xf]  ;;  %v11128_v3 = vpop.f32.mrf.mxu3 }
 0x64d   : > { %v7510_v13 = vld [vmem:[%s10016_s12 + $0x128] sm:$0xf0]  ;;  %4024 = vmatpush.bf16.msrb.mxu2 %v7961_v22 }
 0x64e   : > { %v8624_v42 = vld [vmem:[%s10016_s12 + $0x30c] sm:$0xf]  ;;  %v11126_v5 = vadd.f32 %v11070_v10, %v3662_v14  ;;  %v7513_v2 = vor.u32 %v8560_v26, %v7510_v13  ;;  %4073 = vmatpush.bf16.msrb.mxu3 %v8217_v30 }
 0x64f   : > { %v7766_v24 = vld [vmem:[%s10016_s12 + $0x328] sm:$0xf0] }
 0x650   : > { %14758 = vst [vmem:[#allocation73_spill] sm:$0xff] %v11126_v5  ;;  %v8664_v32 = vld [vmem:[%s10016_s12 + $0x44c] sm:$0xf]  ;;  %v7769_v12 = vor.u32 %v8624_v42, %v7766_v24  ;;  %3866 = vmatmul.bf16.gmra.mxu2 %v10834_v59  ;;  %3924 = vmatpush.bf16.msra.mxu0 %v7513_v2 }
 0x651   : > { %v7926_v1 = vld [vmem:[%s10016_s12 + $0x468] sm:$0xf0]  ;;  %v3565_v10 = vpop.f32.mrf.mxu0  ;;  %v3614_v14 = vpop.f32.mrf.mxu1  ;;  %3915 = vmatmul.bf16.gmra.mxu3 %v10839_v4 }
 0x652   : > { %v7929_v55 = vor.u32 %v8664_v32, %v7926_v1  ;;  %v8728_v23 = vld [vmem:[%s10016_s12 + $0x64c] sm:$0xf]  ;;  %v3615_v26 = vadd.f32 %v3614_v14, %v3565_v10  ;;  %3973 = vmatpush.bf16.msra.mxu1 %v7769_v12 }
 0x653   : > { %v8182_v19 = vld [vmem:[%s10016_s12 + $0x668] sm:$0xf0] }
 0x654   : > { %v8185_v61 = vor.u32 %v8728_v23, %v8182_v19  ;;  %v8552_v22 = vld [vmem:[%s10016_s12 + $0xcc] sm:$0xf]  ;;  %4025 = vmatpush.bf16.msrb.mxu2 %v7929_v55  ;;  %v3664_v2 = vadd.f32 %v11078_v57, %v3615_v26  ;;  %v3671_v6 = vpop.f32.mrf.mxu2 }
 0x655   : > { %v7478_v30 = vld [vmem:[%s10016_s12 + $0xe8] sm:$0xf0] }
 0x656   : > { %v7481_v13 = vor.u32 %v8552_v22, %v7478_v30  ;;  %v8616_v42 = vld [vmem:[%s10016_s12 + $0x2cc] sm:$0xf]  ;;  %4074 = vmatpush.bf16.msrb.mxu3 %v8185_v61  ;;  %v11150_v30 = vadd.f32 %v11084_v34, %v3664_v2 }
 0x657   : > { %v7734_v24 = vld [vmem:[%s10016_s12 + $0x2e8] sm:$0xf0] }
 0x658   : > { %v8656_v32 = vld [vmem:[%s10016_s12 + $0x40c] sm:$0xf]  ;;  %v7737_v1 = vor.u32 %v8616_v42, %v7734_v24  ;;  %3925 = vmatpush.bf16.msra.mxu0 %v7481_v13  ;;  %14759 = vst [vmem:[#allocation74_spill] sm:$0xff] %v11150_v30  ;;  %v3720_v42 = vpop.f32.mrf.mxu3 }
 0x659   : > { %v7894_v23 = vld [vmem:[%s10016_s12 + $0x428] sm:$0xf0]  ;;  %v3568_v61 = vpop.f32.mrf.mxu0 }
 0x65a   : > { %v8720_v19 = vld [vmem:[%s10016_s12 + $0x60c] sm:$0xf]  ;;  %v7897_v12 = vor.u32 %v8656_v32, %v7894_v23  ;;  %3974 = vmatpush.bf16.msra.mxu1 %v7737_v1 }
 0x65b   : > { %v8150_v5 = vld [vmem:[%s10016_s12 + $0x628] sm:$0xf0] }
 0x65c   : > { %v8153_v10 = vor.u32 %v8720_v19, %v8150_v5  ;;  %v8544_v14 = vld [vmem:[%s10016_s12 + $0x8c] sm:$0xf]  ;;  %4026 = vmatpush.bf16.msrb.mxu2 %v7897_v12  ;;  %v3617_v5 = vpop.f32.mrf.mxu1  ;;  %3763 = vmatmul.bf16.gmra.mxu0 %v10780_v20 }
 0x65d   : > { %v7446_v22 = vld [vmem:[%s10016_s12 + $0xa8] sm:$0xf0]  ;;  %v3618_v32 = vadd.f32 %v3617_v5, %v3568_v61  ;;  %3812 = vmatmul.bf16.gmra.mxu1 %v10782_v38 }
 0x65e   : > { %v8608_v55 = vld [vmem:[%s10016_s12 + $0x28c] sm:$0xf]  ;;  %v7449_v24 = vor.u32 %v8544_v14, %v7446_v22  ;;  %4075 = vmatpush.bf16.msrb.mxu3 %v8153_v10 }
 0x65f   : > { %v7705_v57 = vor.u32 %v8608_v55, %v7702_v9  ;;  %v8536_v26 = vld [vmem:[%s10016_s12 + $0x4c] sm:$0xf]  ;;  %v3667_v2 = vadd.f32 %v11096_v7, %v3618_v32  ;;  %v3673_v9 = vpop.f32.mrf.mxu2 }
 0x660   : > { %3926 = vmatpush.bf16.msra.mxu0 %v7449_v24  ;;  %v7414_v13 = vld [vmem:[%s10016_s12 + $0x68] sm:$0xf0]  ;;  %v3722_v55 = vpop.f32.mrf.mxu3  ;;  %4027 = vmatmul.bf16.vlgmr.msrb.gmra.mxu2 %v10706_v47 }
 0x661   : > { %3975 = vmatpush.bf16.msra.mxu1 %v7705_v57  ;;  %v7417_v34 = vor.u32 %v8536_v26, %v7414_v13  ;;  %v8600_v23 = vld [vmem:[%s10016_s12 + $0x24c] sm:$0xf]  ;;  %v11164_v22 = vadd.f32 %v11104_v39, %v3667_v2  ;;  %v3570_v5 = vpop.f32.mrf.mxu0  ;;  %4076 = vmatmul.bf16.vlgmr.msrb.gmra.mxu3 %v10708_v58 }
 0x662   : > { %v7670_v19 = vld [vmem:[%s10016_s12 + $0x268] sm:$0xf0] }
 0x663   : > { %v7673_v1 = vor.u32 %v8600_v23, %v7670_v19  ;;  %v8528_v12 = vld [vmem:[%s10016_s12 + $0xc] sm:$0xf]  ;;  %14760 = vst [vmem:[#allocation75_spill] sm:$0xff] %v11164_v22  ;;  %v8717_v22 = vld [vmem:[%s10016_s12 + $0x5ec] sm:$0xf0] }
 0x664   : > { %3927 = vmatpush.bf16.msra.mxu0 %v7417_v34  ;;  %v7382_v10 = vld [vmem:[%s10016_s12 + $0x28] sm:$0xf0]  ;;  %v3619_v26 = vpop.f32.mrf.mxu1 }
 0x665   : > { %v8592_v14 = vld [vmem:[%s10016_s12 + $0x20c] sm:$0xf]  ;;  %3976 = vmatpush.bf16.msra.mxu1 %v7673_v1  ;;  %v7385_v24 = vor.u32 %v8528_v12, %v7382_v10  ;;  %v3620_v7 = vadd.f32 %v3619_v26, %v3570_v5 }
 0x666   : > { %v7638_v57 = vld [vmem:[%s10016_s12 + $0x228] sm:$0xf0] }
 0x667   : > { %v7641_v61 = vor.u32 %v8592_v14, %v7638_v57  ;;  %v3669_v13 = vadd.f32 %v11120_v54, %v3620_v7  ;;  %v3832_v32 = vpop.f32.mrf.mxu2 }
 0x668   : > { %3928 = vmatpush.bf16.msra.mxu0 %v7385_v24  ;;  %v3881_v34 = vpop.f32.mrf.mxu3 }
 0x669   : > { %3977 = vmatpush.bf16.msra.mxu1 %v7641_v61  ;;  %v11171_v39 = vadd.f32 %v11128_v3, %v3669_v13  ;;  %v3573_v23 = vpop.f32.mrf.mxu0 }
 0x66b   : > { %14761 = vst [vmem:[#allocation76_spill] sm:$0xff] %v11171_v39 }
 0x66c   : > { %v3622_v19 = vpop.f32.mrf.mxu1  ;;  %3768 = vmatmul.bf16.gmra.mxu0 %v10879_v16 }
 0x66d   : > { %v3623_v1 = vadd.f32 %v3622_v19, %v3573_v23  ;;  %3817 = vmatmul.bf16.gmra.mxu1 %v10881_v52 }
 0x66f   : > { %v3672_v2 = vadd.f32 %v3671_v6, %v3623_v1  ;;  %v3834_v12 = vpop.f32.mrf.mxu2 }
 0x670   : > { %v3883_v14 = vpop.f32.mrf.mxu3  ;;  %4032 = vmatmul.bf16.gmra.mxu2 %v10722_v48 }
 0x671   : > { %v11175_v10 = vadd.f32 %v3720_v42, %v3672_v2  ;;  %v3575_v24 = vpop.f32.mrf.mxu0  ;;  %4081 = vmatmul.bf16.gmra.mxu3 %v10724_v56 }
 0x673   : > { %14762 = vst [vmem:[#allocation77_spill] sm:$0xff] %v11175_v10 }
 0x674   : > { %v3624_v57 = vpop.f32.mrf.mxu1 }
 0x675   : > { %v3625_v54 = vadd.f32 %v3624_v57, %v3575_v24 }
 0x677   : > { %v3674_v3 = vadd.f32 %v3673_v9, %v3625_v54  ;;  %v3837_v61 = vpop.f32.mrf.mxu2 }
 0x678   : > { %v3886_v6 = vpop.f32.mrf.mxu3 }
 0x679   : > { %v11179_v5 = vadd.f32 %v3722_v55, %v3674_v3  ;;  %v3734_v26 = vpop.f32.mrf.mxu0 }
 0x67b   : > { %14763 = vst [vmem:[#allocation78_spill] sm:$0xff] %v11179_v5 }
 0x67c   : > { %v3783_v7 = vpop.f32.mrf.mxu1  ;;  %3929 = vmatmul.bf16.vlgmr.msra.gmra.mxu0 %v10634_v41 }
 0x67d   : > { %v3784_v13 = vadd.f32 %v3783_v7, %v3734_v26  ;;  %3978 = vmatmul.bf16.vlgmr.msra.gmra.mxu1 %v10636_v45 }
 0x67f   : > { %v3833_v23 = vadd.f32 %v3832_v32, %v3784_v13  ;;  %v3839_v42 = vpop.f32.mrf.mxu2 }
 0x680   : > { %v3888_v1 = vpop.f32.mrf.mxu3  ;;  %4037 = vmatmul.bf16.gmra.mxu2 %v10744_v62 }
 0x681   : > { %v11183_v19 = vadd.f32 %v3881_v34, %v3833_v23  ;;  %v3736_v2 = vpop.f32.mrf.mxu0  ;;  %4086 = vmatmul.bf16.gmra.mxu3 %v10746_v0 }
 0x683   : > { %14764 = vst [vmem:[#allocation79_spill] sm:$0xff] %v11183_v19 }
 0x684   : > { %v3785_v24 = vpop.f32.mrf.mxu1 }
 0x685   : > { %v3786_v9 = vadd.f32 %v3785_v24, %v3736_v2 }
 0x687   : > { %v3835_v55 = vadd.f32 %v3834_v12, %v3786_v9  ;;  %v3842_v57 = vpop.f32.mrf.mxu2 }
 0x688   : > { %v3891_v32 = vpop.f32.mrf.mxu3 }
 0x689   : > { %v11187_v54 = vadd.f32 %v3883_v14, %v3835_v55  ;;  %v3739_v3 = vpop.f32.mrf.mxu0 }
 0x68b   : > { %14765 = vst [vmem:[#allocation80_spill] sm:$0xff] %v11187_v54  ;;  %v8677_v54 = vld [vmem:[%s10016_s12 + $0x4ac] sm:$0xf0] }
 0x68c   : > { %v3788_v26 = vpop.f32.mrf.mxu1  ;;  %3934 = vmatmul.bf16.gmra.mxu0 %v10647_v25 }
 0x68d   : > { %v3789_v7 = vadd.f32 %v3788_v26, %v3739_v3  ;;  %3983 = vmatmul.bf16.gmra.mxu1 %v10649_v53 }
 0x68f   : > { %v3838_v13 = vadd.f32 %v3837_v61, %v3789_v7  ;;  %v3844_v34 = vpop.f32.mrf.mxu2 }
 0x690   : > { %v3893_v5 = vpop.f32.mrf.mxu3  ;;  %4042 = vmatmul.bf16.gmra.mxu2 %v10766_v63 }
 0x691   : > { %v11191_v23 = vadd.f32 %v3886_v6, %v3838_v13  ;;  %v3741_v2 = vpop.f32.mrf.mxu0  ;;  %4091 = vmatmul.bf16.gmra.mxu3 %v10768_v27 }
 0x693   : > { %14766 = vst [vmem:[#allocation81_spill] sm:$0xff] %v11191_v23  ;;  %v8637_v23 = vld [vmem:[%s10016_s12 + $0x36c] sm:$0xf0] }
 0x694   : > { %v3790_v24 = vpop.f32.mrf.mxu1 }
 0x695   : > { %v3791_v12 = vadd.f32 %v3790_v24, %v3741_v2 }
 0x697   : > { %v3840_v14 = vadd.f32 %v3839_v42, %v3791_v12  ;;  %v3847_v9 = vpop.f32.mrf.mxu2 }
 0x698   : > { %v3896_v61 = vpop.f32.mrf.mxu3 }
 0x699   : > { %v11195_v55 = vadd.f32 %v3888_v1, %v3840_v14  ;;  %v3744_v3 = vpop.f32.mrf.mxu0 }
 0x69b   : > { %14767 = vst [vmem:[#allocation82_spill] sm:$0xff] %v11195_v55 }
 0x69c   : > { %v3793_v26 = vpop.f32.mrf.mxu1  ;;  %3939 = vmatmul.bf16.gmra.mxu0 %v10662_v36 }
 0x69d   : > { %v3794_v7 = vadd.f32 %v3793_v26, %v3744_v3  ;;  %3988 = vmatmul.bf16.gmra.mxu1 %v10664_v33 }
 0x69f   : > { %v3843_v10 = vadd.f32 %v3842_v57, %v3794_v7  ;;  %v3849_v6 = vpop.f32.mrf.mxu2 }
 0x6a0   : > { %v3898_v39 = vpop.f32.mrf.mxu3  ;;  %4047 = vmatmul.bf16.gmra.mxu2 %v10788_v51 }
 0x6a1   : > { %v11199_v13 = vadd.f32 %v3891_v32, %v3843_v10  ;;  %v3746_v2 = vpop.f32.mrf.mxu0  ;;  %4096 = vmatmul.bf16.gmra.mxu3 %v10790_v35 }
 0x6a3   : > { %14768 = vst [vmem:[#allocation83_spill] sm:$0xff] %v11199_v13 }
 0x6a4   : > { %v3795_v24 = vpop.f32.mrf.mxu1 }
 0x6a5   : > { %v3796_v42 = vadd.f32 %v3795_v24, %v3746_v2  ;;  %v8124_v24 = vld [vmem:[%s10016_s12 + $0x5d0] sm:$0xf] }
 0x6a7   : > { %v3845_v1 = vadd.f32 %v3844_v34, %v3796_v42  ;;  %v3852_v57 = vpop.f32.mrf.mxu2  ;;  %v8380_v34 = vld [vmem:[%s10016_s12 + $0x7d0] sm:$0xf]  ;;  %v8125_v42 = vor.u32 %v8717_v22, %v8124_v24 }
 0x6a8   : > { %v3901_v14 = vpop.f32.mrf.mxu3  ;;  %v7612_v22 = vld [vmem:[%s10016_s12 + $0x1d0] sm:$0xf] }
 0x6a9   : > { %v11203_v12 = vadd.f32 %v3893_v5, %v3845_v1  ;;  %v3749_v3 = vpop.f32.mrf.mxu0  ;;  %v8781_v1 = vld [vmem:[%s10016_s12 + $0x7ec] sm:$0xf0]  ;;  %4215 = vmatpush.bf16.msra.mxu2 %v8125_v42 }
 0x6aa   : > { %v8589_v24 = vld [vmem:[%s10016_s12 + $0x1ec] sm:$0xf0] }
 0x6ab   : > { %14769 = vst [vmem:[#allocation84_spill] sm:$0xff] %v11203_v12  ;;  %v7613_v42 = vor.u32 %v8589_v24, %v7612_v22 }
 0x6ac   : > { %v3798_v10 = vpop.f32.mrf.mxu1  ;;  %3944 = vmatmul.bf16.gmra.mxu0 %v10670_v37 }
 0x6ad   : > { %v3799_v32 = vadd.f32 %v3798_v10, %v3749_v3  ;;  %3993 = vmatmul.bf16.gmra.mxu1 %v10672_v49  ;;  %v8381_v3 = vor.u32 %v8781_v1, %v8380_v34  ;;  %v7868_v34 = vld [vmem:[%s10016_s12 + $0x3d0] sm:$0xf]  ;;  %4117 = vmatpush.bf16.msrb.mxu0 %v7613_v42 }
 0x6ae   : > { %v8701_v42 = vld [vmem:[%s10016_s12 + $0x56c] sm:$0xf0] }
 0x6af   : > { %v3848_v26 = vadd.f32 %v3847_v9, %v3799_v32  ;;  %v11207_v7 = vpop.f32.mrf.mxu2  ;;  %4264 = vmatpush.bf16.msra.mxu3 %v8381_v3  ;;  %v8653_v3 = vld [vmem:[%s10016_s12 + $0x3ec] sm:$0xf0] }
 0x6b0   : > { %v11214_v5 = vpop.f32.mrf.mxu3  ;;  %4052 = vmatmul.bf16.gmra.mxu2 %v10802_v31 }
 0x6b1   : > { %v11209_v2 = vadd.f32 %v3896_v61, %v3848_v26  ;;  %v3751_v9 = vpop.f32.mrf.mxu0  ;;  %4101 = vmatmul.bf16.gmra.mxu3 %v10804_v44 }
 0x6b3   : > { %14770 = vst [vmem:[#allocation85_spill] sm:$0xff] %v11209_v2 }
 0x6b4   : > { %v3800_v10 = vpop.f32.mrf.mxu1 }
 0x6b5   : > { %v3801_v32 = vadd.f32 %v3800_v10, %v3751_v9  ;;  %v7869_v9 = vor.u32 %v8653_v3, %v7868_v34  ;;  %v8060_v34 = vld [vmem:[%s10016_s12 + $0x550] sm:$0xf] }
 0x6b7   : > { %v3850_v61 = vadd.f32 %v3849_v6, %v3801_v32  ;;  %v11219_v26 = vpop.f32.mrf.mxu2  ;;  %v8092_v6 = vld [vmem:[%s10016_s12 + $0x590] sm:$0xf]  ;;  %4166 = vmatpush.bf16.msrb.mxu1 %v7869_v9 }
 0x6b8   : > { %v11226_v1 = vpop.f32.mrf.mxu3  ;;  %v8709_v32 = vld [vmem:[%s10016_s12 + $0x5ac] sm:$0xf0] }
 0x6b9   : > { %v11221_v30 = vadd.f32 %v3898_v39, %v3850_v61  ;;  %v3754_v10 = vpop.f32.mrf.mxu0  ;;  %v8093_v39 = vor.u32 %v8709_v32, %v8092_v6  ;;  %v8348_v61 = vld [vmem:[%s10016_s12 + $0x790] sm:$0xf] }
 0x6ba   : > { %v8765_v9 = vld [vmem:[%s10016_s12 + $0x76c] sm:$0xf0] }
 0x6bb   : > { %14771 = vst [vmem:[#allocation86_spill] sm:$0xff] %v11221_v30  ;;  %v8773_v30 = vld [vmem:[%s10016_s12 + $0x7ac] sm:$0xf0]  ;;  %4216 = vmatpush.bf16.msra.mxu2 %v8093_v39 }
 0x6bc   : > { %v3803_v2 = vpop.f32.mrf.mxu1  ;;  %3949 = vmatmul.bf16.gmra.mxu0 %v10730_v43  ;;  %v8349_v22 = vor.u32 %v8773_v30, %v8348_v61  ;;  %v8028_v32 = vld [vmem:[%s10016_s12 + $0x510] sm:$0xf] }
 0x6bd   : > { %v3804_v12 = vadd.f32 %v3803_v2, %v3754_v10  ;;  %3998 = vmatmul.bf16.gmra.mxu1 %v10732_v40  ;;  %v8693_v39 = vld [vmem:[%s10016_s12 + $0x52c] sm:$0xf0] }
 0x6be   : > { %4265 = vmatpush.bf16.msra.mxu3 %v8349_v22  ;;  %v8757_v22 = vld [vmem:[%s10016_s12 + $0x72c] sm:$0xf0] }
 0x6bf   : > { %v3853_v13 = vadd.f32 %v3852_v57, %v3804_v12  ;;  %v11235_v24 = vpop.f32.mrf.mxu2  ;;  %v8061_v57 = vor.u32 %v8701_v42, %v8060_v34  ;;  %v8316_v12 = vld [vmem:[%s10016_s12 + $0x750] sm:$0xf] }
 0x6c0   : > { %v11241_v3 = vpop.f32.mrf.mxu3  ;;  %v8317_v10 = vor.u32 %v8765_v9, %v8316_v12  ;;  %4057 = vmatmul.bf16.gmra.mxu2 %v10808_v11  ;;  %v7580_v12 = vld [vmem:[%s10016_s12 + $0x190] sm:$0xf] }
 0x6c1   : > { %v11239_v2 = vadd.f32 %v3901_v14, %v3853_v13  ;;  %v3756_v6 = vpop.f32.mrf.mxu0  ;;  %4217 = vmatpush.bf16.msra.mxu2 %v8061_v57  ;;  %4106 = vmatmul.bf16.gmra.mxu3 %v10810_v18  ;;  %v8029_v13 = vor.u32 %v8693_v39, %v8028_v32  ;;  %v8284_v14 = vld [vmem:[%s10016_s12 + $0x710] sm:$0xf] }
 0x6c2   : > { %4266 = vmatpush.bf16.msra.mxu3 %v8317_v10  ;;  %v8285_v57 = vor.u32 %v8757_v22, %v8284_v14  ;;  %v8581_v9 = vld [vmem:[%s10016_s12 + $0x1ac] sm:$0xf0] }
 0x6c3   : > { %14772 = vst [vmem:[#allocation87_spill] sm:$0xff] %v11239_v2  ;;  %v7581_v10 = vor.u32 %v8581_v9, %v7580_v12  ;;  %v8645_v32 = vld [vmem:[%s10016_s12 + $0x3ac] sm:$0xf0] }
 0x6c4   : > { %v3805_v30 = vpop.f32.mrf.mxu1  ;;  %v8685_v2 = vld [vmem:[%s10016_s12 + $0x4ec] sm:$0xf0] }
 0x6c5   : > { %v3806_v61 = vadd.f32 %v3805_v30, %v3756_v6  ;;  %4218 = vmatpush.bf16.msra.mxu2 %v8029_v13  ;;  %v7836_v30 = vld [vmem:[%s10016_s12 + $0x390] sm:$0xf]  ;;  %4118 = vmatpush.bf16.msrb.mxu0 %v7581_v10 }
 0x6c6   : > { %4267 = vmatpush.bf16.msra.mxu3 %v8285_v57  ;;  %v8252_v14 = vld [vmem:[%s10016_s12 + $0x6d0] sm:$0xf] }
 0x6c7   : > { %v3855_v34 = vadd.f32 %v11207_v7, %v3806_v61  ;;  %v11252_v42 = vpop.f32.mrf.mxu2  ;;  %v7996_v7 = vld [vmem:[%s10016_s12 + $0x4d0] sm:$0xf]  ;;  %v7837_v61 = vor.u32 %v8645_v32, %v7836_v30 }
 0x6c8   : > { %v11261_v39 = vpop.f32.mrf.mxu3  ;;  %v8749_v22 = vld [vmem:[%s10016_s12 + $0x6ec] sm:$0xf0] }
 0x6c9   : > { %v11257_v6 = vadd.f32 %v11214_v5, %v3855_v34  ;;  %v7997_v5 = vor.u32 %v8685_v2, %v7996_v7  ;;  %v8253_v13 = vor.u32 %v8749_v22, %v8252_v14  ;;  %v3759_v34 = vpop.f32.mrf.mxu0  ;;  %4167 = vmatpush.bf16.msrb.mxu1 %v7837_v61  ;;  %v7548_v9 = vld [vmem:[%s10016_s12 + $0x150] sm:$0xf] }
 0x6ca   : > { %v7804_v57 = vld [vmem:[%s10016_s12 + $0x350] sm:$0xf] }
 0x6cb   : > { %14773 = vst [vmem:[#allocation88_spill] sm:$0xff] %v11257_v6  ;;  %v8573_v6 = vld [vmem:[%s10016_s12 + $0x16c] sm:$0xf0]  ;;  %4219 = vmatpush.bf16.msra.mxu2 %v7997_v5  ;;  %4268 = vmatpush.bf16.msra.mxu3 %v8253_v13  ;;  %v7805_v7 = vor.u32 %v8637_v23, %v7804_v57 }
 0x6cc   : > { %v3808_v12 = vpop.f32.mrf.mxu1  ;;  %v7964_v30 = vld [vmem:[%s10016_s12 + $0x490] sm:$0xf]  ;;  %v7549_v32 = vor.u32 %v8573_v6, %v7548_v9  ;;  %3954 = vmatmul.bf16.gmra.mxu0 %v10752_v60 }
 0x6cd   : > { %v3809_v55 = vadd.f32 %v3808_v12, %v3759_v34  ;;  %v8220_v10 = vld [vmem:[%s10016_s12 + $0x690] sm:$0xf]  ;;  %4003 = vmatmul.bf16.gmra.mxu1 %v10754_v8  ;;  %v7965_v14 = vor.u32 %v8677_v54, %v7964_v30 }
 0x6ce   : > { %v8741_v22 = vld [vmem:[%s10016_s12 + $0x6ac] sm:$0xf0]  ;;  %4119 = vmatpush.bf16.msrb.mxu0 %v7549_v32  ;;  %4168 = vmatpush.bf16.msrb.mxu1 %v7805_v7 }
 0x6cf   : > { %v3858_v2 = vadd.f32 %v11219_v26, %v3809_v55  ;;  %v11277_v61 = vpop.f32.mrf.mxu2  ;;  %v7516_v6 = vld [vmem:[%s10016_s12 + $0x110] sm:$0xf]  ;;  %v8221_v13 = vor.u32 %v8741_v22, %v8220_v10  ;;  %4220 = vmatpush.bf16.msra.mxu2 %v7965_v14 }
 0x6d0   : > { %v8565_v5 = vld [vmem:[%s10016_s12 + $0x12c] sm:$0xf0]  ;;  %v11285_v26 = vpop.f32.mrf.mxu3  ;;  %4062 = vmatmul.bf16.gmra.mxu2 %v10834_v59 }
 0x6d1   : > { %v11283_v55 = vadd.f32 %v11226_v1, %v3858_v2  ;;  %v7517_v34 = vor.u32 %v8565_v5, %v7516_v6  ;;  %v7772_v23 = vld [vmem:[%s10016_s12 + $0x310] sm:$0xf]  ;;  %4269 = vmatpush.bf16.msra.mxu3 %v8221_v13  ;;  %v3761_v2 = vpop.f32.mrf.mxu0 }
 0x6d2   : > { %v8629_v12 = vld [vmem:[%s10016_s12 + $0x32c] sm:$0xf0]  ;;  %4111 = vmatmul.bf16.gmra.mxu3 %v10839_v4 }
 0x6d3   : > { %14774 = vst [vmem:[#allocation89_spill] sm:$0xff] %v11283_v55  ;;  %v7932_v54 = vld [vmem:[%s10016_s12 + $0x450] sm:$0xf]  ;;  %v7773_v9 = vor.u32 %v8629_v12, %v7772_v23  ;;  %4120 = vmatpush.bf16.msrb.mxu0 %v7517_v34 }
 0x6d4   : > { %v8669_v57 = vld [vmem:[%s10016_s12 + $0x46c] sm:$0xf0]  ;;  %v3810_v7 = vpop.f32.mrf.mxu1 }
 0x6d5   : > { %v8188_v30 = vld [vmem:[%s10016_s12 + $0x650] sm:$0xf]  ;;  %v7933_v1 = vor.u32 %v8669_v57, %v7932_v54  ;;  %v3811_v5 = vadd.f32 %v3810_v7, %v3761_v2  ;;  %4169 = vmatpush.bf16.msrb.mxu1 %v7773_v9 }
 0x6d6   : > { %v8733_v32 = vld [vmem:[%s10016_s12 + $0x66c] sm:$0xf0] }
 0x6d7   : > { %v8189_v10 = vor.u32 %v8733_v32, %v8188_v30  ;;  %v7484_v22 = vld [vmem:[%s10016_s12 + $0xd0] sm:$0xf]  ;;  %4221 = vmatpush.bf16.msra.mxu2 %v7933_v1  ;;  %v3860_v34 = vadd.f32 %v11235_v24, %v3811_v5  ;;  %v3867_v30 = vpop.f32.mrf.mxu2 }
 0x6d8   : > { %v8557_v6 = vld [vmem:[%s10016_s12 + $0xec] sm:$0xf0]  ;;  %v3916_v1 = vpop.f32.mrf.mxu3 }
 0x6d9   : > { %v7740_v14 = vld [vmem:[%s10016_s12 + $0x2d0] sm:$0xf]  ;;  %v7485_v12 = vor.u32 %v8557_v6, %v7484_v22  ;;  %4270 = vmatpush.bf16.msra.mxu3 %v8189_v10  ;;  %v11307_v22 = vadd.f32 %v11241_v3, %v3860_v34  ;;  %v3764_v10 = vpop.f32.mrf.mxu0 }
 0x6da   : > { %v8621_v13 = vld [vmem:[%s10016_s12 + $0x2ec] sm:$0xf0] }
 0x6db   : > { %v7900_v23 = vld [vmem:[%s10016_s12 + $0x410] sm:$0xf]  ;;  %v7741_v32 = vor.u32 %v8621_v13, %v7740_v14  ;;  %4121 = vmatpush.bf16.msrb.mxu0 %v7485_v12  ;;  %14775 = vst [vmem:[#allocation90_spill] sm:$0xff] %v11307_v22 }
 0x6dc   : > { %v8661_v54 = vld [vmem:[%s10016_s12 + $0x42c] sm:$0xf0]  ;;  %v3813_v13 = vpop.f32.mrf.mxu1  ;;  %3959 = vmatmul.bf16.gmra.mxu0 %v10780_v20 }
 0x6dd   : > { %v8156_v57 = vld [vmem:[%s10016_s12 + $0x610] sm:$0xf]  ;;  %v7901_v2 = vor.u32 %v8661_v54, %v7900_v23  ;;  %4170 = vmatpush.bf16.msrb.mxu1 %v7741_v32  ;;  %v3814_v54 = vadd.f32 %v3813_v13, %v3764_v10 }
 0x6de   : > { %v8725_v9 = vld [vmem:[%s10016_s12 + $0x62c] sm:$0xf0]  ;;  %4008 = vmatmul.bf16.gmra.mxu1 %v10782_v38 }
 0x6df   : > { %v7452_v7 = vld [vmem:[%s10016_s12 + $0x90] sm:$0xf]  ;;  %v8157_v19 = vor.u32 %v8725_v9, %v8156_v57  ;;  %4222 = vmatpush.bf16.msra.mxu2 %v7901_v2 }
 0x6e0   : > { %v8549_v55 = vld [vmem:[%s10016_s12 + $0xac] sm:$0xf0] }
 0x6e1   : > { %v7453_v6 = vor.u32 %v8549_v55, %v7452_v7  ;;  %v7708_v24 = vld [vmem:[%s10016_s12 + $0x290] sm:$0xf]  ;;  %4271 = vmatpush.bf16.msra.mxu3 %v8157_v19  ;;  %v3863_v55 = vadd.f32 %v11252_v42, %v3814_v54  ;;  %v3869_v19 = vpop.f32.mrf.mxu2  ;;  %v3766_v13 = vpop.f32.mrf.mxu0 }
 0x6e2   : > { %v8613_v5 = vld [vmem:[%s10016_s12 + $0x2ac] sm:$0xf0]  ;;  %4223 = vmatmul.bf16.vlgmr.msra.gmra.mxu2 %v10706_v47 }
 0x6e3   : > { %v7709_v14 = vor.u32 %v8613_v5, %v7708_v24  ;;  %4122 = vmatpush.bf16.msrb.mxu0 %v7453_v6  ;;  %v7420_v23 = vld [vmem:[%s10016_s12 + $0x50] sm:$0xf]  ;;  %v11321_v7 = vadd.f32 %v11261_v39, %v3863_v55  ;;  %v3918_v6 = vpop.f32.mrf.mxu3 }
 0x6e4   : > { %v8541_v12 = vld [vmem:[%s10016_s12 + $0x6c] sm:$0xf0]  ;;  %v3815_v42 = vpop.f32.mrf.mxu1  ;;  %4272 = vmatmul.bf16.vlgmr.msra.gmra.mxu3 %v10708_v58 }
 0x6e5   : > { %4171 = vmatpush.bf16.msrb.mxu1 %v7709_v14  ;;  %v7676_v3 = vld [vmem:[%s10016_s12 + $0x250] sm:$0xf]  ;;  %v7421_v34 = vor.u32 %v8541_v12, %v7420_v23  ;;  %14776 = vst [vmem:[#allocation91_spill] sm:$0xff] %v11321_v7  ;;  %v3816_v23 = vadd.f32 %v3815_v42, %v3766_v13  ;;  %v8406_v7 = vmul.f32 -1.442695, %v10916_v29 }
 0x6e6   : > { %v8605_v57 = vld [vmem:[%s10016_s12 + $0x26c] sm:$0xf0] }
 0x6e7   : > { %v7677_v32 = vor.u32 %v8605_v57, %v7676_v3  ;;  %4123 = vmatpush.bf16.msrb.mxu0 %v7421_v34  ;;  %v7388_v2 = vld [vmem:[%s10016_s12 + $0x10] sm:$0xf]  ;;  %v3865_v12 = vadd.f32 %v11277_v61, %v3816_v23 }
 0x6e8   : > { %v8533_v9 = vld [vmem:[%s10016_s12 + $0x2c] sm:$0xf0] }
 0x6e9   : > { %4172 = vmatpush.bf16.msrb.mxu1 %v7677_v32  ;;  %v7389_v24 = vor.u32 %v8533_v9, %v7388_v2  ;;  %v7644_v5 = vld [vmem:[%s10016_s12 + $0x210] sm:$0xf]  ;;  %v4028_v54 = vpop.f32.mrf.mxu2  ;;  %v11329_v39 = vadd.f32 %v11285_v26, %v3865_v12  ;;  %v3769_v57 = vpop.f32.mrf.mxu0 }
 0x6ea   : > { %v8597_v14 = vld [vmem:[%s10016_s12 + $0x22c] sm:$0xf0] }
 0x6eb   : > { %v7645_v10 = vor.u32 %v8597_v14, %v7644_v5  ;;  %4124 = vmatpush.bf16.msrb.mxu0 %v7389_v24  ;;  %14777 = vst [vmem:[#allocation92_spill] sm:$0xff] %v11329_v39  ;;  %v4077_v3 = vpop.f32.mrf.mxu3 }
 0x6ec   : > { %v3818_v34 = vpop.f32.mrf.mxu1  ;;  %3964 = vmatmul.bf16.gmra.mxu0 %v10879_v16 }
 0x6ed   : > { %4173 = vmatpush.bf16.msrb.mxu1 %v7645_v10  ;;  %v3819_v55 = vadd.f32 %v3818_v34, %v3769_v57 }
 0x6ee   : > { %4013 = vmatmul.bf16.gmra.mxu1 %v10881_v52 }
 0x6ef   : > { %v3868_v32 = vadd.f32 %v3867_v30, %v3819_v55 }
 0x6f1   : > { %v4030_v2 = vpop.f32.mrf.mxu2  ;;  %v11333_v9 = vadd.f32 %v3916_v1, %v3868_v32  ;;  %v3771_v5 = vpop.f32.mrf.mxu0 }
 0x6f2   : > { %4228 = vmatmul.bf16.gmra.mxu2 %v10722_v48 }
 0x6f3   : > { %14778 = vst [vmem:[#allocation93_spill] sm:$0xff] %v11333_v9  ;;  %v4079_v24 = vpop.f32.mrf.mxu3 }
 0x6f4   : > { %v3820_v14 = vpop.f32.mrf.mxu1  ;;  %4277 = vmatmul.bf16.gmra.mxu3 %v10724_v56 }
 0x6f5   : > { %v3821_v61 = vadd.f32 %v3820_v14, %v3771_v5 }
 0x6f7   : > { %v3870_v26 = vadd.f32 %v3869_v19, %v3821_v61 }
 0x6f9   : > { %v4033_v10 = vpop.f32.mrf.mxu2  ;;  %v11337_v13 = vadd.f32 %v3918_v6, %v3870_v26  ;;  %v3930_v42 = vpop.f32.mrf.mxu0 }
 0x6fb   : > { %14779 = vst [vmem:[#allocation94_spill] sm:$0xff] %v11337_v13  ;;  %v4082_v30 = vpop.f32.mrf.mxu3  ;;  %v8382_v13 = vld [vmem:[%s10016_s12 + $0x7f0] sm:$0xf0] }
 0x6fc   : > { %v3979_v23 = vpop.f32.mrf.mxu1  ;;  %4125 = vmatmul.bf16.vlgmr.msrb.gmra.mxu0 %v10634_v41 }
 0x6fd   : > { %v3980_v12 = vadd.f32 %v3979_v23, %v3930_v42 }
 0x6fe   : > { %4174 = vmatmul.bf16.vlgmr.msrb.gmra.mxu1 %v10636_v45 }
 0x6ff   : > { %v4029_v57 = vadd.f32 %v4028_v54, %v3980_v12 }
 0x701   : > { %v4035_v1 = vpop.f32.mrf.mxu2  ;;  %v11341_v34 = vadd.f32 %v4077_v3, %v4029_v57  ;;  %v3932_v32 = vpop.f32.mrf.mxu0 }
 0x702   : > { %4233 = vmatmul.bf16.gmra.mxu2 %v10744_v62 }
 0x703   : > { %14780 = vst [vmem:[#allocation95_spill] sm:$0xff] %v11341_v34  ;;  %v4084_v55 = vpop.f32.mrf.mxu3 }
 0x704   : > { %v3981_v5 = vpop.f32.mrf.mxu1  ;;  %4282 = vmatmul.bf16.gmra.mxu3 %v10746_v0 }
 0x705   : > { %v3982_v14 = vadd.f32 %v3981_v5, %v3932_v32  ;;  %v8394_v5 = vmul.f32 -1.442695, %v10875_v46 }
 0x707   : > { %v4031_v19 = vadd.f32 %v4030_v2, %v3982_v14  ;;  %9002 = vpow2.f32 %v8394_v5 }
 0x709   : > { %v4038_v6 = vpop.f32.mrf.mxu2  ;;  %v11345_v61 = vadd.f32 %v4079_v24, %v4031_v19  ;;  %v3935_v26 = vpop.f32.mrf.mxu0  ;;  %v8396_v24 = vmul.f32 -1.442695, %v10885_v21 }
 0x70b   : > { %14781 = vst [vmem:[#allocation96_spill] sm:$0xff] %v11345_v61  ;;  %v4087_v54 = vpop.f32.mrf.mxu3  ;;  %9004 = vpow2.f32 %v8396_v24 }
 0x70c   : > { %v3984_v42 = vpop.f32.mrf.mxu1  ;;  %4130 = vmatmul.bf16.gmra.mxu0 %v10647_v25 }
 0x70d   : > { %v3985_v23 = vadd.f32 %v3984_v42, %v3935_v26  ;;  %v9003_v42 = vpop.eup %9002 }
 0x70e   : > { %4179 = vmatmul.bf16.gmra.mxu1 %v10649_v53  ;;  %v11357_v61 = vadd.f32 1.0, %v9003_v42  ;;  %v14816_v53 = vld [vmem:[#allocation60_spill] sm:$0xff] }
 0x70f   : > { %v4034_v12 = vadd.f32 %v4033_v10, %v3985_v23  ;;  %v8420_v25 = vmul.f32 -1.442695, %v14816_v53 }
 0x710   : > { %9006 = vrcp.f32 %v11357_v61  ;;  %v5040_v29 = vand.u32 2147483648, %v11357_v61  ;;  %vm5034_vm1 = vweird.f32 %v11357_v61 }
 0x711   : > { %v4040_v3 = vpop.f32.mrf.mxu2  ;;  %v11349_v57 = vadd.f32 %v4082_v30, %v4034_v12  ;;  %v3937_v34 = vpop.f32.mrf.mxu0 }
 0x712   : > { %4238 = vmatmul.bf16.gmra.mxu2 %v10766_v63  ;;  %v8254_v63 = vld [vmem:[%s10016_s12 + $0x6f0] sm:$0xf0] }
 0x713   : > { %14782 = vst [vmem:[#allocation97_spill] sm:$0xff] %v11349_v57  ;;  %v4089_v32 = vpop.f32.mrf.mxu3  ;;  %v9005_v57 = vpop.eup %9004 }
 0x714   : > { %v3986_v2 = vpop.f32.mrf.mxu1  ;;  %4287 = vmatmul.bf16.gmra.mxu3 %v10768_v27  ;;  %v8745_v27 = vld [vmem:[%s10016_s12 + $0x6d4] sm:$0xf] }
 0x715   : > { %v3987_v14 = vadd.f32 %v3986_v2, %v3937_v34  ;;  %v8398_v2 = vmul.f32 -1.442695, %v10890_v17 }
 0x717   : > { %v4036_v10 = vadd.f32 %v4035_v1, %v3987_v14 }
 0x719   : > { %v4043_v19 = vpop.f32.mrf.mxu2  ;;  %v11355_v26 = vadd.f32 %v4084_v55, %v4036_v10  ;;  %v3940_v23 = vpop.f32.mrf.mxu0  ;;  %v11367_v55 = vadd.f32 1.0, %v9005_v57 }
 0x71b   : > { %14783 = vst [vmem:[#allocation98_spill] sm:$0xff] %v11355_v26  ;;  %v4092_v30 = vpop.f32.mrf.mxu3  ;;  %9008 = vrcp.f32 %v11367_v55  ;;  %vm5064_vm3 = vweird.f32 %v11367_v55 }
 0x71c   : > { %v3989_v12 = vpop.f32.mrf.mxu1  ;;  %4135 = vmatmul.bf16.gmra.mxu0 %v10662_v36  ;;  %9010 = vpow2.f32 %v8398_v2  ;;  %v8761_v36 = vld [vmem:[%s10016_s12 + $0x754] sm:$0xf] }
 0x71d   : > { %v3990_v46 = vadd.f32 %v3989_v12, %v3940_v23  ;;  %v11378_v23 = vpop.eup %9006 }
 0x71e   : > { %4184 = vmatmul.bf16.gmra.mxu1 %v10664_v33  ;;  %vm5035_vm0 = vweird.f32 %v11378_v23  ;;  %v8350_v33 = vld [vmem:[%s10016_s12 + $0x7b0] sm:$0xf0] }
 0x71f   : > { %v4039_v21 = vadd.f32 %v4038_v6, %v3990_v46  ;;  %v8400_v6 = vmul.f32 -1.442695, %v10896_v50  ;;  %v5030_v46 = vmul.f32 %v11378_v23, %v11357_v61  ;;  %vm11463_vm5 = vmor %vm5034_vm1, %vm5035_vm0 }
 0x721   : > { %v11361_v34 = vpop.f32.mrf.mxu2  ;;  %v11363_v1 = vadd.f32 %v4087_v54, %v4039_v21  ;;  %v3942_v24 = vpop.f32.mrf.mxu0  ;;  %v8402_v54 = vmul.f32 -1.442695, %v10903_v15  ;;  %9012 = vpow2.f32 %v8400_v6 }
 0x722   : > { %4243 = vmatmul.bf16.gmra.mxu2 %v10788_v51  ;;  %v11384_v50 = vpop.eup %9008  ;;  %v8769_v51 = vld [vmem:[%s10016_s12 + $0x794] sm:$0xf] }
 0x723   : > { %14784 = vst [vmem:[#allocation99_spill] sm:$0xff] %v11363_v1  ;;  %v11365_v5 = vpop.f32.mrf.mxu3  ;;  %9014 = vpow2.f32 %v8402_v54  ;;  %v5031_v54 = vsub.f32 1.0, %v5030_v46  ;;  %vm5065_vm6 = vweird.f32 %v11384_v50 }
 0x724   : > { %v3991_v14 = vpop.f32.mrf.mxu1  ;;  %4292 = vmatmul.bf16.gmra.mxu3 %v10790_v35  ;;  %vm11491_vm7 = vmor %vm5064_vm3, %vm5065_vm6 }
 0x725   : > { %v3992_v10 = vadd.f32 %v3991_v14, %v3942_v24  ;;  %v8404_v24 = vmul.f32 -1.442695, %v10909_v28  ;;  %v8126_v28 = vld [vmem:[%s10016_s12 + $0x5f0] sm:$0xf0] }
 0x727   : > { %v4041_v57 = vadd.f32 %v4040_v3, %v3992_v10  ;;  %v9011_v3 = vpop.eup %9010  ;;  %9016 = vpow2.f32 %v8404_v24  ;;  %v5032_v24 = vmul.f32 %v11378_v23, %v5031_v54 }
 0x728   : > { %v9013_v14 = vpop.eup %9012 }
 0x729   : > { %v11376_v42 = vpop.f32.mrf.mxu2  ;;  %v11380_v17 = vadd.f32 %v4089_v32, %v4041_v57  ;;  %v3945_v15 = vpop.f32.mrf.mxu0  ;;  %v5060_v57 = vmul.f32 %v11384_v50, %v11367_v55 }
 0x72a   : > { %v9015_v10 = vpop.eup %9014 }
 0x72b   : > { %14785 = vst [vmem:[#allocation100_spill] sm:$0xff] %v11380_v17  ;;  %v11382_v12 = vpop.f32.mrf.mxu3  ;;  %v11395_v17 = vadd.f32 1.0, %v9011_v3  ;;  %v11407_v9 = vadd.f32 1.0, %v9015_v10  ;;  %v5061_v39 = vsub.f32 1.0, %v5060_v57 }
 0x72c   : > { %v3994_v21 = vpop.f32.mrf.mxu1  ;;  %4140 = vmatmul.bf16.gmra.mxu0 %v10670_v37 }
 0x72d   : > { %v3995_v2 = vadd.f32 %v3994_v21, %v3945_v15  ;;  %v8713_v15 = vld [vmem:[%s10016_s12 + $0x5d4] sm:$0xf]  ;;  %9018 = vrcp.f32 %v11395_v17  ;;  %v5062_v57 = vmul.f32 %v11384_v50, %v5061_v39  ;;  %vm5094_vm8 = vweird.f32 %v11395_v17 }
 0x72e   : > { %4189 = vmatmul.bf16.gmra.mxu1 %v10672_v49  ;;  %v8777_v21 = vld [vmem:[%s10016_s12 + $0x7d4] sm:$0xf]  ;;  %v8129_v26 = vor.u32 %v8713_v15, %v8126_v28  ;;  %v5070_v15 = vand.u32 2147483648, %v11367_v55  ;;  %vm5154_vm14 = vweird.f32 %v11407_v9 }
 0x72f   : > { %v4044_v32 = vadd.f32 %v4043_v19, %v3995_v2  ;;  %v11404_v2 = vadd.f32 1.0, %v9013_v14  ;;  %v8385_v46 = vor.u32 %v8777_v21, %v8382_v13  ;;  %v9017_v14 = vpop.eup %9016  ;;  %v8585_v21 = vld [vmem:[%s10016_s12 + $0x1d4] sm:$0xf] }
 0x730   : > { %4411 = vmatpush.bf16.msrb.mxu2 %v8129_v26  ;;  %v5068_v26 = vand.u32 2147483647, %v11367_v55  ;;  %v7870_v39 = vld [vmem:[%s10016_s12 + $0x3f0] sm:$0xf0] }
 0x731   : > { %v11391_v6 = vpop.f32.mrf.mxu2  ;;  %v11397_v1 = vadd.f32 %v4092_v30, %v4044_v32  ;;  %v3947_v3 = vpop.f32.mrf.mxu0  ;;  %4460 = vmatpush.bf16.msrb.mxu3 %v8385_v46  ;;  %9020 = vrcp.f32 %v11404_v2  ;;  %v14787_v32 = vld [vmem:[#allocation54_spill] sm:$0xff]  ;;  %v8649_v46 = vld [vmem:[%s10016_s12 + $0x3d4] sm:$0xf]  ;;  %vm5124_vm10 = vweird.f32 %v11404_v2 }
 0x732   : > { %4248 = vmatmul.bf16.gmra.mxu2 %v10802_v31  ;;  %9022 = vrcp.f32 %v11407_v9  ;;  %v8408_v10 = vmul.f32 -1.442695, %v14787_v32  ;;  %vm11451_vm4 = vcmp.eq.f32.partialorder %v5068_v26, 8.507059e+37  ;;  %v8705_v31 = vld [vmem:[%s10016_s12 + $0x594] sm:$0xf]  ;;  %v5063_v26 = vadd.f32 %v11384_v50, %v5062_v57 }
 0x733   : > { %14786 = vst [vmem:[#allocation101_spill] sm:$0xff] %v11397_v1  ;;  %v11402_v19 = vpop.f32.mrf.mxu3  ;;  %9024 = vpow2.f32 %v8406_v7  ;;  %v14789_v7 = vld [vmem:[#allocation55_spill] sm:$0xff] }
 0x734   : > { %v3996_v22 = vpop.f32.mrf.mxu1  ;;  %4297 = vmatmul.bf16.gmra.mxu3 %v10804_v44  ;;  %v8410_v32 = vmul.f32 -1.442695, %v14789_v7  ;;  %v7873_v44 = vor.u32 %v8649_v46, %v7870_v39  ;;  %9026 = vpow2.f32 %v8408_v10  ;;  %v5100_v10 = vand.u32 2147483648, %v11395_v17  ;;  %v8286_v7 = vld [vmem:[%s10016_s12 + $0x730] sm:$0xf0] }
 0x735   : > { %v3997_v30 = vadd.f32 %v3996_v22, %v3947_v3  ;;  %v5038_v22 = vand.u32 2147483647, %v11357_v61  ;;  %v5071_v39 = vor.u32 1.1754944e-38, %v5070_v15  ;;  %v8353_v15 = vor.u32 %v8769_v51, %v8350_v33  ;;  %v8697_v33 = vld [vmem:[%s10016_s12 + $0x554] sm:$0xf] }
 0x736   : > { %4362 = vmatpush.bf16.msra.mxu1 %v7873_v44  ;;  %9028 = vpow2.f32 %v8410_v32  ;;  %v5130_v44 = vand.u32 2147483648, %v11404_v2  ;;  %v8062_v51 = vld [vmem:[%s10016_s12 + $0x570] sm:$0xf0]  ;;  %v5067_v55 = vsel %vm11491_vm7, %v11384_v50, %v5063_v26  ;;  %v5160_v50 = vand.u32 2147483648, %v11407_v9 }
 0x737   : > { %v4046_v13 = vadd.f32 %v11361_v34, %v3997_v30  ;;  %v7614_v34 = vld [vmem:[%s10016_s12 + $0x1f0] sm:$0xf0]  ;;  %v11434_v30 = vadd.f32 %v11378_v23, %v5032_v24  ;;  %vm11446_vm2 = vcmp.eq.f32.partialorder %v5038_v22, 8.507059e+37  ;;  %4461 = vmatpush.bf16.msrb.mxu3 %v8353_v15  ;;  %v8065_v49 = vor.u32 %v8697_v33, %v8062_v51 }
 0x738   : > { %v7617_v1 = vor.u32 %v8585_v21, %v7614_v34  ;;  %v11521_v26 = vor.u32 1.1754944e-38, %v5130_v44  ;;  %v8753_v24 = vld [vmem:[%s10016_s12 + $0x714] sm:$0xf] }
 0x739   : > { %v11421_v54 = vpop.f32.mrf.mxu2  ;;  %v11426_v28 = vadd.f32 %v11365_v5, %v4046_v13  ;;  %v11440_v5 = vor.u32 1.1754944e-38, %v5040_v29  ;;  %v11442_v13 = vpop.eup %9018  ;;  %v5037_v61 = vsel %vm11463_vm5, %v11378_v23, %v11434_v30 }
 0x73a   : > { %v11455_v21 = vpop.eup %9020  ;;  %v3950_v29 = vpop.f32.mrf.mxu0  ;;  %4313 = vmatpush.bf16.msra.mxu0 %v7617_v1  ;;  %v5090_v57 = vmul.f32 %v11442_v13, %v11395_v17  ;;  %vm5095_vm9 = vweird.f32 %v11442_v13 }
 0x73b   : > { %14788 = vst [vmem:[#allocation54_spill] sm:$0xff] %v11426_v28  ;;  %v11431_v3 = vpop.f32.mrf.mxu3  ;;  %v11444_v28 = vadd.f32 1.0, %v9017_v14  ;;  %v8094_v14 = vld [vmem:[%s10016_s12 + $0x5b0] sm:$0xf0]  ;;  %v11470_v46 = vpop.eup %9022  ;;  %v5120_v30 = vmul.f32 %v11455_v21, %v11404_v2  ;;  %vm5125_vm11 = vweird.f32 %v11455_v21  ;;  %vm11634_vm1 = vmor %vm5094_vm8, %vm5095_vm9 }
 0x73c   : > { %v3999_v34 = vpop.f32.mrf.mxu1  ;;  %v9025_v37 = vpop.eup %9024  ;;  %v8097_v35 = vor.u32 %v8705_v31, %v8094_v14  ;;  %4145 = vmatmul.bf16.gmra.mxu0 %v10730_v43  ;;  %v11508_v14 = vor.u32 1.1754944e-38, %v5100_v10  ;;  %v5091_v43 = vsub.f32 1.0, %v5090_v57  ;;  %v8318_v31 = vld [vmem:[%s10016_s12 + $0x770] sm:$0xf0]  ;;  %vm5155_vm0 = vweird.f32 %v11470_v46 }
 0x73d   : > { %v4000_v1 = vadd.f32 %v3999_v34, %v3950_v29  ;;  %9030 = vrcp.f32 %v11444_v28  ;;  %v14796_v29 = vld [vmem:[#allocation56_spill] sm:$0xff]  ;;  %v11510_v22 = vadd.f32 1.0, %v9025_v37  ;;  %v8321_v37 = vor.u32 %v8761_v36, %v8318_v31  ;;  %v14801_v31 = vld [vmem:[#allocation57_spill] sm:$0xff]  ;;  %vm11669_vm3 = vmor %vm5154_vm14, %vm5155_vm0 }
 0x73e   : > { %v8412_v34 = vmul.f32 -1.442695, %v14796_v29  ;;  %4194 = vmatmul.bf16.gmra.mxu1 %v10732_v40  ;;  %4412 = vmatpush.bf16.msrb.mxu2 %v8097_v35  ;;  %v9027_v40 = vpop.eup %9026  ;;  %v8689_v57 = vld [vmem:[%s10016_s12 + $0x514] sm:$0xf]  ;;  %v11534_v36 = vsel %vm11451_vm4, %v5071_v39, %v5067_v55  ;;  %v11548_v39 = vor.u32 1.1754944e-38, %v5160_v50  ;;  %vm5184_vm4 = vweird.f32 %v11444_v28 }
 0x73f   : > { %v4049_v23 = vadd.f32 %v11376_v42, %v4000_v1  ;;  %v11499_v42 = vmul.f32 %v11470_v46, %v11407_v9  ;;  %v9029_v10 = vpop.eup %9028  ;;  %v8030_v35 = vld [vmem:[%s10016_s12 + $0x530] sm:$0xf0]  ;;  %14800 = vst [vmem:[#allocation56_spill] sm:$0xff] %v11534_v36  ;;  %4462 = vmatpush.bf16.msrb.mxu3 %v8321_v37  ;;  %v8414_v37 = vmul.f32 -1.442695, %v14801_v31  ;;  %vm5214_vm6 = vweird.f32 %v11510_v22 }
 0x740   : > { %9032 = vpow2.f32 %v8412_v34  ;;  %v11530_v34 = vsel %vm11446_vm2, %v11440_v5, %v5037_v61  ;;  %v8033_v5 = vor.u32 %v8689_v57, %v8030_v35  ;;  %v5092_v61 = vmul.f32 %v11442_v13, %v5091_v43  ;;  %v14802_v57 = vld [vmem:[#allocation58_spill] sm:$0xff]  ;;  %v8577_v50 = vld [vmem:[%s10016_s12 + $0x194] sm:$0xf]  ;;  %vm11649_vm2 = vmor %vm5124_vm10, %vm5125_vm11 }
 0x741   : > { %v11501_v32 = vpop.f32.mrf.mxu2  ;;  %v11513_v1 = vadd.f32 %v11382_v12, %v4049_v23  ;;  %v5121_v23 = vsub.f32 1.0, %v5120_v30  ;;  %v5151_v15 = vsub.f32 1.0, %v11499_v42  ;;  %9034 = vrcp.f32 %v11510_v22  ;;  %v7838_v31 = vld [vmem:[%s10016_s12 + $0x3b0] sm:$0xf0] }
 0x742   : > { %v3952_v33 = vpop.f32.mrf.mxu0  ;;  %4413 = vmatpush.bf16.msrb.mxu2 %v8065_v49  ;;  %v11539_v30 = vadd.f32 1.0, %v9027_v40  ;;  %v5190_v40 = vand.u32 2147483648, %v11444_v28  ;;  %v11551_v55 = vadd.f32 1.0, %v9029_v10  ;;  %v8416_v43 = vmul.f32 -1.442695, %v14802_v57 }
 0x743   : > { %14799 = vst [vmem:[#allocation55_spill] sm:$0xff] %v11513_v1  ;;  %v11515_v29 = vpop.f32.mrf.mxu3  ;;  %v11536_v44 = vpop.eup %9030  ;;  %4253 = vmatmul.bf16.gmra.mxu2 %v10808_v11  ;;  %v7582_v49 = vld [vmem:[%s10016_s12 + $0x1b0] sm:$0xf0] }
 0x744   : > { %v4001_v51 = vpop.f32.mrf.mxu1  ;;  %4302 = vmatmul.bf16.gmra.mxu3 %v10810_v18  ;;  %v11557_v35 = vmul.f32 %v11536_v44, %v11444_v28  ;;  %9036 = vrcp.f32 %v11539_v30  ;;  %v8681_v1 = vld [vmem:[%s10016_s12 + $0x4d4] sm:$0xf]  ;;  %vm5185_vm5 = vweird.f32 %v11536_v44  ;;  %vm5244_vm11 = vweird.f32 %v11539_v30 }
 0x745   : > { %v4002_v42 = vadd.f32 %v4001_v51, %v3952_v33  ;;  %v8289_v51 = vor.u32 %v8753_v24, %v8286_v7  ;;  %v7585_v24 = vor.u32 %v8577_v50, %v7582_v49  ;;  %v8641_v7 = vld [vmem:[%s10016_s12 + $0x394] sm:$0xf]  ;;  %9038 = vpow2.f32 %v8414_v37  ;;  %vm11768_vm8 = vmor %vm5184_vm4, %vm5185_vm5 }
 0x746   : > { %4414 = vmatpush.bf16.msrb.mxu2 %v8033_v5  ;;  %v9033_v10 = vpop.eup %9032  ;;  %v5152_v5 = vmul.f32 %v11470_v46, %v5151_v15  ;;  %v7841_v18 = vor.u32 %v8641_v7, %v7838_v31  ;;  %v7998_v11 = vld [vmem:[%s10016_s12 + $0x4f0] sm:$0xf0]  ;;  %v14804_v15 = vand.u32 2147483647, %v11395_v17  ;;  %v11598_v7 = vor.u32 1.1754944e-38, %v5190_v40 }
 0x747   : > { %v4051_v33 = vadd.f32 %v11391_v6, %v4002_v42  ;;  %v5122_v6 = vmul.f32 %v11455_v21, %v5121_v23  ;;  %4463 = vmatpush.bf16.msrb.mxu3 %v8289_v51  ;;  %v11580_v23 = vadd.f32 %v11442_v13, %v5092_v61  ;;  %4314 = vmatpush.bf16.msra.mxu0 %v7585_v24  ;;  %v14807_v61 = vand.u32 2147483647, %v11404_v2  ;;  %v7550_v24 = vld [vmem:[%s10016_s12 + $0x170] sm:$0xf0] }
 0x748   : > { %v8001_v49 = vor.u32 %v8681_v1, %v7998_v11  ;;  %vm11588_vm12 = vcmp.eq.f32.partialorder %v14804_v15, 8.507059e+37  ;;  %v5181_v37 = vsub.f32 1.0, %v11557_v35  ;;  %4363 = vmatpush.bf16.msra.mxu1 %v7841_v18  ;;  %v8569_v1 = vld [vmem:[%s10016_s12 + $0x154] sm:$0xf]  ;;  %v14810_v15 = vand.u32 2147483647, %v11407_v9 }
 0x749   : > { %v11562_v12 = vpop.f32.mrf.mxu2  ;;  %v11568_v42 = vadd.f32 %v11402_v19, %v4051_v33  ;;  %v11584_v19 = vpop.eup %9034  ;;  %v8257_v33 = vor.u32 %v8745_v27, %v8254_v63  ;;  %vm11594_vm13 = vcmp.eq.f32.partialorder %v14807_v61, 8.507059e+37  ;;  %v11601_v63 = vadd.f32 1.0, %v9033_v10  ;;  %v8633_v10 = vld [vmem:[%s10016_s12 + $0x354] sm:$0xf] }
 0x74a   : > { %v3955_v27 = vpop.f32.mrf.mxu0  ;;  %v11606_v31 = vadd.f32 %v11455_v21, %v5122_v6  ;;  %vm11611_vm15 = vcmp.eq.f32.partialorder %v14810_v15, 8.507059e+37  ;;  %9040 = vrcp.f32 %v11551_v55  ;;  %v7806_v18 = vld [vmem:[%s10016_s12 + $0x370] sm:$0xf0]  ;;  %4415 = vmatpush.bf16.msrb.mxu2 %v8001_v49  ;;  %v11620_v6 = vadd.f32 %v11470_v46, %v5152_v5 }
 0x74b   : > { %14803 = vst [vmem:[#allocation57_spill] sm:$0xff] %v11568_v42  ;;  %v11572_v57 = vpop.f32.mrf.mxu3  ;;  %4464 = vmatpush.bf16.msrb.mxu3 %v8257_v33  ;;  %v8673_v61 = vld [vmem:[%s10016_s12 + $0x494] sm:$0xf]  ;;  %v11625_v15 = vmul.f32 %v11584_v19, %v11510_v22  ;;  %9042 = vpow2.f32 %v8416_v43  ;;  %v14813_v42 = vld [vmem:[#allocation59_spill] sm:$0xff]  ;;  %v11638_v33 = vpop.eup %9036  ;;  %vm5215_vm10 = vweird.f32 %v11584_v19  ;;  %vm5274_vm0 = vweird.f32 %v11551_v55 }
 0x74c   : > { %v4004_v11 = vpop.f32.mrf.mxu1  ;;  %v8418_v36 = vmul.f32 -1.442695, %v14813_v42  ;;  %v8737_v49 = vld [vmem:[%s10016_s12 + $0x694] sm:$0xf]  ;;  %4150 = vmatmul.bf16.gmra.mxu0 %v10752_v60  ;;  %v7809_v42 = vor.u32 %v8633_v10, %v7806_v18  ;;  %v5097_v10 = vsel %vm11634_vm1, %v11442_v13, %v11580_v23  ;;  %v5127_v2 = vsel %vm11649_vm2, %v11455_v21, %v11606_v31 }
 0x74d   : > { %v4005_v35 = vadd.f32 %v4004_v11, %v3955_v27  ;;  %v7553_v27 = vor.u32 %v8569_v1, %v7550_v24  ;;  %v7966_v11 = vld [vmem:[%s10016_s12 + $0x4b0] sm:$0xf0]  ;;  %9044 = vrcp.f32 %v11601_v63  ;;  %v11689_v5 = vmul.f32 %v11638_v33, %v11539_v30 }
 0x74e   : > { %4199 = vmatmul.bf16.gmra.mxu1 %v10754_v8  ;;  %v7969_v1 = vor.u32 %v8673_v61, %v7966_v11  ;;  %v8222_v24 = vld [vmem:[%s10016_s12 + $0x6b0] sm:$0xf0]  ;;  %v5218_v61 = vand.u32 2147483647, %v11510_v22  ;;  %9046 = vpow2.f32 %v8418_v36  ;;  %vm5304_vm5 = vweird.f32 %v11601_v63 }
 0x74f   : > { %v4054_v43 = vadd.f32 %v11421_v54, %v4005_v35  ;;  %4315 = vmatpush.bf16.msra.mxu0 %v7553_v27  ;;  %v8561_v54 = vld [vmem:[%s10016_s12 + $0x114] sm:$0xf]  ;;  %v8225_v8 = vor.u32 %v8737_v49, %v8222_v24  ;;  %v9039_v27 = vpop.eup %9038  ;;  %4364 = vmatpush.bf16.msra.mxu1 %v7809_v42  ;;  %v5157_v49 = vsel %vm11669_vm3, %v11470_v46, %v11620_v6  ;;  %9048 = vpow2.f32 %v8420_v25 }
 0x750   : > { %v7518_v35 = vld [vmem:[%s10016_s12 + $0x130] sm:$0xf0]  ;;  %4416 = vmatpush.bf16.msrb.mxu2 %v7969_v1  ;;  %v5182_v1 = vmul.f32 %v11536_v44, %v5181_v37  ;;  %v11695_v17 = vpop.eup %9040  ;;  %v11705_v37 = vsel %vm11588_vm12, %v11508_v14, %v5097_v10  ;;  %v11710_v25 = vsel %vm11594_vm13, %v11521_v26, %v5127_v2  ;;  %v11720_v14 = vsel %vm11611_vm15, %v11548_v39, %v5157_v49  ;;  %vm11813_vm13 = vmor %vm5214_vm6, %vm5215_vm10 }
 0x751   : > { %v11653_v53 = vpop.f32.mrf.mxu2  ;;  %v11676_v13 = vadd.f32 %v11431_v3, %v4054_v43  ;;  %v7521_v23 = vor.u32 %v8561_v54, %v7518_v35  ;;  %v8625_v9 = vld [vmem:[%s10016_s12 + $0x314] sm:$0xf]  ;;  %4465 = vmatpush.bf16.msrb.mxu3 %v8225_v8  ;;  %v5211_v54 = vsub.f32 1.0, %v11625_v15  ;;  %v9043_v36 = vpop.eup %9042  ;;  %v11698_v35 = vadd.f32 1.0, %v9039_v27 }
 0x752   : > { %v7774_v31 = vld [vmem:[%s10016_s12 + $0x330] sm:$0xf0]  ;;  %v3957_v8 = vpop.f32.mrf.mxu0  ;;  %v5220_v15 = vand.u32 2147483648, %v11510_v22  ;;  %v5241_v26 = vsub.f32 1.0, %v11689_v5  ;;  %v11729_v2 = vadd.f32 %v11536_v44, %v5182_v1  ;;  %v11741_v1 = vadd.f32 1.0, %v9043_v36  ;;  %v14825_v36 = vld [vmem:[#allocation61_spill] sm:$0xff] }
 0x753   : > { %14821 = vst [vmem:[#allocation58_spill] sm:$0xff] %v11676_v13  ;;  %v11678_v21 = vpop.f32.mrf.mxu3  ;;  %v8665_v11 = vld [vmem:[%s10016_s12 + $0x454] sm:$0xf]  ;;  %v7777_v3 = vor.u32 %v8625_v9, %v7774_v31  ;;  %4316 = vmatpush.bf16.msra.mxu0 %v7521_v23  ;;  %4258 = vmatmul.bf16.gmra.mxu2 %v10834_v59  ;;  %v11732_v39 = vpop.eup %9044  ;;  %9050 = vrcp.f32 %v11698_v35  ;;  %vm11779_vm9 = vcmp.eq.f32.partialorder %v5218_v61, 8.507059e+37  ;;  %vm5245_vm12 = vweird.f32 %v11638_v33 }
 0x754   : > { %v7934_v43 = vld [vmem:[%s10016_s12 + $0x470] sm:$0xf0]  ;;  %v4006_v18 = vpop.f32.mrf.mxu1  ;;  %4307 = vmatmul.bf16.gmra.mxu3 %v10839_v4  ;;  %v5300_v61 = vmul.f32 %v11732_v39, %v11601_v63  ;;  %9052 = vrcp.f32 %v11741_v1  ;;  %vm11843_vm14 = vmor %vm5244_vm11, %vm5245_vm12  ;;  %vm5275_vm1 = vweird.f32 %v11695_v17  ;;  %vm5305_vm4 = vweird.f32 %v11732_v39 }
 0x755   : > { %v8729_v42 = vld [vmem:[%s10016_s12 + $0x654] sm:$0xf]  ;;  %v7937_v46 = vor.u32 %v8665_v11, %v7934_v43  ;;  %v4007_v27 = vadd.f32 %v4006_v18, %v3957_v8  ;;  %4365 = vmatpush.bf16.msra.mxu1 %v7777_v3  ;;  %vm11896_vm3 = vmor %vm5274_vm0, %vm5275_vm1  ;;  %vm5364_vm10 = vweird.f32 %v11741_v1 }
 0x756   : > { %v8190_v24 = vld [vmem:[%s10016_s12 + $0x670] sm:$0xf0]  ;;  %vm11926_vm6 = vmor %vm5304_vm5, %vm5305_vm4 }
 0x757   : > { %v8193_v6 = vor.u32 %v8729_v42, %v8190_v24  ;;  %v8553_v9 = vld [vmem:[%s10016_s12 + $0xd4] sm:$0xf]  ;;  %4417 = vmatpush.bf16.msrb.mxu2 %v7937_v46  ;;  %v4056_v40 = vadd.f32 %v11501_v32, %v4007_v27  ;;  %v5212_v42 = vmul.f32 %v11584_v19, %v5211_v54  ;;  %v9047_v24 = vpop.eup %9046  ;;  %v11739_v46 = vmul.f32 %v11695_v17, %v11551_v55 }
 0x758   : > { %v7486_v31 = vld [vmem:[%s10016_s12 + $0xf0] sm:$0xf0]  ;;  %v11753_v54 = vor.u32 1.1754944e-38, %v5220_v15  ;;  %v9049_v27 = vpop.eup %9048 }
 0x759   : > { %v8617_v23 = vld [vmem:[%s10016_s12 + $0x2d4] sm:$0xf]  ;;  %v7489_v51 = vor.u32 %v8553_v9, %v7486_v31  ;;  %4466 = vmatpush.bf16.msrb.mxu3 %v8193_v6  ;;  %v11743_v8 = vpop.f32.mrf.mxu2  ;;  %v14822_v6 = vand.u32 2147483647, %v11444_v28  ;;  %v5242_v28 = vmul.f32 %v11638_v33, %v5241_v26 }
 0x75a   : > { %v7742_v11 = vld [vmem:[%s10016_s12 + $0x2f0] sm:$0xf0]  ;;  %v3960_v26 = vpop.f32.mrf.mxu0 }
 0x75b   : > { %v8657_v43 = vld [vmem:[%s10016_s12 + $0x414] sm:$0xf]  ;;  %v7745_v49 = vor.u32 %v8617_v23, %v7742_v11  ;;  %4317 = vmatpush.bf16.msra.mxu0 %v7489_v51  ;;  %vm11749_vm7 = vcmp.eq.f32.partialorder %v14822_v6, 8.507059e+37  ;;  %v8422_v23 = vmul.f32 -1.442695, %v14825_v36  ;;  %v11758_v11 = vadd.f32 %v11515_v29, %v4056_v40 }
 0x75c   : > { %v7902_v50 = vld [vmem:[%s10016_s12 + $0x430] sm:$0xf0]  ;;  %v5187_v29 = vsel %vm11768_vm8, %v11536_v44, %v11729_v2  ;;  %v5248_v44 = vand.u32 2147483647, %v11539_v30  ;;  %v5271_v2 = vsub.f32 1.0, %v11739_v46  ;;  %v5250_v46 = vand.u32 2147483648, %v11539_v30  ;;  %4155 = vmatmul.bf16.gmra.mxu0 %v10780_v20 }
 0x75d   : > { %v8721_v10 = vld [vmem:[%s10016_s12 + $0x614] sm:$0xf]  ;;  %v7905_v5 = vor.u32 %v8657_v43, %v7902_v50  ;;  %14826 = vst [vmem:[#allocation59_spill] sm:$0xff] %v11758_v11  ;;  %v11760_v43 = vpop.f32.mrf.mxu3  ;;  %4366 = vmatpush.bf16.msra.mxu1 %v7745_v49  ;;  %v11784_v49 = vadd.f32 1.0, %v9047_v24  ;;  %v4009_v24 = vpop.f32.mrf.mxu1  ;;  %9054 = vpow2.f32 %v8422_v23 }
 0x75e   : > { %v8158_v3 = vld [vmem:[%s10016_s12 + $0x630] sm:$0xf0]  ;;  %4204 = vmatmul.bf16.gmra.mxu1 %v10782_v38  ;;  %v5272_v22 = vmul.f32 %v11695_v17, %v5271_v2  ;;  %vm11861_vm15 = vcmp.eq.f32.partialorder %v5248_v44, 8.507059e+37  ;;  %v14842_v44 = vld [vmem:[#allocation62_spill] sm:$0xff] }
 0x75f   : > { %v8545_v18 = vld [vmem:[%s10016_s12 + $0x94] sm:$0xf]  ;;  %v8161_v9 = vor.u32 %v8721_v10, %v8158_v3  ;;  %v14829_v3 = vld [vmem:[#allocation79_spill] sm:$0xff]  ;;  %4418 = vmatpush.bf16.msrb.mxu2 %v7905_v5  ;;  %v5213_v5 = vadd.f32 %v11584_v19, %v5212_v42  ;;  %v4010_v42 = vadd.f32 %v4009_v24, %v3960_v26 }
 0x760   : > { %v7454_v32 = vld [vmem:[%s10016_s12 + $0xb0] sm:$0xf0]  ;;  %v8426_v6 = vmul.f32 -1.442695, %v14829_v3 }
 0x761   : > { %v7457_v51 = vor.u32 %v8545_v18, %v7454_v32  ;;  %v8609_v50 = vld [vmem:[%s10016_s12 + $0x294] sm:$0xf]  ;;  %4467 = vmatpush.bf16.msrb.mxu3 %v8161_v9  ;;  %v11793_v18 = vadd.f32 1.0, %v9049_v27  ;;  %v5243_v27 = vadd.f32 %v11638_v33, %v5242_v28  ;;  %v4059_v23 = vadd.f32 %v11562_v12, %v4010_v42  ;;  %v11819_v12 = vpop.f32.mrf.mxu2 }
 0x762   : > { %v7710_v10 = vld [vmem:[%s10016_s12 + $0x2b0] sm:$0xf0]  ;;  %9056 = vpow2.f32 %v8426_v6  ;;  %v5301_v28 = vsub.f32 1.0, %v5300_v61 }
 0x763   : > { %v7713_v36 = vor.u32 %v8609_v50, %v7710_v10  ;;  %4318 = vmatpush.bf16.msra.mxu0 %v7457_v51  ;;  %v8537_v32 = vld [vmem:[%s10016_s12 + $0x54] sm:$0xf]  ;;  %v11803_v51 = vpop.eup %9050  ;;  %9058 = vrcp.f32 %v11784_v49  ;;  %4419 = vmatmul.bf16.vlgmr.msrb.gmra.mxu2 %v10706_v47  ;;  %vm5424_vm4 = vweird.f32 %v11793_v18 }
 0x764   : > { %v7422_v9 = vld [vmem:[%s10016_s12 + $0x70] sm:$0xf0]  ;;  %9060 = vrcp.f32 %v11793_v18  ;;  %v5330_v2 = vmul.f32 %v11803_v51, %v11698_v35  ;;  %4468 = vmatmul.bf16.vlgmr.msrb.gmra.mxu3 %v10708_v58  ;;  %vm5335_vm8 = vweird.f32 %v11803_v51 }
 0x765   : > { %4367 = vmatpush.bf16.msra.mxu1 %v7713_v36  ;;  %v8601_v50 = vld [vmem:[%s10016_s12 + $0x254] sm:$0xf]  ;;  %v7425_v15 = vor.u32 %v8537_v32, %v7422_v9  ;;  %v5278_v36 = vand.u32 2147483647, %v11551_v55  ;;  %v5217_v32 = vsel %vm11813_vm13, %v11584_v19, %v5213_v5  ;;  %v11828_v9 = vadd.f32 %v11572_v57, %v4059_v23  ;;  %v11830_v42 = vpop.f32.mrf.mxu3  ;;  %v11848_v5 = vpop.eup %9052 }
 0x766   : > { %v7678_v10 = vld [vmem:[%s10016_s12 + $0x270] sm:$0xf0]  ;;  %v5280_v57 = vand.u32 2147483648, %v11551_v55  ;;  %v11859_v30 = vsel %vm11779_vm9, %v11753_v54, %v5217_v32  ;;  %v5302_v54 = vmul.f32 %v11732_v39, %v5301_v28  ;;  %v5310_v28 = vand.u32 2147483648, %v11601_v63 }
 0x767   : > { %v7681_v3 = vor.u32 %v8601_v50, %v7678_v10  ;;  %4319 = vmatpush.bf16.msra.mxu0 %v7425_v15  ;;  %v8529_v26 = vld [vmem:[%s10016_s12 + $0x14] sm:$0xf]  ;;  %14834 = vst [vmem:[#allocation60_spill] sm:$0xff] %v11828_v9  ;;  %v11837_v15 = vsel %vm11749_vm7, %v11598_v7, %v5187_v29  ;;  %v5247_v7 = vsel %vm11843_vm14, %v11638_v33, %v5243_v27  ;;  %v9055_v29 = vpop.eup %9054  ;;  %vm11868_vm2 = vcmp.eq.f32.partialorder %v5278_v36, 8.507059e+37 }
 0x768   : > { %v7390_v24 = vld [vmem:[%s10016_s12 + $0x30] sm:$0xf0]  ;;  %v5331_v36 = vsub.f32 1.0, %v5330_v2  ;;  %v11883_v19 = vadd.f32 1.0, %v9055_v29  ;;  %v5308_v2 = vand.u32 2147483647, %v11601_v63  ;;  %vm5334_vm9 = vweird.f32 %v11698_v35 }
 0x769   : > { %4368 = vmatpush.bf16.msra.mxu1 %v7681_v3  ;;  %v7393_v61 = vor.u32 %v8529_v26, %v7390_v24  ;;  %v8593_v50 = vld [vmem:[%s10016_s12 + $0x214] sm:$0xf]  ;;  %v5251_v26 = vor.u32 1.1754944e-38, %v5250_v46  ;;  %v9057_v24 = vpop.eup %9056  ;;  %v8424_v46 = vmul.f32 -1.442695, %v14842_v44  ;;  %v5370_v9 = vand.u32 2147483648, %v11741_v1  ;;  %vm11973_vm11 = vmor %vm5334_vm9, %vm5335_vm8 }
 0x76a   : > { %v7646_v10 = vld [vmem:[%s10016_s12 + $0x230] sm:$0xf0]  ;;  %v11873_v40 = vpop.eup %9058  ;;  %vm11930_vm7 = vcmp.eq.f32.partialorder %v5308_v2, 8.507059e+37  ;;  %v5338_v33 = vand.u32 2147483647, %v11698_v35  ;;  %vm5365_vm14 = vweird.f32 %v11848_v5  ;;  %vm5454_vm8 = vweird.f32 %v11883_v19 }
 0x76b   : > { %v14837_v23 = vld [vmem:[#allocation80_spill] sm:$0xff]  ;;  %v7649_v31 = vor.u32 %v8593_v50, %v7646_v10  ;;  %v4011_v50 = vpop.f32.mrf.mxu1  ;;  %4320 = vmatpush.bf16.msra.mxu0 %v7393_v61  ;;  %v5273_v10 = vadd.f32 %v11695_v17, %v5272_v22  ;;  %v11879_v32 = vsel %vm11861_vm15, %v5251_v26, %v5247_v7  ;;  %v5281_v22 = vor.u32 1.1754944e-38, %v5280_v57  ;;  %v11881_v61 = vpop.eup %9060  ;;  %vm12011_vm1 = vmor %vm5364_vm10, %vm5365_vm14 }
 0x76c   : > { %v8428_v3 = vmul.f32 -1.442695, %v14837_v23  ;;  %v3962_v23 = vpop.f32.mrf.mxu0  ;;  %v11903_v7 = vpop.f32.mrf.mxu2  ;;  %v5420_v55 = vmul.f32 %v11881_v61, %v11793_v18  ;;  %4160 = vmatmul.bf16.gmra.mxu0 %v10879_v16  ;;  %vm11977_vm12 = vcmp.eq.f32.partialorder %v5338_v33, 8.507059e+37  ;;  %vm5395_vm15 = vweird.f32 %v11873_v40  ;;  %v14906_v58 = vld [vmem:[#allocation44_spill] sm:$0xff] }
 0x76d   : > { %v4012_v27 = vadd.f32 %v4011_v50, %v3962_v23  ;;  %4369 = vmatpush.bf16.msra.mxu1 %v7649_v31  ;;  %v5360_v23 = vmul.f32 %v11848_v5, %v11741_v1  ;;  %v11889_v50 = vadd.f32 1.0, %v9057_v24  ;;  %v5277_v29 = vsel %vm11896_vm3, %v11695_v17, %v5273_v10  ;;  %v11915_v26 = vpop.f32.mrf.mxu3  ;;  %v14846_v24 = vld [vmem:[#allocation81_spill] sm:$0xff] }
 0x76e   : > { %9062 = vpow2.f32 %v8428_v3  ;;  %v5390_v3 = vmul.f32 %v11873_v40, %v11784_v49  ;;  %v8430_v44 = vmul.f32 -1.442695, %v14846_v24  ;;  %v5311_v17 = vor.u32 1.1754944e-38, %v5310_v28  ;;  %4209 = vmatmul.bf16.gmra.mxu1 %v10881_v52 }
 0x76f   : > { %v4061_v31 = vadd.f32 %v11653_v53, %v4012_v27  ;;  %v5303_v53 = vadd.f32 %v11732_v39, %v5302_v54  ;;  %9064 = vpow2.f32 %v8424_v46  ;;  %v5332_v10 = vmul.f32 %v11803_v51, %v5331_v36 }
 0x770   : > { %9066 = vrcp.f32 %v11883_v19  ;;  %v5361_v54 = vsub.f32 1.0, %v5360_v23  ;;  %v11924_v46 = vsel %vm11868_vm2, %v5281_v22, %v5277_v29  ;;  %v5340_v22 = vand.u32 2147483648, %v11698_v35  ;;  %v14851_v29 = vld [vmem:[#allocation63_spill] sm:$0xff] }
 0x771   : > { %v11913_v6 = vadd.f32 %v11678_v21, %v4061_v31  ;;  %9068 = vrcp.f32 %v11889_v50  ;;  %v5391_v31 = vsub.f32 1.0, %v5390_v3  ;;  %v5307_v36 = vsel %vm11926_vm6, %v11732_v39, %v5303_v53 }
 0x772   : > { %v5421_v23 = vsub.f32 1.0, %v5420_v55  ;;  %v8395_v24 = vmul.f32 -1.442695, %v14851_v29  ;;  %9070 = vpow2.f32 %v8430_v44  ;;  %v11942_v2 = vadd.f32 %v11803_v51, %v5332_v10 }
 0x773   : > { %14845 = vst [vmem:[#allocation61_spill] sm:$0xff] %v11913_v6  ;;  %v4014_v57 = vpop.f32.mrf.mxu1  ;;  %v5368_v3 = vand.u32 2147483647, %v11741_v1  ;;  %v5362_v55 = vmul.f32 %v11848_v5, %v5361_v54  ;;  %4424 = vmatmul.bf16.gmra.mxu2 %v10722_v48  ;;  %vm5425_vm0 = vweird.f32 %v11881_v61  ;;  %vm5394_vm2 = vweird.f32 %v11784_v49 }
 0x774   : > { %v9063_v27 = vpop.eup %9062  ;;  %v3965_v28 = vpop.f32.mrf.mxu0  ;;  %9072 = vpow2.f32 %v8395_v24  ;;  %v5371_v24 = vor.u32 1.1754944e-38, %v5370_v9  ;;  %4473 = vmatmul.bf16.gmra.mxu3 %v10724_v56  ;;  %vm12023_vm3 = vmor %vm5394_vm2, %vm5395_vm15  ;;  %v5428_v1 = vand.u32 2147483647, %v11793_v18 }
 0x775   : > { %v4015_v6 = vadd.f32 %v4014_v57, %v3965_v28  ;;  %v9065_v21 = vpop.eup %9064  ;;  %v11946_v39 = vadd.f32 1.0, %v9063_v27  ;;  %v11955_v10 = vpop.f32.mrf.mxu2  ;;  %v11959_v28 = vsel %vm11930_vm7, %v5311_v17, %v5307_v36  ;;  %v5341_v27 = vor.u32 1.1754944e-38, %v5340_v22  ;;  %v14852_v57 = vld [vmem:[#allocation82_spill] sm:$0xff]  ;;  %vm12039_vm5 = vmor %vm5424_vm4, %vm5425_vm0 }
 0x776   : > { %v11953_v44 = vpop.eup %9066  ;;  %v8432_v35 = vmul.f32 -1.442695, %v14852_v57  ;;  %v11969_v29 = vpop.f32.mrf.mxu3  ;;  %v11982_v36 = vadd.f32 1.0, %v9065_v21  ;;  %vm11988_vm13 = vcmp.eq.f32.partialorder %v5368_v3, 8.507059e+37  ;;  %v5363_v33 = vadd.f32 %v11848_v5, %v5362_v55 }
 0x777   : > { %v4064_v53 = vadd.f32 %v11743_v8, %v4015_v6  ;;  %v5392_v8 = vmul.f32 %v11873_v40, %v5391_v31  ;;  %v11963_v6 = vpop.eup %9068  ;;  %v5422_v31 = vmul.f32 %v11881_v61, %v5421_v23  ;;  %9074 = vrcp.f32 %v11946_v39 }
 0x778   : > { %v5400_v23 = vand.u32 2147483648, %v11784_v49  ;;  %v9071_v21 = vpop.eup %9070  ;;  %9076 = vpow2.f32 %v8432_v35  ;;  %v5398_v35 = vand.u32 2147483647, %v11784_v49  ;;  %v5430_v17 = vand.u32 2147483648, %v11793_v18  ;;  %v14866_v18 = vld [vmem:[#allocation83_spill] sm:$0xff] }
 0x779   : > { %v11967_v54 = vadd.f32 %v11760_v43, %v4064_v53  ;;  %v5337_v43 = vsel %vm11973_vm11, %v11803_v51, %v11942_v2  ;;  %v5450_v53 = vmul.f32 %v11953_v44, %v11883_v19  ;;  %v5638_v51 = vmul.f32 %v11963_v6, %v11889_v50 }
 0x77a   : > { %v5393_v57 = vadd.f32 %v11873_v40, %v5392_v8  ;;  %v5423_v55 = vadd.f32 %v11881_v61, %v5422_v31  ;;  %9078 = vrcp.f32 %v11982_v36  ;;  %v9073_v31 = vpop.eup %9072  ;;  %vm5399_vm6 = vcmp.eq.f32.partialorder %v5398_v35, 8.507059e+37 }
 0x77b   : > { %14853 = vst [vmem:[#allocation79_spill] sm:$0xff] %v11967_v54  ;;  %v4016_v3 = vpop.f32.mrf.mxu1  ;;  %v5451_v11 = vsub.f32 1.0, %v5450_v53  ;;  %v5639_v13 = vsub.f32 1.0, %v5638_v51  ;;  %v8434_v53 = vmul.f32 -1.442695, %v14866_v18  ;;  %v12054_v54 = vadd.f32 1.0, %v9073_v31 }
 0x77c   : > { %v3967_v2 = vpop.f32.mrf.mxu0  ;;  %vm5429_vm7 = vcmp.eq.f32.partialorder %v5428_v1, 8.507059e+37  ;;  %v5460_v1 = vand.u32 2147483648, %v11883_v19  ;;  %4321 = vmatmul.bf16.vlgmr.msra.gmra.mxu0 %v10634_v41  ;;  %vm5455_vm9 = vweird.f32 %v11953_v44  ;;  %vm5643_vm10 = vweird.f32 %v11963_v6 }
 0x77d   : > { %v4017_v9 = vadd.f32 %v4016_v3, %v3967_v2  ;;  %v12018_v2 = vadd.f32 1.0, %v9071_v21  ;;  %v12029_v49 = vpop.f32.mrf.mxu2  ;;  %v5367_v21 = vsel %vm12011_vm1, %v11848_v5, %v5363_v33  ;;  %v12043_v56 = vpop.eup %9074  ;;  %v5401_v5 = vor.u32 1.1754944e-38, %v5400_v23 }
 0x77e   : > { %v12049_v48 = vpop.f32.mrf.mxu3  ;;  %v12058_v33 = vsel %vm11977_vm12, %v5341_v27, %v5337_v43  ;;  %v9077_v8 = vpop.eup %9076  ;;  %v5668_v27 = vmul.f32 %v12043_v56, %v11946_v39  ;;  %v5452_v35 = vmul.f32 %v11953_v44, %v5451_v11  ;;  %4370 = vmatmul.bf16.vlgmr.msra.gmra.mxu1 %v10636_v45  ;;  %v5490_v11 = vand.u32 2147483648, %v11982_v36 }
 0x77f   : > { %v4066_v3 = vadd.f32 %v11819_v12, %v4017_v9  ;;  %v5397_v12 = vsel %vm12023_vm3, %v11873_v40, %v5393_v57  ;;  %v5427_v40 = vsel %vm12039_vm5, %v11881_v61, %v5423_v55  ;;  %v5431_v57 = vor.u32 1.1754944e-38, %v5430_v17  ;;  %v14871_v17 = vld [vmem:[#allocation64_spill] sm:$0xff] }
 0x780   : > { %9080 = vrcp.f32 %v12018_v2  ;;  %v12065_v23 = vsel %vm5399_vm6, %v5401_v5, %v5397_v12  ;;  %v5640_v61 = vmul.f32 %v11963_v6, %v5639_v13  ;;  %v8397_v22 = vmul.f32 -1.442695, %v14871_v17 }
 0x781   : > { %v12047_v51 = vadd.f32 %v11830_v42, %v4066_v3  ;;  %v12063_v42 = vsel %vm11988_vm13, %v5371_v24, %v5367_v21  ;;  %14869 = vst [vmem:[#allocation81_spill] sm:$0xff] %v12065_v23  ;;  %v12067_v3 = vpop.eup %9078  ;;  %v12072_v55 = vsel %vm5429_vm7, %v5431_v57, %v5427_v40  ;;  %9082 = vpow2.f32 %v8434_v53  ;;  %v14872_v57 = vld [vmem:[#allocation84_spill] sm:$0xff]  ;;  %vm12130_vm13 = vmor %vm5454_vm8, %vm5455_vm9 }
 0x782   : > { %14868 = vst [vmem:[#allocation62_spill] sm:$0xff] %v12063_v42  ;;  %9084 = vrcp.f32 %v12054_v54  ;;  %v12078_v31 = vadd.f32 1.0, %v9077_v8  ;;  %v5458_v13 = vand.u32 2147483647, %v11883_v19  ;;  %v5480_v21 = vmul.f32 %v12067_v3, %v11982_v36 }
 0x783   : > { %14867 = vst [vmem:[#allocation80_spill] sm:$0xff] %v12047_v51  ;;  %v4175_v43 = vpop.f32.mrf.mxu1  ;;  %v5669_v9 = vsub.f32 1.0, %v5668_v27  ;;  %v5641_v18 = vadd.f32 %v11963_v6, %v5640_v61  ;;  %v12094_v5 = vadd.f32 %v11953_v44, %v5452_v35  ;;  %9086 = vpow2.f32 %v8397_v22  ;;  %4429 = vmatmul.bf16.gmra.mxu2 %v10744_v62 }
 0x784   : > { %v4126_v63 = vpop.f32.mrf.mxu0  ;;  %14870 = vst [vmem:[#allocation63_spill] sm:$0xff] %v12072_v55  ;;  %v8436_v8 = vmul.f32 -1.442695, %v14872_v57  ;;  %vm5642_vm11 = vweird.f32 %v11889_v50  ;;  %9088 = vrcp.f32 %v12078_v31  ;;  %v5646_v61 = vand.u32 2147483647, %v11889_v50  ;;  %v14875_v57 = vld [vmem:[#allocation65_spill] sm:$0xff]  ;;  %4478 = vmatmul.bf16.gmra.mxu3 %v10746_v0 }
 0x785   : > { %v4176_v24 = vadd.f32 %v4175_v43, %v4126_v63  ;;  %v12091_v53 = vpop.f32.mrf.mxu2  ;;  %v12106_v27 = vor.u32 1.1754944e-38, %v5460_v1  ;;  %v5481_v17 = vsub.f32 1.0, %v5480_v21  ;;  %vm12110_vm12 = vmor %vm5642_vm11, %vm5643_vm10  ;;  %v8399_v51 = vmul.f32 -1.442695, %v14875_v57 }
 0x786   : > { %v12096_v40 = vpop.eup %9080  ;;  %v12101_v43 = vpop.f32.mrf.mxu3  ;;  %v5645_v21 = vsel %vm12110_vm12, %v11963_v6, %v5641_v18  ;;  %vm12134_vm14 = vcmp.eq.f32.partialorder %v5458_v13, 8.507059e+37  ;;  %v5457_v6 = vsel %vm12130_vm13, %v11953_v44, %v12094_v5  ;;  %vm5484_vm15 = vweird.f32 %v11982_v36 }
 0x787   : > { %v4225_v12 = vadd.f32 %v11903_v7, %v4176_v24  ;;  %v5648_v7 = vand.u32 2147483648, %v11889_v50  ;;  %v9083_v35 = vpop.eup %9082  ;;  %v12115_v24 = vor.u32 1.1754944e-38, %v5490_v11  ;;  %v5670_v50 = vmul.f32 %v12043_v56, %v5669_v9 }
 0x788   : > { %v5698_v1 = vmul.f32 %v12096_v40, %v12018_v2  ;;  %v12144_v19 = vadd.f32 1.0, %v9083_v35  ;;  %vm5647_vm0 = vcmp.eq.f32.partialorder %v5646_v61, 8.507059e+37  ;;  %vm5485_vm1 = vweird.f32 %v12067_v3 }
 0x789   : > { %v4274_v63 = vadd.f32 %v11915_v26, %v4225_v12  ;;  %v12117_v12 = vpop.eup %9084  ;;  %v5649_v9 = vor.u32 1.1754944e-38, %v5648_v7  ;;  %v5055_v13 = vand.u32 2147483648, %v12054_v54  ;;  %v6757_v7 = vld [vmem:[#allocation4 + $0xb0] sm:$0xff]  ;;  %v5482_v44 = vmul.f32 %v12067_v3, %v5481_v17  ;;  %vm12196_vm6 = vmor %vm5484_vm15, %vm5485_vm1 }
 0x78a   : > { %v9087_v18 = vpop.eup %9086  ;;  %vm5673_vm2 = vweird.f32 %v12043_v56  ;;  %v5699_v61 = vsub.f32 1.0, %v5698_v1  ;;  %v5671_v35 = vadd.f32 %v12043_v56, %v5670_v50  ;;  %vm5672_vm3 = vweird.f32 %v11946_v39 }
 0x78b   : > { %9090 = vtanh.f32 %v4274_v63  ;;  %v4177_v41 = vpop.f32.mrf.mxu1  ;;  %v12153_v5 = vpop.eup %9088  ;;  %v5676_v50 = vand.u32 2147483647, %v11946_v39  ;;  %v12168_v62 = vadd.f32 1.0, %v9087_v18  ;;  %vm12172_vm4 = vmor %vm5672_vm3, %vm5673_vm2  ;;  %v6759_v63 = vld [vmem:[#allocation4 + $0xc0] sm:$0xff]  ;;  %vm5703_vm7 = vweird.f32 %v12096_v40 }
 0x78c   : > { %v4128_v45 = vpop.f32.mrf.mxu0  ;;  %9092 = vpow2.f32 %v8436_v8  ;;  %v5675_v18 = vsel %vm12172_vm4, %v12043_v56, %v5671_v35  ;;  %v14886_v35 = vld [vmem:[#allocation24_spill] sm:$0xff]  ;;  %vm5702_vm8 = vweird.f32 %v12018_v2  ;;  %vm5049_vm10 = vweird.f32 %v12054_v54 }
 0x78d   : > { %v4178_v57 = vadd.f32 %v4177_v41, %v4128_v45  ;;  %v5045_v41 = vmul.f32 %v12117_v12, %v12054_v54  ;;  %v5650_v45 = vsel %vm5647_vm0, %v5649_v9, %v5645_v21  ;;  %9094 = vpow2.f32 %v8399_v51  ;;  %v12157_v22 = vpop.f32.mrf.mxu2  ;;  %v14880_v9 = vld [vmem:[#allocation85_spill] sm:$0xff]  ;;  %4326 = vmatmul.bf16.gmra.mxu0 %v14886_v35  ;;  %vm12230_vm9 = vmor %vm5702_vm8, %vm5703_vm7  ;;  %v6769_v56 = vld [vmem:[#allocation4 + $0x78] sm:$0xff] }
 0x78e   : > { %v5678_v21 = vand.u32 2147483648, %v11946_v39  ;;  %v8438_v26 = vmul.f32 -1.442695, %v14880_v9  ;;  %v12163_v17 = vpop.f32.mrf.mxu3  ;;  %9096 = vrcp.f32 %v12144_v19  ;;  %v6789_v51 = vmul.f32 %v6757_v7, %v5650_v45 }
 0x78f   : > { %v4227_v8 = vadd.f32 %v11955_v10, %v4178_v57  ;;  %v5046_v0 = vsub.f32 1.0, %v5045_v41  ;;  %v5700_v45 = vmul.f32 %v12096_v40, %v5699_v61  ;;  %vm5677_vm5 = vcmp.eq.f32.partialorder %v5676_v50, 8.507059e+37 }
 0x790   : > { %vm5050_vm11 = vweird.f32 %v12117_v12  ;;  %vm5733_vm13 = vweird.f32 %v12153_v5  ;;  %vm5079_vm1 = vweird.f32 %v12168_v62 }
 0x791   : > { %v9091_v11 = vpop.eup %9090  ;;  %v4276_v10 = vadd.f32 %v11969_v29, %v4227_v8  ;;  %v12177_v29 = vadd.f32 %v12067_v3, %v5482_v44  ;;  %v5679_v8 = vor.u32 1.1754944e-38, %v5678_v21  ;;  %v12188_v44 = vsel %vm12134_vm14, %v12106_v27, %v5457_v6  ;;  %v14887_v21 = vld [vmem:[#allocation25_spill] sm:$0xff]  ;;  %vm12291_vm0 = vmor %vm5049_vm10, %vm5050_vm11 }
 0x792   : > { %v6821_v1 = vmul.f32 %v9091_v11, %v11530_v34  ;;  %v9093_v57 = vpop.eup %9092  ;;  %v5728_v34 = vmul.f32 %v12153_v5, %v12078_v31  ;;  %14883 = vst [vmem:[#allocation82_spill] sm:$0xff] %v12188_v44  ;;  %4375 = vmatmul.bf16.gmra.mxu1 %v14887_v21  ;;  %v14893_v44 = vld [vmem:[#allocation40_spill] sm:$0xff]  ;;  %vm5732_vm14 = vweird.f32 %v12078_v31 }
 0x793   : > { %9098 = vtanh.f32 %v4276_v10  ;;  %v4180_v7 = vpop.f32.mrf.mxu1  ;;  %v9095_v9 = vpop.eup %9094  ;;  %v12190_v61 = vadd.f32 1.0, %v9093_v57  ;;  %v5680_v27 = vsel %vm5677_vm5, %v5679_v8, %v5675_v18  ;;  %v14888_v18 = vld [vmem:[#allocation86_spill] sm:$0xff]  ;;  %v5706_v10 = vand.u32 2147483647, %v12018_v2  ;;  %4434 = vmatmul.bf16.gmra.mxu2 %v14893_v44  ;;  %vm12274_vm15 = vmor %vm5732_vm14, %vm5733_vm13  ;;  %v14898_v44 = vld [vmem:[#allocation67_spill] sm:$0xff] }
 0x794   : > { %v6853_v39 = vadd.f32 %v6821_v1, %v6789_v51  ;;  %v4131_v41 = vpop.f32.mrf.mxu0  ;;  %9100 = vpow2.f32 %v8438_v26  ;;  %v12201_v26 = vor.u32 1.1754944e-38, %v5055_v13  ;;  %v12211_v51 = vpop.eup %9096  ;;  %v5729_v13 = vsub.f32 1.0, %v5728_v34 }
 0x795   : > { %v4181_v11 = vadd.f32 %v4180_v7, %v4131_v41  ;;  %9102 = vrcp.f32 %v12168_v62  ;;  %v5701_v1 = vadd.f32 %v12096_v40, %v5700_v45  ;;  %v12215_v50 = vpop.f32.mrf.mxu2  ;;  %v8440_v41 = vmul.f32 -1.442695, %v14888_v18 }
 0x796   : > { %7013 = vst [vmem:[#allocation4 + $0xb0] sm:$0xff] %v6853_v39  ;;  %v5708_v39 = vand.u32 2147483648, %v12018_v2  ;;  %v12222_v8 = vpop.f32.mrf.mxu3  ;;  %9104 = vrcp.f32 %v12190_v61  ;;  %v6791_v34 = vmul.f32 %v6759_v63, %v5680_v27  ;;  %v12238_v27 = vadd.f32 1.0, %v9095_v9 }
 0x797   : > { %v4230_v6 = vadd.f32 %v12029_v49, %v4181_v11  ;;  %v5047_v49 = vmul.f32 %v12117_v12, %v5046_v0  ;;  %v14889_v11 = vld [vmem:[#allocation56_spill] sm:$0xff]  ;;  %v14890_v0 = vld [vmem:[#allocation66_spill] sm:$0xff]  ;;  %v5730_v2 = vmul.f32 %v12153_v5, %v5729_v13  ;;  %vm5707_vm12 = vcmp.eq.f32.partialorder %v5706_v10, 8.507059e+37  ;;  %v14894_v13 = vld [vmem:[#allocation41_spill] sm:$0xff] }
 0x798   : > { %v8401_v21 = vmul.f32 -1.442695, %v14890_v0  ;;  %v5709_v0 = vor.u32 1.1754944e-38, %v5708_v39  ;;  %4483 = vmatmul.bf16.gmra.mxu3 %v14894_v13  ;;  %vm5763_vm2 = vweird.f32 %v12211_v51  ;;  %vm5762_vm5 = vweird.f32 %v12144_v19 }
 0x799   : > { %v9099_v57 = vpop.eup %9098  ;;  %v4279_v7 = vadd.f32 %v12049_v48, %v4230_v6  ;;  %v5758_v48 = vmul.f32 %v12211_v51, %v12144_v19  ;;  %v5705_v6 = vsel %vm12230_vm9, %v12096_v40, %v5701_v1  ;;  %v12252_v35 = vadd.f32 %v12117_v12, %v5047_v49  ;;  %vm12326_vm7 = vmor %vm5762_vm5, %vm5763_vm2 }
 0x79a   : > { %v6823_v45 = vmul.f32 %v9099_v57, %v14889_v11  ;;  %v9101_v55 = vpop.eup %9100  ;;  %v5085_v40 = vand.u32 2147483648, %v12168_v62  ;;  %v5710_v39 = vsel %vm5707_vm12, %v5709_v0, %v5705_v6  ;;  %v5731_v10 = vadd.f32 %v12153_v5, %v5730_v2 }
 0x79b   : > { %9106 = vtanh.f32 %v4279_v7  ;;  %v4182_v18 = vpop.f32.mrf.mxu1  ;;  %v12244_v11 = vpop.eup %9102  ;;  %v12248_v9 = vadd.f32 1.0, %v9101_v55  ;;  %v5759_v1 = vsub.f32 1.0, %v5758_v48  ;;  %v14895_v48 = vld [vmem:[#allocation87_spill] sm:$0xff]  ;;  %v5736_v2 = vand.u32 2147483647, %v12078_v31 }
 0x79c   : > { %v6855_v63 = vadd.f32 %v6823_v45, %v6791_v34  ;;  %v4133_v57 = vpop.f32.mrf.mxu0  ;;  %9108 = vpow2.f32 %v8440_v41  ;;  %v6761_v41 = vld [vmem:[#allocation4 + $0x28] sm:$0xff]  ;;  %v12256_v45 = vpop.eup %9104  ;;  %v5075_v55 = vmul.f32 %v12244_v11, %v12168_v62  ;;  %vm5080_vm4 = vweird.f32 %v12244_v11 }
 0x79d   : > { %v4183_v7 = vadd.f32 %v4182_v18, %v4133_v57  ;;  %9110 = vpow2.f32 %v8401_v21  ;;  %v12263_v49 = vpop.f32.mrf.mxu2  ;;  %v5738_v21 = vand.u32 2147483648, %v12078_v31  ;;  %v6793_v18 = vmul.f32 %v6761_v41, %v5710_v39  ;;  %vm12359_vm10 = vmor %vm5079_vm1, %vm5080_vm4 }
 0x79e   : > { %7015 = vst [vmem:[#allocation4 + $0xc0] sm:$0xff] %v6855_v63  ;;  %9112 = vrcp.f32 %v12238_v27  ;;  %v12269_v57 = vpop.f32.mrf.mxu3  ;;  %v5760_v13 = vmul.f32 %v12211_v51, %v5759_v1  ;;  %v8403_v39 = vmul.f32 -1.442695, %v14898_v44  ;;  %vm5737_vm3 = vcmp.eq.f32.partialorder %v5736_v2, 8.507059e+37  ;;  %v8356_v1 = vld [vmem:[%s10016_s12 + $0x798] sm:$0xf] }
 0x79f   : > { %v4232_v34 = vadd.f32 %v12091_v53, %v4183_v7  ;;  %v8442_v53 = vmul.f32 -1.442695, %v14895_v48  ;;  %9114 = vrcp.f32 %v12248_v9  ;;  %v5788_v48 = vmul.f32 %v12256_v45, %v12190_v61 }
 0x7a0   : > { %v5768_v2 = vand.u32 2147483648, %v12144_v19  ;;  %vm5793_vm9 = vweird.f32 %v12256_v45  ;;  %vm5792_vm11 = vweird.f32 %v12190_v61 }
 0x7a1   : > { %v9107_v63 = vpop.eup %9106  ;;  %v4281_v6 = vadd.f32 %v12101_v43, %v4232_v34  ;;  %v12281_v43 = vor.u32 1.1754944e-38, %v5085_v40  ;;  %v5076_v34 = vsub.f32 1.0, %v5075_v55  ;;  %vm12389_vm12 = vmor %vm5792_vm11, %vm5793_vm9 }
 0x7a2   : > { %v6825_v0 = vmul.f32 %v9107_v63, %v11705_v37  ;;  %v9109_v7 = vpop.eup %9108  ;;  %v5735_v37 = vsel %vm12274_vm15, %v12153_v5, %v5731_v10  ;;  %v5789_v10 = vsub.f32 1.0, %v5788_v48 }
 0x7a3   : > { %9116 = vtanh.f32 %v4281_v6  ;;  %v4185_v63 = vpop.f32.mrf.mxu1  ;;  %v9111_v40 = vpop.eup %9110  ;;  %v5739_v6 = vor.u32 1.1754944e-38, %v5738_v21  ;;  %v12303_v44 = vadd.f32 1.0, %v9109_v7  ;;  %v5077_v48 = vmul.f32 %v12244_v11, %v5076_v34  ;;  %4439 = vmatmul.bf16.gmra.mxu2 %v14906_v58 }
 0x7a4   : > { %v6857_v41 = vadd.f32 %v6825_v0, %v6793_v18  ;;  %v4136_v31 = vpop.f32.mrf.mxu0  ;;  %9118 = vpow2.f32 %v8442_v53  ;;  %v12300_v5 = vpop.eup %9112  ;;  %v6763_v53 = vld [vmem:[#allocation4 + $0xd0] sm:$0xff]  ;;  %v12312_v16 = vadd.f32 1.0, %v9111_v40 }
 0x7a5   : > { %v4186_v55 = vadd.f32 %v4185_v63, %v4136_v31  ;;  %v5740_v21 = vsel %vm5737_vm3, %v5739_v6, %v5735_v37  ;;  %v14901_v0 = vld [vmem:[#allocation26_spill] sm:$0xff]  ;;  %v14902_v31 = vld [vmem:[#allocation27_spill] sm:$0xff]  ;;  %v5761_v63 = vadd.f32 %v12211_v51, %v5760_v13  ;;  %v12310_v52 = vpop.eup %9114  ;;  %9120 = vpow2.f32 %v8403_v39  ;;  %v12315_v7 = vpop.f32.mrf.mxu2 }
 0x7a6   : > { %7017 = vst [vmem:[#allocation4 + $0x28] sm:$0xff] %v6857_v41  ;;  %4331 = vmatmul.bf16.gmra.mxu0 %v14901_v0  ;;  %4380 = vmatmul.bf16.gmra.mxu1 %v14902_v31  ;;  %v5766_v13 = vand.u32 2147483647, %v12144_v19  ;;  %9122 = vrcp.f32 %v12303_v44  ;;  %v6795_v34 = vmul.f32 %v6763_v53, %v5740_v21  ;;  %v5115_v31 = vand.u32 2147483648, %v12238_v27 }
 0x7a7   : > { %v4235_v18 = vadd.f32 %v12157_v22, %v4186_v55  ;;  %v14903_v22 = vld [vmem:[#allocation88_spill] sm:$0xff]  ;;  %v12322_v55 = vpop.f32.mrf.mxu3  ;;  %v5818_v19 = vmul.f32 %v12310_v52, %v12248_v9  ;;  %v5769_v0 = vor.u32 1.1754944e-38, %v5768_v2  ;;  %vm5823_vm2 = vweird.f32 %v12310_v52 }
 0x7a8   : > { %v8444_v37 = vmul.f32 -1.442695, %v14903_v22  ;;  %vm5767_vm8 = vcmp.eq.f32.partialorder %v5766_v13, 8.507059e+37  ;;  %v14907_v13 = vld [vmem:[#allocation45_spill] sm:$0xff]  ;;  %v12376_v47 = vor.u32 1.1754944e-38, %v5115_v31  ;;  %vm5822_vm3 = vweird.f32 %v12248_v9 }
 0x7a9   : > { %v9117_v41 = vpop.eup %9116  ;;  %v4284_v6 = vadd.f32 %v12163_v17, %v4235_v18  ;;  %v5790_v17 = vmul.f32 %v12256_v45, %v5789_v10  ;;  %v5765_v18 = vsel %vm12326_vm7, %v12211_v51, %v5761_v63  ;;  %v12347_v63 = vmul.f32 %v12300_v5, %v12238_v27  ;;  %4488 = vmatmul.bf16.gmra.mxu3 %v14907_v13  ;;  %v8590_v31 = vld [vmem:[%s10016_s12 + $0x1f4] sm:$0xf0]  ;;  %vm12452_vm4 = vmor %vm5822_vm3, %vm5823_vm2 }
 0x7aa   : > { %v6827_v40 = vmul.f32 %v9117_v41, %v11710_v25  ;;  %v9119_v22 = vpop.eup %9118  ;;  %v12341_v41 = vadd.f32 %v12244_v11, %v5077_v48  ;;  %v5770_v48 = vsel %vm5767_vm8, %v5769_v0, %v5765_v18  ;;  %v8388_v0 = vld [vmem:[%s10016_s12 + $0x7d8] sm:$0xf]  ;;  %v5798_v13 = vand.u32 2147483648, %v12190_v61  ;;  %14910 = vst [vmem:[#allocation83_spill] sm:$0xff] %v12376_v47 }
 0x7ab   : > { %9124 = vtanh.f32 %v4284_v6  ;;  %v4187_v53 = vpop.f32.mrf.mxu1  ;;  %v9121_v51 = vpop.eup %9120  ;;  %v12350_v2 = vadd.f32 1.0, %v9119_v22  ;;  %v8718_v6 = vld [vmem:[%s10016_s12 + $0x5f4] sm:$0xf0]  ;;  %v5791_v22 = vadd.f32 %v12256_v45, %v5790_v17 }
 0x7ac   : > { %9126 = vrcp.f32 %v12312_v16  ;;  %v6859_v21 = vadd.f32 %v6827_v40, %v6795_v34  ;;  %v4138_v25 = vpop.f32.mrf.mxu0  ;;  %v5819_v40 = vsub.f32 1.0, %v5818_v19  ;;  %v8782_v18 = vld [vmem:[%s10016_s12 + $0x7f4] sm:$0xf0]  ;;  %v12367_v39 = vpop.eup %9122  ;;  %v12400_v19 = vadd.f32 1.0, %v9121_v51  ;;  %v14934_v51 = vld [vmem:[#allocation91_spill] sm:$0xff] }
 0x7ad   : > { %9128 = vpow2.f32 %v8444_v37  ;;  %v4188_v10 = vadd.f32 %v4187_v53, %v4138_v25  ;;  %v8132_v37 = vld [vmem:[%s10016_s12 + $0x5d8] sm:$0xf]  ;;  %v6765_v25 = vld [vmem:[#allocation4 + $0x58] sm:$0xff]  ;;  %v12370_v58 = vpop.f32.mrf.mxu2  ;;  %v8389_v23 = vor.u32 %v8782_v18, %v8388_v0  ;;  %v5799_v20 = vor.u32 1.1754944e-38, %v5798_v13 }
 0x7ae   : > { %7019 = vst [vmem:[#allocation4 + $0xd0] sm:$0xff] %v6859_v21  ;;  %v8133_v21 = vor.u32 %v8718_v6, %v8132_v37  ;;  %v14911_v17 = vld [vmem:[#allocation89_spill] sm:$0xff]  ;;  %v5796_v6 = vand.u32 2147483647, %v12190_v61  ;;  %v14912_v18 = vld [vmem:[#allocation68_spill] sm:$0xff]  ;;  %9130 = vrcp.f32 %v12350_v2  ;;  %v5848_v47 = vmul.f32 %v12367_v39, %v12303_v44 }
 0x7af   : > { %v4237_v53 = vadd.f32 %v12215_v50, %v4188_v10  ;;  %v8446_v10 = vmul.f32 -1.442695, %v14911_v17  ;;  %v12382_v42 = vpop.f32.mrf.mxu3  ;;  %v8405_v38 = vmul.f32 -1.442695, %v14912_v18  ;;  %v6797_v17 = vmul.f32 %v6765_v25, %v5770_v48  ;;  %4656 = vmatpush.bf16.msra.mxu3 %v8389_v23 }
 0x7b0   : > { %4607 = vmatpush.bf16.msra.mxu2 %v8133_v21  ;;  %v5820_v21 = vmul.f32 %v12310_v52, %v5819_v40  ;;  %v5795_v18 = vsel %vm12389_vm12, %v12256_v45, %v5791_v22  ;;  %vm5797_vm13 = vcmp.eq.f32.partialorder %v5796_v6, 8.507059e+37  ;;  %v14915_v40 = vand.u32 2147483647, %v11982_v36  ;;  %v7620_v6 = vld [vmem:[%s10016_s12 + $0x1d8] sm:$0xf] }
 0x7b1   : > { %v9125_v50 = vpop.eup %9124  ;;  %v4286_v37 = vadd.f32 %v12222_v8, %v4237_v53  ;;  %v14918_v45 = vand.u32 2147483647, %v12054_v54  ;;  %v14921_v13 = vand.u32 2147483647, %v12168_v62  ;;  %v6767_v62 = vld [vmem:[#allocation4 + $0x48] sm:$0xff]  ;;  %vm5109_vm12 = vweird.f32 %v12238_v27 }
 0x7b2   : > { %v12384_v0 = vpop.eup %9126  ;;  %v6829_v8 = vmul.f32 %v9125_v50, %v11720_v14  ;;  %vm12406_vm14 = vcmp.eq.f32.partialorder %v14915_v40, 8.507059e+37  ;;  %v7621_v40 = vor.u32 %v8590_v31, %v7620_v6  ;;  %v5826_v6 = vand.u32 2147483647, %v12248_v9 }
 0x7b3   : > { %v9129_v61 = vpop.eup %9128  ;;  %9132 = vtanh.f32 %v4286_v37  ;;  %v4190_v23 = vpop.f32.mrf.mxu1  ;;  %vm12412_vm15 = vcmp.eq.f32.partialorder %v14918_v45, 8.507059e+37  ;;  %vm12418_vm1 = vcmp.eq.f32.partialorder %v14921_v13, 8.507059e+37  ;;  %v12425_v36 = vmul.f32 %v12384_v0, %v12312_v16  ;;  %v7876_v45 = vld [vmem:[%s10016_s12 + $0x3d8] sm:$0xf] }
 0x7b4   : > { %v6861_v48 = vadd.f32 %v6829_v8, %v6797_v17  ;;  %v4141_v14 = vpop.f32.mrf.mxu0  ;;  %9134 = vpow2.f32 %v8446_v10  ;;  %v5145_v10 = vand.u32 2147483648, %v12312_v16  ;;  %v12427_v54 = vadd.f32 1.0, %v9129_v61  ;;  %v14924_v8 = vld [vmem:[#allocation28_spill] sm:$0xff]  ;;  %v12438_v61 = vpop.eup %9130  ;;  %4509 = vmatpush.bf16.msrb.mxu0 %v7621_v40 }
 0x7b5   : > { %v4191_v25 = vadd.f32 %v4190_v23, %v4141_v14  ;;  %9136 = vpow2.f32 %v8405_v38  ;;  %v5800_v37 = vsel %vm5797_vm13, %v5799_v20, %v5795_v18  ;;  %v14925_v14 = vld [vmem:[#allocation29_spill] sm:$0xff]  ;;  %v5821_v23 = vadd.f32 %v12310_v52, %v5820_v21  ;;  %v14926_v18 = vld [vmem:[#allocation90_spill] sm:$0xff]  ;;  %v12442_v53 = vpop.f32.mrf.mxu2 }
 0x7b6   : > { %7021 = vst [vmem:[#allocation4 + $0x58] sm:$0xff] %v6861_v48  ;;  %4336 = vmatmul.bf16.gmra.mxu0 %v14924_v8  ;;  %4385 = vmatmul.bf16.gmra.mxu1 %v14925_v14  ;;  %v8654_v38 = vld [vmem:[%s10016_s12 + $0x3f4] sm:$0xf0]  ;;  %9138 = vrcp.f32 %v12400_v19  ;;  %v5849_v20 = vsub.f32 1.0, %v5848_v47  ;;  %v8448_v48 = vmul.f32 -1.442695, %v14926_v18  ;;  %vm5883_vm9 = vweird.f32 %v12438_v61 }
 0x7b7   : > { %v4240_v17 = vadd.f32 %v12263_v49, %v4191_v25  ;;  %v7877_v13 = vor.u32 %v8654_v38, %v7876_v45  ;;  %v5828_v25 = vand.u32 2147483648, %v12248_v9  ;;  %v12448_v31 = vpop.f32.mrf.mxu3  ;;  %9140 = vrcp.f32 %v12427_v54  ;;  %v14929_v47 = vld [vmem:[#allocation46_spill] sm:$0xff] }
 0x7b8   : > { %v6799_v45 = vmul.f32 %v6767_v62, %v5800_v37  ;;  %v12463_v40 = vor.u32 1.1754944e-38, %v5145_v10  ;;  %v5850_v37 = vmul.f32 %v12367_v39, %v5849_v20  ;;  %vm5827_vm5 = vcmp.eq.f32.partialorder %v5826_v6, 8.507059e+37  ;;  %4444 = vmatmul.bf16.gmra.mxu2 %v14929_v47  ;;  %v8100_v20 = vld [vmem:[%s10016_s12 + $0x598] sm:$0xf] }
 0x7b9   : > { %v9133_v49 = vpop.eup %9132  ;;  %v4289_v21 = vadd.f32 %v12269_v57, %v4240_v17  ;;  %4558 = vmatpush.bf16.msrb.mxu1 %v7877_v13  ;;  %v5825_v17 = vsel %vm12452_vm4, %v12310_v52, %v5821_v23  ;;  %v5829_v18 = vor.u32 1.1754944e-38, %v5828_v25  ;;  %v5175_v52 = vand.u32 2147483648, %v12400_v19 }
 0x7ba   : > { %v6831_v38 = vmul.f32 %v9133_v49, %v11837_v15  ;;  %v9135_v57 = vpop.eup %9134  ;;  %v5878_v15 = vmul.f32 %v12438_v61, %v12350_v2  ;;  %v14931_v25 = vsel %vm12196_vm6, %v12067_v3, %v12177_v29  ;;  %v14933_v3 = vsel %vm12359_vm10, %v12244_v11, %v12341_v41 }
 0x7bb   : > { %9142 = vtanh.f32 %v4289_v21  ;;  %v9137_v14 = vpop.eup %9136  ;;  %v4192_v49 = vpop.f32.mrf.mxu1  ;;  %v12472_v23 = vadd.f32 1.0, %v9135_v57  ;;  %v8710_v21 = vld [vmem:[%s10016_s12 + $0x5b4] sm:$0xf0]  ;;  %v12485_v6 = vsel %vm12406_vm14, %v12115_v24, %v14931_v25  ;;  %v12505_v24 = vsel %vm12418_vm1, %v12281_v43, %v14933_v3 }
 0x7bc   : > { %9144 = vpow2.f32 %v8448_v48  ;;  %v6863_v62 = vadd.f32 %v6831_v38, %v6799_v45  ;;  %v4143_v13 = vpop.f32.mrf.mxu0  ;;  %v12470_v10 = vpop.eup %9138  ;;  %v14930_v48 = vld [vmem:[#allocation47_spill] sm:$0xff]  ;;  %v14932_v45 = vsel %vm12291_vm0, %v12117_v12, %v12252_v35  ;;  %vm5853_vm6 = vweird.f32 %v12367_v39 }
 0x7bd   : > { %v4193_v9 = vadd.f32 %v4192_v49, %v4143_v13  ;;  %4493 = vmatmul.bf16.gmra.mxu3 %v14930_v48  ;;  %v12495_v38 = vsel %vm12412_vm15, %v12201_v26, %v14932_v45  ;;  %v5830_v29 = vsel %vm5827_vm5, %v5829_v18, %v5825_v17  ;;  %v8101_v35 = vor.u32 %v8710_v21, %v8100_v20  ;;  %v8774_v26 = vld [vmem:[%s10016_s12 + $0x7b4] sm:$0xf0]  ;;  %v12511_v50 = vpop.eup %9140  ;;  %v12515_v41 = vpop.f32.mrf.mxu2 }
 0x7be   : > { %7023 = vst [vmem:[#allocation4 + $0x48] sm:$0xff] %v6863_v62  ;;  %v5879_v34 = vsub.f32 1.0, %v5878_v15  ;;  %v8450_v57 = vmul.f32 -1.442695, %v14934_v51  ;;  %v5851_v11 = vadd.f32 %v12367_v39, %v5850_v37  ;;  %v8357_v43 = vor.u32 %v8774_v26, %v8356_v1  ;;  %v14935_v62 = vld [vmem:[#allocation69_spill] sm:$0xff] }
 0x7bf   : > { %v4242_v12 = vadd.f32 %v12315_v7, %v4193_v9  ;;  %v8407_v13 = vmul.f32 -1.442695, %v14935_v62  ;;  %vm5852_vm0 = vweird.f32 %v12303_v44  ;;  %v5858_v7 = vand.u32 2147483648, %v12303_v44  ;;  %4608 = vmatpush.bf16.msra.mxu2 %v8101_v35  ;;  %v12521_v9 = vpop.f32.mrf.mxu3  ;;  %v8582_v51 = vld [vmem:[%s10016_s12 + $0x1b4] sm:$0xf0] }
 0x7c0   : > { %9146 = vrcp.f32 %v12472_v23  ;;  %v6801_v15 = vmul.f32 %v6769_v56, %v5830_v29  ;;  %v5856_v49 = vand.u32 2147483647, %v12303_v44  ;;  %4657 = vmatpush.bf16.msra.mxu3 %v8357_v43  ;;  %v12526_v20 = vadd.f32 1.0, %v9137_v14  ;;  %vm12530_vm7 = vmor %vm5852_vm0, %vm5853_vm6 }
 0x7c1   : > { %v9143_v22 = vpop.eup %9142  ;;  %v4291_v18 = vadd.f32 %v12322_v55, %v4242_v12  ;;  %v5908_v55 = vmul.f32 %v12511_v50, %v12427_v54  ;;  %v5855_v14 = vsel %vm12530_vm7, %v12367_v39, %v5851_v11  ;;  %v5859_v29 = vor.u32 1.1754944e-38, %v5858_v7  ;;  %v14938_v12 = vld [vmem:[#allocation92_spill] sm:$0xff]  ;;  %v14940_v7 = vld [vmem:[#allocation34_spill] sm:$0xff] }
 0x7c2   : > { %v9145_v17 = vpop.eup %9144  ;;  %v6833_v37 = vmul.f32 %v9143_v22, %v11859_v30  ;;  %v5880_v30 = vmul.f32 %v12438_v61, %v5879_v34  ;;  %v8452_v35 = vmul.f32 -1.442695, %v14938_v12  ;;  %v12546_v26 = vmul.f32 %v12470_v10, %v12400_v19  ;;  %v7588_v34 = vld [vmem:[%s10016_s12 + $0x198] sm:$0xf] }
 0x7c3   : > { %9148 = vtanh.f32 %v4291_v18  ;;  %v4195_v3 = vpop.f32.mrf.mxu1  ;;  %v12541_v56 = vadd.f32 1.0, %v9145_v17  ;;  %vm5857_vm8 = vcmp.eq.f32.partialorder %v5856_v49, 8.507059e+37  ;;  %v14939_v39 = vsub.f32 1.0, %v12347_v63  ;;  %v6771_v22 = vld [vmem:[#allocation4 + $0xe0] sm:$0xff]  ;;  %v14941_v18 = vld [vmem:[#allocation35_spill] sm:$0xff] }
 0x7c4   : > { %9150 = vpow2.f32 %v8450_v57  ;;  %v6865_v44 = vadd.f32 %v6833_v37, %v6801_v15  ;;  %v4146_v45 = vpop.f32.mrf.mxu0  ;;  %v5909_v11 = vsub.f32 1.0, %v5908_v55  ;;  %v5860_v43 = vsel %vm5857_vm8, %v5859_v29, %v5855_v14  ;;  %v7844_v15 = vld [vmem:[%s10016_s12 + $0x398] sm:$0xf] }
 0x7c5   : > { %v4196_v1 = vadd.f32 %v4195_v3, %v4146_v45  ;;  %9152 = vpow2.f32 %v8407_v13  ;;  %v5107_v57 = vmul.f32 %v12300_v5, %v14939_v39  ;;  %v7589_v17 = vor.u32 %v8582_v51, %v7588_v34  ;;  %v8646_v13 = vld [vmem:[%s10016_s12 + $0x3b4] sm:$0xf0]  ;;  %v12563_v21 = vpop.f32.mrf.mxu2 }
 0x7c6   : > { %7025 = vst [vmem:[#allocation4 + $0x78] sm:$0xff] %v6865_v44  ;;  %4341 = vmatmul.bf16.gmra.mxu0 %v14940_v7  ;;  %4390 = vmatmul.bf16.gmra.mxu1 %v14941_v18  ;;  %v12558_v37 = vpop.eup %9146  ;;  %9154 = vrcp.f32 %v12526_v20  ;;  %v5881_v63 = vadd.f32 %v12438_v61, %v5880_v30  ;;  %v7845_v49 = vor.u32 %v8646_v13, %v7844_v15  ;;  %vm5882_vm10 = vweird.f32 %v12350_v2  ;;  %v14945_v13 = vld [vmem:[#allocation48_spill] sm:$0xff]  ;;  %v8758_v18 = vld [vmem:[%s10016_s12 + $0x734] sm:$0xf0] }
 0x7c7   : > { %v4245_v62 = vadd.f32 %v12370_v58, %v4196_v1  ;;  %v5888_v58 = vand.u32 2147483648, %v12350_v2  ;;  %9156 = vrcp.f32 %v12541_v56  ;;  %4510 = vmatpush.bf16.msrb.mxu0 %v7589_v17  ;;  %v12569_v14 = vpop.f32.mrf.mxu3  ;;  %v6803_v3 = vmul.f32 %v6771_v22, %v5860_v43  ;;  %vm12576_vm11 = vmor %vm5882_vm10, %vm5883_vm9 }
 0x7c8   : > { %9158 = vpow2.f32 %v8452_v35  ;;  %v5886_v29 = vand.u32 2147483647, %v12350_v2  ;;  %4559 = vmatpush.bf16.msrb.mxu1 %v7845_v49  ;;  %v12583_v35 = vor.u32 1.1754944e-38, %v5175_v52  ;;  %v5885_v51 = vsel %vm12576_vm11, %v12438_v61, %v5881_v63  ;;  %4449 = vmatmul.bf16.gmra.mxu2 %v14945_v13  ;;  %v8068_v61 = vld [vmem:[%s10016_s12 + $0x558] sm:$0xf] }
 0x7c9   : > { %v9149_v55 = vpop.eup %9148  ;;  %v4294_v44 = vadd.f32 %v12382_v42, %v4245_v62  ;;  %v5910_v42 = vmul.f32 %v12511_v50, %v5909_v11  ;;  %v5889_v22 = vor.u32 1.1754944e-38, %v5888_v58  ;;  %v14944_v62 = vld [vmem:[#allocation93_spill] sm:$0xff]  ;;  %vm5913_vm13 = vweird.f32 %v12511_v50 }
 0x7ca   : > { %v9151_v45 = vpop.eup %9150  ;;  %v6835_v30 = vmul.f32 %v9149_v55, %v11879_v32  ;;  %v5938_v32 = vmul.f32 %v12558_v37, %v12472_v23  ;;  %v8454_v17 = vmul.f32 -1.442695, %v14944_v62  ;;  %vm5887_vm14 = vcmp.eq.f32.partialorder %v5886_v29, 8.507059e+37  ;;  %v8702_v63 = vld [vmem:[%s10016_s12 + $0x574] sm:$0xf0] }
 0x7cb   : > { %9160 = vtanh.f32 %v4294_v44  ;;  %v9153_v34 = vpop.eup %9152  ;;  %v4197_v43 = vpop.f32.mrf.mxu1  ;;  %v12592_v52 = vadd.f32 1.0, %v9151_v45  ;;  %v14946_v55 = vld [vmem:[#allocation49_spill] sm:$0xff]  ;;  %v12603_v58 = vadd.f32 %v12300_v5, %v5107_v57  ;;  %vm5110_vm15 = vweird.f32 %v12300_v5 }
 0x7cc   : > { %v6867_v2 = vadd.f32 %v6835_v30, %v6803_v3  ;;  %v4148_v39 = vpop.f32.mrf.mxu0  ;;  %v12596_v49 = vpop.eup %9154  ;;  %v5890_v45 = vsel %vm5887_vm14, %v5889_v22, %v5885_v51  ;;  %v6773_v3 = vld [vmem:[#allocation4 + $0xa0] sm:$0xff]  ;;  %v5911_v1 = vadd.f32 %v12511_v50, %v5910_v42  ;;  %v5918_v62 = vand.u32 2147483648, %v12427_v54  ;;  %v14947_v22 = vld [vmem:[#allocation70_spill] sm:$0xff]  ;;  %vm12651_vm4 = vmor %vm5109_vm12, %vm5110_vm15 }
 0x7cd   : > { %v4198_v15 = vadd.f32 %v4197_v43, %v4148_v39  ;;  %4498 = vmatmul.bf16.gmra.mxu3 %v14946_v55  ;;  %v12606_v44 = vpop.eup %9156  ;;  %v8069_v39 = vor.u32 %v8702_v63, %v8068_v61  ;;  %v8766_v29 = vld [vmem:[%s10016_s12 + $0x774] sm:$0xf0]  ;;  %v5939_v25 = vsub.f32 1.0, %v5938_v32  ;;  %v12613_v11 = vpop.f32.mrf.mxu2  ;;  %vm5912_vm1 = vweird.f32 %v12427_v54 }
 0x7ce   : > { %7027 = vst [vmem:[#allocation4 + $0xe0] sm:$0xff] %v6867_v2  ;;  %v8324_v2 = vld [vmem:[%s10016_s12 + $0x758] sm:$0xf]  ;;  %v9159_v43 = vpop.eup %9158  ;;  %9162 = vrcp.f32 %v12592_v52  ;;  %v5916_v42 = vand.u32 2147483647, %v12427_v54  ;;  %vm12627_vm2 = vmor %vm5912_vm1, %vm5913_vm13  ;;  %v6805_v61 = vmul.f32 %v6773_v3, %v5890_v45  ;;  %v5968_v54 = vmul.f32 %v12606_v44, %v12541_v56 }
 0x7cf   : > { %v4247_v30 = vadd.f32 %v12442_v53, %v4198_v15  ;;  %v8325_v57 = vor.u32 %v8766_v29, %v8324_v2  ;;  %4609 = vmatpush.bf16.msra.mxu2 %v8069_v39  ;;  %v12620_v51 = vpop.f32.mrf.mxu3  ;;  %v12623_v15 = vmul.f32 -1.442695, %v14947_v22  ;;  %9164 = vpow2.f32 %v8454_v17 }
 0x7d0   : > { %v12641_v39 = vmul.f32 %v12596_v49, %v12526_v20  ;;  %v5919_v17 = vor.u32 1.1754944e-38, %v5918_v62  ;;  %v12644_v2 = vadd.f32 1.0, %v9153_v34  ;;  %vm5917_vm3 = vcmp.eq.f32.partialorder %v5916_v42, 8.507059e+37  ;;  %v7556_v34 = vld [vmem:[%s10016_s12 + $0x158] sm:$0xf] }
 0x7d1   : > { %v9161_v55 = vpop.eup %9160  ;;  %v4296_v53 = vadd.f32 %v12448_v31, %v4247_v30  ;;  %4658 = vmatpush.bf16.msra.mxu3 %v8325_v57  ;;  %v12634_v31 = vadd.f32 1.0, %v9159_v43  ;;  %v5915_v30 = vsel %vm12627_vm2, %v12511_v50, %v5911_v1  ;;  %v5946_v43 = vand.u32 2147483647, %v12472_v23  ;;  %v8574_v62 = vld [vmem:[%s10016_s12 + $0x174] sm:$0xf0] }
 0x7d2   : > { %v6837_v63 = vmul.f32 %v9161_v55, %v11924_v46  ;;  %v5940_v46 = vmul.f32 %v12558_v37, %v5939_v25  ;;  %v5948_v25 = vand.u32 2147483648, %v12472_v23  ;;  %v5920_v1 = vsel %vm5917_vm3, %v5919_v17, %v5915_v30  ;;  %v14953_v30 = vld [vmem:[#allocation39_spill] sm:$0xff] }
 0x7d3   : > { %9166 = vtanh.f32 %v4296_v53  ;;  %v4200_v3 = vpop.f32.mrf.mxu1  ;;  %v14952_v53 = vsub.f32 1.0, %v12425_v36  ;;  %v5969_v32 = vsub.f32 1.0, %v5968_v54  ;;  %v7557_v17 = vor.u32 %v8574_v62, %v7556_v34  ;;  %v8638_v36 = vld [vmem:[%s10016_s12 + $0x374] sm:$0xf0]  ;;  %v14954_v34 = vld [vmem:[#allocation94_spill] sm:$0xff] }
 0x7d4   : > { %v6869_v55 = vadd.f32 %v6837_v63, %v6805_v61  ;;  %v4151_v45 = vpop.f32.mrf.mxu0  ;;  %v12667_v22 = vpop.eup %9162  ;;  %9168 = vrcp.f32 %v12634_v31  ;;  %v6775_v61 = vld [vmem:[#allocation4 + $0xf8] sm:$0xff]  ;;  %vm5943_vm5 = vweird.f32 %v12558_v37  ;;  %v5941_v54 = vadd.f32 %v12558_v37, %v5940_v46 }
 0x7d5   : > { %v4201_v29 = vadd.f32 %v4200_v3, %v4151_v45  ;;  %v12665_v42 = vmul.f32 %v12384_v0, %v14952_v53  ;;  %v9165_v45 = vpop.eup %9164  ;;  %v12678_v12 = vpop.f32.mrf.mxu2  ;;  %vm5942_vm6 = vweird.f32 %v12472_v23  ;;  %v8456_v62 = vmul.f32 -1.442695, %v14954_v34  ;;  %4511 = vmatpush.bf16.msrb.mxu0 %v7557_v17  ;;  %v8292_v23 = vld [vmem:[%s10016_s12 + $0x718] sm:$0xf] }
 0x7d6   : > { %7029 = vst [vmem:[#allocation4 + $0xa0] sm:$0xff] %v6869_v55  ;;  %4346 = vmatmul.bf16.gmra.mxu0 %v10752_v60  ;;  %4395 = vmatmul.bf16.gmra.mxu1 %v14953_v30  ;;  %v7812_v55 = vld [vmem:[%s10016_s12 + $0x358] sm:$0xf]  ;;  %v5949_v13 = vor.u32 1.1754944e-38, %v5948_v25  ;;  %v12689_v46 = vmul.f32 %v12667_v22, %v12592_v52  ;;  %vm12696_vm0 = vmor %vm5942_vm6, %vm5943_vm5  ;;  %v5970_v25 = vmul.f32 %v12606_v44, %v5969_v32  ;;  %vm12701_vm7 = vcmp.eq.f32.partialorder %v5946_v43, 8.507059e+37 }
 0x7d7   : > { %v4250_v63 = vadd.f32 %v12515_v41, %v4201_v29  ;;  %v7813_v53 = vor.u32 %v8638_v36, %v7812_v55  ;;  %v8036_v41 = vld [vmem:[%s10016_s12 + $0x518] sm:$0xf]  ;;  %v12685_v3 = vpop.f32.mrf.mxu3  ;;  %v6807_v55 = vmul.f32 %v6775_v61, %v5920_v1  ;;  %v5978_v1 = vand.u32 2147483648, %v12541_v56 }
 0x7d8   : > { %v8694_v29 = vld [vmem:[%s10016_s12 + $0x534] sm:$0xf0]  ;;  %v5945_v17 = vsel %vm12696_vm0, %v12558_v37, %v5941_v54  ;;  %vm5139_vm8 = vweird.f32 %v12312_v16  ;;  %4454 = vmatmul.bf16.gmra.mxu2 %v10834_v59  ;;  %v14959_v54 = vand.u32 2147483647, %v12238_v27  ;;  %vm5973_vm10 = vweird.f32 %v12606_v44 }
 0x7d9   : > { %v9167_v57 = vpop.eup %9166  ;;  %v4299_v30 = vadd.f32 %v12521_v9, %v4250_v63  ;;  %v8037_v60 = vor.u32 %v8694_v29, %v8036_v41  ;;  %4560 = vmatpush.bf16.msrb.mxu1 %v7813_v53  ;;  %v8004_v32 = vld [vmem:[%s10016_s12 + $0x4d8] sm:$0xf]  ;;  %v5999_v34 = vsub.f32 1.0, %v12689_v46  ;;  %vm5140_vm11 = vweird.f32 %v12384_v0 }
 0x7da   : > { %v6839_v36 = vmul.f32 %v9167_v57, %v11959_v28  ;;  %v8293_v28 = vor.u32 %v8758_v18, %v8292_v23  ;;  %v12706_v57 = vadd.f32 1.0, %v9165_v45  ;;  %v8686_v43 = vld [vmem:[%s10016_s12 + $0x4f4] sm:$0xf0]  ;;  %v5976_v45 = vand.u32 2147483647, %v12541_v56  ;;  %vm12787_vm15 = vmor %vm5139_vm8, %vm5140_vm11 }
 0x7db   : > { %9170 = vtanh.f32 %v4299_v30  ;;  %4610 = vmatpush.bf16.msra.mxu2 %v8037_v60  ;;  %v4202_v41 = vpop.f32.mrf.mxu1  ;;  %v12714_v30 = vpop.eup %9168  ;;  %v6777_v60 = vld [vmem:[#allocation4 + $0x90] sm:$0xff]  ;;  %v8005_v37 = vor.u32 %v8686_v43, %v8004_v32  ;;  %vm12720_vm9 = vcmp.eq.f32.partialorder %v14959_v54, 8.507059e+37  ;;  %v5950_v27 = vsel %vm12701_vm7, %v5949_v13, %v5945_v17  ;;  %v8750_v13 = vld [vmem:[%s10016_s12 + $0x6f4] sm:$0xf0] }
 0x7dc   : > { %v6871_v61 = vadd.f32 %v6839_v36, %v6807_v55  ;;  %v4153_v53 = vpop.f32.mrf.mxu0  ;;  %9172 = vpow2.f32 %v8456_v62  ;;  %4659 = vmatpush.bf16.msra.mxu3 %v8293_v28  ;;  %v7524_v62 = vld [vmem:[%s10016_s12 + $0x118] sm:$0xf]  ;;  %v12731_v36 = vadd.f32 %v12384_v0, %v12665_v42  ;;  %v5971_v46 = vadd.f32 %v12606_v44, %v5970_v25  ;;  %v14962_v32 = vld [vmem:[#allocation95_spill] sm:$0xff] }
 0x7dd   : > { %v4203_v18 = vadd.f32 %v4202_v41, %v4153_v53  ;;  %v8566_v55 = vld [vmem:[%s10016_s12 + $0x134] sm:$0xf0]  ;;  %4503 = vmatmul.bf16.gmra.mxu3 %v10839_v4  ;;  %vm5972_vm12 = vweird.f32 %v12541_v56  ;;  %v12744_v42 = vmul.f32 %v12714_v30, %v12634_v31  ;;  %9174 = vrcp.f32 %v12706_v57  ;;  %v12747_v41 = vpop.f32.mrf.mxu2 }
 0x7de   : > { %7031 = vst [vmem:[#allocation4 + $0xf8] sm:$0xff] %v6871_v61  ;;  %v7525_v9 = vor.u32 %v8566_v55, %v7524_v62  ;;  %v7780_v28 = vld [vmem:[%s10016_s12 + $0x318] sm:$0xf]  ;;  %v8427_v43 = vmul.f32 -1.442695, %v14962_v32  ;;  %vm12760_vm13 = vmor %vm5972_vm12, %vm5973_vm10  ;;  %vm12765_vm14 = vcmp.eq.f32.partialorder %v5976_v45, 8.507059e+37  ;;  %vm6002_vm2 = vweird.f32 %v12592_v52 }
 0x7df   : > { %v4252_v23 = vadd.f32 %v12563_v21, %v4203_v18  ;;  %v8630_v61 = vld [vmem:[%s10016_s12 + $0x334] sm:$0xf0]  ;;  %4611 = vmatpush.bf16.msra.mxu2 %v8005_v37  ;;  %v12754_v54 = vpop.f32.mrf.mxu3  ;;  %vm6003_vm3 = vweird.f32 %v12667_v22  ;;  %vm5169_vm6 = vweird.f32 %v12400_v19  ;;  %vm5170_vm0 = vweird.f32 %v12470_v10 }
 0x7e0   : > { %v8260_v53 = vld [vmem:[%s10016_s12 + $0x6d8] sm:$0xf]  ;;  %v7781_v63 = vor.u32 %v8630_v61, %v7780_v28  ;;  %4512 = vmatpush.bf16.msrb.mxu0 %v7525_v9  ;;  %v5979_v28 = vor.u32 1.1754944e-38, %v5978_v1  ;;  %v6809_v61 = vmul.f32 %v6777_v60, %v5950_v27  ;;  %vm6032_vm7 = vweird.f32 %v12634_v31  ;;  %vm12947_vm10 = vmor %vm5169_vm6, %vm5170_vm0 }
 0x7e1   : > { %v7972_v21 = vld [vmem:[%s10016_s12 + $0x498] sm:$0xf]  ;;  %v9171_v17 = vpop.eup %9170  ;;  %v4301_v18 = vadd.f32 %v12569_v14, %v4252_v23  ;;  %v8261_v37 = vor.u32 %v8750_v13, %v8260_v53  ;;  %v5975_v53 = vsel %vm12760_vm13, %v12606_v44, %v5971_v46  ;;  %v6779_v46 = vld [vmem:[#allocation4 + $0x38] sm:$0xff]  ;;  %vm6033_vm8 = vweird.f32 %v12714_v30 }
 0x7e2   : > { %v8678_v25 = vld [vmem:[%s10016_s12 + $0x4b4] sm:$0xf0]  ;;  %v6841_v4 = vmul.f32 %v9171_v17, %v12058_v33  ;;  %4561 = vmatpush.bf16.msrb.mxu1 %v7781_v63  ;;  %v9173_v9 = vpop.eup %9172  ;;  %v6000_v33 = vmul.f32 %v12667_v22, %v5999_v34  ;;  %v14967_v17 = vld [vmem:[#allocation96_spill] sm:$0xff]  ;;  %v14970_v34 = vand.u32 2147483647, %v12312_v16  ;;  %v14973_v16 = vsel %vm12651_vm4, %v12300_v5, %v12603_v58  ;;  %v14976_v5 = vld [vmem:[#allocation43_spill] sm:$0xff] }
 0x7e3   : > { %v7973_v62 = vor.u32 %v8678_v25, %v7972_v21  ;;  %v8228_v14 = vld [vmem:[%s10016_s12 + $0x698] sm:$0xf]  ;;  %9176 = vtanh.f32 %v4301_v18  ;;  %4660 = vmatpush.bf16.msra.mxu3 %v8261_v37  ;;  %v4205_v63 = vpop.f32.mrf.mxu1  ;;  %v12781_v44 = vmul.f32 -1.442695, %v14967_v17  ;;  %v12799_v55 = vadd.f32 1.0, %v9173_v9  ;;  %vm12856_vm4 = vmor %vm6002_vm2, %vm6003_vm3 }
 0x7e4   : > { %v8742_v23 = vld [vmem:[%s10016_s12 + $0x6b4] sm:$0xf0]  ;;  %v6873_v45 = vadd.f32 %v6841_v4, %v6809_v61  ;;  %v4156_v27 = vpop.f32.mrf.mxu0  ;;  %9178 = vpow2.f32 %v8427_v43  ;;  %vm12793_vm1 = vcmp.eq.f32.partialorder %v14970_v34, 8.507059e+37  ;;  %v5980_v61 = vsel %vm12765_vm14, %v5979_v28, %v5975_v53  ;;  %v14975_v28 = vld [vmem:[#allocation42_spill] sm:$0xff] }
 0x7e5   : > { %4612 = vmatpush.bf16.msra.mxu2 %v7973_v62  ;;  %v8229_v13 = vor.u32 %v8742_v23, %v8228_v14  ;;  %v7940_v21 = vld [vmem:[%s10016_s12 + $0x458] sm:$0xf]  ;;  %v4206_v18 = vadd.f32 %v4205_v63, %v4156_v27  ;;  %v12797_v62 = vpop.eup %9174  ;;  %v14974_v27 = vld [vmem:[#allocation83_spill] sm:$0xff]  ;;  %9180 = vpow2.f32 %v12623_v15  ;;  %v12835_v34 = vpop.f32.mrf.mxu2  ;;  %vm5199_vm12 = vweird.f32 %v12526_v20 }
 0x7e6   : > { %v8670_v25 = vld [vmem:[%s10016_s12 + $0x474] sm:$0xf0]  ;;  %7033 = vst [vmem:[#allocation4 + $0x90] sm:$0xff] %v6873_v45  ;;  %v12813_v63 = vsel %vm12720_vm9, %v14974_v27, %v14973_v16  ;;  %4351 = vmatmul.bf16.gmra.mxu0 %v14975_v28  ;;  %4400 = vmatmul.bf16.gmra.mxu1 %v14976_v5  ;;  %v14977_v45 = vsub.f32 1.0, %v12546_v26  ;;  %9182 = vrcp.f32 %v12799_v55  ;;  %vm12928_vm9 = vmor %vm6032_vm7, %vm6033_vm8  ;;  %vm5200_vm14 = vweird.f32 %v12596_v49 }
 0x7e7   : > { %v7941_v37 = vor.u32 %v8670_v25, %v7940_v21  ;;  %v7492_v14 = vld [vmem:[%s10016_s12 + $0xd8] sm:$0xf]  ;;  %v4255_v50 = vadd.f32 %v12613_v11, %v4206_v18  ;;  %v6001_v11 = vadd.f32 %v12667_v22, %v6000_v33  ;;  %4661 = vmatpush.bf16.msra.mxu3 %v8229_v13  ;;  %vm6092_vm0 = vweird.f32 %v12799_v55 }
 0x7e8   : > { %v8558_v23 = vld [vmem:[%s10016_s12 + $0xf4] sm:$0xf0]  ;;  %v5167_v21 = vmul.f32 %v12470_v10, %v14977_v45 }
 0x7e9   : > { %v7493_v58 = vor.u32 %v8558_v23, %v7492_v14  ;;  %v7748_v29 = vld [vmem:[%s10016_s12 + $0x2d8] sm:$0xf]  ;;  %4613 = vmatpush.bf16.msra.mxu2 %v7941_v37  ;;  %v9177_v26 = vpop.eup %9176  ;;  %v12839_v14 = vmul.f32 %v12797_v62, %v12706_v57  ;;  %v6811_v23 = vmul.f32 %v6779_v46, %v5980_v61  ;;  %v4304_v33 = vadd.f32 %v12620_v51, %v4255_v50 }
 0x7ea   : > { %v8622_v32 = vld [vmem:[%s10016_s12 + $0x2f4] sm:$0xf0]  ;;  %v9179_v46 = vpop.eup %9178  ;;  %v14981_v61 = vand.u32 2147483648, %v12592_v52 }
 0x7eb   : > { %v7460_v53 = vld [vmem:[%s10016_s12 + $0x98] sm:$0xf]  ;;  %v7749_v15 = vor.u32 %v8622_v32, %v7748_v29  ;;  %4513 = vmatpush.bf16.msrb.mxu0 %v7493_v58  ;;  %v12844_v29 = vpop.f32.mrf.mxu3  ;;  %v14978_v32 = vld [vmem:[#allocation62_spill] sm:$0xff]  ;;  %v14982_v58 = vand.u32 2147483647, %v12592_v52  ;;  %9184 = vtanh.f32 %v4304_v33  ;;  %v4207_v52 = vpop.f32.mrf.mxu1  ;;  %v6059_v33 = vsub.f32 1.0, %v12839_v14 }
 0x7ec   : > { %v8550_v25 = vld [vmem:[%s10016_s12 + $0xb4] sm:$0xf0]  ;;  %v6843_v45 = vmul.f32 %v9177_v26, %v14978_v32  ;;  %v6009_v50 = vor.u32 1.1754944e-38, %v14981_v61  ;;  %v6005_v26 = vsel %vm12856_vm4, %v12667_v22, %v6001_v11  ;;  %v9181_v32 = vpop.eup %9180  ;;  %9186 = vpow2.f32 %v12781_v44 }
 0x7ed   : > { %v7716_v17 = vld [vmem:[%s10016_s12 + $0x298] sm:$0xf]  ;;  %v7461_v16 = vor.u32 %v8550_v25, %v7460_v53  ;;  %4562 = vmatpush.bf16.msrb.mxu1 %v7749_v15  ;;  %vm12864_vm5 = vcmp.eq.f32.partialorder %v14982_v58, 8.507059e+37  ;;  %v14985_v25 = vsub.f32 1.0, %v12744_v42  ;;  %v6781_v42 = vld [vmem:[#allocation4 + $0xa8] sm:$0xff]  ;;  %v12878_v22 = vadd.f32 1.0, %v9179_v46  ;;  %v12903_v14 = vpop.eup %9182 }
 0x7ee   : > { %v8614_v18 = vld [vmem:[%s10016_s12 + $0x2b4] sm:$0xf0]  ;;  %v12893_v11 = vadd.f32 %v12470_v10, %v5167_v21  ;;  %9188 = vrcp.f32 %v12644_v2  ;;  %v6010_v4 = vsel %vm12864_vm5, %v6009_v50, %v6005_v26  ;;  %vm13025_vm5 = vmor %vm5199_vm12, %vm5200_vm14  ;;  %vm6093_vm6 = vweird.f32 %v12903_v14 }
 0x7ef   : > { %v8196_v13 = vld [vmem:[%s10016_s12 + $0x658] sm:$0xf]  ;;  %v7717_v9 = vor.u32 %v8614_v18, %v7716_v17  ;;  %v6030_v17 = vmul.f32 %v12714_v30, %v14985_v25  ;;  %v6875_v18 = vadd.f32 %v6843_v45, %v6811_v23  ;;  %4514 = vmatpush.bf16.msrb.mxu0 %v7461_v16  ;;  %9190 = vrcp.f32 %v12878_v22  ;;  %vm13059_vm8 = vmor %vm6092_vm0, %vm6093_vm6 }
 0x7f0   : > { %v8734_v27 = vld [vmem:[%s10016_s12 + $0x674] sm:$0xf0]  ;;  %vm5657_vm12 = vweird.f32 %v12878_v22 }
 0x7f1   : > { %v7908_v37 = vld [vmem:[%s10016_s12 + $0x418] sm:$0xf]  ;;  %v8197_v60 = vor.u32 %v8734_v27, %v8196_v13  ;;  %v4158_v13 = vpop.f32.mrf.mxu0  ;;  %7035 = vst [vmem:[#allocation4 + $0x38] sm:$0xff] %v6875_v18  ;;  %4563 = vmatpush.bf16.msrb.mxu1 %v7717_v9  ;;  %v6031_v21 = vadd.f32 %v12714_v30, %v6030_v17  ;;  %v9185_v61 = vpop.eup %9184  ;;  %v6813_v17 = vmul.f32 %v6781_v42, %v6010_v4  ;;  %v14994_v42 = vand.u32 2147483648, %v12526_v20 }
 0x7f2   : > { %v8662_v1 = vld [vmem:[%s10016_s12 + $0x434] sm:$0xf0]  ;;  %v4208_v23 = vadd.f32 %v4207_v52, %v4158_v13 }
 0x7f3   : > { %v8164_v56 = vld [vmem:[%s10016_s12 + $0x618] sm:$0xf]  ;;  %v7909_v15 = vor.u32 %v8662_v1, %v7908_v37  ;;  %4662 = vmatpush.bf16.msra.mxu3 %v8197_v60  ;;  %v6038_v1 = vand.u32 2147483648, %v12634_v31  ;;  %v14987_v37 = vld [vmem:[#allocation30_spill] sm:$0xff]  ;;  %v12917_v18 = vpop.f32.mrf.mxu3  ;;  %v12935_v4 = vor.u32 1.1754944e-38, %v14994_v42 }
 0x7f4   : > { %v8726_v5 = vld [vmem:[%s10016_s12 + $0x634] sm:$0xf0] }
 0x7f5   : > { %v8165_v27 = vor.u32 %v8726_v5, %v8164_v56  ;;  %4614 = vmatpush.bf16.msra.mxu2 %v7909_v15  ;;  %v7428_v60 = vld [vmem:[%s10016_s12 + $0x58] sm:$0xf]  ;;  %v14986_v5 = vsel %vm12787_vm15, %v12384_v0, %v12731_v36  ;;  %v4257_v0 = vadd.f32 %v12678_v12, %v4208_v23  ;;  %v12912_v12 = vpop.f32.mrf.mxu2  ;;  %v6036_v15 = vand.u32 2147483647, %v12634_v31 }
 0x7f6   : > { %v8542_v56 = vld [vmem:[%s10016_s12 + $0x74] sm:$0xf0]  ;;  %v12890_v44 = vsel %vm12793_vm1, %v12463_v40, %v14986_v5  ;;  %v12921_v23 = vadd.f32 1.0, %v9181_v32  ;;  %v14993_v5 = vld [vmem:[#allocation31_spill] sm:$0xff]  ;;  %v6060_v32 = vmul.f32 %v12797_v62, %v6059_v33  ;;  %v6035_v31 = vsel %vm12928_vm9, %v12714_v30, %v6031_v21 }
 0x7f7   : > { %v7429_v36 = vor.u32 %v8542_v56, %v7428_v60  ;;  %v7684_v9 = vld [vmem:[%s10016_s12 + $0x258] sm:$0xf]  ;;  %4663 = vmatpush.bf16.msra.mxu3 %v8165_v27  ;;  %v4306_v53 = vadd.f32 %v12685_v3, %v4257_v0  ;;  %v9187_v27 = vpop.eup %9186  ;;  %v14990_v60 = vld [vmem:[#allocation71_spill] sm:$0xff]  ;;  %v6088_v0 = vmul.f32 %v12903_v14, %v12799_v55  ;;  %v14997_v33 = vand.u32 2147483647, %v12400_v19 }
 0x7f8   : > { %v8606_v43 = vld [vmem:[%s10016_s12 + $0x274] sm:$0xf0]  ;;  %4615 = vmatmul.bf16.vlgmr.msra.gmra.mxu2 %v14987_v37  ;;  %v8411_v56 = vmul.f32 -1.442695, %v14990_v60  ;;  %v5172_v21 = vsel %vm12947_vm10, %v12470_v10, %v12893_v11  ;;  %vm6037_vm13 = vcmp.eq.f32.partialorder %v6036_v15, 8.507059e+37  ;;  %v15000_v19 = vsub.f32 1.0, %v12641_v39 }
 0x7f9   : > { %v7396_v40 = vld [vmem:[%s10016_s12 + $0x18] sm:$0xf]  ;;  %v7685_v16 = vor.u32 %v8606_v43, %v7684_v9  ;;  %4515 = vmatpush.bf16.msrb.mxu0 %v7429_v36  ;;  %9192 = vtanh.f32 %v4306_v53  ;;  %v4161_v9 = vpop.f32.mrf.mxu0  ;;  %v4210_v43 = vpop.f32.mrf.mxu1  ;;  %vm12953_vm11 = vcmp.eq.f32.partialorder %v14997_v33, 8.507059e+37  ;;  %v15001_v53 = vld [vmem:[#allocation52_spill] sm:$0xff]  ;;  %v5235_v11 = vand.u32 2147483648, %v12644_v2  ;;  %v15004_v3 = vld [vmem:[#allocation63_spill] sm:$0xff] }
 0x7fa   : > { %v8534_v45 = vld [vmem:[%s10016_s12 + $0x34] sm:$0xf0]  ;;  %4664 = vmatmul.bf16.vlgmr.msra.gmra.mxu3 %v14993_v5  ;;  %v4211_v30 = vadd.f32 %v4210_v43, %v4161_v9  ;;  %4356 = vmatmul.bf16.gmra.mxu0 %v15001_v53  ;;  %vm6063_vm15 = vweird.f32 %v12797_v62  ;;  %v6089_v39 = vsub.f32 1.0, %v6088_v0  ;;  %v6061_v15 = vadd.f32 %v12797_v62, %v6060_v32 }
 0x7fb   : > { %v7652_v46 = vld [vmem:[%s10016_s12 + $0x218] sm:$0xf]  ;;  %v7397_v25 = vor.u32 %v8534_v45, %v7396_v40  ;;  %4564 = vmatpush.bf16.msrb.mxu1 %v7685_v16  ;;  %v12957_v45 = vpop.eup %9188  ;;  %vm6062_vm1 = vweird.f32 %v12706_v57  ;;  %v12985_v60 = vpop.f32.mrf.mxu3  ;;  %v6066_v32 = vand.u32 2147483647, %v12706_v57  ;;  %vm5229_vm9 = vweird.f32 %v12644_v2 }
 0x7fc   : > { %v8598_v51 = vld [vmem:[%s10016_s12 + $0x234] sm:$0xf0]  ;;  %vm12995_vm2 = vmor %vm6062_vm1, %vm6063_vm15  ;;  %v6090_v40 = vmul.f32 %v12903_v14, %v6089_v39  ;;  %vm5230_vm7 = vweird.f32 %v12957_v45 }
 0x7fd   : > { %v14988_v50 = vld [vmem:[#allocation97_spill] sm:$0xff]  ;;  %v7653_v52 = vor.u32 %v8598_v51, %v7652_v46  ;;  %v6039_v46 = vor.u32 1.1754944e-38, %v6038_v1  ;;  %4516 = vmatpush.bf16.msrb.mxu0 %v7397_v25  ;;  %v12964_v51 = vadd.f32 1.0, %v9187_v27  ;;  %v12974_v25 = vpop.eup %9190  ;;  %vm6067_vm4 = vcmp.eq.f32.partialorder %v6066_v32, 8.507059e+37  ;;  %v15013_v32 = vld [vmem:[#allocation32_spill] sm:$0xff]  ;;  %vm13130_vm1 = vmor %vm5229_vm9, %vm5230_vm7 }
 0x7fe   : > { %v8431_v58 = vmul.f32 -1.442695, %v14988_v50  ;;  %v14989_v26 = vld [vmem:[#allocation81_spill] sm:$0xff]  ;;  %v6783_v50 = vld [vmem:[#allocation4 + $0x50] sm:$0xff] }
 0x7ff   : > { %v6845_v13 = vmul.f32 %v9185_v61, %v14989_v26  ;;  %4565 = vmatpush.bf16.msrb.mxu1 %v7653_v52  ;;  %v5197_v61 = vmul.f32 %v12596_v49, %v15000_v19  ;;  %v6040_v1 = vsel %vm6037_vm13, %v6039_v46, %v6035_v31  ;;  %v15002_v10 = vld [vmem:[#allocation53_spill] sm:$0xff]  ;;  %v9193_v26 = vpop.eup %9192  ;;  %v15005_v31 = vld [vmem:[#allocation72_spill] sm:$0xff]  ;;  %v6065_v46 = vsel %vm12995_vm2, %v12797_v62, %v6061_v15 }
 0x800   : > { %9194 = vpow2.f32 %v8431_v58  ;;  %v4260_v58 = vadd.f32 %v12747_v41, %v4211_v30  ;;  %4405 = vmatmul.bf16.gmra.mxu1 %v15002_v10  ;;  %v6068_v41 = vand.u32 2147483648, %v12706_v57  ;;  %v6847_v42 = vmul.f32 %v9193_v26, %v15004_v3 }
 0x801   : > { %v6877_v36 = vadd.f32 %v6845_v13, %v6813_v17  ;;  %9196 = vpow2.f32 %v8411_v56  ;;  %v12979_v17 = vpop.f32.mrf.mxu2  ;;  %v15003_v13 = vld [vmem:[#allocation98_spill] sm:$0xff]  ;;  %v6815_v56 = vmul.f32 %v6783_v50, %v6040_v1  ;;  %v8413_v9 = vmul.f32 -1.442695, %v15005_v31  ;;  %v4163_v30 = vpop.f32.mrf.mxu0 }
 0x802   : > { %9198 = vrcp.f32 %v12921_v23  ;;  %v8433_v52 = vmul.f32 -1.442695, %v15003_v13  ;;  %v4309_v27 = vadd.f32 %v12754_v54, %v4260_v58  ;;  %v5198_v54 = vadd.f32 %v12596_v49, %v5197_v61  ;;  %v4212_v19 = vpop.f32.mrf.mxu1 }
 0x803   : > { %7037 = vst [vmem:[#allocation4 + $0xa8] sm:$0xff] %v6877_v36  ;;  %9200 = vrcp.f32 %v12964_v51  ;;  %v5225_v36 = vmul.f32 %v12957_v45, %v12644_v2  ;;  %v5653_v57 = vmul.f32 %v12974_v25, %v12878_v22  ;;  %v6879_v33 = vadd.f32 %v6847_v42, %v6815_v56  ;;  %v13047_v43 = vpop.f32.mrf.mxu3 }
 0x804   : > { %9202 = vtanh.f32 %v4309_v27  ;;  %v15008_v1 = vand.u32 2147483647, %v12526_v20  ;;  %v6069_v61 = vor.u32 1.1754944e-38, %v6068_v41  ;;  %v4213_v39 = vadd.f32 %v4212_v19, %v4163_v30  ;;  %v15018_v19 = vld [vmem:[#allocation33_spill] sm:$0xff] }
 0x805   : > { %9204 = vpow2.f32 %v8433_v52  ;;  %v13015_v26 = vsel %vm12953_vm11, %v12583_v35, %v5172_v21  ;;  %7039 = vst [vmem:[#allocation4 + $0x50] sm:$0xff] %v6879_v33  ;;  %v5233_v41 = vand.u32 2147483647, %v12644_v2  ;;  %v13030_v52 = vor.u32 1.1754944e-38, %v5235_v11  ;;  %v6785_v21 = vld [vmem:[#allocation4 + $0xc8] sm:$0xff] }
 0x806   : > { %v9195_v0 = vpop.eup %9194  ;;  %vm13008_vm3 = vcmp.eq.f32.partialorder %v15008_v1, 8.507059e+37  ;;  %v5226_v35 = vsub.f32 1.0, %v5225_v36  ;;  %v6070_v16 = vsel %vm6067_vm4, %v6069_v61, %v6065_v46  ;;  %v4262_v27 = vadd.f32 %v12835_v34, %v4213_v39  ;;  %v15014_v36 = vld [vmem:[#allocation99_spill] sm:$0xff]  ;;  %v15041_v2 = vld [vmem:[#allocation54_spill] sm:$0xff] }
 0x807   : > { %v9197_v58 = vpop.eup %9196  ;;  %v13019_v62 = vadd.f32 1.0, %v9195_v0  ;;  %v5202_v56 = vsel %vm13025_vm5, %v12596_v49, %v5198_v54  ;;  %9206 = vpow2.f32 %v8413_v9  ;;  %v5654_v20 = vsub.f32 1.0, %v5653_v57  ;;  %v15015_v54 = vld [vmem:[#allocation82_spill] sm:$0xff] }
 0x808   : > { %v13017_v13 = vpop.eup %9198  ;;  %v6091_v42 = vadd.f32 %v12903_v14, %v6090_v40  ;;  %4620 = vmatmul.bf16.gmra.mxu2 %v15013_v32  ;;  %v6098_v34 = vand.u32 2147483648, %v12799_v55  ;;  %v8435_v31 = vmul.f32 -1.442695, %v15014_v36  ;;  %v4311_v49 = vadd.f32 %v12844_v29, %v4262_v27 }
 0x809   : > { %v13036_v3 = vpop.eup %9200  ;;  %v13041_v11 = vpop.f32.mrf.mxu2  ;;  %9208 = vrcp.f32 %v13019_v62  ;;  %v6817_v9 = vmul.f32 %v6785_v21, %v6070_v16  ;;  %v6096_v57 = vand.u32 2147483647, %v12799_v55  ;;  %v5255_v46 = vmul.f32 %v13017_v13, %v12921_v23 }
 0x80a   : > { %v9203_v0 = vpop.eup %9202  ;;  %v13055_v30 = vadd.f32 1.0, %v9197_v58  ;;  %9210 = vtanh.f32 %v4311_v49  ;;  %4669 = vmatmul.bf16.gmra.mxu3 %v15018_v19  ;;  %v5227_v1 = vmul.f32 %v12957_v45, %v5226_v35  ;;  %v5655_v55 = vmul.f32 %v12974_v25, %v5654_v20  ;;  %v4322_v15 = vpop.f32.mrf.mxu0 }
 0x80b   : > { %v6849_v40 = vmul.f32 %v9203_v0, %v15015_v54  ;;  %v9205_v33 = vpop.eup %9204  ;;  %v5683_v61 = vmul.f32 %v13036_v3, %v12964_v51  ;;  %v6095_v58 = vsel %vm13059_vm8, %v12903_v14, %v6091_v42  ;;  %v4371_v16 = vpop.f32.mrf.mxu1  ;;  %v6099_v21 = vor.u32 1.1754944e-38, %v6098_v34  ;;  %v15020_v54 = vld [vmem:[#allocation23_spill] sm:$0xff] }
 0x80c   : > { %9212 = vpow2.f32 %v8435_v31  ;;  %v4372_v27 = vadd.f32 %v4371_v16, %v4322_v15  ;;  %v13075_v35 = vsel %vm13008_vm3, %v12935_v4, %v5202_v56  ;;  %v13077_v0 = vadd.f32 1.0, %v9205_v33  ;;  %v15019_v31 = vld [vmem:[#allocation22_spill] sm:$0xff] }
 0x80d   : > { %v6881_v39 = vadd.f32 %v6849_v40, %v6817_v9  ;;  %v9207_v20 = vpop.eup %9206  ;;  %vm6097_vm10 = vcmp.eq.f32.partialorder %v6096_v57, 8.507059e+37  ;;  %v5263_v36 = vand.u32 2147483647, %v12921_v23  ;;  %v5265_v14 = vand.u32 2147483648, %v12921_v23  ;;  %v6787_v9 = vld [vmem:[#allocation4 + $0x60] sm:$0xff]  ;;  %4517 = vmatmul.bf16.vlgmr.msrb.gmra.mxu0 %v15019_v31 }
 0x80e   : > { %v5256_v42 = vsub.f32 1.0, %v5255_v46  ;;  %v6100_v49 = vsel %vm6097_vm10, %v6099_v21, %v6095_v58  ;;  %v4421_v34 = vadd.f32 %v12912_v12, %v4372_v27  ;;  %v13085_v4 = vadd.f32 %v12957_v45, %v5227_v1  ;;  %v15021_v46 = vld [vmem:[#allocation100_spill] sm:$0xff]  ;;  %v15022_v21 = vld [vmem:[#allocation73_spill] sm:$0xff] }
 0x80f   : > { %7041 = vst [vmem:[#allocation4 + $0xc8] sm:$0xff] %v6881_v39  ;;  %v13087_v50 = vpop.eup %9208  ;;  %9214 = vrcp.f32 %v13055_v30  ;;  %vm5658_vm11 = vweird.f32 %v12974_v25  ;;  %v5684_v56 = vsub.f32 1.0, %v5683_v61  ;;  %v5656_v40 = vadd.f32 %v12974_v25, %v5655_v55  ;;  %v13098_v39 = vpop.f32.mrf.mxu3 }
 0x810   : > { %4566 = vmatmul.bf16.vlgmr.msrb.gmra.mxu1 %v15020_v54  ;;  %v9211_v33 = vpop.eup %9210  ;;  %v5663_v12 = vand.u32 2147483648, %v12878_v22  ;;  %v8437_v29 = vmul.f32 -1.442695, %v15021_v46  ;;  %v4470_v1 = vadd.f32 %v12917_v18, %v4421_v34  ;;  %vm5259_vm13 = vweird.f32 %v12921_v23  ;;  %vm13109_vm14 = vmor %vm5657_vm12, %vm5658_vm11  ;;  %v15040_v46 = vld [vmem:[#allocation25_spill] sm:$0xff] }
 0x811   : > { %v13092_v57 = vpop.f32.mrf.mxu2  ;;  %9216 = vrcp.f32 %v13077_v0  ;;  %v6819_v61 = vmul.f32 %v6787_v9, %v6100_v49  ;;  %v6851_v55 = vmul.f32 %v9211_v33, %v12485_v6  ;;  %v5661_v58 = vand.u32 2147483647, %v12878_v22 }
 0x812   : > { %v9213_v15 = vpop.eup %9212  ;;  %v13104_v16 = vadd.f32 1.0, %v9207_v20  ;;  %v8415_v27 = vmul.f32 -1.442695, %v15022_v21  ;;  %9218 = vtanh.f32 %v4470_v1  ;;  %v5257_v34 = vmul.f32 %v13017_v13, %v5256_v42  ;;  %v4324_v9 = vpop.f32.mrf.mxu0 }
 0x813   : > { %v5685_v49 = vmul.f32 %v13036_v3, %v5684_v56  ;;  %v5713_v6 = vmul.f32 %v13087_v50, %v13019_v62  ;;  %v6883_v22 = vadd.f32 %v6851_v55, %v6819_v61  ;;  %v5660_v20 = vsel %vm13109_vm14, %v12974_v25, %v5656_v40  ;;  %v4373_v33 = vpop.f32.mrf.mxu1 }
 0x814   : > { %vm13122_vm15 = vcmp.eq.f32.partialorder %v5233_v41, 8.507059e+37  ;;  %v5664_v1 = vor.u32 1.1754944e-38, %v5663_v12  ;;  %9220 = vpow2.f32 %v8437_v29  ;;  %v4374_v42 = vadd.f32 %v4373_v33, %v4324_v9  ;;  %v15039_v9 = vld [vmem:[#allocation24_spill] sm:$0xff] }
 0x815   : > { %v5266_v25 = vor.u32 1.1754944e-38, %v5265_v14  ;;  %v13134_v40 = vpop.eup %9214  ;;  %v13136_v61 = vadd.f32 1.0, %v9213_v15  ;;  %7043 = vst [vmem:[#allocation4 + $0x60] sm:$0xff] %v6883_v22  ;;  %vm5662_vm2 = vcmp.eq.f32.partialorder %v5661_v58, 8.507059e+37  ;;  %v5232_v41 = vsel %vm13130_vm1, %v12957_v45, %v13085_v4  ;;  %v6758_v14 = vld [vmem:[#allocation4 + $0xb8] sm:$0xff] }
 0x816   : > { %vm5260_vm3 = vweird.f32 %v13017_v13  ;;  %vm13143_vm4 = vcmp.eq.f32.partialorder %v5263_v36, 8.507059e+37  ;;  %9222 = vpow2.f32 %v8415_v27  ;;  %v5665_v12 = vsel %vm5662_vm2, %v5664_v1, %v5660_v20  ;;  %v15031_v36 = vld [vmem:[#allocation36_spill] sm:$0xff]  ;;  %v15032_v27 = vld [vmem:[#allocation101_spill] sm:$0xff]  ;;  %v15035_v1 = vld [vmem:[#allocation74_spill] sm:$0xff] }
 0x817   : > { %v4423_v29 = vadd.f32 %v12979_v17, %v4374_v42  ;;  %v5258_v55 = vadd.f32 %v13017_v13, %v5257_v34  ;;  %v13149_v15 = vpop.eup %9216  ;;  %9224 = vrcp.f32 %v13104_v16  ;;  %vm5688_vm5 = vweird.f32 %v13036_v3  ;;  %v13161_v22 = vpop.f32.mrf.mxu3  ;;  %vm13170_vm0 = vmor %vm5259_vm13, %vm5260_vm3 }
 0x818   : > { %v5714_v45 = vsub.f32 1.0, %v5713_v6  ;;  %v5686_v4 = vadd.f32 %v13036_v3, %v5685_v49  ;;  %4625 = vmatmul.bf16.gmra.mxu2 %v15031_v36  ;;  %v9219_v21 = vpop.eup %9218  ;;  %vm5687_vm6 = vweird.f32 %v12964_v51  ;;  %v5693_v17 = vand.u32 2147483648, %v12964_v51  ;;  %v15070_v36 = vld [vmem:[#allocation59_spill] sm:$0xff] }
 0x819   : > { %v13155_v58 = vpop.f32.mrf.mxu2  ;;  %v8439_v18 = vmul.f32 -1.442695, %v15032_v27  ;;  %v4472_v34 = vadd.f32 %v12985_v60, %v4423_v29  ;;  %9226 = vrcp.f32 %v13136_v61  ;;  %v6790_v6 = vmul.f32 %v6758_v14, %v5665_v12  ;;  %vm13179_vm7 = vmor %vm5687_vm6, %vm5688_vm5 }
 0x81a   : > { %v6822_v49 = vmul.f32 %v9219_v21, %v12495_v38  ;;  %v5691_v20 = vand.u32 2147483647, %v12964_v51  ;;  %v9221_v33 = vpop.eup %9220  ;;  %v5285_v60 = vmul.f32 %v13134_v40, %v13055_v30  ;;  %v8417_v42 = vmul.f32 -1.442695, %v15035_v1  ;;  %v15038_v51 = vld [vmem:[#allocation37_spill] sm:$0xff]  ;;  %v4327_v21 = vpop.f32.mrf.mxu0 }
 0x81b   : > { %9228 = vtanh.f32 %v4472_v34  ;;  %4674 = vmatmul.bf16.gmra.mxu3 %v15038_v51  ;;  %v5262_v23 = vsel %vm13170_vm0, %v13017_v13, %v5258_v55  ;;  %v5715_v56 = vmul.f32 %v13087_v50, %v5714_v45  ;;  %v5743_v12 = vmul.f32 %v13149_v15, %v13077_v0  ;;  %v4376_v27 = vpop.f32.mrf.mxu1 }
 0x81c   : > { %v6854_v14 = vadd.f32 %v6822_v49, %v6790_v6  ;;  %v5690_v29 = vsel %vm13179_vm7, %v13036_v3, %v5686_v4  ;;  %v9223_v1 = vpop.eup %9222  ;;  %v5694_v34 = vor.u32 1.1754944e-38, %v5693_v17  ;;  %9230 = vpow2.f32 %v8439_v18  ;;  %v6760_v17 = vld [vmem:[#allocation4 + $0x10] sm:$0xff] }
 0x81d   : > { %v4377_v51 = vadd.f32 %v4376_v27, %v4327_v21  ;;  %v13196_v13 = vsel %vm13122_vm15, %v13030_v52, %v5232_v41  ;;  %v13198_v55 = vpop.eup %9224  ;;  %v13200_v45 = vadd.f32 1.0, %v9221_v33  ;;  %vm5692_vm8 = vcmp.eq.f32.partialorder %v5691_v20, 8.507059e+37  ;;  %4522 = vmatmul.bf16.gmra.mxu0 %v15039_v9 }
 0x81e   : > { %7014 = vst [vmem:[#allocation4 + $0xb8] sm:$0xff] %v6854_v14  ;;  %v5295_v3 = vand.u32 2147483648, %v13055_v30  ;;  %v5286_v4 = vsub.f32 1.0, %v5285_v60  ;;  %v5695_v49 = vsel %vm5692_vm8, %v5694_v34, %v5690_v29  ;;  %v13209_v52 = vsel %vm13143_vm4, %v5266_v25, %v5262_v23 }
 0x81f   : > { %v4426_v18 = vadd.f32 %v13041_v11, %v4377_v51  ;;  %vm5290_vm9 = vweird.f32 %v13134_v40  ;;  %v13212_v41 = vpop.eup %9226  ;;  %9232 = vpow2.f32 %v8417_v42  ;;  %vm5718_vm10 = vweird.f32 %v13087_v50  ;;  %v13222_v23 = vpop.f32.mrf.mxu3 }
 0x820   : > { %4571 = vmatmul.bf16.gmra.mxu1 %v15040_v46  ;;  %v5744_v20 = vsub.f32 1.0, %v5743_v12  ;;  %v5716_v33 = vadd.f32 %v13087_v50, %v5715_v56  ;;  %vm5717_vm11 = vweird.f32 %v13019_v62  ;;  %v5723_v38 = vand.u32 2147483648, %v13019_v62 }
 0x821   : > { %v13216_v60 = vpop.f32.mrf.mxu2  ;;  %v9229_v11 = vpop.eup %9228  ;;  %v8441_v25 = vmul.f32 -1.442695, %v15041_v2  ;;  %v4475_v51 = vadd.f32 %v13047_v43, %v4426_v18  ;;  %vm5289_vm12 = vweird.f32 %v13055_v30  ;;  %9234 = vrcp.f32 %v13200_v45  ;;  %vm13236_vm13 = vmor %vm5717_vm11, %vm5718_vm10 }
 0x822   : > { %v6792_v42 = vmul.f32 %v6760_v17, %v5695_v49  ;;  %v6824_v56 = vmul.f32 %v9229_v11, %v12505_v24  ;;  %v5721_v12 = vand.u32 2147483647, %v13019_v62  ;;  %v9231_v14 = vpop.eup %9230  ;;  %v13230_v29 = vmul.f32 %v13198_v55, %v13104_v16  ;;  %v4329_v49 = vpop.f32.mrf.mxu0  ;;  %vm13279_vm2 = vmor %vm5289_vm12, %vm5290_vm9 }
 0x823   : > { %v13232_v21 = vadd.f32 1.0, %v9223_v1  ;;  %9236 = vtanh.f32 %v4475_v51  ;;  %v5287_v27 = vmul.f32 %v13134_v40, %v5286_v4  ;;  %v5745_v24 = vmul.f32 %v13149_v15, %v5744_v20  ;;  %v4378_v17 = vpop.f32.mrf.mxu1 }
 0x824   : > { %v5773_v62 = vmul.f32 %v13212_v41, %v13136_v61  ;;  %v6856_v34 = vadd.f32 %v6824_v56, %v6792_v42  ;;  %v5720_v1 = vsel %vm13236_vm13, %v13087_v50, %v5716_v33  ;;  %v5724_v18 = vor.u32 1.1754944e-38, %v5723_v38  ;;  %v6762_v50 = vld [vmem:[#allocation4 + $0x30] sm:$0xff] }
 0x825   : > { %9238 = vpow2.f32 %v8441_v25  ;;  %v4379_v11 = vadd.f32 %v4378_v17, %v4329_v49  ;;  %v13247_v2 = vor.u32 1.1754944e-38, %v5295_v3  ;;  %v9233_v51 = vpop.eup %9232  ;;  %v13249_v6 = vadd.f32 1.0, %v9231_v14  ;;  %v15044_v14 = vld [vmem:[#allocation40_spill] sm:$0xff] }
 0x826   : > { %7016 = vst [vmem:[#allocation4 + $0x10] sm:$0xff] %v6856_v34  ;;  %vm5722_vm14 = vcmp.eq.f32.partialorder %v5721_v12, 8.507059e+37  ;;  %v5325_v20 = vand.u32 2147483648, %v13104_v16  ;;  %9240 = vrcp.f32 %v13232_v21  ;;  %v13256_v38 = vadd.f32 %v13134_v40, %v5287_v27  ;;  %v15045_v27 = vld [vmem:[#allocation55_spill] sm:$0xff] }
 0x827   : > { %v5725_v42 = vsel %vm5722_vm14, %v5724_v18, %v5720_v1  ;;  %v4428_v33 = vadd.f32 %v13092_v57, %v4379_v11  ;;  %v13258_v3 = vpop.eup %9234  ;;  %v5316_v25 = vsub.f32 1.0, %v13230_v29  ;;  %vm5748_vm15 = vweird.f32 %v13149_v15  ;;  %v13270_v17 = vpop.f32.mrf.mxu3 }
 0x828   : > { %v5774_v56 = vsub.f32 1.0, %v5773_v62  ;;  %v5746_v12 = vadd.f32 %v13149_v15, %v5745_v24  ;;  %4630 = vmatmul.bf16.gmra.mxu2 %v15044_v14  ;;  %vm5747_vm1 = vweird.f32 %v13077_v0  ;;  %v5753_v57 = vand.u32 2147483648, %v13077_v0 }
 0x829   : > { %v13264_v43 = vpop.f32.mrf.mxu2  ;;  %v9237_v34 = vpop.eup %9236  ;;  %v8443_v1 = vmul.f32 -1.442695, %v15045_v27  ;;  %v4477_v49 = vadd.f32 %v13098_v39, %v4428_v33  ;;  %9242 = vrcp.f32 %v13249_v6  ;;  %v6794_v29 = vmul.f32 %v6762_v50, %v5725_v42  ;;  %v15048_v39 = vld [vmem:[#allocation75_spill] sm:$0xff]  ;;  %vm13288_vm3 = vmor %vm5747_vm1, %vm5748_vm15 }
 0x82a   : > { %v6826_v24 = vmul.f32 %v9237_v34, %v12813_v63  ;;  %v5751_v62 = vand.u32 2147483647, %v13077_v0  ;;  %v13283_v27 = vadd.f32 1.0, %v9233_v51  ;;  %v8419_v33 = vmul.f32 -1.442695, %v15048_v39  ;;  %v15051_v63 = vld [vmem:[#allocation41_spill] sm:$0xff]  ;;  %v4332_v4 = vpop.f32.mrf.mxu0 }
 0x82b   : > { %v9239_v11 = vpop.eup %9238  ;;  %9244 = vtanh.f32 %v4477_v49  ;;  %4679 = vmatmul.bf16.gmra.mxu3 %v15051_v63  ;;  %v5775_v50 = vmul.f32 %v13212_v41, %v5774_v56  ;;  %v5803_v51 = vmul.f32 %v13258_v3, %v13200_v45  ;;  %v5750_v39 = vsel %vm13288_vm3, %v13149_v15, %v5746_v12  ;;  %v4381_v14 = vpop.f32.mrf.mxu1  ;;  %v15061_v0 = vld [vmem:[#allocation44_spill] sm:$0xff] }
 0x82c   : > { %v6858_v34 = vadd.f32 %v6826_v24, %v6794_v29  ;;  %v13303_v49 = vpop.eup %9240  ;;  %v5754_v63 = vor.u32 1.1754944e-38, %v5753_v57  ;;  %9246 = vpow2.f32 %v8443_v1  ;;  %v4382_v46 = vadd.f32 %v4381_v14, %v4332_v4  ;;  %v6764_v1 = vld [vmem:[#allocation4 + $0x68] sm:$0xff] }
 0x82d   : > { %v15052_v9 = vand.u32 2147483647, %v13055_v30  ;;  %v13311_v56 = vor.u32 1.1754944e-38, %v5325_v20  ;;  %v13313_v29 = vadd.f32 1.0, %v9239_v11  ;;  %vm5752_vm5 = vcmp.eq.f32.partialorder %v5751_v62, 8.507059e+37  ;;  %v15055_v30 = vld [vmem:[#allocation26_spill] sm:$0xff] }
 0x82e   : > { %7018 = vst [vmem:[#allocation4 + $0x30] sm:$0xff] %v6858_v34  ;;  %v5317_v15 = vmul.f32 %v13198_v55, %v5316_v25  ;;  %9248 = vpow2.f32 %v8419_v33  ;;  %v5755_v57 = vsel %vm5752_vm5, %v5754_v63, %v5750_v39  ;;  %v4431_v4 = vadd.f32 %v13155_v58, %v4382_v46  ;;  %4527 = vmatmul.bf16.gmra.mxu0 %v15055_v30  ;;  %v15057_v46 = vld [vmem:[#allocation57_spill] sm:$0xff] }
 0x82f   : > { %vm13307_vm4 = vcmp.eq.f32.partialorder %v15052_v9, 8.507059e+37  ;;  %v15056_v9 = vld [vmem:[#allocation27_spill] sm:$0xff]  ;;  %v5355_v20 = vand.u32 2147483648, %v13232_v21  ;;  %v13321_v14 = vpop.eup %9242  ;;  %9250 = vrcp.f32 %v13283_v27  ;;  %vm5778_vm6 = vweird.f32 %v13212_v41  ;;  %v13332_v34 = vpop.f32.mrf.mxu3 }
 0x830   : > { %4576 = vmatmul.bf16.gmra.mxu1 %v15056_v9  ;;  %v5804_v25 = vsub.f32 1.0, %v5803_v51  ;;  %v5776_v24 = vadd.f32 %v13212_v41, %v5775_v50  ;;  %v5783_v58 = vand.u32 2147483648, %v13136_v61  ;;  %v8445_v33 = vmul.f32 -1.442695, %v15057_v46 }
 0x831   : > { %v13326_v62 = vpop.f32.mrf.mxu2  ;;  %v9245_v11 = vpop.eup %9244  ;;  %v4480_v42 = vadd.f32 %v13161_v22, %v4431_v4  ;;  %v5781_v63 = vand.u32 2147483647, %v13136_v61  ;;  %vm5777_vm0 = vweird.f32 %v13136_v61  ;;  %9252 = vrcp.f32 %v13313_v29  ;;  %v8778_v22 = vld [vmem:[%s10016_s12 + $0x7dc] sm:$0xf] }
 0x832   : > { %v6796_v51 = vmul.f32 %v6764_v1, %v5755_v57  ;;  %v6828_v50 = vmul.f32 %v9245_v11, %v12890_v44  ;;  %v9247_v39 = vpop.eup %9246  ;;  %v13339_v12 = vmul.f32 %v13303_v49, %v13232_v21  ;;  %vm13343_vm7 = vmor %vm5777_vm0, %vm5778_vm6  ;;  %v13347_v4 = vor.u32 1.1754944e-38, %v5355_v20  ;;  %v4334_v46 = vpop.f32.mrf.mxu0 }
 0x833   : > { %9254 = vtanh.f32 %v4480_v42  ;;  %v5805_v57 = vmul.f32 %v13258_v3, %v5804_v25  ;;  %v5833_v44 = vmul.f32 %v13321_v14, %v13249_v6  ;;  %v5780_v11 = vsel %vm13343_vm7, %v13212_v41, %v5776_v24  ;;  %v4383_v9 = vpop.f32.mrf.mxu1 }
 0x834   : > { %v6860_v1 = vadd.f32 %v6828_v50, %v6796_v51  ;;  %vm5319_vm8 = vweird.f32 %v13104_v16  ;;  %v9249_v20 = vpop.eup %9248  ;;  %v5784_v42 = vor.u32 1.1754944e-38, %v5783_v58  ;;  %9256 = vpow2.f32 %v8445_v33  ;;  %v8714_v51 = vld [vmem:[%s10016_s12 + $0x5dc] sm:$0xf] }
 0x835   : > { %vm5782_vm9 = vcmp.eq.f32.partialorder %v5781_v63, 8.507059e+37  ;;  %v4384_v25 = vadd.f32 %v4383_v9, %v4334_v46  ;;  %v13357_v61 = vpop.eup %9250  ;;  %v13359_v30 = vadd.f32 1.0, %v9247_v39  ;;  %v8134_v50 = vld [vmem:[%s10016_s12 + $0x5f8] sm:$0xf0]  ;;  %v15060_v41 = vsel %vm13279_vm2, %v13134_v40, %v13256_v38  ;;  %v6766_v63 = vld [vmem:[#allocation4] sm:$0xff] }
 0x836   : > { %7020 = vst [vmem:[#allocation4 + $0x68] sm:$0xff] %v6860_v1  ;;  %v13371_v24 = vsel %vm13307_vm4, %v13247_v2, %v15060_v41  ;;  %v13374_v58 = vadd.f32 %v13198_v55, %v5317_v15  ;;  %vm5320_vm10 = vweird.f32 %v13198_v55  ;;  %v5346_v9 = vsub.f32 1.0, %v13339_v12  ;;  %v8390_v1 = vld [vmem:[%s10016_s12 + $0x7f8] sm:$0xf0] }
 0x837   : > { %v5785_v33 = vsel %vm5782_vm9, %v5784_v42, %v5780_v11  ;;  %v4433_v39 = vadd.f32 %v13216_v60, %v4384_v25  ;;  %v8137_v18 = vor.u32 %v8714_v51, %v8134_v50  ;;  %v13381_v40 = vpop.eup %9252  ;;  %vm5808_vm11 = vweird.f32 %v13258_v3  ;;  %v15062_v42 = vld [vmem:[#allocation58_spill] sm:$0xff]  ;;  %v13392_v50 = vpop.f32.mrf.mxu3  ;;  %vm13418_vm15 = vmor %vm5319_vm8, %vm5320_vm10 }
 0x838   : > { %v5834_v2 = vsub.f32 1.0, %v5833_v44  ;;  %v5806_v38 = vadd.f32 %v13258_v3, %v5805_v57  ;;  %4635 = vmatmul.bf16.gmra.mxu2 %v15061_v0  ;;  %v8393_v46 = vor.u32 %v8778_v22, %v8390_v1  ;;  %v5813_v11 = vand.u32 2147483648, %v13200_v45  ;;  %v15063_v22 = vld [vmem:[#allocation76_spill] sm:$0xff] }
 0x839   : > { %v13386_v15 = vpop.f32.mrf.mxu2  ;;  %v9255_v12 = vpop.eup %9254  ;;  %v8447_v60 = vmul.f32 -1.442695, %v15062_v42  ;;  %v4482_v25 = vadd.f32 %v13222_v23, %v4433_v39  ;;  %v5811_v51 = vand.u32 2147483647, %v13200_v45  ;;  %4803 = vmatpush.bf16.msrb.mxu2 %v8137_v18  ;;  %vm5807_vm12 = vweird.f32 %v13200_v45  ;;  %v15066_v45 = vld [vmem:[#allocation45_spill] sm:$0xff] }
 0x83a   : > { %9258 = vrcp.f32 %v13359_v30  ;;  %v6798_v57 = vmul.f32 %v6766_v63, %v5785_v33  ;;  %v6830_v44 = vmul.f32 %v9255_v12, %v13015_v26  ;;  %4852 = vmatpush.bf16.msrb.mxu3 %v8393_v46  ;;  %v9257_v41 = vpop.eup %9256  ;;  %v8421_v1 = vmul.f32 -1.442695, %v15063_v22  ;;  %vm13400_vm13 = vmor %vm5807_vm12, %vm5808_vm11  ;;  %v4337_v12 = vpop.f32.mrf.mxu0  ;;  %v6768_v23 = vld [vmem:[#allocation4 + $0x40] sm:$0xff] }
 0x83b   : > { %v5863_v39 = vmul.f32 %v13381_v40, %v13313_v29  ;;  %9260 = vtanh.f32 %v4482_v25  ;;  %4684 = vmatmul.bf16.gmra.mxu3 %v15066_v45  ;;  %v5385_v33 = vand.u32 2147483648, %v13283_v27  ;;  %v13408_v26 = vadd.f32 1.0, %v9249_v20  ;;  %v4386_v42 = vpop.f32.mrf.mxu1  ;;  %v7878_v45 = vld [vmem:[%s10016_s12 + $0x3f8] sm:$0xf0] }
 0x83c   : > { %v5835_v63 = vmul.f32 %v13321_v14, %v5834_v2  ;;  %v6862_v18 = vadd.f32 %v6830_v44, %v6798_v57  ;;  %v5810_v46 = vsel %vm13400_vm13, %v13258_v3, %v5806_v38  ;;  %v5814_v22 = vor.u32 1.1754944e-38, %v5813_v11  ;;  %v8586_v38 = vld [vmem:[%s10016_s12 + $0x1dc] sm:$0xf] }
 0x83d   : > { %9262 = vpow2.f32 %v8447_v60  ;;  %vm5812_vm14 = vcmp.eq.f32.partialorder %v5811_v51, 8.507059e+37  ;;  %v4387_v25 = vadd.f32 %v4386_v42, %v4337_v12  ;;  %v13424_v2 = vmul.f32 %v13357_v61, %v13283_v27  ;;  %v7622_v11 = vld [vmem:[%s10016_s12 + $0x1f8] sm:$0xf0] }
 0x83e   : > { %v13426_v3 = vadd.f32 1.0, %v9257_v41  ;;  %7022 = vst [vmem:[#allocation4] sm:$0xff] %v6862_v18  ;;  %v5347_v51 = vmul.f32 %v13303_v49, %v5346_v9  ;;  %v5864_v57 = vsub.f32 1.0, %v5863_v39  ;;  %v5815_v44 = vsel %vm5812_vm14, %v5814_v22, %v5810_v46  ;;  %4532 = vmatmul.bf16.gmra.mxu0 %v14924_v8  ;;  %v15069_v42 = vld [vmem:[#allocation29_spill] sm:$0xff] }
 0x83f   : > { %v4436_v12 = vadd.f32 %v13264_v43, %v4387_v25  ;;  %v7625_v41 = vor.u32 %v8586_v38, %v7622_v11  ;;  %v8650_v18 = vld [vmem:[%s10016_s12 + $0x3dc] sm:$0xf]  ;;  %vm5838_vm1 = vweird.f32 %v13321_v14  ;;  %v8449_v60 = vmul.f32 -1.442695, %v15070_v36  ;;  %v13450_v11 = vpop.f32.mrf.mxu3 }
 0x840   : > { %4581 = vmatmul.bf16.gmra.mxu1 %v15069_v42  ;;  %v13440_v0 = vpop.eup %9258  ;;  %v5836_v9 = vadd.f32 %v13321_v14, %v5835_v63  ;;  %v7881_v39 = vor.u32 %v8650_v18, %v7878_v45  ;;  %9264 = vpow2.f32 %v8421_v1  ;;  %v5843_v43 = vand.u32 2147483648, %v13249_v6  ;;  %v15076_v42 = vld [vmem:[#allocation60_spill] sm:$0xff] }
 0x841   : > { %v13445_v46 = vpop.f32.mrf.mxu2  ;;  %v9261_v22 = vpop.eup %9260  ;;  %v4485_v25 = vadd.f32 %v13270_v17, %v4436_v12  ;;  %v5841_v38 = vand.u32 2147483647, %v13249_v6  ;;  %4705 = vmatpush.bf16.msra.mxu0 %v7625_v41  ;;  %vm5837_vm2 = vweird.f32 %v13249_v6  ;;  %9266 = vrcp.f32 %v13426_v3 }
 0x842   : > { %v6800_v36 = vmul.f32 %v6768_v23, %v5815_v44  ;;  %v6832_v45 = vmul.f32 %v9261_v22, %v13075_v35  ;;  %4754 = vmatpush.bf16.msra.mxu1 %v7881_v39  ;;  %vm5350_vm3 = vweird.f32 %v13303_v49  ;;  %vm13459_vm4 = vmor %vm5837_vm2, %vm5838_vm1  ;;  %v5865_v12 = vmul.f32 %v13381_v40, %v5864_v57  ;;  %v4339_v41 = vpop.f32.mrf.mxu0  ;;  %v8642_v22 = vld [vmem:[%s10016_s12 + $0x39c] sm:$0xf] }
 0x843   : > { %v9263_v1 = vpop.eup %9262  ;;  %9268 = vtanh.f32 %v4485_v25  ;;  %v13464_v6 = vor.u32 1.1754944e-38, %v5385_v33  ;;  %v5893_v35 = vmul.f32 %v13440_v0, %v13359_v30  ;;  %v5840_v23 = vsel %vm13459_vm4, %v13321_v14, %v5836_v9  ;;  %v4388_v18 = vpop.f32.mrf.mxu1  ;;  %v8706_v9 = vld [vmem:[%s10016_s12 + $0x59c] sm:$0xf] }
 0x844   : > { %9270 = vpow2.f32 %v8449_v60  ;;  %v6864_v44 = vadd.f32 %v6832_v45, %v6800_v36  ;;  %vm5349_vm5 = vweird.f32 %v13232_v21  ;;  %v5844_v39 = vor.u32 1.1754944e-38, %v5843_v43  ;;  %v8102_v43 = vld [vmem:[%s10016_s12 + $0x5b8] sm:$0xf0]  ;;  %v6770_v36 = vld [vmem:[#allocation4 + $0xd8] sm:$0xff] }
 0x845   : > { %vm5842_vm6 = vcmp.eq.f32.partialorder %v5841_v38, 8.507059e+37  ;;  %v4389_v57 = vadd.f32 %v4388_v18, %v4339_v41  ;;  %v15073_v33 = vand.u32 2147483647, %v13104_v16  ;;  %v5415_v60 = vand.u32 2147483648, %v13408_v26  ;;  %v8770_v18 = vld [vmem:[%s10016_s12 + $0x79c] sm:$0xf]  ;;  %vm13534_vm10 = vmor %vm5349_vm5, %vm5350_vm3 }
 0x846   : > { %9272 = vrcp.f32 %v13408_v26  ;;  %vm5868_vm7 = vweird.f32 %v13381_v40  ;;  %v13481_v14 = vadd.f32 1.0, %v9263_v1  ;;  %7024 = vst [vmem:[#allocation4 + $0x40] sm:$0xff] %v6864_v44  ;;  %v13486_v25 = vadd.f32 %v13303_v49, %v5347_v51  ;;  %v9265_v16 = vpop.eup %9264 }
 0x847   : > { %vm13474_vm0 = vcmp.eq.f32.partialorder %v15073_v33, 8.507059e+37  ;;  %v5845_v38 = vsel %vm5842_vm6, %v5844_v39, %v5840_v23  ;;  %v4438_v45 = vadd.f32 %v13326_v62, %v4389_v57  ;;  %v5866_v17 = vadd.f32 %v13381_v40, %v5865_v12  ;;  %v8358_v33 = vld [vmem:[%s10016_s12 + $0x7b8] sm:$0xf0]  ;;  %v13492_v63 = vpop.eup %9266  ;;  %v13502_v57 = vpop.f32.mrf.mxu3 }
 0x848   : > { %v8105_v41 = vor.u32 %v8706_v9, %v8102_v43  ;;  %v5894_v1 = vsub.f32 1.0, %v5893_v35  ;;  %v8451_v44 = vmul.f32 -1.442695, %v15076_v42  ;;  %4640 = vmatmul.bf16.gmra.mxu2 %v14929_v47  ;;  %v8361_v51 = vor.u32 %v8770_v18, %v8358_v33  ;;  %v8578_v9 = vld [vmem:[%s10016_s12 + $0x19c] sm:$0xf] }
 0x849   : > { %v13496_v8 = vpop.f32.mrf.mxu2  ;;  %v9269_v39 = vpop.eup %9268  ;;  %vm5867_vm8 = vweird.f32 %v13313_v29  ;;  %v5873_v62 = vand.u32 2147483648, %v13313_v29  ;;  %v4487_v12 = vadd.f32 %v13332_v34, %v4438_v45  ;;  %v13504_v35 = vor.u32 1.1754944e-38, %v5415_v60  ;;  %v15079_v45 = vld [vmem:[#allocation77_spill] sm:$0xff] }
 0x84a   : > { %4804 = vmatpush.bf16.msrb.mxu2 %v8105_v41  ;;  %v9271_v42 = vpop.eup %9270  ;;  %vm13508_vm9 = vmor %vm5867_vm8, %vm5868_vm7  ;;  %9274 = vrcp.f32 %v13481_v14  ;;  %v6802_v43 = vmul.f32 %v6770_v36, %v5845_v38  ;;  %v6834_v18 = vmul.f32 %v9269_v39, %v13196_v13  ;;  %v5871_v33 = vand.u32 2147483647, %v13313_v29  ;;  %4853 = vmatpush.bf16.msrb.mxu3 %v8361_v51 }
 0x84b   : > { %v13515_v34 = vadd.f32 1.0, %v9265_v16  ;;  %v8423_v60 = vmul.f32 -1.442695, %v15079_v45  ;;  %v5870_v41 = vsel %vm13508_vm9, %v13381_v40, %v5866_v17  ;;  %9276 = vtanh.f32 %v4487_v12  ;;  %4689 = vmatmul.bf16.gmra.mxu3 %v14930_v48  ;;  %v4342_v16 = vpop.f32.mrf.mxu0  ;;  %v4391_v36 = vpop.f32.mrf.mxu1  ;;  %v15080_v40 = vld [vmem:[#allocation61_spill] sm:$0xff] }
 0x84c   : > { %v13522_v23 = vpop.eup %9272  ;;  %v5895_v38 = vmul.f32 %v13440_v0, %v5894_v1  ;;  %v5923_v13 = vmul.f32 %v13492_v63, %v13426_v3  ;;  %9278 = vpow2.f32 %v8451_v44  ;;  %v6866_v29 = vadd.f32 %v6834_v18, %v6802_v43  ;;  %v7590_v43 = vld [vmem:[%s10016_s12 + $0x1b8] sm:$0xf0]  ;;  %v6772_v45 = vld [vmem:[#allocation4 + $0x80] sm:$0xff] }
 0x84d   : > { %v5874_v51 = vor.u32 1.1754944e-38, %v5873_v62  ;;  %v13527_v39 = vadd.f32 1.0, %v9271_v42  ;;  %v8453_v17 = vmul.f32 -1.442695, %v15080_v40  ;;  %v4392_v12 = vadd.f32 %v4391_v36, %v4342_v16  ;;  %v15093_v42 = vld [vmem:[#allocation48_spill] sm:$0xff] }
 0x84e   : > { %7026 = vst [vmem:[#allocation4 + $0xd8] sm:$0xff] %v6866_v29  ;;  %vm5872_vm11 = vcmp.eq.f32.partialorder %v5871_v33, 8.507059e+37  ;;  %v15083_v44 = vsel %vm13418_vm15, %v13198_v55, %v13374_v58  ;;  %v15084_v18 = vsub.f32 1.0, %v13424_v2  ;;  %9280 = vpow2.f32 %v8423_v60  ;;  %4537 = vmatmul.bf16.gmra.mxu0 %v14940_v7  ;;  %v7846_v29 = vld [vmem:[%s10016_s12 + $0x3b8] sm:$0xf0] }
 0x84f   : > { %v13546_v62 = vsel %vm13474_vm0, %v13311_v56, %v15083_v44  ;;  %v5875_v20 = vsel %vm5872_vm11, %v5874_v51, %v5870_v41  ;;  %v4441_v55 = vadd.f32 %v13386_v15, %v4392_v12  ;;  %v15085_v56 = vld [vmem:[#allocation35_spill] sm:$0xff]  ;;  %v7593_v58 = vor.u32 %v8578_v9, %v7590_v43  ;;  %v13572_v12 = vpop.f32.mrf.mxu3 }
 0x850   : > { %v5377_v33 = vmul.f32 %v13357_v61, %v15084_v18  ;;  %4586 = vmatmul.bf16.gmra.mxu1 %v15085_v56  ;;  %v13562_v16 = vpop.eup %9274  ;;  %vm5898_vm12 = vweird.f32 %v13440_v0  ;;  %v5924_v36 = vsub.f32 1.0, %v5923_v13  ;;  %v5896_v2 = vadd.f32 %v13440_v0, %v5895_v38  ;;  %v15086_v18 = vld [vmem:[#allocation78_spill] sm:$0xff] }
 0x851   : > { %v7849_v40 = vor.u32 %v8642_v22, %v7846_v29  ;;  %v13566_v60 = vpop.f32.mrf.mxu2  ;;  %v9277_v41 = vpop.eup %9276  ;;  %vm5897_vm13 = vweird.f32 %v13359_v30  ;;  %v5903_v15 = vand.u32 2147483648, %v13359_v30  ;;  %9282 = vrcp.f32 %v13527_v39  ;;  %4706 = vmatpush.bf16.msra.mxu0 %v7593_v58 }
 0x852   : > { %v4490_v51 = vadd.f32 %v13392_v50, %v4441_v55  ;;  %v9279_v44 = vpop.eup %9278  ;;  %9284 = vpow2.f32 %v8453_v17  ;;  %v6804_v13 = vmul.f32 %v6772_v45, %v5875_v20  ;;  %v6836_v38 = vmul.f32 %v9277_v41, %v13209_v52  ;;  %vm13585_vm14 = vmor %vm5897_vm13, %vm5898_vm12  ;;  %v8326_v17 = vld [vmem:[%s10016_s12 + $0x778] sm:$0xf0] }
 0x853   : > { %v5901_v9 = vand.u32 2147483647, %v13359_v30  ;;  %4755 = vmatpush.bf16.msra.mxu1 %v7849_v40  ;;  %v13578_v43 = vmul.f32 %v13522_v23, %v13408_v26  ;;  %v13581_v22 = vmul.f32 -1.442695, %v15086_v18  ;;  %v5925_v52 = vmul.f32 %v13492_v63, %v5924_v36  ;;  %v4344_v55 = vpop.f32.mrf.mxu0  ;;  %v4393_v58 = vpop.f32.mrf.mxu1 }
 0x854   : > { %9286 = vtanh.f32 %v4490_v51  ;;  %v5953_v30 = vmul.f32 %v13562_v16, %v13481_v14  ;;  %v6868_v20 = vadd.f32 %v6836_v38, %v6804_v13  ;;  %v5900_v45 = vsel %vm13585_vm14, %v13440_v0, %v5896_v2  ;;  %v9281_v29 = vpop.eup %9280  ;;  %v15089_v51 = vld [vmem:[#allocation79_spill] sm:$0xff]  ;;  %v8698_v2 = vld [vmem:[%s10016_s12 + $0x55c] sm:$0xf] }
 0x855   : > { %vm5379_vm15 = vweird.f32 %v13283_v27  ;;  %v5904_v40 = vor.u32 1.1754944e-38, %v5903_v15  ;;  %v13597_v41 = vadd.f32 1.0, %v9279_v44  ;;  %v8455_v36 = vmul.f32 -1.442695, %v15089_v51  ;;  %v8070_v15 = vld [vmem:[%s10016_s12 + $0x578] sm:$0xf0] }
 0x856   : > { %v4394_v18 = vadd.f32 %v4393_v58, %v4344_v55  ;;  %v15090_v13 = vand.u32 2147483647, %v13232_v21  ;;  %9288 = vrcp.f32 %v13515_v34  ;;  %7028 = vst [vmem:[#allocation4 + $0x80] sm:$0xff] %v6868_v20  ;;  %vm5902_vm2 = vcmp.eq.f32.partialorder %v5901_v9, 8.507059e+37  ;;  %v6774_v55 = vld [vmem:[#allocation4 + $0x18] sm:$0xff] }
 0x857   : > { %v13608_v0 = vadd.f32 %v13357_v61, %v5377_v33  ;;  %vm5380_vm3 = vweird.f32 %v13357_v61  ;;  %v13613_v44 = vpop.eup %9282  ;;  %v5905_v50 = vsel %vm5902_vm2, %v5904_v40, %v5900_v45  ;;  %v8073_v51 = vor.u32 %v8698_v2, %v8070_v15  ;;  %v13628_v40 = vpop.f32.mrf.mxu3  ;;  %v15096_v15 = vld [vmem:[#allocation49_spill] sm:$0xff] }
 0x858   : > { %vm13602_vm1 = vcmp.eq.f32.partialorder %v15090_v13, 8.507059e+37  ;;  %v4443_v58 = vadd.f32 %v13445_v46, %v4394_v18  ;;  %v8762_v13 = vld [vmem:[%s10016_s12 + $0x75c] sm:$0xf]  ;;  %v9285_v20 = vpop.eup %9284  ;;  %vm5928_vm4 = vweird.f32 %v13492_v63  ;;  %v5954_v33 = vsub.f32 1.0, %v5953_v30  ;;  %4645 = vmatmul.bf16.gmra.mxu2 %v15093_v42  ;;  %vm13658_vm0 = vmor %vm5379_vm15, %vm5380_vm3 }
 0x859   : > { %v5926_v9 = vadd.f32 %v13492_v63, %v5925_v52  ;;  %v13622_v56 = vpop.f32.mrf.mxu2  ;;  %v8329_v7 = vor.u32 %v8762_v13, %v8326_v17  ;;  %vm5927_vm5 = vweird.f32 %v13426_v3  ;;  %v5933_v45 = vand.u32 2147483648, %v13426_v3  ;;  %4805 = vmatpush.bf16.msrb.mxu2 %v8073_v51  ;;  %v8634_v2 = vld [vmem:[%s10016_s12 + $0x35c] sm:$0xf] }
 0x85a   : > { %v9287_v48 = vpop.eup %9286  ;;  %9290 = vrcp.f32 %v13597_v41  ;;  %v4492_v46 = vadd.f32 %v13450_v11, %v4443_v58  ;;  %v6806_v30 = vmul.f32 %v6774_v55, %v5905_v50  ;;  %v5931_v18 = vand.u32 2147483647, %v13426_v3  ;;  %vm13636_vm6 = vmor %vm5927_vm5, %vm5928_vm4 }
 0x85b   : > { %9292 = vpow2.f32 %v8455_v36  ;;  %v6838_v52 = vmul.f32 %v9287_v48, %v13371_v24  ;;  %4854 = vmatpush.bf16.msrb.mxu3 %v8329_v7  ;;  %v13632_v17 = vadd.f32 1.0, %v9281_v29  ;;  %v5983_v11 = vmul.f32 %v13613_v44, %v13527_v39  ;;  %v4347_v50 = vpop.f32.mrf.mxu0  ;;  %v4396_v55 = vpop.f32.mrf.mxu1 }
 0x85c   : > { %9294 = vtanh.f32 %v4492_v46  ;;  %4694 = vmatmul.bf16.gmra.mxu3 %v15096_v15  ;;  %v13644_v48 = vpop.eup %9288  ;;  %v5955_v7 = vmul.f32 %v13562_v16, %v5954_v33  ;;  %v13647_v24 = vadd.f32 1.0, %v9285_v20  ;;  %v5930_v29 = vsel %vm13636_vm6, %v13492_v63, %v5926_v9 }
 0x85d   : > { %v6870_v3 = vadd.f32 %v6838_v52, %v6806_v30  ;;  %v5934_v58 = vor.u32 1.1754944e-38, %v5933_v45  ;;  %v5963_v51 = vand.u32 2147483648, %v13481_v14  ;;  %v4397_v13 = vadd.f32 %v4396_v55, %v4347_v50  ;;  %v8570_v45 = vld [vmem:[%s10016_s12 + $0x15c] sm:$0xf] }
 0x85e   : > { %v5961_v46 = vand.u32 2147483647, %v13481_v14  ;;  %9296 = vpow2.f32 %v13581_v22  ;;  %vm5932_vm7 = vcmp.eq.f32.partialorder %v5931_v18, 8.507059e+37  ;;  %v15099_v63 = vsel %vm13534_vm10, %v13303_v49, %v13486_v25  ;;  %v7558_v22 = vld [vmem:[%s10016_s12 + $0x178] sm:$0xf0]  ;;  %v15100_v25 = vld [vmem:[#allocation38_spill] sm:$0xff] }
 0x85f   : > { %7030 = vst [vmem:[#allocation4 + $0x18] sm:$0xff] %v6870_v3  ;;  %v13671_v33 = vsel %vm13602_vm1, %v13347_v4, %v15099_v63  ;;  %v5984_v52 = vsub.f32 1.0, %v5983_v11  ;;  %v5935_v1 = vsel %vm5932_vm7, %v5934_v58, %v5930_v29  ;;  %v6776_v18 = vld [vmem:[#allocation4 + $0xe8] sm:$0xff]  ;;  %v4446_v49 = vadd.f32 %v13496_v8, %v4397_v13  ;;  %4542 = vmatmul.bf16.gmra.mxu0 %v15100_v25  ;;  %v15101_v4 = vld [vmem:[#allocation39_spill] sm:$0xff]  ;;  %v15102_v63 = vld [vmem:[#allocation80_spill] sm:$0xff]  ;;  %v13696_v36 = vpop.f32.mrf.mxu3 }
 0x860   : > { %v13679_v30 = vpop.eup %9290  ;;  %4591 = vmatmul.bf16.gmra.mxu1 %v15101_v4  ;;  %v7561_v38 = vor.u32 %v8570_v45, %v7558_v22  ;;  %v7814_v3 = vld [vmem:[%s10016_s12 + $0x378] sm:$0xf0]  ;;  %vm5958_vm8 = vweird.f32 %v13562_v16  ;;  %9298 = vrcp.f32 %v13647_v24  ;;  %v5956_v55 = vadd.f32 %v13562_v16, %v5955_v7 }
 0x861   : > { %v9293_v50 = vpop.eup %9292  ;;  %v7817_v11 = vor.u32 %v8634_v2, %v7814_v3  ;;  %v13689_v29 = vpop.f32.mrf.mxu2  ;;  %v8690_v8 = vld [vmem:[%s10016_s12 + $0x51c] sm:$0xf]  ;;  %vm5957_vm9 = vweird.f32 %v13481_v14  ;;  %v8457_v45 = vmul.f32 -1.442695, %v15102_v63  ;;  %v4495_v22 = vadd.f32 %v13502_v57, %v4446_v49  ;;  %v6778_v63 = vld [vmem:[#allocation4 + $0x20] sm:$0xff] }
 0x862   : > { %v8038_v58 = vld [vmem:[%s10016_s12 + $0x538] sm:$0xf0]  ;;  %v9295_v13 = vpop.eup %9294  ;;  %4707 = vmatpush.bf16.msra.mxu0 %v7561_v38  ;;  %v5964_v21 = vor.u32 1.1754944e-38, %v5963_v51  ;;  %v13700_v7 = vmul.f32 %v13679_v30, %v13597_v41  ;;  %v6808_v2 = vmul.f32 %v6776_v18, %v5935_v1  ;;  %vm13707_vm10 = vmor %vm5957_vm9, %vm5958_vm8  ;;  %v5985_v51 = vmul.f32 %v13613_v44, %v5984_v52 }
 0x863   : > { %v8041_v9 = vor.u32 %v8690_v8, %v8038_v58  ;;  %v6840_v3 = vmul.f32 %v9295_v13, %v13546_v62  ;;  %4756 = vmatpush.bf16.msra.mxu1 %v7817_v11  ;;  %v8754_v4 = vld [vmem:[%s10016_s12 + $0x71c] sm:$0xf]  ;;  %vm13712_vm11 = vcmp.eq.f32.partialorder %v5961_v46, 8.507059e+37  ;;  %9300 = vtanh.f32 %v4495_v22  ;;  %v4349_v52 = vpop.f32.mrf.mxu0  ;;  %v4398_v46 = vpop.f32.mrf.mxu1 }
 0x864   : > { %v8294_v14 = vld [vmem:[%s10016_s12 + $0x738] sm:$0xf0]  ;;  %vm5410_vm12 = vweird.f32 %v13522_v23  ;;  %v9297_v1 = vpop.eup %9296  ;;  %v5993_v18 = vand.u32 2147483648, %v13527_v39  ;;  %v13718_v38 = vadd.f32 1.0, %v9293_v50  ;;  %v5960_v8 = vsel %vm13707_vm10, %v13562_v16, %v5956_v55 }
 0x865   : > { %4806 = vmatpush.bf16.msrb.mxu2 %v8041_v9  ;;  %v8297_v62 = vor.u32 %v8754_v4, %v8294_v14  ;;  %v6872_v11 = vadd.f32 %v6840_v3, %v6808_v2  ;;  %v8682_v58 = vld [vmem:[%s10016_s12 + $0x4dc] sm:$0xf]  ;;  %9302 = vpow2.f32 %v8457_v45  ;;  %v4399_v9 = vadd.f32 %v4398_v46, %v4349_v52 }
 0x866   : > { %v8006_v13 = vld [vmem:[%s10016_s12 + $0x4f8] sm:$0xf0]  ;;  %v15107_v4 = vand.u32 2147483647, %v13283_v27  ;;  %v5991_v50 = vand.u32 2147483647, %v13527_v39  ;;  %vm5409_vm14 = vweird.f32 %v13408_v26  ;;  %v13733_v55 = vpop.eup %9298  ;;  %v13737_v45 = vmul.f32 %v13644_v48, %v13515_v34 }
 0x867   : > { %4855 = vmatpush.bf16.msrb.mxu3 %v8297_v62  ;;  %v8009_v16 = vor.u32 %v8682_v58, %v8006_v13  ;;  %9304 = vrcp.f32 %v13632_v17  ;;  %vm5988_vm15 = vweird.f32 %v13613_v44  ;;  %v6014_v27 = vsub.f32 1.0, %v13700_v7  ;;  %7032 = vst [vmem:[#allocation4 + $0xe8] sm:$0xff] %v6872_v11  ;;  %v8562_v2 = vld [vmem:[%s10016_s12 + $0x11c] sm:$0xf]  ;;  %vm13820_vm4 = vmor %vm5409_vm14, %vm5410_vm12 }
 0x868   : > { %vm13727_vm13 = vcmp.eq.f32.partialorder %v15107_v4, 8.507059e+37  ;;  %v7526_v3 = vld [vmem:[%s10016_s12 + $0x138] sm:$0xf0]  ;;  %v5965_v14 = vsel %vm13712_vm11, %v5964_v21, %v5960_v8  ;;  %v4448_v57 = vadd.f32 %v13566_v60, %v4399_v9  ;;  %v5986_v62 = vadd.f32 %v13613_v44, %v5985_v51  ;;  %4650 = vmatmul.bf16.gmra.mxu2 %v10834_v59 }
 0x869   : > { %v7529_v52 = vor.u32 %v8562_v2, %v7526_v3  ;;  %v8626_v46 = vld [vmem:[%s10016_s12 + $0x31c] sm:$0xf]  ;;  %4807 = vmatpush.bf16.msrb.mxu2 %v8009_v16  ;;  %vm5987_vm1 = vweird.f32 %v13527_v39  ;;  %9306 = vrcp.f32 %v13718_v38  ;;  %v15110_v7 = vsub.f32 1.0, %v13578_v43  ;;  %v13757_v11 = vpop.f32.mrf.mxu2  ;;  %v9301_v9 = vpop.eup %9300 }
 0x86a   : > { %v7782_v58 = vld [vmem:[%s10016_s12 + $0x338] sm:$0xf0]  ;;  %v13764_v4 = vmul.f32 %v13733_v55, %v13647_v24  ;;  %v4497_v16 = vadd.f32 %v13572_v12, %v4448_v57  ;;  %v13767_v2 = vpop.f32.mrf.mxu3  ;;  %vm13776_vm2 = vmor %vm5987_vm1, %vm5988_vm15  ;;  %v6810_v59 = vmul.f32 %v6778_v63, %v5965_v14  ;;  %v6842_v12 = vmul.f32 %v9301_v9, %v13671_v33 }
 0x86b   : > { %v8746_v13 = vld [vmem:[%s10016_s12 + $0x6dc] sm:$0xf]  ;;  %v5407_v49 = vmul.f32 %v13522_v23, %v15110_v7  ;;  %v7785_v21 = vor.u32 %v8626_v46, %v7782_v58  ;;  %4708 = vmatpush.bf16.msra.mxu0 %v7529_v52  ;;  %v13770_v58 = vadd.f32 1.0, %v9297_v1  ;;  %v5990_v1 = vsel %vm13776_vm2, %v13613_v44, %v5986_v62 }
 0x86c   : > { %v8262_v60 = vld [vmem:[%s10016_s12 + $0x6f8] sm:$0xf0]  ;;  %vm13786_vm3 = vcmp.eq.f32.partialorder %v5991_v50, 8.507059e+37  ;;  %9308 = vtanh.f32 %v4497_v16  ;;  %v6015_v63 = vmul.f32 %v13679_v30, %v6014_v27  ;;  %v6044_v9 = vsub.f32 1.0, %v13764_v4  ;;  %v6780_v16 = vld [vmem:[#allocation4 + $0x70] sm:$0xff] }
 0x86d   : > { %v8674_v51 = vld [vmem:[%s10016_s12 + $0x49c] sm:$0xf]  ;;  %v8265_v43 = vor.u32 %v8746_v13, %v8262_v60  ;;  %4757 = vmatpush.bf16.msra.mxu1 %v7785_v21  ;;  %v9303_v13 = vpop.eup %9302  ;;  %v5994_v60 = vor.u32 1.1754944e-38, %v5993_v18  ;;  %v6874_v21 = vadd.f32 %v6842_v12, %v6810_v59  ;;  %v4352_v18 = vpop.f32.mrf.mxu0  ;;  %v15116_v59 = vsel %vm13658_vm0, %v13357_v61, %v13608_v0 }
 0x86e   : > { %v7974_v8 = vld [vmem:[%s10016_s12 + $0x4b8] sm:$0xf0]  ;;  %v13791_v33 = vpop.eup %9304  ;;  %v13801_v27 = vadd.f32 1.0, %v9303_v13  ;;  %v5387_v4 = vsel %vm13727_vm13, %v13464_v6, %v15116_v59  ;;  %v13814_v12 = vadd.f32 %v13522_v23, %v5407_v49  ;;  %9310 = vrcp.f32 %v13770_v58  ;;  %v15119_v49 = vld [vmem:[#allocation43_spill] sm:$0xff] }
 0x86f   : > { %v7977_v3 = vor.u32 %v8674_v51, %v7974_v8  ;;  %v8738_v57 = vld [vmem:[%s10016_s12 + $0x69c] sm:$0xf]  ;;  %v15115_v51 = vld [vmem:[#allocation51_spill] sm:$0xff]  ;;  %v4401_v8 = vpop.f32.mrf.mxu1  ;;  %4856 = vmatpush.bf16.msrb.mxu3 %v8265_v43  ;;  %7034 = vst [vmem:[#allocation4 + $0x20] sm:$0xff] %v6874_v21  ;;  %v5995_v43 = vsel %vm13786_vm3, %v5994_v60, %v5990_v1  ;;  %v13828_v6 = vmul.f32 %v13791_v33, %v13632_v17  ;;  %vm6017_vm6 = vweird.f32 %v13597_v41 }
 0x870   : > { %v8230_v52 = vld [vmem:[%s10016_s12 + $0x6b8] sm:$0xf0]  ;;  %4699 = vmatmul.bf16.gmra.mxu3 %v15115_v51  ;;  %v4402_v7 = vadd.f32 %v4401_v8, %v4352_v18  ;;  %v13799_v51 = vpop.eup %9306  ;;  %4547 = vmatmul.bf16.gmra.mxu0 %v14975_v28  ;;  %vm6018_vm0 = vweird.f32 %v13679_v30  ;;  %9312 = vrcp.f32 %v13801_v27  ;;  %v15126_v20 = vand.u32 2147483648, %v13597_v41 }
 0x871   : > { %4808 = vmatpush.bf16.msrb.mxu2 %v7977_v3  ;;  %v8233_v44 = vor.u32 %v8738_v57, %v8230_v52  ;;  %v8666_v50 = vld [vmem:[%s10016_s12 + $0x45c] sm:$0xf]  ;;  %4596 = vmatmul.bf16.gmra.mxu1 %v15119_v49  ;;  %v15120_v57 = vand.u32 2147483647, %v13408_v26  ;;  %vm13867_vm7 = vmor %vm6017_vm6, %vm6018_vm0  ;;  %vm5439_vm9 = vweird.f32 %v13515_v34  ;;  %vm5440_vm10 = vweird.f32 %v13644_v48 }
 0x872   : > { %v7942_v62 = vld [vmem:[%s10016_s12 + $0x478] sm:$0xf0]  ;;  %v4451_v22 = vadd.f32 %v13622_v56, %v4402_v7  ;;  %v6016_v56 = vadd.f32 %v13679_v30, %v6015_v63  ;;  %v6812_v7 = vmul.f32 %v6780_v16, %v5995_v43  ;;  %v5412_v16 = vsel %vm13820_vm4, %v13522_v23, %v13814_v12  ;;  %vm13919_vm13 = vmor %vm5439_vm9, %vm5440_vm10 }
 0x873   : > { %v7945_v46 = vor.u32 %v8666_v50, %v7942_v62  ;;  %v8554_v61 = vld [vmem:[%s10016_s12 + $0xdc] sm:$0xf]  ;;  %vm13836_vm5 = vcmp.eq.f32.partialorder %v15120_v57, 8.507059e+37  ;;  %4857 = vmatpush.bf16.msrb.mxu3 %v8233_v44  ;;  %v9309_v50 = vpop.eup %9308  ;;  %v13851_v62 = vmul.f32 %v13799_v51, %v13718_v38  ;;  %vm6048_vm11 = vweird.f32 %v13733_v55 }
 0x874   : > { %v7494_v0 = vld [vmem:[%s10016_s12 + $0xf8] sm:$0xf0]  ;;  %v4500_v59 = vadd.f32 %v13628_v40, %v4451_v22  ;;  %v13878_v22 = vpop.f32.mrf.mxu3  ;;  %v13884_v12 = vpop.eup %9310  ;;  %vm6047_vm12 = vweird.f32 %v13647_v24  ;;  %vm6078_vm2 = vweird.f32 %v13799_v51  ;;  %vm5470_vm3 = vweird.f32 %v13791_v33 }
 0x875   : > { %v7497_v13 = vor.u32 %v8554_v61, %v7494_v0  ;;  %v8618_v60 = vld [vmem:[%s10016_s12 + $0x2dc] sm:$0xf]  ;;  %4809 = vmatpush.bf16.msrb.mxu2 %v7945_v46  ;;  %v13854_v61 = vpop.f32.mrf.mxu2  ;;  %v6844_v46 = vmul.f32 %v9309_v50, %v5387_v4  ;;  %v15125_v4 = vsub.f32 1.0, %v13737_v45  ;;  %v5466_v45 = vsub.f32 1.0, %v13828_v6  ;;  %v6782_v50 = vld [vmem:[#allocation4 + $0xf0] sm:$0xff]  ;;  %vm13926_vm14 = vmor %vm6047_vm12, %vm6048_vm11 }
 0x876   : > { %v7750_v1 = vld [vmem:[%s10016_s12 + $0x2f8] sm:$0xf0]  ;;  %9314 = vtanh.f32 %v4500_v59  ;;  %vm6077_vm4 = vweird.f32 %v13718_v38  ;;  %vm5469_vm6 = vweird.f32 %v13632_v17  ;;  %vm5500_vm10 = vweird.f32 %v13884_v12 }
 0x877   : > { %v8546_v39 = vld [vmem:[%s10016_s12 + $0x9c] sm:$0xf]  ;;  %v7753_v21 = vor.u32 %v8618_v60, %v7750_v1  ;;  %4709 = vmatpush.bf16.msra.mxu0 %v7497_v13  ;;  %v5437_v43 = vmul.f32 %v13644_v48, %v15125_v4  ;;  %vm13974_vm0 = vmor %vm5469_vm6, %vm5470_vm3  ;;  %vm6107_vm11 = vweird.f32 %v13801_v27 }
 0x878   : > { %v7462_v26 = vld [vmem:[%s10016_s12 + $0xb8] sm:$0xf0] }
 0x879   : > { %v8610_v18 = vld [vmem:[%s10016_s12 + $0x29c] sm:$0xf]  ;;  %v7465_v63 = vor.u32 %v8546_v39, %v7462_v26  ;;  %4758 = vmatpush.bf16.msra.mxu1 %v7753_v21  ;;  %v6045_v39 = vmul.f32 %v13733_v55, %v6044_v9  ;;  %v6876_v21 = vadd.f32 %v6844_v46, %v6812_v7  ;;  %v6020_v26 = vsel %vm13867_vm7, %v13679_v30, %v6016_v56 }
 0x87a   : > { %v7718_v8 = vld [vmem:[%s10016_s12 + $0x2b8] sm:$0xf0]  ;;  %v15127_v9 = vand.u32 2147483647, %v13597_v41  ;;  %v6074_v56 = vsub.f32 1.0, %v13851_v62  ;;  %v5438_v7 = vadd.f32 %v13644_v48, %v5437_v43  ;;  %v6053_v43 = vand.u32 2147483648, %v13647_v24 }
 0x87b   : > { %v8730_v44 = vld [vmem:[%s10016_s12 + $0x65c] sm:$0xf]  ;;  %v7721_v60 = vor.u32 %v8610_v18, %v7718_v8  ;;  %v4354_v18 = vpop.f32.mrf.mxu0  ;;  %v4403_v8 = vpop.f32.mrf.mxu1  ;;  %4710 = vmatpush.bf16.msra.mxu0 %v7465_v63  ;;  %7036 = vst [vmem:[#allocation4 + $0x70] sm:$0xff] %v6876_v21  ;;  %v6046_v46 = vadd.f32 %v13733_v55, %v6045_v39 }
 0x87c   : > { %v8198_v0 = vld [vmem:[%s10016_s12 + $0x678] sm:$0xf0]  ;;  %vm6022_vm8 = vcmp.eq.f32.partialorder %v15127_v9, 8.507059e+37  ;;  %v4404_v30 = vadd.f32 %v4403_v8, %v4354_v18  ;;  %v15132_v18 = vand.u32 2147483648, %v13515_v34 }
 0x87d   : > { %v8658_v57 = vld [vmem:[%s10016_s12 + $0x41c] sm:$0xf]  ;;  %v8201_v1 = vor.u32 %v8730_v44, %v8198_v0  ;;  %4759 = vmatpush.bf16.msra.mxu1 %v7721_v60  ;;  %v13901_v0 = vpop.eup %9312  ;;  %v6050_v9 = vsel %vm13926_vm14, %v13733_v55, %v6046_v46 }
 0x87e   : > { %v7910_v3 = vld [vmem:[%s10016_s12 + $0x438] sm:$0xf0]  ;;  %v9315_v4 = vpop.eup %9314  ;;  %v5446_v8 = vor.u32 1.1754944e-38, %v15132_v18  ;;  %vm6108_vm9 = vweird.f32 %v13901_v0 }
 0x87f   : > { %v8722_v14 = vld [vmem:[%s10016_s12 + $0x61c] sm:$0xf]  ;;  %v7913_v13 = vor.u32 %v8658_v57, %v7910_v3  ;;  %4858 = vmatpush.bf16.msrb.mxu3 %v8201_v1  ;;  %v6024_v3 = vor.u32 1.1754944e-38, %v15126_v20  ;;  %v5417_v57 = vsel %vm13836_vm5, %v13504_v35, %v5412_v16  ;;  %v6051_v16 = vand.u32 2147483647, %v13647_v24  ;;  %vm13963_vm5 = vmor %vm6077_vm4, %vm6078_vm2 }
 0x880   : > { %v8166_v49 = vld [vmem:[%s10016_s12 + $0x638] sm:$0xf0]  ;;  %v6846_v35 = vmul.f32 %v9315_v4, %v5417_v57  ;;  %v6075_v24 = vmul.f32 %v13799_v51, %v6074_v56  ;;  %v6103_v20 = vmul.f32 %v13901_v0, %v13801_v27  ;;  %v15133_v56 = vand.u32 2147483647, %v13515_v34  ;;  %4552 = vmatmul.bf16.gmra.mxu0 %v15001_v53  ;;  %vm13995_vm12 = vmor %vm6107_vm11, %vm6108_vm9 }
 0x881   : > { %v8169_v23 = vor.u32 %v8722_v14, %v8166_v49  ;;  %4810 = vmatpush.bf16.msrb.mxu2 %v7913_v13  ;;  %v8538_v14 = vld [vmem:[%s10016_s12 + $0x5c] sm:$0xf]  ;;  %v6025_v41 = vsel %vm6022_vm8, %v6024_v3, %v6020_v26  ;;  %v4453_v49 = vadd.f32 %v13689_v29, %v4404_v30  ;;  %v5442_v26 = vsel %vm13919_vm13, %v13644_v48, %v5438_v7 }
 0x882   : > { %v7430_v6 = vld [vmem:[%s10016_s12 + $0x78] sm:$0xf0]  ;;  %v6814_v52 = vmul.f32 %v6782_v50, %v6025_v41  ;;  %v5495_v30 = vmul.f32 %v13884_v12, %v13770_v58  ;;  %vm5444_vm15 = vcmp.eq.f32.partialorder %v15133_v56, 8.507059e+37  ;;  %vm6052_vm1 = vcmp.eq.f32.partialorder %v6051_v16, 8.507059e+37  ;;  %v13949_v41 = vpop.f32.mrf.mxu3  ;;  %4601 = vmatmul.bf16.gmra.mxu1 %v15002_v10 }
 0x883   : > { %v7433_v59 = vor.u32 %v8538_v14, %v7430_v6  ;;  %v8602_v63 = vld [vmem:[%s10016_s12 + $0x25c] sm:$0xf]  ;;  %4859 = vmatpush.bf16.msrb.mxu3 %v8169_v23  ;;  %v4502_v13 = vadd.f32 %v13696_v36, %v4453_v49  ;;  %v13936_v23 = vpop.f32.mrf.mxu2  ;;  %v4357_v50 = vpop.f32.mrf.mxu0  ;;  %v6054_v14 = vor.u32 1.1754944e-38, %v6053_v43  ;;  %v5447_v49 = vsel %vm5444_vm15, %v5446_v8, %v5442_v26  ;;  %v6786_v8 = vld [vmem:[#allocation4 + $0x98] sm:$0xff] }
 0x884   : > { %v7686_v44 = vld [vmem:[%s10016_s12 + $0x278] sm:$0xf0]  ;;  %4811 = vmatmul.bf16.vlgmr.msrb.gmra.mxu2 %v14987_v37  ;;  %v6878_v3 = vadd.f32 %v6846_v35, %v6814_v52  ;;  %v4406_v48 = vpop.f32.mrf.mxu1  ;;  %v6076_v34 = vadd.f32 %v13799_v51, %v6075_v24  ;;  %v6083_v57 = vand.u32 2147483648, %v13718_v38  ;;  %v5473_v4 = vand.u32 2147483647, %v13632_v17 }
 0x885   : > { %v8530_v62 = vld [vmem:[%s10016_s12 + $0x1c] sm:$0xf]  ;;  %v7689_v60 = vor.u32 %v8602_v63, %v7686_v44  ;;  %4711 = vmatpush.bf16.msra.mxu0 %v7433_v59  ;;  %9316 = vtanh.f32 %v4502_v13  ;;  %v4407_v6 = vadd.f32 %v4406_v48, %v4357_v50  ;;  %v6055_v55 = vsel %vm6052_vm1, %v6054_v14, %v6050_v9 }
 0x886   : > { %v7398_v29 = vld [vmem:[%s10016_s12 + $0x38] sm:$0xf0]  ;;  %4860 = vmatmul.bf16.vlgmr.msrb.gmra.mxu3 %v14993_v5  ;;  %v5467_v5 = vmul.f32 %v13791_v33, %v5466_v45  ;;  %7038 = vst [vmem:[#allocation4 + $0xf0] sm:$0xff] %v6878_v3  ;;  %v5475_v45 = vand.u32 2147483648, %v13632_v17  ;;  %v6104_v63 = vsub.f32 1.0, %v6103_v20  ;;  %v6084_v37 = vor.u32 1.1754944e-38, %v6083_v57 }
 0x887   : > { %v8594_v1 = vld [vmem:[%s10016_s12 + $0x21c] sm:$0xf]  ;;  %v7401_v21 = vor.u32 %v8530_v62, %v7398_v29  ;;  %4760 = vmatpush.bf16.msra.mxu1 %v7689_v60  ;;  %v4456_v59 = vadd.f32 %v13757_v11, %v4407_v6  ;;  %v5496_v62 = vsub.f32 1.0, %v5495_v30  ;;  %vm5474_vm8 = vcmp.eq.f32.partialorder %v5473_v4, 8.507059e+37  ;;  %v15140_v4 = vld [vmem:[#allocation36_spill] sm:$0xff] }
 0x888   : > { %v7654_v40 = vld [vmem:[%s10016_s12 + $0x238] sm:$0xf0]  ;;  %v5468_v11 = vadd.f32 %v13791_v33, %v5467_v5  ;;  %v5476_v36 = vor.u32 1.1754944e-38, %v5475_v45  ;;  %v6113_v3 = vand.u32 2147483648, %v13801_v27  ;;  %v6111_v30 = vand.u32 2147483647, %v13801_v27 }
 0x889   : > { %v7657_v39 = vor.u32 %v8594_v1, %v7654_v40  ;;  %4712 = vmatpush.bf16.msra.mxu0 %v7401_v21  ;;  %v6784_v7 = vld [vmem:[#allocation4 + $0x88] sm:$0xff]  ;;  %v4505_v46 = vadd.f32 %v13767_v2, %v4456_v59  ;;  %v6081_v1 = vand.u32 2147483647, %v13718_v38  ;;  %v6105_v2 = vmul.f32 %v13901_v0, %v6104_v63 }
 0x88a   : > { %v6816_v60 = vmul.f32 %v6784_v7, %v6055_v55  ;;  %v6080_v38 = vsel %vm13963_vm5, %v13799_v51, %v6076_v34  ;;  %v5472_v17 = vsel %vm13974_vm0, %v13791_v33, %v5468_v11  ;;  %v4667_v26 = vpop.f32.mrf.mxu3  ;;  %vm5499_vm13 = vweird.f32 %v13770_v58  ;;  %v6788_v34 = vld [vmem:[#allocation4 + $0x8] sm:$0xff] }
 0x88b   : > { %4761 = vmatpush.bf16.msra.mxu1 %v7657_v39  ;;  %v9317_v44 = vpop.eup %9316  ;;  %9318 = vtanh.f32 %v4505_v46  ;;  %v13969_v43 = vpop.f32.mrf.mxu2  ;;  %v5497_v39 = vmul.f32 %v13884_v12, %v5496_v62  ;;  %vm6082_vm7 = vcmp.eq.f32.partialorder %v6081_v1, 8.507059e+37  ;;  %v5477_v51 = vsel %vm5474_vm8, %v5476_v36, %v5472_v17  ;;  %vm5501_vm14 = vmor %vm5499_vm13, %vm5500_vm10  ;;  %v15141_v21 = vld [vmem:[#allocation37_spill] sm:$0xff] }
 0x88c   : > { %v6848_v29 = vmul.f32 %v9317_v44, %v5447_v49  ;;  %v4359_v52 = vpop.f32.mrf.mxu0  ;;  %v4408_v35 = vpop.f32.mrf.mxu1  ;;  %v6085_v18 = vsel %vm6082_vm7, %v6084_v37, %v6080_v38  ;;  %v6106_v20 = vadd.f32 %v13901_v0, %v6105_v2  ;;  %v5503_v5 = vand.u32 2147483647, %v13770_v58 }
 0x88d   : > { %v4409_v16 = vadd.f32 %v4408_v35, %v4359_v52  ;;  %v5498_v50 = vadd.f32 %v13884_v12, %v5497_v39  ;;  %v6818_v48 = vmul.f32 %v6786_v8, %v6085_v18  ;;  %v6114_v55 = vor.u32 1.1754944e-38, %v6113_v3  ;;  %v15142_v39 = vld [vmem:[#allocation24_spill] sm:$0xff] }
 0x88e   : > { %v6880_v13 = vadd.f32 %v6848_v29, %v6816_v60  ;;  %v6110_v56 = vsel %vm13995_vm12, %v13901_v0, %v6106_v20  ;;  %vm6112_vm15 = vcmp.eq.f32.partialorder %v6111_v30, 8.507059e+37  ;;  %vm5504_vm1 = vcmp.eq.f32.partialorder %v5503_v5, 8.507059e+37  ;;  %v9514_v30 = vld [vmem:[#allocation4 + $0xb0] sm:$0xff] }
 0x88f   : > { %v4458_v24 = vadd.f32 %v13854_v61, %v4409_v16  ;;  %v6115_v63 = vsel %vm6112_vm15, %v6114_v55, %v6110_v56  ;;  %v15145_v55 = vld [vmem:[#allocation41_spill] sm:$0xff] }
 0x890   : > { %7040 = vst [vmem:[#allocation4 + $0x88] sm:$0xff] %v6880_v13  ;;  %4713 = vmatmul.bf16.vlgmr.msra.gmra.mxu0 %v15019_v31  ;;  %v6820_v57 = vmul.f32 %v6788_v34, %v6115_v63 }
 0x891   : > { %v9319_v33 = vpop.eup %9318  ;;  %v4507_v9 = vadd.f32 %v13878_v22, %v4458_v24 }
 0x892   : > { %v6850_v61 = vmul.f32 %v9319_v33, %v5477_v51  ;;  %v4670_v59 = vpop.f32.mrf.mxu3  ;;  %4762 = vmatmul.bf16.vlgmr.msra.gmra.mxu1 %v15020_v54 }
 0x893   : > { %9320 = vtanh.f32 %v4507_v9  ;;  %v4621_v22 = vpop.f32.mrf.mxu2 }
 0x894   : > { %4816 = vmatmul.bf16.gmra.mxu2 %v15013_v32  ;;  %v5505_v32 = vand.u32 2147483648, %v13770_v58  ;;  %v6882_v6 = vadd.f32 %v6850_v61, %v6818_v48  ;;  %v4518_v27 = vpop.f32.mrf.mxu0  ;;  %v4567_v49 = vpop.f32.mrf.mxu1 }
 0x895   : > { %v4568_v7 = vadd.f32 %v4567_v49, %v4518_v27 }
 0x896   : > { %4865 = vmatmul.bf16.gmra.mxu3 %v15018_v19  ;;  %7042 = vst [vmem:[#allocation4 + $0x98] sm:$0xff] %v6882_v6  ;;  %v5502_v19 = vsel %vm5501_vm14, %v13884_v12, %v5498_v50  ;;  %v5506_v45 = vor.u32 1.1754944e-38, %v5505_v32  ;;  %v15144_v32 = vld [vmem:[#allocation40_spill] sm:$0xff] }
 0x897   : > { %v4617_v58 = vadd.f32 %v13936_v23, %v4568_v7 }
 0x898   : > { %v5507_v44 = vsel %vm5504_vm1, %v5506_v45, %v5502_v19 }
 0x899   : > { %v9321_v0 = vpop.eup %9320  ;;  %v4666_v62 = vadd.f32 %v13949_v41, %v4617_v58 }
 0x89a   : > { %v6852_v46 = vmul.f32 %v9321_v0, %v5507_v44  ;;  %v4672_v23 = vpop.f32.mrf.mxu3 }
 0x89b   : > { %v8458_v11 = vmul.f32 -1.442695, %v4666_v62  ;;  %v4623_v12 = vpop.f32.mrf.mxu2 }
 0x89c   : > { %v6884_v60 = vadd.f32 %v6852_v46, %v6820_v57  ;;  %v4520_v29 = vpop.f32.mrf.mxu0  ;;  %v4569_v1 = vpop.f32.mrf.mxu1 }
 0x89d   : > { %9322 = vpow2.f32 %v8458_v11  ;;  %v4570_v40 = vadd.f32 %v4569_v1, %v4520_v29  ;;  %v15147_v29 = vld [vmem:[#allocation27_spill] sm:$0xff]  ;;  %v9515_v1 = vld [vmem:[#allocation4 + $0xc0] sm:$0xff] }
 0x89e   : > { %7044 = vst [vmem:[#allocation4 + $0x8] sm:$0xff] %v6884_v60  ;;  %v15146_v60 = vld [vmem:[#allocation26_spill] sm:$0xff] }
 0x89f   : > { %v4619_v31 = vadd.f32 %v13969_v43, %v4570_v40  ;;  %v15143_v43 = vld [vmem:[#allocation25_spill] sm:$0xff] }
 0x8a0   : > { %4718 = vmatmul.bf16.gmra.mxu0 %v15142_v39 }
 0x8a1   : > { %v4668_v54 = vadd.f32 %v4667_v26, %v4619_v31 }
 0x8a2   : > { %v14018_v17 = vpop.f32.mrf.mxu3  ;;  %4767 = vmatmul.bf16.gmra.mxu1 %v15143_v43 }
 0x8a3   : > { %v9323_v2 = vpop.eup %9322  ;;  %v8460_v13 = vmul.f32 -1.442695, %v4668_v54  ;;  %v14016_v41 = vpop.f32.mrf.mxu2 }
 0x8a4   : > { %4821 = vmatmul.bf16.gmra.mxu2 %v15140_v4  ;;  %v6245_v38 = vadd.f32 1.0, %v9323_v2  ;;  %v4523_v52 = vpop.f32.mrf.mxu0  ;;  %v4572_v35 = vpop.f32.mrf.mxu1 }
 0x8a5   : > { %9324 = vpow2.f32 %v8460_v13  ;;  %v4573_v37 = vadd.f32 %v4572_v35, %v4523_v52 }
 0x8a6   : > { %4870 = vmatmul.bf16.gmra.mxu3 %v15141_v21  ;;  %9326 = vrcp.f32 %v6245_v38  ;;  %v6288_v14 = vand.u32 2147483648, %v6245_v38  ;;  %v6286_v6 = vand.u32 2147483647, %v6245_v38  ;;  %vm6282_vm3 = vweird.f32 %v6245_v38 }
 0x8a7   : > { %v4622_v16 = vadd.f32 %v4621_v22, %v4573_v37 }
 0x8a8   : > { %vm6287_vm5 = vcmp.eq.f32.partialorder %v6286_v6, 8.507059e+37 }
 0x8a9   : > { %v4671_v36 = vadd.f32 %v4670_v59, %v4622_v16  ;;  %v6289_v59 = vor.u32 1.1754944e-38, %v6288_v14  ;;  %v15149_v14 = vld [vmem:[#allocation45_spill] sm:$0xff] }
 0x8aa   : > { %v14027_v50 = vpop.f32.mrf.mxu3 }
 0x8ab   : > { %v9325_v26 = vpop.eup %9324  ;;  %v8462_v18 = vmul.f32 -1.442695, %v4671_v36  ;;  %v14022_v8 = vpop.f32.mrf.mxu2 }
 0x8ac   : > { %v9327_v24 = vpop.eup %9326  ;;  %v14024_v51 = vadd.f32 1.0, %v9325_v26  ;;  %v4525_v20 = vpop.f32.mrf.mxu0 }
 0x8ad   : > { %v4574_v33 = vpop.f32.mrf.mxu1  ;;  %v6278_v3 = vmul.f32 %v9327_v24, %v6245_v38  ;;  %9328 = vpow2.f32 %v8462_v18  ;;  %vm6283_vm2 = vweird.f32 %v9327_v24 }
 0x8ae   : > { %v4575_v9 = vadd.f32 %v4574_v33, %v4525_v20  ;;  %9330 = vrcp.f32 %v14024_v51  ;;  %vm6284_vm4 = vmor %vm6282_vm3, %vm6283_vm2  ;;  %v6318_v40 = vand.u32 2147483648, %v14024_v51  ;;  %v6316_v31 = vand.u32 2147483647, %v14024_v51 }
 0x8af   : > { %v6279_v48 = vsub.f32 1.0, %v6278_v3  ;;  %9332 = vtanh.f32 %v9514_v30  ;;  %vm6312_vm0 = vweird.f32 %v14024_v51  ;;  %v15148_v3 = vld [vmem:[#allocation44_spill] sm:$0xff] }
 0x8b0   : > { %v4624_v61 = vadd.f32 %v4623_v12, %v4575_v9  ;;  %4723 = vmatmul.bf16.gmra.mxu0 %v15146_v60  ;;  %v6319_v52 = vor.u32 1.1754944e-38, %v6318_v40  ;;  %vm6317_vm8 = vcmp.eq.f32.partialorder %v6316_v31, 8.507059e+37 }
 0x8b1   : > { %v6280_v22 = vmul.f32 %v9327_v24, %v6279_v48 }
 0x8b2   : > { %v4673_v5 = vadd.f32 %v4672_v23, %v4624_v61  ;;  %v14037_v57 = vpop.f32.mrf.mxu3  ;;  %4772 = vmatmul.bf16.gmra.mxu1 %v15147_v29 }
 0x8b3   : > { %v9329_v56 = vpop.eup %9328  ;;  %v6281_v27 = vadd.f32 %v9327_v24, %v6280_v22  ;;  %v14031_v7 = vpop.f32.mrf.mxu2 }
 0x8b4   : > { %4826 = vmatmul.bf16.gmra.mxu2 %v15144_v32  ;;  %v8464_v49 = vmul.f32 -1.442695, %v4673_v5  ;;  %v9331_v19 = vpop.eup %9330  ;;  %v14033_v45 = vadd.f32 1.0, %v9329_v56  ;;  %v4528_v63 = vpop.f32.mrf.mxu0 }
 0x8b5   : > { %v4577_v34 = vpop.f32.mrf.mxu1  ;;  %v6285_v58 = vsel %vm6284_vm4, %v9327_v24, %v6281_v27  ;;  %v6308_v0 = vmul.f32 %v9331_v19, %v14024_v51  ;;  %v9333_v44 = vpop.eup %9332  ;;  %vm6313_vm6 = vweird.f32 %v9331_v19  ;;  %v9516_v51 = vld [vmem:[#allocation4 + $0x28] sm:$0xff] }
 0x8b6   : > { %4875 = vmatmul.bf16.gmra.mxu3 %v15145_v55  ;;  %9334 = vpow2.f32 %v8464_v49  ;;  %v6290_v62 = vsel %vm6287_vm5, %v6289_v59, %v6285_v58  ;;  %v4578_v12 = vadd.f32 %v4577_v34, %v4528_v63  ;;  %vm6314_vm7 = vmor %vm6312_vm0, %vm6313_vm6  ;;  %v6348_v20 = vand.u32 2147483648, %v14033_v45 }
 0x8b7   : > { %9336 = vrcp.f32 %v14033_v45  ;;  %v14039_v46 = vmul.f32 %v9333_v44, %v6290_v62  ;;  %v6309_v11 = vsub.f32 1.0, %v6308_v0  ;;  %v6346_v48 = vand.u32 2147483647, %v14033_v45  ;;  %v9517_v0 = vld [vmem:[#allocation4 + $0xd0] sm:$0xff] }
 0x8b8   : > { %9338 = vtanh.f32 %v9515_v1  ;;  %v4627_v4 = vadd.f32 %v14016_v41, %v4578_v12  ;;  %vm6342_vm10 = vweird.f32 %v14033_v45  ;;  %v6349_v6 = vor.u32 1.1754944e-38, %v6348_v20  ;;  %v15151_v12 = vld [vmem:[#allocation29_spill] sm:$0xff] }
 0x8b9   : > { %6949 = vst [vmem:[#allocation2 + $0xb0] sm:$0xff] %v14039_v46  ;;  %v6310_v23 = vmul.f32 %v9331_v19, %v6309_v11  ;;  %vm6347_vm12 = vcmp.eq.f32.partialorder %v6346_v48, 8.507059e+37  ;;  %v15150_v11 = vld [vmem:[#allocation28_spill] sm:$0xff] }
 0x8ba   : > { %6981 = vst [vmem:[#allocation3 + $0x80] sm:$0xff] %v14039_v46  ;;  %v4676_v13 = vadd.f32 %v14018_v17, %v4627_v4  ;;  %v14056_v18 = vpop.f32.mrf.mxu3 }
 0x8bb   : > { %v6311_v2 = vadd.f32 %v9331_v19, %v6310_v23  ;;  %v14050_v21 = vpop.f32.mrf.mxu2 }
 0x8bc   : > { %v9335_v54 = vpop.eup %9334  ;;  %v4530_v37 = vpop.f32.mrf.mxu0  ;;  %v8466_v43 = vmul.f32 -1.442695, %v4676_v13 }
 0x8bd   : > { %v9337_v38 = vpop.eup %9336  ;;  %v14052_v35 = vadd.f32 1.0, %v9335_v54  ;;  %v4579_v16 = vpop.f32.mrf.mxu1  ;;  %v6315_v39 = vsel %vm6314_vm7, %v9331_v19, %v6311_v2 }
 0x8be   : > { %v6338_v41 = vmul.f32 %v9337_v38, %v14033_v45  ;;  %v9339_v36 = vpop.eup %9338  ;;  %v6320_v26 = vsel %vm6317_vm8, %v6319_v52, %v6315_v39  ;;  %v4580_v33 = vadd.f32 %v4579_v16, %v4530_v37  ;;  %vm6343_vm9 = vweird.f32 %v9337_v38 }
 0x8bf   : > { %9340 = vrcp.f32 %v14052_v35  ;;  %v14058_v17 = vmul.f32 %v9339_v36, %v6320_v26  ;;  %vm6344_vm11 = vmor %vm6342_vm10, %vm6343_vm9  ;;  %v6376_v60 = vand.u32 2147483647, %v14052_v35  ;;  %v6378_v29 = vand.u32 2147483648, %v14052_v35  ;;  %v9518_v26 = vld [vmem:[#allocation4 + $0x58] sm:$0xff] }
 0x8c0   : > { %v6339_v24 = vsub.f32 1.0, %v6338_v41  ;;  %9342 = vpow2.f32 %v8466_v43  ;;  %v4629_v61 = vadd.f32 %v14022_v8, %v4580_v33  ;;  %4728 = vmatmul.bf16.gmra.mxu0 %v15150_v11  ;;  %vm6372_vm14 = vweird.f32 %v14052_v35 }
 0x8c1   : > { %9344 = vtanh.f32 %v9516_v51  ;;  %6951 = vst [vmem:[#allocation2 + $0xd8] sm:$0xff] %v14058_v17  ;;  %v6379_v4 = vor.u32 1.1754944e-38, %v6378_v29  ;;  %vm6377_vm1 = vcmp.eq.f32.partialorder %v6376_v60, 8.507059e+37  ;;  %v9520_v60 = vld [vmem:[#allocation4 + $0x78] sm:$0xff] }
 0x8c2   : > { %v6340_v9 = vmul.f32 %v9337_v38, %v6339_v24  ;;  %6983 = vst [vmem:[#allocation3 + $0xe8] sm:$0xff] %v14058_v17  ;;  %v4678_v5 = vadd.f32 %v14027_v50, %v4629_v61  ;;  %v14074_v58 = vpop.f32.mrf.mxu3  ;;  %9346 = vtanh.f32 %v9517_v0  ;;  %4777 = vmatmul.bf16.gmra.mxu1 %v15151_v12 }
 0x8c3   : > { %v14068_v32 = vpop.f32.mrf.mxu2 }
 0x8c4   : > { %4831 = vmatmul.bf16.gmra.mxu2 %v15148_v3  ;;  %v6341_v30 = vadd.f32 %v9337_v38, %v6340_v9  ;;  %v4533_v56 = vpop.f32.mrf.mxu0  ;;  %v8468_v34 = vmul.f32 -1.442695, %v4678_v5 }
 0x8c5   : > { %v9341_v22 = vpop.eup %9340  ;;  %v4582_v27 = vpop.f32.mrf.mxu1 }
 0x8c6   : > { %4880 = vmatmul.bf16.gmra.mxu3 %v15149_v14  ;;  %v9343_v49 = vpop.eup %9342  ;;  %v6345_v55 = vsel %vm6344_vm11, %v9337_v38, %v6341_v30  ;;  %v6368_v19 = vmul.f32 %v9341_v22, %v14052_v35  ;;  %v4583_v8 = vadd.f32 %v4582_v27, %v4533_v56  ;;  %vm6373_vm13 = vweird.f32 %v9341_v22 }
 0x8c7   : > { %v9345_v59 = vpop.eup %9344  ;;  %v6350_v63 = vsel %vm6347_vm12, %v6349_v6, %v6345_v55  ;;  %v14072_v45 = vadd.f32 1.0, %v9343_v49  ;;  %vm6374_vm15 = vmor %vm6372_vm14, %vm6373_vm13  ;;  %v15153_v55 = vld [vmem:[#allocation34_spill] sm:$0xff] }
 0x8c8   : > { %v14076_v44 = vmul.f32 %v9345_v59, %v6350_v63  ;;  %v6369_v50 = vsub.f32 1.0, %v6368_v19  ;;  %v4632_v62 = vadd.f32 %v14031_v7, %v4583_v8  ;;  %v9347_v13 = vpop.eup %9346  ;;  %v15154_v19 = vld [vmem:[#allocation35_spill] sm:$0xff] }
 0x8c9   : > { %9348 = vrcp.f32 %v14072_v45  ;;  %v6408_v20 = vand.u32 2147483648, %v14072_v45  ;;  %vm6402_vm3 = vweird.f32 %v14072_v45 }
 0x8ca   : > { %6953 = vst [vmem:[#allocation2 + $0x50] sm:$0xff] %v14076_v44  ;;  %v6370_v1 = vmul.f32 %v9341_v22, %v6369_v50  ;;  %9350 = vpow2.f32 %v8468_v34  ;;  %v4681_v40 = vadd.f32 %v14037_v57, %v4632_v62  ;;  %v14090_v57 = vpop.f32.mrf.mxu3  ;;  %v9519_v50 = vld [vmem:[#allocation4 + $0x48] sm:$0xff] }
 0x8cb   : > { %6985 = vst [vmem:[#allocation3 + $0x8] sm:$0xff] %v14076_v44  ;;  %v14088_v31 = vpop.f32.mrf.mxu2  ;;  %v6409_v6 = vor.u32 1.1754944e-38, %v6408_v20 }
 0x8cc   : > { %v6371_v7 = vadd.f32 %v9341_v22, %v6370_v1  ;;  %v8470_v23 = vmul.f32 -1.442695, %v4681_v40  ;;  %v4535_v54 = vpop.f32.mrf.mxu0 }
 0x8cd   : > { %v4584_v2 = vpop.f32.mrf.mxu1 }
 0x8ce   : > { %v6375_v38 = vsel %vm6374_vm15, %v9341_v22, %v6371_v7  ;;  %9352 = vpow2.f32 %v8470_v23  ;;  %v4585_v52 = vadd.f32 %v4584_v2, %v4535_v54 }
 0x8cf   : > { %v9349_v37 = vpop.eup %9348  ;;  %v6380_v16 = vsel %vm6377_vm1, %v6379_v4, %v6375_v38  ;;  %9354 = vtanh.f32 %v9518_v26 }
 0x8d0   : > { %v9351_v39 = vpop.eup %9350  ;;  %v14092_v41 = vmul.f32 %v9347_v13, %v6380_v16  ;;  %v6398_v35 = vmul.f32 %v9349_v37, %v14072_v45  ;;  %v4634_v43 = vadd.f32 %v14050_v21, %v4585_v52  ;;  %vm6403_vm2 = vweird.f32 %v9349_v37  ;;  %4733 = vmatmul.bf16.gmra.mxu0 %v15153_v55 }
 0x8d1   : > { %v14096_v36 = vadd.f32 1.0, %v9351_v39  ;;  %v6406_v21 = vand.u32 2147483647, %v14072_v45  ;;  %vm6404_vm4 = vmor %vm6402_vm3, %vm6403_vm2 }
 0x8d2   : > { %6955 = vst [vmem:[#allocation2 + $0x30] sm:$0xff] %v14092_v41  ;;  %v6399_v24 = vsub.f32 1.0, %v6398_v35  ;;  %v4683_v51 = vadd.f32 %v14056_v18, %v4634_v43  ;;  %v14112_v5 = vpop.f32.mrf.mxu3  ;;  %4782 = vmatmul.bf16.gmra.mxu1 %v15154_v19 }
 0x8d3   : > { %6987 = vst [vmem:[#allocation3 + $0x58] sm:$0xff] %v14092_v41  ;;  %9356 = vrcp.f32 %v14096_v36  ;;  %v14106_v48 = vpop.f32.mrf.mxu2  ;;  %vm6407_vm5 = vcmp.eq.f32.partialorder %v6406_v21, 8.507059e+37  ;;  %v6436_v29 = vand.u32 2147483647, %v14096_v36  ;;  %v6438_v1 = vand.u32 2147483648, %v14096_v36 }
 0x8d4   : > { %4836 = vmatmul.bf16.gmra.mxu2 %v14929_v47  ;;  %v9353_v33 = vpop.eup %9352  ;;  %v6400_v3 = vmul.f32 %v9349_v37, %v6399_v24  ;;  %v8472_v9 = vmul.f32 -1.442695, %v4683_v51  ;;  %v15152_v47 = vld [vmem:[#allocation47_spill] sm:$0xff]  ;;  %v4538_v30 = vpop.f32.mrf.mxu0  ;;  %vm6432_vm0 = vweird.f32 %v14096_v36 }
 0x8d5   : > { %v14108_v61 = vadd.f32 1.0, %v9353_v33  ;;  %v4587_v18 = vpop.f32.mrf.mxu1  ;;  %v9355_v56 = vpop.eup %9354  ;;  %vm6437_vm8 = vcmp.eq.f32.partialorder %v6436_v29, 8.507059e+37  ;;  %v6439_v52 = vor.u32 1.1754944e-38, %v6438_v1 }
 0x8d6   : > { %4885 = vmatmul.bf16.gmra.mxu3 %v15152_v47  ;;  %v6401_v14 = vadd.f32 %v9349_v37, %v6400_v3  ;;  %9358 = vpow2.f32 %v8472_v9  ;;  %v4588_v22 = vadd.f32 %v4587_v18, %v4538_v30 }
 0x8d7   : > { %9360 = vrcp.f32 %v14108_v61  ;;  %v6468_v16 = vand.u32 2147483648, %v14108_v61  ;;  %vm6462_vm10 = vweird.f32 %v14108_v61 }
 0x8d8   : > { %v6405_v27 = vsel %vm6404_vm4, %v9349_v37, %v6401_v14  ;;  %v4637_v49 = vadd.f32 %v14068_v32, %v4588_v22  ;;  %9362 = vtanh.f32 %v9519_v50  ;;  %v6466_v37 = vand.u32 2147483647, %v14108_v61 }
 0x8d9   : > { %v9357_v8 = vpop.eup %9356  ;;  %v6410_v59 = vsel %vm6407_vm5, %v6409_v6, %v6405_v27  ;;  %9364 = vtanh.f32 %v9520_v60  ;;  %v6469_v9 = vor.u32 1.1754944e-38, %v6468_v16  ;;  %v9521_v27 = vld [vmem:[#allocation4 + $0xe0] sm:$0xff] }
 0x8da   : > { %v14117_v63 = vmul.f32 %v9355_v56, %v6410_v59  ;;  %v6428_v45 = vmul.f32 %v9357_v8, %v14096_v36  ;;  %v4686_v34 = vadd.f32 %v14074_v58, %v4637_v49  ;;  %vm6433_vm6 = vweird.f32 %v9357_v8  ;;  %v14131_v54 = vpop.f32.mrf.mxu3  ;;  %v15155_v56 = vld [vmem:[#allocation39_spill] sm:$0xff] }
 0x8db   : > { %v14122_v32 = vpop.f32.mrf.mxu2  ;;  %vm6434_vm7 = vmor %vm6432_vm0, %vm6433_vm6  ;;  %vm6467_vm12 = vcmp.eq.f32.partialorder %v6466_v37, 8.507059e+37  ;;  %v15156_v37 = vld [vmem:[#allocation50_spill] sm:$0xff] }
 0x8dc   : > { %v9359_v0 = vpop.eup %9358  ;;  %6957 = vst [vmem:[#allocation2 + $0x80] sm:$0xff] %v14117_v63  ;;  %v6429_v62 = vsub.f32 1.0, %v6428_v45  ;;  %v8474_v11 = vmul.f32 -1.442695, %v4686_v34  ;;  %v4540_v58 = vpop.f32.mrf.mxu0 }
 0x8dd   : > { %v9361_v12 = vpop.eup %9360  ;;  %6989 = vst [vmem:[#allocation3 + $0xd0] sm:$0xff] %v14117_v63  ;;  %v14127_v40 = vadd.f32 1.0, %v9359_v0  ;;  %v4589_v7 = vpop.f32.mrf.mxu1 }
 0x8de   : > { %v6430_v23 = vmul.f32 %v9357_v8, %v6429_v62  ;;  %v6458_v4 = vmul.f32 %v9361_v12, %v14108_v61  ;;  %9366 = vpow2.f32 %v8474_v11  ;;  %v4590_v38 = vadd.f32 %v4589_v7, %v4540_v58  ;;  %v9363_v39 = vpop.eup %9362 }
 0x8df   : > { %9368 = vrcp.f32 %v14127_v40  ;;  %vm6463_vm9 = vweird.f32 %v9361_v12  ;;  %v9365_v24 = vpop.eup %9364  ;;  %v6498_v49 = vand.u32 2147483648, %v14127_v40  ;;  %vm6492_vm14 = vweird.f32 %v14127_v40 }
 0x8e0   : > { %v6431_v2 = vadd.f32 %v9357_v8, %v6430_v23  ;;  %v6459_v13 = vsub.f32 1.0, %v6458_v4  ;;  %v4639_v26 = vadd.f32 %v14088_v31, %v4590_v38  ;;  %vm6464_vm11 = vmor %vm6462_vm10, %vm6463_vm9  ;;  %4738 = vmatmul.bf16.gmra.mxu0 %v15100_v25  ;;  %v9522_v4 = vld [vmem:[#allocation4 + $0xa0] sm:$0xff] }
 0x8e1   : > { %v6499_v0 = vor.u32 1.1754944e-38, %v6498_v49 }
 0x8e2   : > { %v6435_v35 = vsel %vm6434_vm7, %v9357_v8, %v6431_v2  ;;  %v6460_v43 = vmul.f32 %v9361_v12, %v6459_v13  ;;  %v4688_v3 = vadd.f32 %v14090_v57, %v4639_v26  ;;  %4787 = vmatmul.bf16.gmra.mxu1 %v15155_v56  ;;  %v6496_v8 = vand.u32 2147483647, %v14127_v40 }
 0x8e3   : > { %v6440_v51 = vsel %vm6437_vm8, %v6439_v52, %v6435_v35  ;;  %v14143_v21 = vpop.f32.mrf.mxu2 }
 0x8e4   : > { %4841 = vmatmul.bf16.gmra.mxu2 %v15093_v42  ;;  %v9367_v36 = vpop.eup %9366  ;;  %v14138_v20 = vmul.f32 %v9363_v39, %v6440_v51  ;;  %v6461_v33 = vadd.f32 %v9361_v12, %v6460_v43  ;;  %v4543_v31 = vpop.f32.mrf.mxu0  ;;  %v8476_v61 = vmul.f32 -1.442695, %v4688_v3  ;;  %vm6497_vm1 = vcmp.eq.f32.partialorder %v6496_v8, 8.507059e+37  ;;  %v15157_v43 = vld [vmem:[#allocation51_spill] sm:$0xff] }
 0x8e5   : > { %v9369_v42 = vpop.eup %9368  ;;  %v14145_v47 = vadd.f32 1.0, %v9367_v36  ;;  %v4592_v30 = vpop.f32.mrf.mxu1 }
 0x8e6   : > { %4890 = vmatmul.bf16.gmra.mxu3 %v15096_v15  ;;  %6959 = vst [vmem:[#allocation2 + $0xe8] sm:$0xff] %v14138_v20  ;;  %v6465_v18 = vsel %vm6464_vm11, %v9361_v12, %v6461_v33  ;;  %v6488_v14 = vmul.f32 %v9369_v42, %v14127_v40  ;;  %v14151_v15 = vpop.f32.mrf.mxu3  ;;  %v4593_v55 = vadd.f32 %v4592_v30, %v4543_v31  ;;  %vm6493_vm13 = vweird.f32 %v9369_v42 }
 0x8e7   : > { %6991 = vst [vmem:[#allocation3 + $0x38] sm:$0xff] %v14138_v20  ;;  %v6470_v57 = vsel %vm6467_vm12, %v6469_v9, %v6465_v18  ;;  %9370 = vrcp.f32 %v14145_v47  ;;  %vm6494_vm15 = vmor %vm6492_vm14, %vm6493_vm13  ;;  %v6526_v38 = vand.u32 2147483647, %v14145_v47  ;;  %v6528_v52 = vand.u32 2147483648, %v14145_v47 }
 0x8e8   : > { %v14153_v22 = vmul.f32 %v9365_v24, %v6470_v57  ;;  %v6489_v6 = vsub.f32 1.0, %v6488_v14  ;;  %9372 = vpow2.f32 %v8476_v61  ;;  %v4642_v59 = vadd.f32 %v14106_v48, %v4593_v55  ;;  %v15158_v61 = vld [vmem:[#allocation43_spill] sm:$0xff] }
 0x8e9   : > { %9374 = vtanh.f32 %v9521_v27  ;;  %vm6522_vm3 = vweird.f32 %v14145_v47  ;;  %v6529_v24 = vor.u32 1.1754944e-38, %v6528_v52  ;;  %vm6527_vm5 = vcmp.eq.f32.partialorder %v6526_v38, 8.507059e+37 }
 0x8ea   : > { %6961 = vst [vmem:[#allocation2 + $0x60] sm:$0xff] %v14153_v22  ;;  %v6490_v19 = vmul.f32 %v9369_v42, %v6489_v6  ;;  %v4691_v50 = vadd.f32 %v14112_v5, %v4642_v59  ;;  %9376 = vtanh.f32 %v9522_v4  ;;  %v9523_v6 = vld [vmem:[#allocation4 + $0xf8] sm:$0xff]  ;;  %v9524_v4 = vld [vmem:[#allocation4 + $0x90] sm:$0xff] }
 0x8eb   : > { %6993 = vst [vmem:[#allocation3 + $0xe0] sm:$0xff] %v14153_v22  ;;  %v14163_v25 = vpop.f32.mrf.mxu2 }
 0x8ec   : > { %v6491_v45 = vadd.f32 %v9369_v42, %v6490_v19  ;;  %v4545_v62 = vpop.f32.mrf.mxu0  ;;  %v8478_v40 = vmul.f32 -1.442695, %v4691_v50 }
 0x8ed   : > { %v9371_v34 = vpop.eup %9370  ;;  %v4594_v11 = vpop.f32.mrf.mxu1 }
 0x8ee   : > { %v9373_v12 = vpop.eup %9372  ;;  %v6495_v60 = vsel %vm6494_vm15, %v9369_v42, %v6491_v45  ;;  %v6518_v29 = vmul.f32 %v9371_v34, %v14145_v47  ;;  %v4595_v1 = vadd.f32 %v4594_v11, %v4545_v62  ;;  %v14169_v23 = vpop.f32.mrf.mxu3  ;;  %vm6523_vm2 = vweird.f32 %v9371_v34 }
 0x8ef   : > { %v9375_v58 = vpop.eup %9374  ;;  %v6500_v48 = vsel %vm6497_vm1, %v6499_v0, %v6495_v60  ;;  %v14167_v7 = vadd.f32 1.0, %v9373_v12  ;;  %vm6524_vm4 = vmor %vm6522_vm3, %vm6523_vm2 }
 0x8f0   : > { %v14171_v2 = vmul.f32 %v9375_v58, %v6500_v48  ;;  %v6519_v5 = vsub.f32 1.0, %v6518_v29  ;;  %v4644_v13 = vadd.f32 %v14122_v32, %v4595_v1  ;;  %v9377_v33 = vpop.eup %9376  ;;  %4743 = vmatmul.bf16.gmra.mxu0 %v14975_v28 }
 0x8f1   : > { %9378 = vrcp.f32 %v14167_v7  ;;  %v6558_v49 = vand.u32 2147483648, %v14167_v7  ;;  %v6556_v28 = vand.u32 2147483647, %v14167_v7  ;;  %vm6552_vm0 = vweird.f32 %v14167_v7 }
 0x8f2   : > { %6963 = vst [vmem:[#allocation2 + $0x8] sm:$0xff] %v14171_v2  ;;  %v6520_v16 = vmul.f32 %v9371_v34, %v6519_v5  ;;  %9380 = vpow2.f32 %v8478_v40  ;;  %v4693_v39 = vadd.f32 %v14131_v54, %v4644_v13  ;;  %4792 = vmatmul.bf16.gmra.mxu1 %v15158_v61 }
 0x8f3   : > { %6995 = vst [vmem:[#allocation3 + $0x18] sm:$0xff] %v14171_v2  ;;  %v14183_v26 = vpop.f32.mrf.mxu2  ;;  %v6559_v50 = vor.u32 1.1754944e-38, %v6558_v49  ;;  %vm6557_vm8 = vcmp.eq.f32.partialorder %v6556_v28, 8.507059e+37 }
 0x8f4   : > { %4846 = vmatmul.bf16.gmra.mxu2 %v15156_v37  ;;  %v6521_v35 = vadd.f32 %v9371_v34, %v6520_v16  ;;  %v8480_v32 = vmul.f32 -1.442695, %v4693_v39  ;;  %v4548_v51 = vpop.f32.mrf.mxu0  ;;  %v9525_v37 = vld [vmem:[#allocation4 + $0x38] sm:$0xff] }
 0x8f5   : > { %v4597_v36 = vpop.f32.mrf.mxu1 }
 0x8f6   : > { %4895 = vmatmul.bf16.gmra.mxu3 %v15157_v43  ;;  %v6525_v3 = vsel %vm6524_vm4, %v9371_v34, %v6521_v35  ;;  %9382 = vpow2.f32 %v8480_v32  ;;  %v4598_v42 = vadd.f32 %v4597_v36, %v4548_v51  ;;  %v14185_v31 = vpop.f32.mrf.mxu3 }
 0x8f7   : > { %v9379_v54 = vpop.eup %9378  ;;  %v6530_v9 = vsel %vm6527_vm5, %v6529_v24, %v6525_v3  ;;  %9384 = vtanh.f32 %v9523_v6 }
 0x8f8   : > { %v9381_v30 = vpop.eup %9380  ;;  %v14187_v47 = vmul.f32 %v9377_v33, %v6530_v9  ;;  %v6548_v18 = vmul.f32 %v9379_v54, %v14167_v7  ;;  %v4647_v14 = vadd.f32 %v14143_v21, %v4598_v42  ;;  %vm6553_vm6 = vweird.f32 %v9379_v54 }
 0x8f9   : > { %v14193_v57 = vadd.f32 1.0, %v9381_v30  ;;  %vm6554_vm7 = vmor %vm6552_vm0, %vm6553_vm6 }
 0x8fa   : > { %6965 = vst [vmem:[#allocation2 + $0x38] sm:$0xff] %v14187_v47  ;;  %v6549_v56 = vsub.f32 1.0, %v6548_v18  ;;  %v4696_v27 = vadd.f32 %v14151_v15, %v4647_v14 }
 0x8fb   : > { %6997 = vst [vmem:[#allocation3 + $0x10] sm:$0xff] %v14187_v47  ;;  %9386 = vrcp.f32 %v14193_v57  ;;  %v14201_v8 = vpop.f32.mrf.mxu2  ;;  %v6588_v16 = vand.u32 2147483648, %v14193_v57  ;;  %vm6582_vm10 = vweird.f32 %v14193_v57 }
 0x8fc   : > { %v9383_v21 = vpop.eup %9382  ;;  %v6550_v55 = vmul.f32 %v9379_v54, %v6549_v56  ;;  %v8482_v19 = vmul.f32 -1.442695, %v4696_v27  ;;  %v4550_v45 = vpop.f32.mrf.mxu0 }
 0x8fd   : > { %v14203_v59 = vadd.f32 1.0, %v9383_v21  ;;  %v4599_v34 = vpop.f32.mrf.mxu1  ;;  %v9385_v11 = vpop.eup %9384  ;;  %v6589_v3 = vor.u32 1.1754944e-38, %v6588_v16 }
 0x8fe   : > { %v6551_v0 = vadd.f32 %v9379_v54, %v6550_v55  ;;  %9388 = vpow2.f32 %v8482_v19  ;;  %v4600_v15 = vadd.f32 %v4599_v34, %v4550_v45  ;;  %v14207_v62 = vpop.f32.mrf.mxu3 }
 0x8ff   : > { %9390 = vrcp.f32 %v14203_v59  ;;  %v6616_v42 = vand.u32 2147483647, %v14203_v59  ;;  %vm6612_vm14 = vweird.f32 %v14203_v59 }
 0x900   : > { %v6555_v12 = vsel %vm6554_vm7, %v9379_v54, %v6551_v0  ;;  %v4649_v60 = vadd.f32 %v14163_v25, %v4600_v15  ;;  %9392 = vtanh.f32 %v9524_v4  ;;  %v6586_v25 = vand.u32 2147483647, %v14193_v57  ;;  %4748 = vmatmul.bf16.gmra.mxu0 %v15001_v53 }
 0x901   : > { %v9387_v29 = vpop.eup %9386  ;;  %v6560_v1 = vsel %vm6557_vm8, %v6559_v50, %v6555_v12  ;;  %9394 = vtanh.f32 %v9525_v37  ;;  %v6618_v54 = vand.u32 2147483648, %v14203_v59  ;;  %vm6617_vm1 = vcmp.eq.f32.partialorder %v6616_v42, 8.507059e+37  ;;  %v9526_v50 = vld [vmem:[#allocation4 + $0xa8] sm:$0xff] }
 0x902   : > { %v14210_v58 = vmul.f32 %v9385_v11, %v6560_v1  ;;  %v6578_v48 = vmul.f32 %v9387_v29, %v14193_v57  ;;  %v4698_v7 = vadd.f32 %v14169_v23, %v4649_v60  ;;  %vm6583_vm9 = vweird.f32 %v9387_v29  ;;  %4797 = vmatmul.bf16.gmra.mxu1 %v15002_v10 }
 0x903   : > { %vm6584_vm11 = vmor %vm6582_vm10, %vm6583_vm9  ;;  %vm6587_vm12 = vcmp.eq.f32.partialorder %v6586_v25, 8.507059e+37  ;;  %v6619_v21 = vor.u32 1.1754944e-38, %v6618_v54 }
 0x904   : > { %v9389_v40 = vpop.eup %9388  ;;  %6967 = vst [vmem:[#allocation2 + $0x40] sm:$0xff] %v14210_v58  ;;  %v6579_v5 = vsub.f32 1.0, %v6578_v48  ;;  %v8484_v13 = vmul.f32 -1.442695, %v4698_v7  ;;  %v4553_v23 = vpop.f32.mrf.mxu0 }
 0x905   : > { %v9391_v52 = vpop.eup %9390  ;;  %6999 = vst [vmem:[#allocation3 + $0x50] sm:$0xff] %v14210_v58  ;;  %v14220_v39 = vadd.f32 1.0, %v9389_v40  ;;  %v4602_v35 = vpop.f32.mrf.mxu1 }
 0x906   : > { %v6580_v32 = vmul.f32 %v9387_v29, %v6579_v5  ;;  %v6608_v43 = vmul.f32 %v9391_v52, %v14203_v59  ;;  %9396 = vpow2.f32 %v8484_v13  ;;  %v4603_v33 = vadd.f32 %v4602_v35, %v4553_v23  ;;  %v9393_v9 = vpop.eup %9392 }
 0x907   : > { %v14215_v38 = vpop.f32.mrf.mxu2  ;;  %9398 = vrcp.f32 %v14220_v39  ;;  %vm6613_vm13 = vweird.f32 %v9391_v52  ;;  %v9395_v61 = vpop.eup %9394  ;;  %v6648_v11 = vand.u32 2147483648, %v14220_v39  ;;  %vm6642_vm3 = vweird.f32 %v14220_v39 }
 0x908   : > { %v6581_v51 = vadd.f32 %v9387_v29, %v6580_v32  ;;  %v6609_v36 = vsub.f32 1.0, %v6608_v43  ;;  %v4652_v14 = vadd.f32 %v14183_v26, %v4603_v33  ;;  %vm6614_vm15 = vmor %vm6612_vm14, %vm6613_vm13 }
 0x909   : > { %v14224_v24 = vpop.f32.mrf.mxu3  ;;  %v6649_v4 = vor.u32 1.1754944e-38, %v6648_v11 }
 0x90a   : > { %v6585_v30 = vsel %vm6584_vm11, %v9387_v29, %v6581_v51  ;;  %v6610_v18 = vmul.f32 %v9391_v52, %v6609_v36  ;;  %v4701_v10 = vadd.f32 %v14185_v31, %v4652_v14  ;;  %v6646_v29 = vand.u32 2147483647, %v14220_v39  ;;  %v9527_v51 = vld [vmem:[#allocation4 + $0x50] sm:$0xff] }
 0x90b   : > { %v6590_v57 = vsel %vm6587_vm12, %v6589_v3, %v6585_v30 }
 0x90c   : > { %v9397_v6 = vpop.eup %9396  ;;  %v14232_v56 = vmul.f32 %v9393_v9, %v6590_v57  ;;  %v6611_v53 = vadd.f32 %v9391_v52, %v6610_v18  ;;  %v4555_v28 = vpop.f32.mrf.mxu0  ;;  %v8486_v34 = vmul.f32 -1.442695, %v4701_v10  ;;  %vm6647_vm5 = vcmp.eq.f32.partialorder %v6646_v29, 8.507059e+37 }
 0x90d   : > { %v9399_v49 = vpop.eup %9398  ;;  %v14238_v55 = vadd.f32 1.0, %v9397_v6  ;;  %v4604_v19 = vpop.f32.mrf.mxu1 }
 0x90e   : > { %6969 = vst [vmem:[#allocation2 + $0xe0] sm:$0xff] %v14232_v56  ;;  %v6615_v26 = vsel %vm6614_vm15, %v9391_v52, %v6611_v53  ;;  %v6638_v45 = vmul.f32 %v9399_v49, %v14220_v39  ;;  %v4605_v12 = vadd.f32 %v4604_v19, %v4555_v28  ;;  %vm6643_vm2 = vweird.f32 %v9399_v49 }
 0x90f   : > { %v14236_v27 = vpop.f32.mrf.mxu2  ;;  %7001 = vst [vmem:[#allocation3 + $0xd8] sm:$0xff] %v14232_v56  ;;  %v6620_v59 = vsel %vm6617_vm1, %v6619_v21, %v6615_v26  ;;  %9400 = vrcp.f32 %v14238_v55  ;;  %vm6644_vm4 = vmor %vm6642_vm3, %vm6643_vm2  ;;  %v6676_v3 = vand.u32 2147483647, %v14238_v55  ;;  %v6678_v42 = vand.u32 2147483648, %v14238_v55 }
 0x910   : > { %v14246_v0 = vmul.f32 %v9395_v61, %v6620_v59  ;;  %v6639_v15 = vsub.f32 1.0, %v6638_v45  ;;  %9402 = vpow2.f32 %v8486_v34  ;;  %v4654_v1 = vadd.f32 %v14201_v8, %v4605_v12  ;;  %v9528_v34 = vld [vmem:[#allocation4 + $0xc8] sm:$0xff] }
 0x911   : > { %v14244_v31 = vpop.f32.mrf.mxu3  ;;  %9404 = vtanh.f32 %v9526_v50  ;;  %vm6672_vm0 = vweird.f32 %v14238_v55  ;;  %v6679_v14 = vor.u32 1.1754944e-38, %v6678_v42  ;;  %vm6677_vm8 = vcmp.eq.f32.partialorder %v6676_v3, 8.507059e+37 }
 0x912   : > { %6971 = vst [vmem:[#allocation2 + $0x70] sm:$0xff] %v14246_v0  ;;  %v6640_v60 = vmul.f32 %v9399_v49, %v6639_v15  ;;  %v4703_v5 = vadd.f32 %v14207_v62, %v4654_v1  ;;  %9406 = vtanh.f32 %v9527_v51  ;;  %v9529_v51 = vld [vmem:[#allocation4 + $0x60] sm:$0xff] }
 0x913   : > { %7003 = vst [vmem:[#allocation3 + $0x20] sm:$0xff] %v14246_v0 }
 0x914   : > { %v6641_v48 = vadd.f32 %v9399_v49, %v6640_v60  ;;  %v4714_v13 = vpop.f32.mrf.mxu0  ;;  %v8488_v39 = vmul.f32 -1.442695, %v4703_v5 }
 0x915   : > { %v9401_v40 = vpop.eup %9400  ;;  %v4763_v52 = vpop.f32.mrf.mxu1 }
 0x916   : > { %v9403_v37 = vpop.eup %9402  ;;  %v6645_v25 = vsel %vm6644_vm4, %v9399_v49, %v6641_v48  ;;  %v6668_v16 = vmul.f32 %v9401_v40, %v14238_v55  ;;  %v4764_v23 = vadd.f32 %v4763_v52, %v4714_v13  ;;  %vm6673_vm6 = vweird.f32 %v9401_v40 }
 0x917   : > { %v14254_v7 = vpop.f32.mrf.mxu2  ;;  %v9405_v35 = vpop.eup %9404  ;;  %v6650_v8 = vsel %vm6647_vm5, %v6649_v4, %v6645_v25  ;;  %v14258_v32 = vadd.f32 1.0, %v9403_v37  ;;  %vm6674_vm7 = vmor %vm6672_vm0, %vm6673_vm6 }
 0x918   : > { %v14262_v36 = vmul.f32 %v9405_v35, %v6650_v8  ;;  %v6669_v62 = vsub.f32 1.0, %v6668_v16  ;;  %v4813_v33 = vadd.f32 %v14215_v38, %v4764_v23  ;;  %v9407_v6 = vpop.eup %9406 }
 0x919   : > { %v14260_v43 = vpop.f32.mrf.mxu3  ;;  %9408 = vrcp.f32 %v14258_v32  ;;  %v6708_v50 = vand.u32 2147483648, %v14258_v32  ;;  %vm6702_vm10 = vweird.f32 %v14258_v32 }
 0x91a   : > { %6973 = vst [vmem:[#allocation2 + $0xa8] sm:$0xff] %v14262_v36  ;;  %v6670_v54 = vmul.f32 %v9401_v40, %v6669_v62  ;;  %9410 = vpow2.f32 %v8488_v39  ;;  %v4862_v9 = vadd.f32 %v14224_v24, %v4813_v33 }
 0x91b   : > { %7005 = vst [vmem:[#allocation3 + $0x88] sm:$0xff] %v14262_v36  ;;  %v6709_v5 = vor.u32 1.1754944e-38, %v6708_v50 }
 0x91c   : > { %v6671_v30 = vadd.f32 %v9401_v40, %v6670_v54  ;;  %v8459_v18 = vmul.f32 -1.442695, %v4862_v9  ;;  %v4716_v61 = vpop.f32.mrf.mxu0  ;;  %v9530_v54 = vld [vmem:[#allocation4 + $0xb8] sm:$0xff] }
 0x91d   : > { %v4765_v57 = vpop.f32.mrf.mxu1 }
 0x91e   : > { %v6675_v53 = vsel %vm6674_vm7, %v9401_v40, %v6671_v30  ;;  %9412 = vpow2.f32 %v8459_v18  ;;  %v4766_v10 = vadd.f32 %v4765_v57, %v4716_v61 }
 0x91f   : > { %v14272_v38 = vpop.f32.mrf.mxu2  ;;  %v9409_v49 = vpop.eup %9408  ;;  %v6680_v21 = vsel %vm6677_vm8, %v6679_v14, %v6675_v53  ;;  %9414 = vtanh.f32 %v9528_v34 }
 0x920   : > { %v9411_v28 = vpop.eup %9410  ;;  %v14276_v19 = vmul.f32 %v9407_v6, %v6680_v21  ;;  %v6698_v55 = vmul.f32 %v9409_v49, %v14258_v32  ;;  %v4815_v26 = vadd.f32 %v14236_v27, %v4766_v10  ;;  %vm6703_vm9 = vweird.f32 %v9409_v49 }
 0x921   : > { %v14274_v24 = vpop.f32.mrf.mxu3  ;;  %v14280_v45 = vadd.f32 1.0, %v9411_v28  ;;  %v6706_v27 = vand.u32 2147483647, %v14258_v32  ;;  %vm6704_vm11 = vmor %vm6702_vm10, %vm6703_vm9 }
 0x922   : > { %6975 = vst [vmem:[#allocation2 + $0x10] sm:$0xff] %v14276_v19  ;;  %v6699_v59 = vsub.f32 1.0, %v6698_v55  ;;  %v4864_v15 = vadd.f32 %v14244_v31, %v4815_v26 }
 0x923   : > { %7007 = vst [vmem:[#allocation3 + $0xf8] sm:$0xff] %v14276_v19  ;;  %9416 = vrcp.f32 %v14280_v45  ;;  %vm6707_vm12 = vcmp.eq.f32.partialorder %v6706_v27, 8.507059e+37  ;;  %v6738_v9 = vand.u32 2147483648, %v14280_v45  ;;  %vm6732_vm14 = vweird.f32 %v14280_v45 }
 0x924   : > { %v9413_v11 = vpop.eup %9412  ;;  %v6700_v12 = vmul.f32 %v9409_v49, %v6699_v59  ;;  %v8461_v60 = vmul.f32 -1.442695, %v4864_v15  ;;  %v4719_v48 = vpop.f32.mrf.mxu0 }
 0x925   : > { %v14290_v1 = vadd.f32 1.0, %v9413_v11  ;;  %v4768_v40 = vpop.f32.mrf.mxu1  ;;  %v9415_v52 = vpop.eup %9414 }
 0x926   : > { %v6701_v4 = vadd.f32 %v9409_v49, %v6700_v12  ;;  %9418 = vpow2.f32 %v8461_v60  ;;  %v4769_v31 = vadd.f32 %v4768_v40, %v4719_v48 }
 0x927   : > { %v14288_v29 = vpop.f32.mrf.mxu2  ;;  %9420 = vrcp.f32 %v14290_v1  ;;  %v6301_v21 = vand.u32 2147483647, %v14290_v1  ;;  %v6303_v28 = vand.u32 2147483648, %v14290_v1  ;;  %vm6297_vm3 = vweird.f32 %v14290_v1 }
 0x928   : > { %v6705_v37 = vsel %vm6704_vm11, %v9409_v49, %v6701_v4  ;;  %v4818_v25 = vadd.f32 %v14254_v7, %v4769_v31  ;;  %9422 = vtanh.f32 %v9529_v51  ;;  %v6736_v7 = vand.u32 2147483647, %v14280_v45 }
 0x929   : > { %v14294_v13 = vpop.f32.mrf.mxu3  ;;  %v9417_v16 = vpop.eup %9416  ;;  %v6710_v23 = vsel %vm6707_vm12, %v6709_v5, %v6705_v37  ;;  %9424 = vtanh.f32 %v9530_v54  ;;  %v6739_v49 = vor.u32 1.1754944e-38, %v6738_v9  ;;  %v6304_v40 = vor.u32 1.1754944e-38, %v6303_v28 }
 0x92a   : > { %v14297_v35 = vmul.f32 %v9415_v52, %v6710_v23  ;;  %v6728_v8 = vmul.f32 %v9417_v16, %v14280_v45  ;;  %v4867_v32 = vadd.f32 %v14260_v43, %v4818_v25  ;;  %vm6733_vm13 = vweird.f32 %v9417_v16  ;;  %v9531_v23 = vld [vmem:[#allocation4 + $0x10] sm:$0xff] }
 0x92b   : > { %vm6734_vm15 = vmor %vm6732_vm14, %vm6733_vm13  ;;  %vm6737_vm1 = vcmp.eq.f32.partialorder %v6736_v7, 8.507059e+37  ;;  %vm6302_vm5 = vcmp.eq.f32.partialorder %v6301_v21, 8.507059e+37  ;;  %v9532_v21 = vld [vmem:[#allocation4 + $0x30] sm:$0xff] }
 0x92c   : > { %v9419_v39 = vpop.eup %9418  ;;  %6977 = vst [vmem:[#allocation2 + $0xa0] sm:$0xff] %v14297_v35  ;;  %v6729_v62 = vsub.f32 1.0, %v6728_v8  ;;  %v8463_v33 = vmul.f32 -1.442695, %v4867_v32  ;;  %v4721_v43 = vpop.f32.mrf.mxu0 }
 0x92d   : > { %v9421_v42 = vpop.eup %9420  ;;  %7009 = vst [vmem:[#allocation3 + $0xb8] sm:$0xff] %v14297_v35  ;;  %v14307_v30 = vadd.f32 1.0, %v9419_v39  ;;  %v4770_v18 = vpop.f32.mrf.mxu1 }
 0x92e   : > { %v6730_v14 = vmul.f32 %v9417_v16, %v6729_v62  ;;  %v6293_v61 = vmul.f32 %v9421_v42, %v14290_v1  ;;  %9426 = vpow2.f32 %v8463_v33  ;;  %v4771_v10 = vadd.f32 %v4770_v18, %v4721_v43  ;;  %v9423_v55 = vpop.eup %9422 }
 0x92f   : > { %v14302_v3 = vpop.f32.mrf.mxu2  ;;  %9428 = vrcp.f32 %v14307_v30  ;;  %vm6298_vm2 = vweird.f32 %v9421_v42  ;;  %v9425_v15 = vpop.eup %9424  ;;  %v6333_v8 = vand.u32 2147483648, %v14307_v30  ;;  %v6331_v51 = vand.u32 2147483647, %v14307_v30 }
 0x930   : > { %v6731_v6 = vadd.f32 %v9417_v16, %v6730_v14  ;;  %v6294_v53 = vsub.f32 1.0, %v6293_v61  ;;  %v4820_v59 = vadd.f32 %v14272_v38, %v4771_v10  ;;  %vm6299_vm4 = vmor %vm6297_vm3, %vm6298_vm2  ;;  %vm6327_vm0 = vweird.f32 %v14307_v30 }
 0x931   : > { %v14311_v57 = vpop.f32.mrf.mxu3  ;;  %v6334_v54 = vor.u32 1.1754944e-38, %v6333_v8  ;;  %vm6332_vm8 = vcmp.eq.f32.partialorder %v6331_v51, 8.507059e+37  ;;  %v9533_v8 = vld [vmem:[#allocation4 + $0x68] sm:$0xff] }
 0x932   : > { %v6735_v26 = vsel %vm6734_vm15, %v9417_v16, %v6731_v6  ;;  %v6295_v34 = vmul.f32 %v9421_v42, %v6294_v53  ;;  %v4869_v27 = vadd.f32 %v14274_v24, %v4820_v59 }
 0x933   : > { %v6740_v50 = vsel %vm6737_vm1, %v6739_v49, %v6735_v26 }
 0x934   : > { %v9427_v11 = vpop.eup %9426  ;;  %v14317_v12 = vmul.f32 %v9423_v55, %v6740_v50  ;;  %v6296_v45 = vadd.f32 %v9421_v42, %v6295_v34  ;;  %v4724_v31 = vpop.f32.mrf.mxu0  ;;  %v8465_v37 = vmul.f32 -1.442695, %v4869_v27 }
 0x935   : > { %v9429_v48 = vpop.eup %9428  ;;  %v14323_v4 = vadd.f32 1.0, %v9427_v11  ;;  %v4773_v5 = vpop.f32.mrf.mxu1 }
 0x936   : > { %6979 = vst [vmem:[#allocation2 + $0x20] sm:$0xff] %v14317_v12  ;;  %v6300_v38 = vsel %vm6299_vm4, %v9421_v42, %v6296_v45  ;;  %v6323_v52 = vmul.f32 %v9429_v48, %v14307_v30  ;;  %v4774_v32 = vadd.f32 %v4773_v5, %v4724_v31  ;;  %vm6328_vm6 = vweird.f32 %v9429_v48 }
 0x937   : > { %v14321_v60 = vpop.f32.mrf.mxu2  ;;  %7011 = vst [vmem:[#allocation3 + $0x28] sm:$0xff] %v14317_v12  ;;  %v6305_v1 = vsel %vm6302_vm5, %v6304_v40, %v6300_v38  ;;  %9430 = vrcp.f32 %v14323_v4  ;;  %vm6329_vm7 = vmor %vm6327_vm0, %vm6328_vm6  ;;  %v6361_v34 = vand.u32 2147483647, %v14323_v4  ;;  %v6363_v59 = vand.u32 2147483648, %v14323_v4 }
 0x938   : > { %v14331_v25 = vmul.f32 %v9425_v15, %v6305_v1  ;;  %v6324_v16 = vsub.f32 1.0, %v6323_v52  ;;  %9432 = vpow2.f32 %v8465_v37  ;;  %v4823_v62 = vadd.f32 %v14288_v29, %v4774_v32 }
 0x939   : > { %v14329_v24 = vpop.f32.mrf.mxu3  ;;  %9434 = vtanh.f32 %v9531_v23  ;;  %vm6357_vm10 = vweird.f32 %v14323_v4  ;;  %v6364_v45 = vor.u32 1.1754944e-38, %v6363_v59  ;;  %vm6362_vm12 = vcmp.eq.f32.partialorder %v6361_v34, 8.507059e+37  ;;  %v9534_v59 = vld [vmem:[#allocation4] sm:$0xff] }
 0x93a   : > { %6950 = vst [vmem:[#allocation2] sm:$0xff] %v14331_v25  ;;  %v6325_v39 = vmul.f32 %v9429_v48, %v6324_v16  ;;  %v4872_v7 = vadd.f32 %v14294_v13, %v4823_v62  ;;  %9436 = vtanh.f32 %v9532_v21 }
 0x93b   : > { %6982 = vst [vmem:[#allocation3 + $0xc8] sm:$0xff] %v14331_v25 }
 0x93c   : > { %v6326_v33 = vadd.f32 %v9429_v48, %v6325_v39  ;;  %v4726_v9 = vpop.f32.mrf.mxu0  ;;  %v8467_v30 = vmul.f32 -1.442695, %v4872_v7 }
 0x93d   : > { %v9431_v42 = vpop.eup %9430  ;;  %v4775_v43 = vpop.f32.mrf.mxu1 }
 0x93e   : > { %v9433_v18 = vpop.eup %9432  ;;  %v6330_v14 = vsel %vm6329_vm7, %v9429_v48, %v6326_v33  ;;  %v6353_v61 = vmul.f32 %v9431_v42, %v14323_v4  ;;  %v4776_v6 = vadd.f32 %v4775_v43, %v4726_v9  ;;  %vm6358_vm9 = vweird.f32 %v9431_v42 }
 0x93f   : > { %v14341_v53 = vpop.f32.mrf.mxu2  ;;  %v9435_v10 = vpop.eup %9434  ;;  %v6335_v29 = vsel %vm6332_vm8, %v6334_v54, %v6330_v14  ;;  %v14343_v49 = vadd.f32 1.0, %v9433_v18  ;;  %vm6359_vm11 = vmor %vm6357_vm10, %vm6358_vm9 }
 0x940   : > { %v14345_v28 = vmul.f32 %v9435_v10, %v6335_v29  ;;  %v6354_v13 = vsub.f32 1.0, %v6353_v61  ;;  %v4825_v55 = vadd.f32 %v14302_v3, %v4776_v6  ;;  %v9437_v40 = vpop.eup %9436 }
 0x941   : > { %v4878_v26 = vpop.f32.mrf.mxu3  ;;  %9438 = vrcp.f32 %v14343_v49  ;;  %v6393_v62 = vand.u32 2147483648, %v14343_v49  ;;  %vm6387_vm14 = vweird.f32 %v14343_v49 }
 0x942   : > { %6952 = vst [vmem:[#allocation2 + $0x18] sm:$0xff] %v14345_v28  ;;  %v6355_v15 = vmul.f32 %v9431_v42, %v6354_v13  ;;  %9440 = vpow2.f32 %v8467_v30  ;;  %v4874_v50 = vadd.f32 %v14311_v57, %v4825_v55 }
 0x943   : > { %6984 = vst [vmem:[#allocation3 + $0x78] sm:$0xff] %v14345_v28  ;;  %v6394_v14 = vor.u32 1.1754944e-38, %v6393_v62 }
 0x944   : > { %v6356_v11 = vadd.f32 %v9431_v42, %v6355_v15  ;;  %v8469_v3 = vmul.f32 -1.442695, %v4874_v50  ;;  %v4729_v27 = vpop.f32.mrf.mxu0 }
 0x945   : > { %v4778_v48 = vpop.f32.mrf.mxu1 }
 0x946   : > { %v6360_v31 = vsel %vm6359_vm11, %v9431_v42, %v6356_v11  ;;  %9442 = vpow2.f32 %v8469_v3  ;;  %v4779_v5 = vadd.f32 %v4778_v48, %v4729_v27 }
 0x947   : > { %v9439_v38 = vpop.eup %9438  ;;  %v6365_v52 = vsel %vm6362_vm12, %v6364_v45, %v6360_v31  ;;  %v14359_v4 = vpop.f32.mrf.mxu2  ;;  %9444 = vtanh.f32 %v9533_v8  ;;  %v9535_v45 = vld [vmem:[#allocation4 + $0x40] sm:$0xff] }
 0x948   : > { %v9441_v37 = vpop.eup %9440  ;;  %v14355_v1 = vmul.f32 %v9437_v40, %v6365_v52  ;;  %v6383_v57 = vmul.f32 %v9439_v38, %v14343_v49  ;;  %v4828_v16 = vadd.f32 %v14321_v60, %v4779_v5  ;;  %vm6388_vm13 = vweird.f32 %v9439_v38 }
 0x949   : > { %v6254_v23 = vadd.f32 1.0, %v9441_v37  ;;  %v14363_v51 = vpop.f32.mrf.mxu3  ;;  %v6391_v60 = vand.u32 2147483647, %v14343_v49  ;;  %vm6389_vm15 = vmor %vm6387_vm14, %vm6388_vm13 }
 0x94a   : > { %6954 = vst [vmem:[#allocation2 + $0x68] sm:$0xff] %v14355_v1  ;;  %v6384_v32 = vsub.f32 1.0, %v6383_v57  ;;  %v4877_v39 = vadd.f32 %v14329_v24, %v4828_v16 }
 0x94b   : > { %6986 = vst [vmem:[#allocation3 + $0x90] sm:$0xff] %v14355_v1  ;;  %9446 = vrcp.f32 %v6254_v23  ;;  %vm6392_vm1 = vcmp.eq.f32.partialorder %v6391_v60, 8.507059e+37  ;;  %v6423_v27 = vand.u32 2147483648, %v6254_v23  ;;  %vm6417_vm3 = vweird.f32 %v6254_v23 }
 0x94c   : > { %v9443_v33 = vpop.eup %9442  ;;  %v6385_v42 = vmul.f32 %v9439_v38, %v6384_v32  ;;  %v8471_v54 = vmul.f32 -1.442695, %v4877_v39  ;;  %v4731_v9 = vpop.f32.mrf.mxu0 }
 0x94d   : > { %v14368_v7 = vadd.f32 1.0, %v9443_v33  ;;  %v4780_v43 = vpop.f32.mrf.mxu1  ;;  %v9445_v61 = vpop.eup %9444  ;;  %v6424_v57 = vor.u32 1.1754944e-38, %v6423_v27 }
 0x94e   : > { %v6386_v18 = vadd.f32 %v9439_v38, %v6385_v42  ;;  %9448 = vpow2.f32 %v8471_v54  ;;  %v4781_v24 = vadd.f32 %v4780_v43, %v4731_v9 }
 0x94f   : > { %9450 = vrcp.f32 %v14368_v7  ;;  %v14375_v34 = vpop.f32.mrf.mxu2  ;;  %v6451_v16 = vand.u32 2147483647, %v14368_v7  ;;  %v6453_v8 = vand.u32 2147483648, %v14368_v7  ;;  %vm6447_vm0 = vweird.f32 %v14368_v7 }
 0x950   : > { %v6390_v6 = vsel %vm6389_vm15, %v9439_v38, %v6386_v18  ;;  %v4830_v10 = vadd.f32 %v14341_v53, %v4781_v24  ;;  %9452 = vtanh.f32 %v9534_v59  ;;  %v6421_v53 = vand.u32 2147483647, %v6254_v23 }
 0x951   : > { %v9447_v29 = vpop.eup %9446  ;;  %v6395_v30 = vsel %vm6392_vm1, %v6394_v14, %v6390_v6  ;;  %v14378_v11 = vpop.f32.mrf.mxu3  ;;  %9454 = vtanh.f32 %v9535_v45  ;;  %v6454_v14 = vor.u32 1.1754944e-38, %v6453_v8  ;;  %vm6452_vm8 = vcmp.eq.f32.partialorder %v6451_v16, 8.507059e+37 }
 0x952   : > { %v14373_v21 = vmul.f32 %v9445_v61, %v6395_v30  ;;  %v6413_v13 = vmul.f32 %v9447_v29, %v6254_v23  ;;  %v4879_v55 = vadd.f32 %v4878_v26, %v4830_v10  ;;  %vm6418_vm2 = vweird.f32 %v9447_v29 }
 0x953   : > { %vm6419_vm4 = vmor %vm6417_vm3, %vm6418_vm2  ;;  %vm6422_vm5 = vcmp.eq.f32.partialorder %v6421_v53, 8.507059e+37 }
 0x954   : > { %v9449_v49 = vpop.eup %9448  ;;  %6956 = vst [vmem:[#allocation2 + $0x48] sm:$0xff] %v14373_v21  ;;  %v6414_v15 = vsub.f32 1.0, %v6413_v13  ;;  %v8473_v50 = vmul.f32 -1.442695, %v4879_v55  ;;  %v4734_v26 = vpop.f32.mrf.mxu0 }
 0x955   : > { %v9451_v3 = vpop.eup %9450  ;;  %6988 = vst [vmem:[#allocation3 + $0xa8] sm:$0xff] %v14373_v21  ;;  %v14381_v48 = vadd.f32 1.0, %v9449_v49  ;;  %v4783_v40 = vpop.f32.mrf.mxu1  ;;  %v9536_v49 = vld [vmem:[#allocation4 + $0xd8] sm:$0xff] }
 0x956   : > { %v6415_v31 = vmul.f32 %v9447_v29, %v6414_v15  ;;  %v6443_v5 = vmul.f32 %v9451_v3, %v14368_v7  ;;  %9456 = vpow2.f32 %v8473_v50  ;;  %v4784_v37 = vadd.f32 %v4783_v40, %v4734_v26  ;;  %v9453_v32 = vpop.eup %9452 }
 0x957   : > { %9458 = vrcp.f32 %v14381_v48  ;;  %vm6448_vm6 = vweird.f32 %v9451_v3  ;;  %v9455_v42 = vpop.eup %9454  ;;  %v4837_v18 = vpop.f32.mrf.mxu2  ;;  %v6483_v59 = vand.u32 2147483648, %v14381_v48  ;;  %vm6477_vm10 = vweird.f32 %v14381_v48 }
 0x958   : > { %v6416_v38 = vadd.f32 %v9447_v29, %v6415_v31  ;;  %v6444_v52 = vsub.f32 1.0, %v6443_v5  ;;  %v4833_v33 = vadd.f32 %v14359_v4, %v4784_v37  ;;  %vm6449_vm7 = vmor %vm6447_vm0, %vm6448_vm6 }
 0x959   : > { %v4886_v13 = vpop.f32.mrf.mxu3  ;;  %v6484_v26 = vor.u32 1.1754944e-38, %v6483_v59 }
 0x95a   : > { %v6420_v39 = vsel %vm6419_vm4, %v9447_v29, %v6416_v38  ;;  %v6445_v62 = vmul.f32 %v9451_v3, %v6444_v52  ;;  %v4882_v43 = vadd.f32 %v14363_v51, %v4833_v33 }
 0x95b   : > { %v6425_v60 = vsel %vm6422_vm5, %v6424_v57, %v6420_v39 }
 0x95c   : > { %v9457_v54 = vpop.eup %9456  ;;  %v14388_v9 = vmul.f32 %v9453_v32, %v6425_v60  ;;  %v6446_v23 = vadd.f32 %v9451_v3, %v6445_v62  ;;  %v4736_v6 = vpop.f32.mrf.mxu0  ;;  %v8475_v30 = vmul.f32 -1.442695, %v4882_v43 }
 0x95d   : > { %v9459_v24 = vpop.eup %9458  ;;  %v14392_v61 = vadd.f32 1.0, %v9457_v54  ;;  %v4785_v10 = vpop.f32.mrf.mxu1 }
 0x95e   : > { %6958 = vst [vmem:[#allocation2 + $0x88] sm:$0xff] %v14388_v9  ;;  %v6450_v4 = vsel %vm6449_vm7, %v9451_v3, %v6446_v23  ;;  %v6473_v29 = vmul.f32 %v9459_v24, %v14381_v48  ;;  %v4786_v15 = vadd.f32 %v4785_v10, %v4736_v6  ;;  %vm6478_vm9 = vweird.f32 %v9459_v24 }
 0x95f   : > { %6990 = vst [vmem:[#allocation3 + $0xb0] sm:$0xff] %v14388_v9  ;;  %v6455_v7 = vsel %vm6452_vm8, %v6454_v14, %v6450_v4  ;;  %9460 = vrcp.f32 %v14392_v61  ;;  %v6481_v3 = vand.u32 2147483647, %v14381_v48  ;;  %vm6479_vm11 = vmor %vm6477_vm10, %vm6478_vm9  ;;  %v4839_v16 = vpop.f32.mrf.mxu2  ;;  %v9537_v48 = vld [vmem:[#allocation4 + $0x80] sm:$0xff]  ;;  %v6511_v60 = vand.u32 2147483647, %v14392_v61 }
 0x960   : > { %v14398_v51 = vmul.f32 %v9455_v42, %v6455_v7  ;;  %v6474_v55 = vsub.f32 1.0, %v6473_v29  ;;  %9462 = vpow2.f32 %v8475_v30  ;;  %v4835_v45 = vadd.f32 %v14375_v34, %v4786_v15 }
 0x961   : > { %9464 = vtanh.f32 %v9536_v49  ;;  %vm6482_vm12 = vcmp.eq.f32.partialorder %v6481_v3, 8.507059e+37  ;;  %v4888_v42 = vpop.f32.mrf.mxu3  ;;  %v6513_v54 = vand.u32 2147483648, %v14392_v61  ;;  %vm6507_vm14 = vweird.f32 %v14392_v61  ;;  %v9538_v3 = vld [vmem:[#allocation4 + $0x18] sm:$0xff] }
 0x962   : > { %6960 = vst [vmem:[#allocation2 + $0xb8] sm:$0xff] %v14398_v51  ;;  %v6475_v50 = vmul.f32 %v9459_v24, %v6474_v55  ;;  %v4884_v40 = vadd.f32 %v14378_v11, %v4835_v45  ;;  %9466 = vtanh.f32 %v9537_v48  ;;  %vm6512_vm1 = vcmp.eq.f32.partialorder %v6511_v60, 8.507059e+37 }
 0x963   : > { %6992 = vst [vmem:[#allocation3 + $0x40] sm:$0xff] %v14398_v51 }
 0x964   : > { %v6476_v53 = vadd.f32 %v9459_v24, %v6475_v50  ;;  %v4739_v31 = vpop.f32.mrf.mxu0  ;;  %v8477_v39 = vmul.f32 -1.442695, %v4884_v40 }
 0x965   : > { %v9461_v27 = vpop.eup %9460  ;;  %v4788_v5 = vpop.f32.mrf.mxu1 }
 0x966   : > { %v9463_v38 = vpop.eup %9462  ;;  %v6480_v52 = vsel %vm6479_vm11, %v9459_v24, %v6476_v53  ;;  %v6503_v37 = vmul.f32 %v9461_v27, %v14392_v61  ;;  %v4789_v57 = vadd.f32 %v4788_v5, %v4739_v31  ;;  %vm6508_vm13 = vweird.f32 %v9461_v27 }
 0x967   : > { %v9465_v8 = vpop.eup %9464  ;;  %v6485_v32 = vsel %vm6482_vm12, %v6484_v26, %v6480_v52  ;;  %v14408_v34 = vadd.f32 1.0, %v9463_v38  ;;  %vm6509_vm15 = vmor %vm6507_vm14, %vm6508_vm13  ;;  %v4842_v50 = vpop.f32.mrf.mxu2 }
 0x968   : > { %v14410_v62 = vmul.f32 %v9465_v8, %v6485_v32  ;;  %v6504_v33 = vsub.f32 1.0, %v6503_v37  ;;  %v4838_v11 = vadd.f32 %v4837_v18, %v4789_v57  ;;  %v6514_v18 = vor.u32 1.1754944e-38, %v6513_v54  ;;  %v9467_v4 = vpop.eup %9466 }
 0x969   : > { %9468 = vrcp.f32 %v14408_v34  ;;  %v6543_v26 = vand.u32 2147483648, %v14408_v34  ;;  %v6541_v5 = vand.u32 2147483647, %v14408_v34  ;;  %vm6537_vm3 = vweird.f32 %v14408_v34 }
 0x96a   : > { %6962 = vst [vmem:[#allocation2 + $0xf0] sm:$0xff] %v14410_v62  ;;  %v6505_v23 = vmul.f32 %v9461_v27, %v6504_v33  ;;  %9470 = vpow2.f32 %v8477_v39  ;;  %v4887_v43 = vadd.f32 %v4886_v13, %v4838_v11 }
 0x96b   : > { %6994 = vst [vmem:[#allocation3 + $0x60] sm:$0xff] %v14410_v62  ;;  %v6544_v32 = vor.u32 1.1754944e-38, %v6543_v26  ;;  %vm6542_vm5 = vcmp.eq.f32.partialorder %v6541_v5, 8.507059e+37 }
 0x96c   : > { %v6506_v24 = vadd.f32 %v9461_v27, %v6505_v23  ;;  %v8479_v14 = vmul.f32 -1.442695, %v4887_v43  ;;  %v4741_v6 = vpop.f32.mrf.mxu0 }
 0x96d   : > { %v4790_v10 = vpop.f32.mrf.mxu1 }
 0x96e   : > { %v6510_v29 = vsel %vm6509_vm15, %v9461_v27, %v6506_v24  ;;  %9472 = vpow2.f32 %v8479_v14  ;;  %v4791_v30 = vadd.f32 %v4790_v10, %v4741_v6  ;;  %v4891_v27 = vpop.f32.mrf.mxu3  ;;  %v9539_v14 = vld [vmem:[#allocation4 + $0xe8] sm:$0xff] }
 0x96f   : > { %v9469_v7 = vpop.eup %9468  ;;  %v6515_v55 = vsel %vm6512_vm1, %v6514_v18, %v6510_v29  ;;  %9474 = vtanh.f32 %v9538_v3  ;;  %v4844_v43 = vpop.f32.mrf.mxu2 }
 0x970   : > { %v9471_v49 = vpop.eup %9470  ;;  %v14418_v59 = vmul.f32 %v9467_v4, %v6515_v55  ;;  %v6533_v13 = vmul.f32 %v9469_v7, %v14408_v34  ;;  %v4840_v15 = vadd.f32 %v4839_v16, %v4791_v30  ;;  %vm6538_vm2 = vweird.f32 %v9469_v7  ;;  %v9540_v4 = vld [vmem:[#allocation4 + $0x20] sm:$0xff] }
 0x971   : > { %v6264_v61 = vadd.f32 1.0, %v9471_v49  ;;  %vm6539_vm4 = vmor %vm6537_vm3, %vm6538_vm2 }
 0x972   : > { %6964 = vst [vmem:[#allocation2 + $0x78] sm:$0xff] %v14418_v59  ;;  %v6534_v45 = vsub.f32 1.0, %v6533_v13  ;;  %v4889_v53 = vadd.f32 %v4888_v42, %v4840_v15 }
 0x973   : > { %6996 = vst [vmem:[#allocation3 + $0x68] sm:$0xff] %v14418_v59  ;;  %9476 = vrcp.f32 %v6264_v61  ;;  %v6571_v29 = vand.u32 2147483647, %v6264_v61  ;;  %v6573_v30 = vand.u32 2147483648, %v6264_v61  ;;  %vm6567_vm0 = vweird.f32 %v6264_v61 }
 0x974   : > { %v9473_v40 = vpop.eup %9472  ;;  %v6535_v31 = vmul.f32 %v9469_v7, %v6534_v45  ;;  %v8481_v38 = vmul.f32 -1.442695, %v4889_v53  ;;  %v4744_v37 = vpop.f32.mrf.mxu0 }
 0x975   : > { %v14425_v52 = vadd.f32 1.0, %v9473_v40  ;;  %v4793_v57 = vpop.f32.mrf.mxu1  ;;  %v9475_v39 = vpop.eup %9474  ;;  %vm6572_vm8 = vcmp.eq.f32.partialorder %v6571_v29, 8.507059e+37  ;;  %v6574_v53 = vor.u32 1.1754944e-38, %v6573_v30 }
 0x976   : > { %v6536_v16 = vadd.f32 %v9469_v7, %v6535_v31  ;;  %9478 = vpow2.f32 %v8481_v38  ;;  %v4794_v8 = vadd.f32 %v4793_v57, %v4744_v37  ;;  %v4893_v6 = vpop.f32.mrf.mxu3 }
 0x977   : > { %9480 = vrcp.f32 %v14425_v52  ;;  %v6603_v26 = vand.u32 2147483648, %v14425_v52  ;;  %vm6597_vm10 = vweird.f32 %v14425_v52 }
 0x978   : > { %v6540_v48 = vsel %vm6539_vm4, %v9469_v7, %v6536_v16  ;;  %v4843_v33 = vadd.f32 %v4842_v50, %v4794_v8  ;;  %9482 = vtanh.f32 %v9539_v14 }
 0x979   : > { %v9477_v11 = vpop.eup %9476  ;;  %v6545_v42 = vsel %vm6542_vm5, %v6544_v32, %v6540_v48  ;;  %9484 = vtanh.f32 %v9540_v4 }
 0x97a   : > { %v14429_v60 = vmul.f32 %v9475_v39, %v6545_v42  ;;  %v6563_v54 = vmul.f32 %v9477_v11, %v6264_v61  ;;  %v4892_v23 = vadd.f32 %v4891_v27, %v4843_v33  ;;  %vm6568_vm6 = vweird.f32 %v9477_v11  ;;  %v4847_v39 = vpop.f32.mrf.mxu2 }
 0x97b   : > { %vm6569_vm7 = vmor %vm6567_vm0, %vm6568_vm6  ;;  %v6601_v27 = vand.u32 2147483647, %v14425_v52  ;;  %v6604_v33 = vor.u32 1.1754944e-38, %v6603_v26 }
 0x97c   : > { %v9479_v24 = vpop.eup %9478  ;;  %6966 = vst [vmem:[#allocation2 + $0x58] sm:$0xff] %v14429_v60  ;;  %v6564_v34 = vsub.f32 1.0, %v6563_v54  ;;  %v8483_v18 = vmul.f32 -1.442695, %v4892_v23  ;;  %v4746_v55 = vpop.f32.mrf.mxu0 }
 0x97d   : > { %v9481_v10 = vpop.eup %9480  ;;  %6998 = vst [vmem:[#allocation3 + $0x70] sm:$0xff] %v14429_v60  ;;  %v14433_v7 = vadd.f32 1.0, %v9479_v24  ;;  %v4795_v49 = vpop.f32.mrf.mxu1  ;;  %vm6602_vm12 = vcmp.eq.f32.partialorder %v6601_v27, 8.507059e+37 }
 0x97e   : > { %v6565_v13 = vmul.f32 %v9477_v11, %v6564_v34  ;;  %v6593_v15 = vmul.f32 %v9481_v10, %v14425_v52  ;;  %9486 = vpow2.f32 %v8483_v18  ;;  %v4796_v45 = vadd.f32 %v4795_v49, %v4746_v55  ;;  %v9483_v40 = vpop.eup %9482  ;;  %v4896_v52 = vpop.f32.mrf.mxu3 }
 0x97f   : > { %9488 = vrcp.f32 %v14433_v7  ;;  %vm6598_vm9 = vweird.f32 %v9481_v10  ;;  %v9485_v37 = vpop.eup %9484  ;;  %v6633_v4 = vand.u32 2147483648, %v14433_v7  ;;  %v6631_v30 = vand.u32 2147483647, %v14433_v7 }
 0x980   : > { %v6566_v50 = vadd.f32 %v9477_v11, %v6565_v13  ;;  %v6594_v3 = vsub.f32 1.0, %v6593_v15  ;;  %v4845_v38 = vadd.f32 %v4844_v43, %v4796_v45  ;;  %vm6599_vm11 = vmor %vm6597_vm10, %vm6598_vm9  ;;  %vm6627_vm14 = vweird.f32 %v14433_v7 }
 0x981   : > { %v6634_v15 = vor.u32 1.1754944e-38, %v6633_v4  ;;  %vm6632_vm1 = vcmp.eq.f32.partialorder %v6631_v30, 8.507059e+37 }
 0x982   : > { %v6570_v31 = vsel %vm6569_vm7, %v9477_v11, %v6566_v50  ;;  %v6595_v5 = vmul.f32 %v9481_v10, %v6594_v3  ;;  %v4894_v32 = vadd.f32 %v4893_v6, %v4845_v38  ;;  %v9541_v6 = vld [vmem:[#allocation4 + $0x70] sm:$0xff] }
 0x983   : > { %v6575_v57 = vsel %vm6572_vm8, %v6574_v53, %v6570_v31 }
 0x984   : > { %v9487_v16 = vpop.eup %9486  ;;  %v14439_v8 = vmul.f32 %v9483_v40, %v6575_v57  ;;  %v6596_v61 = vadd.f32 %v9481_v10, %v6595_v5  ;;  %v4749_v54 = vpop.f32.mrf.mxu0  ;;  %v8485_v24 = vmul.f32 -1.442695, %v4894_v32 }
 0x985   : > { %v9489_v48 = vpop.eup %9488  ;;  %v14442_v42 = vadd.f32 1.0, %v9487_v16  ;;  %v4798_v11 = vpop.f32.mrf.mxu1  ;;  %v9542_v16 = vld [vmem:[#allocation4 + $0xf0] sm:$0xff] }
 0x986   : > { %6968 = vst [vmem:[#allocation2 + $0xc8] sm:$0xff] %v14439_v8  ;;  %v6600_v23 = vsel %vm6599_vm11, %v9481_v10, %v6596_v61  ;;  %v6623_v43 = vmul.f32 %v9489_v48, %v14433_v7  ;;  %v4799_v29 = vadd.f32 %v4798_v11, %v4749_v54  ;;  %vm6628_vm13 = vweird.f32 %v9489_v48  ;;  %v4849_v57 = vpop.f32.mrf.mxu2 }
 0x987   : > { %7000 = vst [vmem:[#allocation3 + $0xa0] sm:$0xff] %v14439_v8  ;;  %v6605_v14 = vsel %vm6602_vm12, %v6604_v33, %v6600_v23  ;;  %9490 = vrcp.f32 %v14442_v42  ;;  %vm6629_vm15 = vmor %vm6627_vm14, %vm6628_vm13  ;;  %v6663_v33 = vand.u32 2147483648, %v14442_v42  ;;  %vm6657_vm3 = vweird.f32 %v14442_v42 }
 0x988   : > { %v14448_v34 = vmul.f32 %v9485_v37, %v6605_v14  ;;  %v6624_v18 = vsub.f32 1.0, %v6623_v43  ;;  %9492 = vpow2.f32 %v8485_v24  ;;  %v4848_v55 = vadd.f32 %v4847_v39, %v4799_v29 }
 0x989   : > { %9494 = vtanh.f32 %v9541_v6  ;;  %v6661_v39 = vand.u32 2147483647, %v14442_v42  ;;  %v6664_v24 = vor.u32 1.1754944e-38, %v6663_v33 }
 0x98a   : > { %6970 = vst [vmem:[#allocation2 + $0x90] sm:$0xff] %v14448_v34  ;;  %v6625_v10 = vmul.f32 %v9489_v48, %v6624_v18  ;;  %v4897_v50 = vadd.f32 %v4896_v52, %v4848_v55  ;;  %9496 = vtanh.f32 %v9542_v16  ;;  %v9543_v55 = vld [vmem:[#allocation4 + $0x88] sm:$0xff] }
 0x98b   : > { %7002 = vst [vmem:[#allocation3 + $0x30] sm:$0xff] %v14448_v34  ;;  %vm6662_vm5 = vcmp.eq.f32.partialorder %v6661_v39, 8.507059e+37 }
 0x98c   : > { %v6626_v49 = vadd.f32 %v9489_v48, %v6625_v10  ;;  %v4751_v3 = vpop.f32.mrf.mxu0  ;;  %v8487_v37 = vmul.f32 -1.442695, %v4897_v50 }
 0x98d   : > { %v9491_v13 = vpop.eup %9490  ;;  %v4800_v45 = vpop.f32.mrf.mxu1 }
 0x98e   : > { %v9493_v53 = vpop.eup %9492  ;;  %v6630_v27 = vsel %vm6629_vm15, %v9489_v48, %v6626_v49  ;;  %v6653_v26 = vmul.f32 %v9491_v13, %v14442_v42  ;;  %v4801_v40 = vadd.f32 %v4800_v45, %v4751_v3  ;;  %v4898_v48 = vpop.f32.mrf.mxu3  ;;  %vm6658_vm2 = vweird.f32 %v9491_v13 }
 0x98f   : > { %v9495_v31 = vpop.eup %9494  ;;  %v6635_v5 = vsel %vm6632_vm1, %v6634_v15, %v6630_v27  ;;  %v6272_v38 = vadd.f32 1.0, %v9493_v53  ;;  %vm6659_vm4 = vmor %vm6657_vm3, %vm6658_vm2 }
 0x990   : > { %v14456_v7 = vmul.f32 %v9495_v31, %v6635_v5  ;;  %v6654_v61 = vsub.f32 1.0, %v6653_v26  ;;  %v4850_v32 = vadd.f32 %v4849_v57, %v4801_v40  ;;  %v9497_v14 = vpop.eup %9496 }
 0x991   : > { %9498 = vrcp.f32 %v6272_v38  ;;  %v6693_v42 = vand.u32 2147483648, %v6272_v38  ;;  %v6691_v50 = vand.u32 2147483647, %v6272_v38  ;;  %vm6687_vm0 = vweird.f32 %v6272_v38 }
 0x992   : > { %6972 = vst [vmem:[#allocation2 + $0xc0] sm:$0xff] %v14456_v7  ;;  %v6655_v54 = vmul.f32 %v9491_v13, %v6654_v61  ;;  %9500 = vpow2.f32 %v8487_v37  ;;  %v4899_v11 = vadd.f32 %v4898_v48, %v4850_v32  ;;  %v9544_v61 = vld [vmem:[#allocation4 + $0x98] sm:$0xff] }
 0x993   : > { %7004 = vst [vmem:[#allocation3 + $0xf0] sm:$0xff] %v14456_v7  ;;  %v6694_v53 = vor.u32 1.1754944e-38, %v6693_v42  ;;  %vm6692_vm8 = vcmp.eq.f32.partialorder %v6691_v50, 8.507059e+37 }
 0x994   : > { %v6656_v23 = vadd.f32 %v9491_v13, %v6655_v54  ;;  %v8489_v43 = vmul.f32 -1.442695, %v4899_v11  ;;  %v9545_v11 = vld [vmem:[#allocation4 + $0x8] sm:$0xff] }
 0x996   : > { %v6660_v52 = vsel %vm6659_vm4, %v9491_v13, %v6656_v23  ;;  %9502 = vpow2.f32 %v8489_v43 }
 0x997   : > { %v9499_v18 = vpop.eup %9498  ;;  %v6665_v6 = vsel %vm6662_vm5, %v6664_v24, %v6660_v52  ;;  %9504 = vtanh.f32 %v9543_v55 }
 0x998   : > { %v9501_v4 = vpop.eup %9500  ;;  %v14463_v29 = vmul.f32 %v9497_v14, %v6665_v6  ;;  %v6683_v10 = vmul.f32 %v9499_v18, %v6272_v38  ;;  %vm6688_vm6 = vweird.f32 %v9499_v18 }
 0x999   : > { %v6274_v30 = vadd.f32 1.0, %v9501_v4  ;;  %vm6689_vm7 = vmor %vm6687_vm0, %vm6688_vm6 }
 0x99a   : > { %6974 = vst [vmem:[#allocation2 + $0xd0] sm:$0xff] %v14463_v29  ;;  %v6684_v49 = vsub.f32 1.0, %v6683_v10 }
 0x99b   : > { %7006 = vst [vmem:[#allocation3 + $0x48] sm:$0xff] %v14463_v29  ;;  %9506 = vrcp.f32 %v6274_v30  ;;  %v6721_v38 = vand.u32 2147483647, %v6274_v30  ;;  %v6723_v32 = vand.u32 2147483648, %v6274_v30  ;;  %vm6717_vm10 = vweird.f32 %v6274_v30 }
 0x99c   : > { %v9503_v15 = vpop.eup %9502  ;;  %v6685_v13 = vmul.f32 %v9499_v18, %v6684_v49 }
 0x99d   : > { %v6276_v3 = vadd.f32 1.0, %v9503_v15  ;;  %v9505_v27 = vpop.eup %9504  ;;  %vm6722_vm12 = vcmp.eq.f32.partialorder %v6721_v38, 8.507059e+37  ;;  %v6724_v23 = vor.u32 1.1754944e-38, %v6723_v32 }
 0x99e   : > { %v6686_v45 = vadd.f32 %v9499_v18, %v6685_v13 }
 0x99f   : > { %9508 = vrcp.f32 %v6276_v3  ;;  %v6753_v43 = vand.u32 2147483648, %v6276_v3  ;;  %v6751_v52 = vand.u32 2147483647, %v6276_v3  ;;  %vm6747_vm14 = vweird.f32 %v6276_v3 }
 0x9a0   : > { %v6690_v26 = vsel %vm6689_vm7, %v9499_v18, %v6686_v45  ;;  %9510 = vtanh.f32 %v9544_v61 }
 0x9a1   : > { %v9507_v40 = vpop.eup %9506  ;;  %v6695_v31 = vsel %vm6692_vm8, %v6694_v53, %v6690_v26  ;;  %9512 = vtanh.f32 %v9545_v11  ;;  %v6754_v55 = vor.u32 1.1754944e-38, %v6753_v43  ;;  %vm6752_vm1 = vcmp.eq.f32.partialorder %v6751_v52, 8.507059e+37 }
 0x9a2   : > { %v14467_v5 = vmul.f32 %v9505_v27, %v6695_v31  ;;  %v6713_v37 = vmul.f32 %v9507_v40, %v6274_v30  ;;  %vm6718_vm9 = vweird.f32 %v9507_v40 }
 0x9a3   : > { %vm6719_vm11 = vmor %vm6717_vm10, %vm6718_vm9 }
 0x9a4   : > { %6976 = vst [vmem:[#allocation2 + $0x28] sm:$0xff] %v14467_v5  ;;  %v6714_v57 = vsub.f32 1.0, %v6713_v37 }
 0x9a5   : > { %v9509_v16 = vpop.eup %9508  ;;  %7008 = vst [vmem:[#allocation3 + $0xc0] sm:$0xff] %v14467_v5 }
 0x9a6   : > { %v6715_v39 = vmul.f32 %v9507_v40, %v6714_v57  ;;  %v6743_v33 = vmul.f32 %v9509_v16, %v6276_v3  ;;  %vm6748_vm13 = vweird.f32 %v9509_v16  ;;  %v9511_v18 = vpop.eup %9510 }
 0x9a7   : > { %vm6749_vm15 = vmor %vm6747_vm14, %vm6748_vm13  ;;  %v9513_v49 = vpop.eup %9512 }
 0x9a8   : > { %v6716_v48 = vadd.f32 %v9507_v40, %v6715_v39  ;;  %v6744_v54 = vsub.f32 1.0, %v6743_v33 }
 0x9aa   : > { %v6720_v24 = vsel %vm6719_vm11, %v9507_v40, %v6716_v48  ;;  %v6745_v14 = vmul.f32 %v9509_v16, %v6744_v54 }
 0x9ab   : > { %v6725_v6 = vsel %vm6722_vm12, %v6724_v23, %v6720_v24 }
 0x9ac   : > { %v6946_v4 = vmul.f32 %v9511_v18, %v6725_v6  ;;  %v6746_v10 = vadd.f32 %v9509_v16, %v6745_v14 }
 0x9ae   : > { %6978 = vst [vmem:[#allocation2 + $0xf8] sm:$0xff] %v6946_v4  ;;  %v6750_v30 = vsel %vm6749_vm15, %v9509_v16, %v6746_v10 }
 0x9af   : > { %7010 = vst [vmem:[#allocation3] sm:$0xff] %v6946_v4  ;;  %v6755_v42 = vsel %vm6752_vm1, %v6754_v55, %v6750_v30  ;;  %7048 = sbr.rel (%p8490_p5) target bundleno = 2516 (0x9d4), region = 80 }
 0x9b0   : > { %v6948_v15 = vmul.f32 %v9513_v49, %v6755_v42 }
 0x9b2   : > { %6980 = vst [vmem:[#allocation2 + $0x98] sm:$0xff] %v6948_v15 }
 0x9b3   : > { %7012 = vst [vmem:[#allocation3 + $0x98] sm:$0xff] %v6948_v15 }
 0x9b4   : > { %7049 = vst [vmem:[%s14618_s7] sm:$0xff] %v14039_v46 }
 0x9b5   : > { %7050 = vst [vmem:[%s14618_s7 + $0x8] sm:$0xff] %v14331_v25 }
 0x9b6   : > { %7051 = vst [vmem:[%s14618_s7 + $0x10] sm:$0xff] %v14058_v17 }
 0x9b7   : > { %7052 = vst [vmem:[%s14618_s7 + $0x18] sm:$0xff] %v14345_v28 }
 0x9b8   : > { %7053 = vst [vmem:[%s14618_s7 + $0x20] sm:$0xff] %v14076_v44 }
 0x9b9   : > { %7054 = vst [vmem:[%s14618_s7 + $0x28] sm:$0xff] %v14355_v1 }
 0x9ba   : > { %7055 = vst [vmem:[%s14618_s7 + $0x30] sm:$0xff] %v14092_v41 }
 0x9bb   : > { %7056 = vst [vmem:[%s14618_s7 + $0x38] sm:$0xff] %v14373_v21 }
 0x9bc   : > { %7057 = vst [vmem:[%s14618_s7 + $0x40] sm:$0xff] %v14117_v63 }
 0x9bd   : > { %7058 = vst [vmem:[%s14618_s7 + $0x48] sm:$0xff] %v14388_v9 }
 0x9be   : > { %7059 = vst [vmem:[%s14618_s7 + $0x50] sm:$0xff] %v14138_v20 }
 0x9bf   : > { %7060 = vst [vmem:[%s14618_s7 + $0x58] sm:$0xff] %v14398_v51 }
 0x9c0   : > { %7061 = vst [vmem:[%s14618_s7 + $0x60] sm:$0xff] %v14153_v22 }
 0x9c1   : > { %7062 = vst [vmem:[%s14618_s7 + $0x68] sm:$0xff] %v14410_v62 }
 0x9c2   : > { %7063 = vst [vmem:[%s14618_s7 + $0x70] sm:$0xff] %v14171_v2 }
 0x9c3   : > { %7064 = vst [vmem:[%s14618_s7 + $0x78] sm:$0xff] %v14418_v59 }
 0x9c4   : > { %7065 = vst [vmem:[%s14618_s7 + $0x80] sm:$0xff] %v14187_v47 }
 0x9c5   : > { %7066 = vst [vmem:[%s14618_s7 + $0x88] sm:$0xff] %v14429_v60 }
 0x9c6   : > { %7067 = vst [vmem:[%s14618_s7 + $0x90] sm:$0xff] %v14210_v58 }
 0x9c7   : > { %7068 = vst [vmem:[%s14618_s7 + $0x98] sm:$0xff] %v14439_v8 }
 0x9c8   : > { %7069 = vst [vmem:[%s14618_s7 + $0xa0] sm:$0xff] %v14232_v56 }
 0x9c9   : > { %7070 = vst [vmem:[%s14618_s7 + $0xa8] sm:$0xff] %v14448_v34 }
 0x9ca   : > { %7071 = vst [vmem:[%s14618_s7 + $0xb0] sm:$0xff] %v14246_v0 }
 0x9cb   : > { %7072 = vst [vmem:[%s14618_s7 + $0xb8] sm:$0xff] %v14456_v7 }
 0x9cc   : > { %7073 = vst [vmem:[%s14618_s7 + $0xc0] sm:$0xff] %v14262_v36 }
 0x9cd   : > { %7074 = vst [vmem:[%s14618_s7 + $0xc8] sm:$0xff] %v14463_v29 }
 0x9ce   : > { %7075 = vst [vmem:[%s14618_s7 + $0xd0] sm:$0xff] %v14276_v19 }
 0x9cf   : > { %7076 = vst [vmem:[%s14618_s7 + $0xd8] sm:$0xff] %v14467_v5 }
 0x9d0   : > { %7077 = vst [vmem:[%s14618_s7 + $0xe0] sm:$0xff] %v14297_v35 }
 0x9d1   : > { %7078 = vst [vmem:[%s14618_s7 + $0xe8] sm:$0xff] %v6946_v4 }
 0x9d2   : > { %7079 = vst [vmem:[%s14618_s7 + $0xf0] sm:$0xff] %v14317_v12 }
 0x9d3   : > { %7080 = vst [vmem:[%s14618_s7 + $0xf8] sm:$0xff] %v6948_v15 }
 0x9d4 PF: > { %s15159_s27 = sld [smem:[#allocation20_spill]]  ;;  %s15162_s24 = smov %s9764_s25 }
 0x9d5   : > { %s15160_s28 = sld [smem:[#allocation19_spill]] }
 0x9d6   : > { %s15161_s26 = sld [smem:[#allocation21_spill]] }
 0x9da   : > { %p24_p7 = scmp.ge.s32.totalorder %s15159_s27, 6  }
 0x9db   : > { %s15163_s25 = smov %s15160_s28 }
 0x9dc   :  { %26 = sbr.rel (!%p24_p7) target bundleno = 12 (0xc), region = 145 }
 0x9e1   :  { %7092 = vsyncpa [#allocation6], 1 }
 0x9e2   :  { %7094 = vsyncpa [#allocation6 + $0x1], 1 }
 0x9e3   :  { %7095 = vsyncpa [#allocation8], 1 }
 0x9e4   :  { %7097 = vsyncpa [#allocation8 + $0x1], 1 }
 0x9e5   :  { %7098 = vsyncpa [#allocation11], 1 }
 0x9e6   :  { %7100 = vsyncpa [#allocation11 + $0x1], 1 }
 0x9e7   :  { %7101 = vsyncpa [#allocation14], 1 }
 0x9e8   :  { %7103 = vsyncpa [#allocation14 + $0x1], 1 }

</bundles_post_ra>
